<compile_context>
chip_gen: v7x
topology: tpu7x:2x2x1
jax: 0.10.0
libtpu: 0.0.40
codegen_flags: <defaults>
</compile_context>

<pallas_src>
import functools
import math

import jax
import jax.numpy as jnp
from jax import lax
from jax.experimental import pallas as pl
from jax.experimental.pallas import tpu as pltpu

LANE = 128
SUB = 8
F32 = jnp.float32
BF16 = jnp.bfloat16


# ----------------------------------------------------------------------------
# small helpers
# ----------------------------------------------------------------------------
def _ru(x, m):
    return (x + m - 1) // m * m


def _pad_rows(n):
    # small inputs: one block (single grid step, minimal dispatch overhead);
    # large inputs: 256-row multiples so row grids actually pipeline.
    return _ru(n, SUB) if n <= 256 else _ru(n, 256)


def _row_tile(m):
    return m if m <= 256 else 256


def _edge_pad(e):
    return _ru(e, LANE) if e <= 512 else _ru(e, 512)


def _edge_tile(e_pad):
    return e_pad if e_pad <= 512 else 512


def _silu(x):
    return x * jax.nn.sigmoid(x)


def _gelu_tanh(x):
    # TODO(synk): tanh-approximate GELU (EUP-friendly); torch nn.GELU() default is
    # exact erf (difference < 1e-3 relative).
    c = math.sqrt(2.0 / math.pi)
    return 0.5 * x * (1.0 + jnp.tanh(c * (x + 0.044715 * x * x * x)))


def _act(x, act):
    if act == "silu":
        return _silu(x)
    if act == "gelu":
        return _gelu_tanh(x)
    return x


def _bdot(a, w_ref, bias_ref=None):
    """bf16 MXU dot with f32 accumulation (+ optional f32 bias)."""
    r = jnp.dot(a.astype(BF16), w_ref[...], preferred_element_type=F32)
    if bias_ref is not None:
        r = r + bias_ref[...]
    return r


_DN_T = (((0,), (0,)), ((), ()))   # contract dim 0 of both operands (lhs transposed)


# ----------------------------------------------------------------------------
# generic fused dense kernels (2-layer MLP / single Linear), row-tiled grid
# ----------------------------------------------------------------------------
def _mlp2_kernel(x_ref, w0_ref, b0_ref, w1_ref, b1_ref, o_ref, *, act1, act2):
    h = _act(_bdot(x_ref[...], w0_ref, b0_ref), act1)
    o_ref[...] = _act(_bdot(h, w1_ref, b1_ref), act2)


def pallas_mlp2(x, l0, l1, act1="silu", act2="none"):
    M, K0 = x.shape
    N0 = l0["w"].shape[1]
    N1 = l1["w"].shape[1]
    T = _row_tile(M)
    return pl.pallas_call(
        functools.partial(_mlp2_kernel, act1=act1, act2=act2),
        out_shape=jax.ShapeDtypeStruct((M, N1), F32),
        grid=(M // T,),
        in_specs=[
            pl.BlockSpec((T, K0), lambda i: (i, 0)),
            pl.BlockSpec((K0, N0), lambda i: (0, 0)),
            pl.BlockSpec((1, N0), lambda i: (0, 0)),
            pl.BlockSpec((N0, N1), lambda i: (0, 0)),
            pl.BlockSpec((1, N1), lambda i: (0, 0)),
        ],
        out_specs=pl.BlockSpec((T, N1), lambda i: (i, 0)),
        compiler_params=pltpu.CompilerParams(dimension_semantics=("parallel",)),
    )(x, l0["w"], l0["b"], l1["w"], l1["b"])


def _lin1_kernel(x_ref, w_ref, b_ref, o_ref, *, act):
    o_ref[...] = _act(_bdot(x_ref[...], w_ref, b_ref), act)


def pallas_linear1(x, lin, act="none"):
    M, K = x.shape
    N = lin["w"].shape[1]
    T = _row_tile(M)
    return pl.pallas_call(
        functools.partial(_lin1_kernel, act=act),
        out_shape=jax.ShapeDtypeStruct((M, N), F32),
        grid=(M // T,),
        in_specs=[
            pl.BlockSpec((T, K), lambda i: (i, 0)),
            pl.BlockSpec((K, N), lambda i: (0, 0)),
            pl.BlockSpec((1, N), lambda i: (0, 0)),
        ],
        out_specs=pl.BlockSpec((T, N), lambda i: (i, 0)),
        compiler_params=pltpu.CompilerParams(dimension_semantics=("parallel",)),
    )(x, lin["w"], lin["b"])


# ----------------------------------------------------------------------------
# fused node-embedding kernel: ss_mlp(x) and ss_embedding(b_type) in one call,
# second-layer weights are column-shifted at init so the output slab is already
# feats = cat([b_embed, x_embed]) in lane-padded layout.
# ----------------------------------------------------------------------------
def _node_embed_kernel(x_ref, bt_ref,
                       wx0_ref, bx0_ref, wx1_ref, bx1_ref,
                       wb0_ref, bb0_ref, wb1_ref, bb1_ref, o_ref):
    hx = _silu(_bdot(x_ref[...], wx0_ref, bx0_ref))
    xe = _bdot(hx, wx1_ref, bx1_ref)            # lands in columns [EMB, 2*EMB)
    hb = _silu(_bdot(bt_ref[...], wb0_ref, bb0_ref))
    be = _bdot(hb, wb1_ref, bb1_ref)            # lands in columns [0, EMB)
    o_ref[...] = be + xe


def pallas_node_embed(xp, btp, emb):
    M, Kx = xp.shape
    Kb = btp.shape[1]
    H0 = emb["wx0"].shape[1]
    F0 = emb["wx1"].shape[1]
    T = _row_tile(M)
    return pl.pallas_call(
        _node_embed_kernel,
        out_shape=jax.ShapeDtypeStruct((M, F0), F32),
        grid=(M // T,),
        in_specs=[
            pl.BlockSpec((T, Kx), lambda i: (i, 0)),
            pl.BlockSpec((T, Kb), lambda i: (i, 0)),
            pl.BlockSpec((Kx, H0), lambda i: (0, 0)),
            pl.BlockSpec((1, H0), lambda i: (0, 0)),
            pl.BlockSpec((H0, F0), lambda i: (0, 0)),
            pl.BlockSpec((1, F0), lambda i: (0, 0)),
            pl.BlockSpec((Kb, H0), lambda i: (0, 0)),
            pl.BlockSpec((1, H0), lambda i: (0, 0)),
            pl.BlockSpec((H0, F0), lambda i: (0, 0)),
            pl.BlockSpec((1, F0), lambda i: (0, 0)),
        ],
        out_specs=pl.BlockSpec((T, F0), lambda i: (i, 0)),
        compiler_params=pltpu.CompilerParams(dimension_semantics=("parallel",)),
    )(xp, btp, emb["wx0"], emb["bx0"], emb["wx1"], emb["bx1"],
      emb["wb0"], emb["bb0"], emb["wb1"], emb["bb1"])


# ----------------------------------------------------------------------------
# fused EGNN layer kernel:
#   grid over 128/512-row edge tiles (axis "arbitrary"):
#     in-kernel gather (bf16 one-hot mask matmuls) -> edge MLP -> edge-update head
#     -> coord weights -> scatter-add via transposed-contraction dot into VMEM
#        scratch accumulators (pl.when init at step 0);
#   on the LAST grid step (pl.when): node MLP + coord update + time FiLM +
#   graph-mode LayerNorm + GELU feed-forward + residual, written to resident outputs.
# TODO(synk): resident (n_pad, .) node tables assume modest graphs; large N needs a
# DMA-gather / dst-sorted-segment formulation (see header TODO).
# ----------------------------------------------------------------------------
def _layer_kernel(src_ref, dst_ref, ea_ref, feats_ref, coors_ref, t_ref,
                  batch_ref, invn_ref,
                  w0xi_ref, w0xj_ref, w0ea_ref, w0rd_ref, b0_ref,
                  w1_ref, b1_ref,
                  wue_ref, wum_ref, bu_ref,
                  wc0_ref, bc0_ref, wc1_ref, bc1_ref,
                  wn0f_ref, wn0m_ref, bn0_ref, wn1_ref, bn1_ref,
                  wt_ref, bt_ref, lnw_ref, lnb_ref,
                  wf0_ref, bf0_ref, wf1_ref, bf1_ref,
                  eo_ref, co_ref, fo_ref,
                  magg_ref, cagg_ref, *, eps, h_pad):
    step = pl.program_id(0)

    @pl.when(step == 0)
    def _init():
        magg_ref[...] = jnp.zeros_like(magg_ref)
        cagg_ref[...] = jnp.zeros_like(cagg_ref)

    feats_bf = feats_ref[...].astype(BF16)      # (Np, Fp) resident node features
    coors_bf = coors_ref[...].astype(BF16)      # (Np, 128) xyz in lanes 0..2
    ea = ea_ref[...]                            # (T, EMBp) edge attrs of this tile
    ea_bf = ea.astype(BF16)
    n_pad = feats_bf.shape[0]
    t = ea.shape[0]

    # --- in-kernel gather of edge endpoints (bf16 one-hot mask matmuls) ---
    src_c = src_ref[...]                        # (T, 1) int32, padded edges = -1
    dst_c = dst_ref[...]                        # (T, 1)
    nid = lax.broadcasted_iota(jnp.int32, (t, n_pad), 1)
    sel_i = (nid == dst_c).astype(BF16)         # selects target node i
    sel_j = (nid == src_c).astype(BF16)         # selects source node j
    x_i = jnp.dot(sel_i, feats_bf, preferred_element_type=F32)
    x_j = jnp.dot(sel_j, feats_bf, preferred_element_type=F32)
    rel = (jnp.dot(sel_j, coors_bf, preferred_element_type=F32)
           - jnp.dot(sel_i, coors_bf, preferred_element_type=F32))          # (T, 128)
    rd = jnp.sum(rel * rel, axis=-1, keepdims=True)                         # (T, 1)

    # --- edge_mlp: Linear(cat[x_i, x_j, edge_attr, rel_dist]) as split-K dots ---
    h = (_bdot(x_i, w0xi_ref) + _bdot(x_j, w0xj_ref) + _bdot(ea_bf, w0ea_ref)
         + rd * w0rd_ref[...] + b0_ref[...])
    m_ij = _silu(_bdot(_silu(h), w1_ref, b1_ref))
    m_bf = m_ij.astype(BF16)

    # --- edge-attribute update head: Linear(cat[edge_attr, m_ij]) ---
    eo_ref[...] = _silu(_bdot(ea_bf, wue_ref) + _bdot(m_bf, wum_ref) + bu_ref[...])

    # --- coordinate weights ---
    cw = _silu(_bdot(m_bf, wc0_ref, bc0_ref))
    cwt = _bdot(cw, wc1_ref, bc1_ref)                                       # lane 0 valid
    w_rel = cwt[:, 0:1] * rel                                               # (T, 128)

    # --- scatter-add via the transposed gather mask (no second mask / iota) ---
    magg_ref[...] += lax.dot_general(sel_i, m_bf, _DN_T, preferred_element_type=F32)
    cagg_ref[...] += lax.dot_general(sel_i, w_rel.astype(BF16), _DN_T,
                                     preferred_element_type=F32)

    # --- fused node pass on the last grid step (accumulators already resident) ---
    @pl.when(step == pl.num_programs(0) - 1)
    def _node():
        batch_c = batch_ref[...]                                            # (Np, 1)
        valid = (batch_c >= 0).astype(F32)                                  # 0 for pad rows
        co_ref[...] = (coors_ref[...] + cagg_ref[...]) * valid

        # node MLP on cat([feats, m_i]) as split-K dots
        nh = _silu(_bdot(feats_bf, wn0f_ref) + _bdot(magg_ref[...], wn0m_ref)
                   + bn0_ref[...])
        hid = _bdot(nh, wn1_ref, bn1_ref)                                   # (Np, Hp)

        # time conditioning: Sequential(SiLU, Linear(EMB, 2H)) as ONE fused dot
        tact = _silu(t_ref[...])                                            # (Gp, EMBp)
        ts = _bdot(tact, wt_ref, bt_ref)                                    # (Gp, 2Hp)
        scale_g = ts[:, :h_pad]
        shift_g = ts[:, h_pad:]

        g_pad = ts.shape[0]
        gmask = (lax.broadcasted_iota(jnp.int32, (n_pad, g_pad), 1)
                 == batch_c).astype(F32)                                    # (Np, Gp)

        # FiLM: feats * (scale + 1) + shift (per-graph -> per-node via mask matmul)
        x = (hid * (jnp.dot(gmask, scale_g, preferred_element_type=F32) + 1.0)
             + jnp.dot(gmask, shift_g, preferred_element_type=F32))

        # PyG graph-mode LayerNorm: per-graph mean / variance over nodes & channels
        inv = invn_ref[...]                                                 # (Gp,1)=1/(cnt*C)
        sum_gc = lax.dot_general(gmask, x, _DN_T, preferred_element_type=F32)
        sq_gc = lax.dot_general(gmask, x * x, _DN_T, preferred_element_type=F32)
        mean_g = jnp.sum(sum_gc, axis=-1, keepdims=True) * inv
        var_g = jnp.maximum(jnp.sum(sq_gc, axis=-1, keepdims=True) * inv
                            - mean_g * mean_g, 0.0)
        mean_n = jnp.dot(gmask, mean_g, preferred_element_type=F32)
        var_n = jnp.dot(gmask, var_g, preferred_element_type=F32)
        normed = (x - mean_n) * lax.rsqrt(var_n + eps) * lnw_ref[...] + lnb_ref[...]

        # feed-forward (GELU) + residual; dropout is identity in eval mode.
        fh = _gelu_tanh(_bdot(normed, wf0_ref, bf0_ref))
        ff = _bdot(fh, wf1_ref, bf1_ref) + normed
        fo_ref[...] = ff * valid        # zero padded node rows (keeps next layer clean)


def egnn_layer_pass(lp, src_c, dst_c, edge_attr, feats, coors, t_emb, batch_c, invn,
                    h_pad, eps=1e-5):
    n_pad, f_p = feats.shape
    e_pad, emb_p = edge_attr.shape
    g_pad = t_emb.shape[0]
    n2_p = lp["b_e0"].shape[1]
    h_p = lp["w_e1"].shape[1]
    h4_p = lp["w_c0"].shape[1]
    T = _edge_tile(e_pad)

    def const(shape):
        return pl.BlockSpec(shape, lambda i: (0, 0))

    return pl.pallas_call(
        functools.partial(_layer_kernel, eps=eps, h_pad=h_pad),
        out_shape=(jax.ShapeDtypeStruct((e_pad, emb_p), F32),
                   jax.ShapeDtypeStruct((n_pad, LANE), F32),
                   jax.ShapeDtypeStruct((n_pad, h_p), F32)),
        grid=(e_pad // T,),
        in_specs=[
            pl.BlockSpec((T, 1), lambda i: (i, 0)),          # src indices
            pl.BlockSpec((T, 1), lambda i: (i, 0)),          # dst indices
            pl.BlockSpec((T, emb_p), lambda i: (i, 0)),      # edge attrs tile
            const((n_pad, f_p)),                             # node feats (resident)
            const((n_pad, LANE)),                            # node coords (resident)
            const((g_pad, emb_p)),                           # time embedding
            const((n_pad, 1)),                               # batch index per node
            const((g_pad, 1)),                               # 1/(count*H) per graph
            const((f_p, n2_p)), const((f_p, n2_p)), const((emb_p, n2_p)),
            const((1, n2_p)), const((1, n2_p)),
            const((n2_p, h_p)), const((1, h_p)),
            const((emb_p, emb_p)), const((h_p, emb_p)), const((1, emb_p)),
            const((h_p, h4_p)), const((1, h4_p)),
            const((h4_p, LANE)), const((1, LANE)),
            const((f_p, h_p)), const((h_p, h_p)), const((1, h_p)),
            const((h_p, h_p)), const((1, h_p)),
            const((emb_p, 2 * h_p)), const((1, 2 * h_p)),
            const((1, h_p)), const((1, h_p)),
            const((h_p, h4_p)), const((1, h4_p)),
            const((h4_p, h_p)), const((1, h_p)),
        ],
        out_specs=(
            pl.BlockSpec((T, emb_p), lambda i: (i, 0)),      # updated edge attrs
            pl.BlockSpec((n_pad, LANE), lambda i: (0, 0)),   # updated coords (resident)
            pl.BlockSpec((n_pad, h_p), lambda i: (0, 0)),    # updated feats (resident)
        ),
        scratch_shapes=[pltpu.VMEM((n_pad, h_p), F32),       # message accumulator
                        pltpu.VMEM((n_pad, LANE), F32)],     # coord accumulator
        compiler_params=pltpu.CompilerParams(
            dimension_semantics=("arbitrary",),
            vmem_limit_bytes=64 * 1024 * 1024),
    )(src_c, dst_c, edge_attr, feats, coors, t_emb, batch_c, invn,
      lp["w_e0_xi"], lp["w_e0_xj"], lp["w_e0_ea"], lp["w_e0_rd"], lp["b_e0"],
      lp["w_e1"], lp["b_e1"],
      lp["w_eu_ea"], lp["w_eu_m"], lp["b_eu"],
      lp["w_c0"], lp["b_c0"], lp["w_c1"], lp["b_c1"],
      lp["w_n0_f"], lp["w_n0_m"], lp["b_n0"], lp["w_n1"], lp["b_n1"],
      lp["w_t"], lp["b_t"], lp["ln_w"], lp["ln_b"],
      lp["w_f0"], lp["b_f0"], lp["w_f1"], lp["b_f1"])


# ----------------------------------------------------------------------------
# parameters: torch-Linear-style init, padded/split/bf16-cast ONCE at init
# ----------------------------------------------------------------------------
def _raw_linear(key, fan_in, fan_out):
    k1, k2 = jax.random.split(key)
    bound = 1.0 / math.sqrt(fan_in)
    w = jax.random.uniform(k1, (fan_in, fan_out), F32, -bound, bound)
    b = jax.random.uniform(k2, (fan_out,), F32, -bound, bound)
    return w, b


def _pad_w(w, kp=None, npad=None, col_off=0, dtype=BF16):
    k, n = w.shape
    kp = _ru(k, LANE) if kp is None else kp
    npad = _ru(n, LANE) if npad is None else npad
    out = jnp.zeros((kp, npad), F32).at[:k, col_off:col_off + n].set(w)
    return out.astype(dtype)


def _pad_b(b, npad=None, col_off=0):
    n = b.shape[0]
    npad = _ru(n, LANE) if npad is None else npad
    return jnp.zeros((1, npad), F32).at[0, col_off:col_off + n].set(b)


def _pad_lin(key, fan_in, fan_out):
    w, b = _raw_linear(key, fan_in, fan_out)
    return {"w": _pad_w(w), "b": _pad_b(b)}


def init_params(key, input_dim, H, EMB, n_layers, ss_type_num):
    keys = iter(jax.random.split(key, 9 + 10 * n_layers))

    emb_p = _ru(EMB, LANE)
    h_p = _ru(H, LANE)
    h4_p = _ru(4 * H, LANE)
    f0_p = _ru(2 * EMB, LANE)

    # fused node-embedding: ss_mlp output columns shifted to [EMB, 2*EMB)
    wx0, bx0 = _raw_linear(next(keys), input_dim, H)
    wx1, bx1 = _raw_linear(next(keys), H, EMB)
    wb0, bb0 = _raw_linear(next(keys), ss_type_num, H)
    wb1, bb1 = _raw_linear(next(keys), H, EMB)
    embed = {
        "wx0": _pad_w(wx0, npad=h_p), "bx0": _pad_b(bx0, h_p),
        "wx1": _pad_w(wx1, kp=h_p, npad=f0_p, col_off=EMB),
        "bx1": _pad_b(bx1, f0_p, col_off=EMB),
        "wb0": _pad_w(wb0, npad=h_p), "bb0": _pad_b(bb0, h_p),
        "wb1": _pad_w(wb1, kp=h_p, npad=f0_p), "bb1": _pad_b(bb1, f0_p),
    }

    p = {
        "input_dim": input_dim, "H": H, "EMB": EMB, "ss_type_num": ss_type_num,
        "embed": embed,
        "time_mlp0": _pad_lin(next(keys), H, H),
        "time_mlp1": _pad_lin(next(keys), H, EMB),
        "edge_emb": _pad_lin(next(keys), 1, EMB),
        "decode0": _pad_lin(next(keys), H, H),
        "decode1": _pad_lin(next(keys), H, input_dim + ss_type_num),
        "layers": [],
    }

    # TODO(synk): EGNN_Sparse source was not shipped with the module; this follows the
    # egnn_pytorch-style sparse layer (edge MLP -> coord update -> node MLP, sum
    # aggregation by target node) with a SiLU edge-update head, as implied by the
    # constructor arguments (m_dim/hidden_dim/out_dim/edge_attr_dim/update_edge).
    for i in range(n_layers):
        F = 2 * EMB if i == 0 else H
        f_p = f0_p if i == 0 else h_p
        edge_in = EMB + 1 + 2 * F
        n2 = 2 * edge_in
        n2_p = _ru(n2, LANE)

        w_e0, b_e0 = _raw_linear(next(keys), edge_in, n2)
        w_e1, b_e1 = _raw_linear(next(keys), n2, H)
        w_eu, b_eu = _raw_linear(next(keys), EMB + H, EMB)
        w_c0, b_c0 = _raw_linear(next(keys), H, 4 * H)
        w_c1, b_c1 = _raw_linear(next(keys), 4 * H, 1)
        w_n0, b_n0 = _raw_linear(next(keys), F + H, H)
        w_n1, b_n1 = _raw_linear(next(keys), H, H)
        w_t, b_t = _raw_linear(next(keys), EMB, 2 * H)
        w_f0, b_f0 = _raw_linear(next(keys), H, 4 * H)
        w_f1, b_f1 = _raw_linear(next(keys), 4 * H, H)

        # fused time-conditioning weight: scale -> cols [0,H), shift -> cols [h_p,h_p+H)
        w_t_full = (jnp.zeros((emb_p, 2 * h_p), F32)
                    .at[:EMB, :H].set(w_t[:, :H])
                    .at[:EMB, h_p:h_p + H].set(w_t[:, H:]))
        b_t_full = (jnp.zeros((1, 2 * h_p), F32)
                    .at[0, :H].set(b_t[:H])
                    .at[0, h_p:h_p + H].set(b_t[H:]))

        p["layers"].append({
            # edge_mlp0: split along K for cat([x_i, x_j, edge_attr, rel_dist])
            "w_e0_xi": _pad_w(w_e0[0:F], kp=f_p, npad=n2_p),
            "w_e0_xj": _pad_w(w_e0[F:2 * F], kp=f_p, npad=n2_p),
            "w_e0_ea": _pad_w(w_e0[2 * F:2 * F + EMB], kp=emb_p, npad=n2_p),
            "w_e0_rd": _pad_w(w_e0[2 * F + EMB:2 * F + EMB + 1], kp=1, npad=n2_p,
                              dtype=F32),   # used elementwise, stays f32
            "b_e0": _pad_b(b_e0, n2_p),
            "w_e1": _pad_w(w_e1, kp=n2_p, npad=h_p),
            "b_e1": _pad_b(b_e1, h_p),
            # edge update head: split for cat([edge_attr, m_ij])
            "w_eu_ea": _pad_w(w_eu[0:EMB], kp=emb_p, npad=emb_p),
            "w_eu_m": _pad_w(w_eu[EMB:EMB + H], kp=h_p, npad=emb_p),
            "b_eu": _pad_b(b_eu, emb_p),
            # coors MLP
            "w_c0": _pad_w(w_c0, kp=h_p, npad=h4_p),
            "b_c0": _pad_b(b_c0, h4_p),
            "w_c1": _pad_w(w_c1, kp=h4_p, npad=LANE),
            "b_c1": _pad_b(b_c1, LANE),
            # node MLP: split for cat([feats, m_i])
            "w_n0_f": _pad_w(w_n0[0:F], kp=f_p, npad=h_p),
            "w_n0_m": _pad_w(w_n0[F:F + H], kp=h_p, npad=h_p),
            "b_n0": _pad_b(b_n0, h_p),
            "w_n1": _pad_w(w_n1, kp=h_p, npad=h_p),
            "b_n1": _pad_b(b_n1, h_p),
            # fused time conditioning
            "w_t": w_t_full.astype(BF16),
            "b_t": b_t_full,
            # graph LayerNorm affine
            "ln_w": _pad_b(jnp.ones((H,), F32), h_p),
            "ln_b": _pad_b(jnp.zeros((H,), F32), h_p),
            # feed-forward
            "w_f0": _pad_w(w_f0, kp=h_p, npad=h4_p),
            "b_f0": _pad_b(b_f0, h4_p),
            "w_f1": _pad_w(w_f1, kp=h4_p, npad=h_p),
            "b_f1": _pad_b(b_f1, h_p),
        })
    return p


# ----------------------------------------------------------------------------
# forward pass
# ----------------------------------------------------------------------------
def sinusoidal_pos_emb(t, dim):
    half = dim // 2
    scale = math.log(10000.0) / (half - 1)
    freqs = jnp.exp(jnp.arange(half, dtype=F32) * -scale)
    arg = t.astype(F32)[:, None] * freqs[None, :]
    return jnp.concatenate([jnp.sin(arg), jnp.cos(arg)], axis=-1)


def _pad2(x, rows, cols):
    r, c = x.shape
    return jnp.zeros((rows, cols), F32).at[:r, :c].set(x.astype(F32))


def egnn_net2_forward(params, data, time, num_graphs):
    x = data["x"]
    b_pos = data["b_pos"]
    edge_index = data["b_edge_index"]
    b_edge_attr = data["b_edge_attr"]
    b_type = data["b_type"]
    batch = data["batch"]

    input_dim = params["input_dim"]
    H = params["H"]
    EMB = params["EMB"]
    ss_type_num = params["ss_type_num"]

    N = x.shape[0]
    E = edge_index.shape[1]
    G = num_graphs
    n_pad = _pad_rows(N)
    e_pad = _edge_pad(E)
    g_pad = _ru(G, SUB)
    h_p = _ru(H, LANE)

    # ---- one-time padding to lane/sublane-aligned layouts (kept end-to-end) ----
    x_p = _pad2(x, n_pad, _ru(input_dim, LANE))
    btype_p = _pad2(b_type.astype(F32), n_pad, _ru(ss_type_num, LANE))
    coors = _pad2(b_pos, n_pad, LANE)                  # xyz in lanes 0..2
    bea_p = _pad2(b_edge_attr, e_pad, LANE)

    src = edge_index[0].astype(jnp.int32)
    dst = edge_index[1].astype(jnp.int32)
    src_c = jnp.full((e_pad, 1), -1, jnp.int32).at[:E, 0].set(src)
    dst_c = jnp.full((e_pad, 1), -1, jnp.int32).at[:E, 0].set(dst)

    batch_i = batch.astype(jnp.int32)
    batch_c = jnp.full((n_pad, 1), -1, jnp.int32).at[:N, 0].set(batch_i)

    cnt = jnp.zeros((G,), F32).at[batch_i].add(1.0)
    invn = jnp.zeros((g_pad, 1), F32).at[:G, 0].set(1.0 / (jnp.maximum(cnt, 1.0) * H))

    # ---- input embeddings (fused kernels) ----
    feats = pallas_node_embed(x_p, btype_p, params["embed"])      # cat([b_embed, x_embed])
    pe = _pad2(sinusoidal_pos_emb(time, H), g_pad, h_p)
    t_emb = pallas_mlp2(pe, params["time_mlp0"], params["time_mlp1"], "silu", "none")
    edge_attr = pallas_linear1(bea_p, params["edge_emb"], "none")

    # ---- message-passing layers: ONE fused pallas_call per layer ----
    for lp in params["layers"]:
        edge_attr, coors, feats = egnn_layer_pass(
            lp, src_c, dst_c, edge_attr, feats, coors, t_emb, batch_c, invn, h_pad=h_p)

    # ---- decode (fused 2-layer MLP); F.dropout(training=False) is identity ----
    out = pallas_mlp2(feats, params["decode0"], params["decode1"], "silu", "none")
    return out[:N, :input_dim], out[:N, input_dim:input_dim + ss_type_num]


# ----------------------------------------------------------------------------
# demo
# ----------------------------------------------------------------------------
if __name__ == "__main__":
    INPUT_DIM = 8
    HIDDEN = 32
    EMB = 24
    N_LAYERS = 2
    SS_TYPE = 3
    N_NODES = 16
    N_EDGES = 48
    N_GRAPHS = 2

    params = init_params(jax.random.PRNGKey(12345), INPUT_DIM, HIDDEN, EMB,
                         N_LAYERS, SS_TYPE)

    key = jax.random.PRNGKey(0)
    ks = jax.random.split(key, 12)
    x = jax.random.normal(ks[0], (N_NODES, INPUT_DIM), F32)
    b_pos = jax.random.normal(ks[1], (N_NODES, 3), F32)
    # graph-consistent random edges (graph 0: nodes [0,8), graph 1: [8,16))
    src0 = jax.random.randint(ks[2], (N_EDGES // 2,), 0, N_NODES // 2)
    dst0 = jax.random.randint(ks[3], (N_EDGES // 2,), 0, N_NODES // 2)
    src1 = jax.random.randint(ks[4], (N_EDGES // 2,), N_NODES // 2, N_NODES)
    dst1 = jax.random.randint(ks[5], (N_EDGES // 2,), N_NODES // 2, N_NODES)
    edge_index = jnp.stack([jnp.concatenate([src0, src1]),
                            jnp.concatenate([dst0, dst1])]).astype(jnp.int32)
    b_edge_attr = jax.random.normal(ks[6], (N_EDGES, 1), F32)
    b_type = jax.nn.one_hot(jax.random.randint(ks[7], (N_NODES,), 0, SS_TYPE),
                            SS_TYPE, dtype=F32)
    batch = jnp.concatenate([jnp.zeros((N_NODES // 2,), jnp.int32),
                             jnp.ones((N_NODES - N_NODES // 2,), jnp.int32)])
    time = jax.random.uniform(ks[8], (N_GRAPHS,), F32, 0.0, 1000.0)

    data = dict(x=x, b_pos=b_pos, b_edge_index=edge_index, b_edge_attr=b_edge_attr,
                b_type=b_type, batch=batch)

    forward = jax.jit(functools.partial(egnn_net2_forward, params, num_graphs=N_GRAPHS))
    out_x, out_ss = forward(data, time)
    jax.block_until_ready((out_x, out_ss))
    assert out_x.shape == (N_NODES, INPUT_DIM)
    assert out_ss.shape == (N_NODES, SS_TYPE)
    assert bool(jnp.all(jnp.isfinite(out_x))) and bool(jnp.all(jnp.isfinite(out_ss)))
    print("KERNEL_OK")
</pallas_src>

<mosaic_0001>
module attributes {stable_mosaic.version = 11 : i64} {
  func.func private @main(%arg0: i32) attributes {dimension_semantics = [#tpu.dimension_semantics<core_parallel>], iteration_bounds = array<i64: 2>, tpu.core_type = #tpu.core_type<sc_scalar_subcore>, window_params = []} {
    return
  }
}

module attributes {stable_mosaic.version = 11 : i64} {
  func.func private @main(%arg0: i32) attributes {dimension_semantics = [#tpu.dimension_semantics<core_parallel>], iteration_bounds = array<i64: 2>, tpu.core_type = #tpu.core_type<sc_scalar_subcore>, window_params = []} {
    return
  }
}

module attributes {stable_mosaic.version = 11 : i64} {
  func.func @_lin1_kernel(%arg0: i32, %arg1: memref<128x128xf32, #tpu.memory_space<vmem>>, %arg2: memref<128x128xbf16, #tpu.memory_space<vmem>>, %arg3: memref<1x128xf32, #tpu.memory_space<vmem>>, %arg4: memref<128x128xf32, #tpu.memory_space<vmem>>) attributes {dimension_semantics = [#tpu.dimension_semantics<parallel>], iteration_bounds = array<i64: 1>, scalar_prefetch = 0 : i64, scratch_operands = 0 : i64, tpu.core_type = #tpu.core_type<tc>, window_params = [{transform_indices = @transform_0, window_bounds = array<i64: 128, 128>}, {pipeline_mode = #tpu.pipeline_mode<synchronous>, transform_indices = @transform_1, window_bounds = array<i64: 128, 128>}, {pipeline_mode = #tpu.pipeline_mode<synchronous>, transform_indices = @transform_2, window_bounds = array<i64: 1, 128>}, {transform_indices = @transform_3, window_bounds = array<i64: 128, 128>}]} {
    %c0 = arith.constant 0 : index
    %c0_0 = arith.constant 0 : index
    %0 = vector.load %arg1[%c0, %c0_0] : memref<128x128xf32, #tpu.memory_space<vmem>>, vector<128x128xf32>
    %1 = arith.truncf %0 : vector<128x128xf32> to vector<128x128xbf16>
    %c0_1 = arith.constant 0 : index
    %c0_2 = arith.constant 0 : index
    %2 = vector.load %arg2[%c0_1, %c0_2] : memref<128x128xbf16, #tpu.memory_space<vmem>>, vector<128x128xbf16>
    %cst = arith.constant dense<0.000000e+00> : vector<128x128xf32>
    %3 = tpu.matmul %1, %2, %cst {dimension_numbers = #tpu.dot_dimension_numbers<[1], [0], [0], [1], [0, 0, 1, 1], [], []>} : vector<128x128xbf16>, vector<128x128xbf16>, vector<128x128xf32> -> vector<128x128xf32>
    %c0_3 = arith.constant 0 : index
    %c0_4 = arith.constant 0 : index
    %4 = vector.load %arg3[%c0_3, %c0_4] : memref<1x128xf32, #tpu.memory_space<vmem>>, vector<1x128xf32>
    %5 = vector.broadcast %4 : vector<1x128xf32> to vector<128x128xf32>
    %6 = arith.addf %3, %5 : vector<128x128xf32>
    %c0_5 = arith.constant 0 : index
    %c0_6 = arith.constant 0 : index
    %7 = vector.load %arg4[%c0_5, %c0_6] : memref<128x128xf32, #tpu.memory_space<vmem>>, vector<128x128xf32>
    tpu.vector_store %arg4[%c0_5, %c0_6], %6 {strides = array<i32>} : memref<128x128xf32, #tpu.memory_space<vmem>>, vector<128x128xf32>,
    return
  }
  func.func @transform_0(%arg0: i32) -> (i32, i32) {
    %c0_i32 = arith.constant 0 : i32
    %c0_i32_0 = arith.constant 0 : i32
    return %arg0, %c0_i32 : i32, i32
  }
  func.func @transform_1(%arg0: i32) -> (i32, i32) {
    %c0_i32 = arith.constant 0 : i32
    %c0_i32_0 = arith.constant 0 : i32
    %c0_i32_1 = arith.constant 0 : i32
    return %c0_i32, %c0_i32_0 : i32, i32
  }
  func.func @transform_2(%arg0: i32) -> (i32, i32) {
    %c0_i32 = arith.constant 0 : i32
    %c0_i32_0 = arith.constant 0 : i32
    %c0_i32_1 = arith.constant 0 : i32
    return %c0_i32, %c0_i32_0 : i32, i32
  }
  func.func @transform_3(%arg0: i32) -> (i32, i32) {
    %c0_i32 = arith.constant 0 : i32
    %c0_i32_0 = arith.constant 0 : i32
    return %arg0, %c0_i32 : i32, i32
  }
}

module attributes {stable_mosaic.version = 11 : i64} {
  func.func @_mlp2_kernel(%arg0: i32, %arg1: memref<8x128xf32, #tpu.memory_space<vmem>>, %arg2: memref<128x128xbf16, #tpu.memory_space<vmem>>, %arg3: memref<1x128xf32, #tpu.memory_space<vmem>>, %arg4: memref<128x128xbf16, #tpu.memory_space<vmem>>, %arg5: memref<1x128xf32, #tpu.memory_space<vmem>>, %arg6: memref<8x128xf32, #tpu.memory_space<vmem>>) attributes {dimension_semantics = [#tpu.dimension_semantics<parallel>], iteration_bounds = array<i64: 1>, scalar_prefetch = 0 : i64, scratch_operands = 0 : i64, tpu.core_type = #tpu.core_type<tc>, window_params = [{transform_indices = @transform_0, window_bounds = array<i64: 8, 128>}, {pipeline_mode = #tpu.pipeline_mode<synchronous>, transform_indices = @transform_1, window_bounds = array<i64: 128, 128>}, {pipeline_mode = #tpu.pipeline_mode<synchronous>, transform_indices = @transform_2, window_bounds = array<i64: 1, 128>}, {pipeline_mode = #tpu.pipeline_mode<synchronous>, transform_indices = @transform_3, window_bounds = array<i64: 128, 128>}, {pipeline_mode = #tpu.pipeline_mode<synchronous>, transform_indices = @transform_4, window_bounds = array<i64: 1, 128>}, {transform_indices = @transform_5, window_bounds = array<i64: 8, 128>}]} {
    %c0 = arith.constant 0 : index
    %c0_0 = arith.constant 0 : index
    %0 = vector.load %arg1[%c0, %c0_0] : memref<8x128xf32, #tpu.memory_space<vmem>>, vector<8x128xf32>
    %1 = arith.truncf %0 : vector<8x128xf32> to vector<8x128xbf16>
    %c0_1 = arith.constant 0 : index
    %c0_2 = arith.constant 0 : index
    %2 = vector.load %arg2[%c0_1, %c0_2] : memref<128x128xbf16, #tpu.memory_space<vmem>>, vector<128x128xbf16>
    %cst = arith.constant dense<0.000000e+00> : vector<8x128xf32>
    %3 = tpu.matmul %1, %2, %cst {dimension_numbers = #tpu.dot_dimension_numbers<[1], [0], [0], [1], [0, 0, 1, 1], [], []>} : vector<8x128xbf16>, vector<128x128xbf16>, vector<8x128xf32> -> vector<8x128xf32>
    %c0_3 = arith.constant 0 : index
    %c0_4 = arith.constant 0 : index
    %4 = vector.load %arg3[%c0_3, %c0_4] : memref<1x128xf32, #tpu.memory_space<vmem>>, vector<1x128xf32>
    %5 = vector.broadcast %4 : vector<1x128xf32> to vector<8x128xf32>
    %6 = arith.addf %3, %5 : vector<8x128xf32>
    %7 = arith.negf %6 : vector<8x128xf32>
    %8 = math.exp %7 : vector<8x128xf32>
    %cst_5 = arith.constant 1.000000e+00 : f32
    %9 = vector.broadcast %cst_5 : f32 to vector<8x128xf32>
    %10 = arith.addf %9, %8 : vector<8x128xf32>
    %11 = arith.divf %9, %10 : vector<8x128xf32>
    %12 = arith.mulf %6, %11 : vector<8x128xf32>
    %13 = arith.truncf %12 : vector<8x128xf32> to vector<8x128xbf16>
    %c0_6 = arith.constant 0 : index
    %c0_7 = arith.constant 0 : index
    %14 = vector.load %arg4[%c0_6, %c0_7] : memref<128x128xbf16, #tpu.memory_space<vmem>>, vector<128x128xbf16>
    %cst_8 = arith.constant dense<0.000000e+00> : vector<8x128xf32>
    %15 = tpu.matmul %13, %14, %cst_8 {dimension_numbers = #tpu.dot_dimension_numbers<[1], [0], [0], [1], [0, 0, 1, 1], [], []>} : vector<8x128xbf16>, vector<128x128xbf16>, vector<8x128xf32> -> vector<8x128xf32>
    %c0_9 = arith.constant 0 : index
    %c0_10 = arith.constant 0 : index
    %16 = vector.load %arg5[%c0_9, %c0_10] : memref<1x128xf32, #tpu.memory_space<vmem>>, vector<1x128xf32>
    %17 = vector.broadcast %16 : vector<1x128xf32> to vector<8x128xf32>
    %18 = arith.addf %15, %17 : vector<8x128xf32>
    %c0_11 = arith.constant 0 : index
    %c0_12 = arith.constant 0 : index
    %19 = vector.load %arg6[%c0_11, %c0_12] : memref<8x128xf32, #tpu.memory_space<vmem>>, vector<8x128xf32>
    tpu.vector_store %arg6[%c0_11, %c0_12], %18 {strides = array<i32>} : memref<8x128xf32, #tpu.memory_space<vmem>>, vector<8x128xf32>,
    return
  }
  func.func @transform_0(%arg0: i32) -> (i32, i32) {
    %c0_i32 = arith.constant 0 : i32
    %c0_i32_0 = arith.constant 0 : i32
    return %arg0, %c0_i32 : i32, i32
  }
  func.func @transform_1(%arg0: i32) -> (i32, i32) {
    %c0_i32 = arith.constant 0 : i32
    %c0_i32_0 = arith.constant 0 : i32
    %c0_i32_1 = arith.constant 0 : i32
    return %c0_i32, %c0_i32_0 : i32, i32
  }
  func.func @transform_2(%arg0: i32) -> (i32, i32) {
    %c0_i32 = arith.constant 0 : i32
    %c0_i32_0 = arith.constant 0 : i32
    %c0_i32_1 = arith.constant 0 : i32
    return %c0_i32, %c0_i32_0 : i32, i32
  }
  func.func @transform_3(%arg0: i32) -> (i32, i32) {
    %c0_i32 = arith.constant 0 : i32
    %c0_i32_0 = arith.constant 0 : i32
    %c0_i32_1 = arith.constant 0 : i32
    return %c0_i32, %c0_i32_0 : i32, i32
  }
  func.func @transform_4(%arg0: i32) -> (i32, i32) {
    %c0_i32 = arith.constant 0 : i32
    %c0_i32_0 = arith.constant 0 : i32
    %c0_i32_1 = arith.constant 0 : i32
    return %c0_i32, %c0_i32_0 : i32, i32
  }
  func.func @transform_5(%arg0: i32) -> (i32, i32) {
    %c0_i32 = arith.constant 0 : i32
    %c0_i32_0 = arith.constant 0 : i32
    return %arg0, %c0_i32 : i32, i32
  }
}

module attributes {stable_mosaic.version = 11 : i64} {
  func.func @_node_embed_kernel(%arg0: i32, %arg1: memref<16x128xf32, #tpu.memory_space<vmem>>, %arg2: memref<16x128xf32, #tpu.memory_space<vmem>>, %arg3: memref<128x128xbf16, #tpu.memory_space<vmem>>, %arg4: memref<1x128xf32, #tpu.memory_space<vmem>>, %arg5: memref<128x128xbf16, #tpu.memory_space<vmem>>, %arg6: memref<1x128xf32, #tpu.memory_space<vmem>>, %arg7: memref<128x128xbf16, #tpu.memory_space<vmem>>, %arg8: memref<1x128xf32, #tpu.memory_space<vmem>>, %arg9: memref<128x128xbf16, #tpu.memory_space<vmem>>, %arg10: memref<1x128xf32, #tpu.memory_space<vmem>>, %arg11: memref<16x128xf32, #tpu.memory_space<vmem>>) attributes {dimension_semantics = [#tpu.dimension_semantics<parallel>], iteration_bounds = array<i64: 1>, scalar_prefetch = 0 : i64, scratch_operands = 0 : i64, tpu.core_type = #tpu.core_type<tc>, window_params = [{transform_indices = @transform_0, window_bounds = array<i64: 16, 128>}, {transform_indices = @transform_1, window_bounds = array<i64: 16, 128>}, {pipeline_mode = #tpu.pipeline_mode<synchronous>, transform_indices = @transform_2, window_bounds = array<i64: 128, 128>}, {pipeline_mode = #tpu.pipeline_mode<synchronous>, transform_indices = @transform_3, window_bounds = array<i64: 1, 128>}, {pipeline_mode = #tpu.pipeline_mode<synchronous>, transform_indices = @transform_4, window_bounds = array<i64: 128, 128>}, {pipeline_mode = #tpu.pipeline_mode<synchronous>, transform_indices = @transform_5, window_bounds = array<i64: 1, 128>}, {pipeline_mode = #tpu.pipeline_mode<synchronous>, transform_indices = @transform_6, window_bounds = array<i64: 128, 128>}, {pipeline_mode = #tpu.pipeline_mode<synchronous>, transform_indices = @transform_7, window_bounds = array<i64: 1, 128>}, {pipeline_mode = #tpu.pipeline_mode<synchronous>, transform_indices = @transform_8, window_bounds = array<i64: 128, 128>}, {pipeline_mode = #tpu.pipeline_mode<synchronous>, transform_indices = @transform_9, window_bounds = array<i64: 1, 128>}, {transform_indices = @transform_10, window_bounds = array<i64: 16, 128>}]} {
    %c0 = arith.constant 0 : index
    %c0_0 = arith.constant 0 : index
    %0 = vector.load %arg1[%c0, %c0_0] : memref<16x128xf32, #tpu.memory_space<vmem>>, vector<16x128xf32>
    %1 = arith.truncf %0 : vector<16x128xf32> to vector<16x128xbf16>
    %c0_1 = arith.constant 0 : index
    %c0_2 = arith.constant 0 : index
    %2 = vector.load %arg3[%c0_1, %c0_2] : memref<128x128xbf16, #tpu.memory_space<vmem>>, vector<128x128xbf16>
    %cst = arith.constant dense<0.000000e+00> : vector<16x128xf32>
    %3 = tpu.matmul %1, %2, %cst {dimension_numbers = #tpu.dot_dimension_numbers<[1], [0], [0], [1], [0, 0, 1, 1], [], []>} : vector<16x128xbf16>, vector<128x128xbf16>, vector<16x128xf32> -> vector<16x128xf32>
    %c0_3 = arith.constant 0 : index
    %c0_4 = arith.constant 0 : index
    %4 = vector.load %arg4[%c0_3, %c0_4] : memref<1x128xf32, #tpu.memory_space<vmem>>, vector<1x128xf32>
    %5 = vector.broadcast %4 : vector<1x128xf32> to vector<16x128xf32>
    %6 = arith.addf %3, %5 : vector<16x128xf32>
    %7 = arith.negf %6 : vector<16x128xf32>
    %8 = math.exp %7 : vector<16x128xf32>
    %cst_5 = arith.constant 1.000000e+00 : f32
    %9 = vector.broadcast %cst_5 : f32 to vector<16x128xf32>
    %10 = arith.addf %9, %8 : vector<16x128xf32>
    %11 = arith.divf %9, %10 : vector<16x128xf32>
    %12 = arith.mulf %6, %11 : vector<16x128xf32>
    %13 = arith.truncf %12 : vector<16x128xf32> to vector<16x128xbf16>
    %c0_6 = arith.constant 0 : index
    %c0_7 = arith.constant 0 : index
    %14 = vector.load %arg5[%c0_6, %c0_7] : memref<128x128xbf16, #tpu.memory_space<vmem>>, vector<128x128xbf16>
    %cst_8 = arith.constant dense<0.000000e+00> : vector<16x128xf32>
    %15 = tpu.matmul %13, %14, %cst_8 {dimension_numbers = #tpu.dot_dimension_numbers<[1], [0], [0], [1], [0, 0, 1, 1], [], []>} : vector<16x128xbf16>, vector<128x128xbf16>, vector<16x128xf32> -> vector<16x128xf32>
    %c0_9 = arith.constant 0 : index
    %c0_10 = arith.constant 0 : index
    %16 = vector.load %arg6[%c0_9, %c0_10] : memref<1x128xf32, #tpu.memory_space<vmem>>, vector<1x128xf32>
    %17 = vector.broadcast %16 : vector<1x128xf32> to vector<16x128xf32>
    %18 = arith.addf %15, %17 : vector<16x128xf32>
    %c0_11 = arith.constant 0 : index
    %c0_12 = arith.constant 0 : index
    %19 = vector.load %arg2[%c0_11, %c0_12] : memref<16x128xf32, #tpu.memory_space<vmem>>, vector<16x128xf32>
    %20 = arith.truncf %19 : vector<16x128xf32> to vector<16x128xbf16>
    %c0_13 = arith.constant 0 : index
    %c0_14 = arith.constant 0 : index
    %21 = vector.load %arg7[%c0_13, %c0_14] : memref<128x128xbf16, #tpu.memory_space<vmem>>, vector<128x128xbf16>
    %cst_15 = arith.constant dense<0.000000e+00> : vector<16x128xf32>
    %22 = tpu.matmul %20, %21, %cst_15 {dimension_numbers = #tpu.dot_dimension_numbers<[1], [0], [0], [1], [0, 0, 1, 1], [], []>} : vector<16x128xbf16>, vector<128x128xbf16>, vector<16x128xf32> -> vector<16x128xf32>
    %c0_16 = arith.constant 0 : index
    %c0_17 = arith.constant 0 : index
    %23 = vector.load %arg8[%c0_16, %c0_17] : memref<1x128xf32, #tpu.memory_space<vmem>>, vector<1x128xf32>
    %24 = vector.broadcast %23 : vector<1x128xf32> to vector<16x128xf32>
    %25 = arith.addf %22, %24 : vector<16x128xf32>
    %26 = arith.negf %25 : vector<16x128xf32>
    %27 = math.exp %26 : vector<16x128xf32>
    %cst_18 = arith.constant 1.000000e+00 : f32
    %28 = vector.broadcast %cst_18 : f32 to vector<16x128xf32>
    %29 = arith.addf %28, %27 : vector<16x128xf32>
    %30 = arith.divf %28, %29 : vector<16x128xf32>
    %31 = arith.mulf %25, %30 : vector<16x128xf32>
    %32 = arith.truncf %31 : vector<16x128xf32> to vector<16x128xbf16>
    %c0_19 = arith.constant 0 : index
    %c0_20 = arith.constant 0 : index
    %33 = vector.load %arg9[%c0_19, %c0_20] : memref<128x128xbf16, #tpu.memory_space<vmem>>, vector<128x128xbf16>
    %cst_21 = arith.constant dense<0.000000e+00> : vector<16x128xf32>
    %34 = tpu.matmul %32, %33, %cst_21 {dimension_numbers = #tpu.dot_dimension_numbers<[1], [0], [0], [1], [0, 0, 1, 1], [], []>} : vector<16x128xbf16>, vector<128x128xbf16>, vector<16x128xf32> -> vector<16x128xf32>
    %c0_22 = arith.constant 0 : index
    %c0_23 = arith.constant 0 : index
    %35 = vector.load %arg10[%c0_22, %c0_23] : memref<1x128xf32, #tpu.memory_space<vmem>>, vector<1x128xf32>
    %36 = vector.broadcast %35 : vector<1x128xf32> to vector<16x128xf32>
    %37 = arith.addf %34, %36 : vector<16x128xf32>
    %38 = arith.addf %37, %18 : vector<16x128xf32>
    %c0_24 = arith.constant 0 : index
    %c0_25 = arith.constant 0 : index
    %39 = vector.load %arg11[%c0_24, %c0_25] : memref<16x128xf32, #tpu.memory_space<vmem>>, vector<16x128xf32>
    tpu.vector_store %arg11[%c0_24, %c0_25], %38 {strides = array<i32>} : memref<16x128xf32, #tpu.memory_space<vmem>>, vector<16x128xf32>,
    return
  }
  func.func @transform_0(%arg0: i32) -> (i32, i32) {
    %c0_i32 = arith.constant 0 : i32
    %c0_i32_0 = arith.constant 0 : i32
    return %arg0, %c0_i32 : i32, i32
  }
  func.func @transform_1(%arg0: i32) -> (i32, i32) {
    %c0_i32 = arith.constant 0 : i32
    %c0_i32_0 = arith.constant 0 : i32
    return %arg0, %c0_i32 : i32, i32
  }
  func.func @transform_2(%arg0: i32) -> (i32, i32) {
    %c0_i32 = arith.constant 0 : i32
    %c0_i32_0 = arith.constant 0 : i32
    %c0_i32_1 = arith.constant 0 : i32
    return %c0_i32, %c0_i32_0 : i32, i32
  }
  func.func @transform_3(%arg0: i32) -> (i32, i32) {
    %c0_i32 = arith.constant 0 : i32
    %c0_i32_0 = arith.constant 0 : i32
    %c0_i32_1 = arith.constant 0 : i32
    return %c0_i32, %c0_i32_0 : i32, i32
  }
  func.func @transform_4(%arg0: i32) -> (i32, i32) {
    %c0_i32 = arith.constant 0 : i32
    %c0_i32_0 = arith.constant 0 : i32
    %c0_i32_1 = arith.constant 0 : i32
    return %c0_i32, %c0_i32_0 : i32, i32
  }
  func.func @transform_5(%arg0: i32) -> (i32, i32) {
    %c0_i32 = arith.constant 0 : i32
    %c0_i32_0 = arith.constant 0 : i32
    %c0_i32_1 = arith.constant 0 : i32
    return %c0_i32, %c0_i32_0 : i32, i32
  }
  func.func @transform_6(%arg0: i32) -> (i32, i32) {
    %c0_i32 = arith.constant 0 : i32
    %c0_i32_0 = arith.constant 0 : i32
    %c0_i32_1 = arith.constant 0 : i32
    return %c0_i32, %c0_i32_0 : i32, i32
  }
  func.func @transform_7(%arg0: i32) -> (i32, i32) {
    %c0_i32 = arith.constant 0 : i32
    %c0_i32_0 = arith.constant 0 : i32
    %c0_i32_1 = arith.constant 0 : i32
    return %c0_i32, %c0_i32_0 : i32, i32
  }
  func.func @transform_8(%arg0: i32) -> (i32, i32) {
    %c0_i32 = arith.constant 0 : i32
    %c0_i32_0 = arith.constant 0 : i32
    %c0_i32_1 = arith.constant 0 : i32
    return %c0_i32, %c0_i32_0 : i32, i32
  }
  func.func @transform_9(%arg0: i32) -> (i32, i32) {
    %c0_i32 = arith.constant 0 : i32
    %c0_i32_0 = arith.constant 0 : i32
    %c0_i32_1 = arith.constant 0 : i32
    return %c0_i32, %c0_i32_0 : i32, i32
  }
  func.func @transform_10(%arg0: i32) -> (i32, i32) {
    %c0_i32 = arith.constant 0 : i32
    %c0_i32_0 = arith.constant 0 : i32
    return %arg0, %c0_i32 : i32, i32
  }
}

module attributes {stable_mosaic.version = 11 : i64} {
  func.func @_layer_kernel(%arg0: i32, %arg1: memref<128x1xi32, #tpu.memory_space<vmem>>, %arg2: memref<128x1xi32, #tpu.memory_space<vmem>>, %arg3: memref<128x128xf32, #tpu.memory_space<vmem>>, %arg4: memref<16x128xf32, #tpu.memory_space<vmem>>, %arg5: memref<16x128xf32, #tpu.memory_space<vmem>>, %arg6: memref<8x128xf32, #tpu.memory_space<vmem>>, %arg7: memref<16x1xi32, #tpu.memory_space<vmem>>, %arg8: memref<8x1xf32, #tpu.memory_space<vmem>>, %arg9: memref<128x256xbf16, #tpu.memory_space<vmem>>, %arg10: memref<128x256xbf16, #tpu.memory_space<vmem>>, %arg11: memref<128x256xbf16, #tpu.memory_space<vmem>>, %arg12: memref<1x256xf32, #tpu.memory_space<vmem>>, %arg13: memref<1x256xf32, #tpu.memory_space<vmem>>, %arg14: memref<256x128xbf16, #tpu.memory_space<vmem>>, %arg15: memref<1x128xf32, #tpu.memory_space<vmem>>, %arg16: memref<128x128xbf16, #tpu.memory_space<vmem>>, %arg17: memref<128x128xbf16, #tpu.memory_space<vmem>>, %arg18: memref<1x128xf32, #tpu.memory_space<vmem>>, %arg19: memref<128x128xbf16, #tpu.memory_space<vmem>>, %arg20: memref<1x128xf32, #tpu.memory_space<vmem>>, %arg21: memref<128x128xbf16, #tpu.memory_space<vmem>>, %arg22: memref<1x128xf32, #tpu.memory_space<vmem>>, %arg23: memref<128x128xbf16, #tpu.memory_space<vmem>>, %arg24: memref<128x128xbf16, #tpu.memory_space<vmem>>, %arg25: memref<1x128xf32, #tpu.memory_space<vmem>>, %arg26: memref<128x128xbf16, #tpu.memory_space<vmem>>, %arg27: memref<1x128xf32, #tpu.memory_space<vmem>>, %arg28: memref<128x256xbf16, #tpu.memory_space<vmem>>, %arg29: memref<1x256xf32, #tpu.memory_space<vmem>>, %arg30: memref<1x128xf32, #tpu.memory_space<vmem>>, %arg31: memref<1x128xf32, #tpu.memory_space<vmem>>, %arg32: memref<128x128xbf16, #tpu.memory_space<vmem>>, %arg33: memref<1x128xf32, #tpu.memory_space<vmem>>, %arg34: memref<128x128xbf16, #tpu.memory_space<vmem>>, %arg35: memref<1x128xf32, #tpu.memory_space<vmem>>, %arg36: memref<128x128xf32, #tpu.memory_space<vmem>>, %arg37: memref<16x128xf32, #tpu.memory_space<vmem>>, %arg38: memref<16x128xf32, #tpu.memory_space<vmem>>, %arg39: memref<16x128xf32, #tpu.memory_space<vmem>>, %arg40: memref<16x128xf32, #tpu.memory_space<vmem>>) attributes {dimension_semantics = [#tpu.dimension_semantics<arbitrary>], iteration_bounds = array<i64: 1>, scalar_prefetch = 0 : i64, scratch_operands = 2 : i64, tpu.core_type = #tpu.core_type<tc>, window_params = [{transform_indices = @transform_0, window_bounds = array<i64: 128, 1>}, {transform_indices = @transform_1, window_bounds = array<i64: 128, 1>}, {transform_indices = @transform_2, window_bounds = array<i64: 128, 128>}, {pipeline_mode = #tpu.pipeline_mode<synchronous>, transform_indices = @transform_3, window_bounds = array<i64: 16, 128>}, {pipeline_mode = #tpu.pipeline_mode<synchronous>, transform_indices = @transform_4, window_bounds = array<i64: 16, 128>}, {pipeline_mode = #tpu.pipeline_mode<synchronous>, transform_indices = @transform_5, window_bounds = array<i64: 8, 128>}, {pipeline_mode = #tpu.pipeline_mode<synchronous>, transform_indices = @transform_6, window_bounds = array<i64: 16, 1>}, {pipeline_mode = #tpu.pipeline_mode<synchronous>, transform_indices = @transform_7, window_bounds = array<i64: 8, 1>}, {pipeline_mode = #tpu.pipeline_mode<synchronous>, transform_indices = @transform_8, window_bounds = array<i64: 128, 256>}, {pipeline_mode = #tpu.pipeline_mode<synchronous>, transform_indices = @transform_9, window_bounds = array<i64: 128, 256>}, {pipeline_mode = #tpu.pipeline_mode<synchronous>, transform_indices = @transform_10, window_bounds = array<i64: 128, 256>}, {pipeline_mode = #tpu.pipeline_mode<synchronous>, transform_indices = @transform_11, window_bounds = array<i64: 1, 256>}, {pipeline_mode = #tpu.pipeline_mode<synchronous>, transform_indices = @transform_12, window_bounds = array<i64: 1, 256>}, {pipeline_mode = #tpu.pipeline_mode<synchronous>, transform_indices = @transform_13, window_bounds = array<i64: 256, 128>}, {pipeline_mode = #tpu.pipeline_mode<synchronous>, transform_indices = @transform_14, window_bounds = array<i64: 1, 128>}, {pipeline_mode = #tpu.pipeline_mode<synchronous>, transform_indices = @transform_15, window_bounds = array<i64: 128, 128>}, {pipeline_mode = #tpu.pipeline_mode<synchronous>, transform_indices = @transform_16, window_bounds = array<i64: 128, 128>}, {pipeline_mode = #tpu.pipeline_mode<synchronous>, transform_indices = @transform_17, window_bounds = array<i64: 1, 128>}, {pipeline_mode = #tpu.pipeline_mode<synchronous>, transform_indices = @transform_18, window_bounds = array<i64: 128, 128>}, {pipeline_mode = #tpu.pipeline_mode<synchronous>, transform_indices = @transform_19, window_bounds = array<i64: 1, 128>}, {pipeline_mode = #tpu.pipeline_mode<synchronous>, transform_indices = @transform_20, window_bounds = array<i64: 128, 128>}, {pipeline_mode = #tpu.pipeline_mode<synchronous>, transform_indices = @transform_21, window_bounds = array<i64: 1, 128>}, {pipeline_mode = #tpu.pipeline_mode<synchronous>, transform_indices = @transform_22, window_bounds = array<i64: 128, 128>}, {pipeline_mode = #tpu.pipeline_mode<synchronous>, transform_indices = @transform_23, window_bounds = array<i64: 128, 128>}, {pipeline_mode = #tpu.pipeline_mode<synchronous>, transform_indices = @transform_24, window_bounds = array<i64: 1, 128>}, {pipeline_mode = #tpu.pipeline_mode<synchronous>, transform_indices = @transform_25, window_bounds = array<i64: 128, 128>}, {pipeline_mode = #tpu.pipeline_mode<synchronous>, transform_indices = @transform_26, window_bounds = array<i64: 1, 128>}, {pipeline_mode = #tpu.pipeline_mode<synchronous>, transform_indices = @transform_27, window_bounds = array<i64: 128, 256>}, {pipeline_mode = #tpu.pipeline_mode<synchronous>, transform_indices = @transform_28, window_bounds = array<i64: 1, 256>}, {pipeline_mode = #tpu.pipeline_mode<synchronous>, transform_indices = @transform_29, window_bounds = array<i64: 1, 128>}, {pipeline_mode = #tpu.pipeline_mode<synchronous>, transform_indices = @transform_30, window_bounds = array<i64: 1, 128>}, {pipeline_mode = #tpu.pipeline_mode<synchronous>, transform_indices = @transform_31, window_bounds = array<i64: 128, 128>}, {pipeline_mode = #tpu.pipeline_mode<synchronous>, transform_indices = @transform_32, window_bounds = array<i64: 1, 128>}, {pipeline_mode = #tpu.pipeline_mode<synchronous>, transform_indices = @transform_33, window_bounds = array<i64: 128, 128>}, {pipeline_mode = #tpu.pipeline_mode<synchronous>, transform_indices = @transform_34, window_bounds = array<i64: 1, 128>}, {transform_indices = @transform_35, window_bounds = array<i64: 128, 128>}, {pipeline_mode = #tpu.pipeline_mode<synchronous>, transform_indices = @transform_36, window_bounds = array<i64: 16, 128>}, {pipeline_mode = #tpu.pipeline_mode<synchronous>, transform_indices = @transform_37, window_bounds = array<i64: 16, 128>}]} {
    %c0_i32 = arith.constant 0 : i32
    %0 = arith.cmpi eq, %arg0, %c0_i32 : i32
    %1 = arith.extui %0 : i1 to i32
    %c0_i32_0 = arith.constant 0 : i32
    %2 = arith.cmpi ne, %1, %c0_i32_0 : i32
    scf.if %2 {
      %cst_68 = arith.constant 0.000000e+00 : f32
      %114 = vector.broadcast %cst_68 : f32 to vector<16x128xf32>
      %c0_69 = arith.constant 0 : index
      %c0_70 = arith.constant 0 : index
      %115 = vector.load %arg39[%c0_69, %c0_70] : memref<16x128xf32, #tpu.memory_space<vmem>>, vector<16x128xf32>
      tpu.vector_store %arg39[%c0_69, %c0_70], %114 {strides = array<i32>} : memref<16x128xf32, #tpu.memory_space<vmem>>, vector<16x128xf32>,
      %cst_71 = arith.constant 0.000000e+00 : f32
      %116 = vector.broadcast %cst_71 : f32 to vector<16x128xf32>
      %c0_72 = arith.constant 0 : index
      %c0_73 = arith.constant 0 : index
      %117 = vector.load %arg40[%c0_72, %c0_73] : memref<16x128xf32, #tpu.memory_space<vmem>>, vector<16x128xf32>
      tpu.vector_store %arg40[%c0_72, %c0_73], %116 {strides = array<i32>} : memref<16x128xf32, #tpu.memory_space<vmem>>, vector<16x128xf32>,
    } else {
    }
    %c0 = arith.constant 0 : index
    %c0_1 = arith.constant 0 : index
    %3 = vector.load %arg4[%c0, %c0_1] : memref<16x128xf32, #tpu.memory_space<vmem>>, vector<16x128xf32>
    %4 = arith.truncf %3 : vector<16x128xf32> to vector<16x128xbf16>
    %c0_2 = arith.constant 0 : index
    %c0_3 = arith.constant 0 : index
    %5 = vector.load %arg5[%c0_2, %c0_3] : memref<16x128xf32, #tpu.memory_space<vmem>>, vector<16x128xf32>
    %6 = arith.truncf %5 : vector<16x128xf32> to vector<16x128xbf16>
    %c0_4 = arith.constant 0 : index
    %c0_5 = arith.constant 0 : index
    %7 = vector.load %arg3[%c0_4, %c0_5] : memref<128x128xf32, #tpu.memory_space<vmem>>, vector<128x128xf32>
    %8 = arith.truncf %7 : vector<128x128xf32> to vector<128x128xbf16>
    %c0_6 = arith.constant 0 : index
    %c0_7 = arith.constant 0 : index
    %9 = vector.load %arg1[%c0_6, %c0_7] : memref<128x1xi32, #tpu.memory_space<vmem>>, vector<128x1xi32>
    %c0_8 = arith.constant 0 : index
    %c0_9 = arith.constant 0 : index
    %10 = vector.load %arg2[%c0_8, %c0_9] : memref<128x1xi32, #tpu.memory_space<vmem>>, vector<128x1xi32>
    %11 = tpu.iota {dimensions = array<i32: 1>} : vector<128x16xi32>
    %12 = vector.broadcast %10 : vector<128x1xi32> to vector<128x16xi32>
    %13 = arith.cmpi eq, %11, %12 : vector<128x16xi32>
    %14 = arith.extui %13 : vector<128x16xi1> to vector<128x16xi32>
    %15 = arith.sitofp %14 : vector<128x16xi32> to vector<128x16xf32>
    %16 = arith.truncf %15 : vector<128x16xf32> to vector<128x16xbf16>
    %17 = vector.broadcast %9 : vector<128x1xi32> to vector<128x16xi32>
    %18 = arith.cmpi eq, %11, %17 : vector<128x16xi32>
    %19 = arith.extui %18 : vector<128x16xi1> to vector<128x16xi32>
    %20 = arith.sitofp %19 : vector<128x16xi32> to vector<128x16xf32>
    %21 = arith.truncf %20 : vector<128x16xf32> to vector<128x16xbf16>
    %cst = arith.constant dense<0.000000e+00> : vector<128x128xf32>
    %22 = tpu.matmul %16, %4, %cst {dimension_numbers = #tpu.dot_dimension_numbers<[1], [0], [0], [1], [0, 0, 1, 1], [], []>} : vector<128x16xbf16>, vector<16x128xbf16>, vector<128x128xf32> -> vector<128x128xf32>
    %cst_10 = arith.constant dense<0.000000e+00> : vector<128x128xf32>
    %23 = tpu.matmul %21, %4, %cst_10 {dimension_numbers = #tpu.dot_dimension_numbers<[1], [0], [0], [1], [0, 0, 1, 1], [], []>} : vector<128x16xbf16>, vector<16x128xbf16>, vector<128x128xf32> -> vector<128x128xf32>
    %cst_11 = arith.constant dense<0.000000e+00> : vector<128x128xf32>
    %24 = tpu.matmul %21, %6, %cst_11 {dimension_numbers = #tpu.dot_dimension_numbers<[1], [0], [0], [1], [0, 0, 1, 1], [], []>} : vector<128x16xbf16>, vector<16x128xbf16>, vector<128x128xf32> -> vector<128x128xf32>
    %cst_12 = arith.constant dense<0.000000e+00> : vector<128x128xf32>
    %25 = tpu.matmul %16, %6, %cst_12 {dimension_numbers = #tpu.dot_dimension_numbers<[1], [0], [0], [1], [0, 0, 1, 1], [], []>} : vector<128x16xbf16>, vector<16x128xbf16>, vector<128x128xf32> -> vector<128x128xf32>
    %26 = arith.subf %24, %25 : vector<128x128xf32>
    %27 = arith.mulf %26, %26 : vector<128x128xf32>
    %cst_13 = arith.constant dense<0.000000e+00> : vector<128xf32>
    %28 = vector.multi_reduction <add>, %27, %cst_13 [1] : vector<128x128xf32> to vector<128xf32>
    %29 = vector.shape_cast %28 : vector<128xf32> to vector<128x1xf32>
    %30 = arith.truncf %22 : vector<128x128xf32> to vector<128x128xbf16>
    %c0_14 = arith.constant 0 : index
    %c0_15 = arith.constant 0 : index
    %31 = vector.load %arg9[%c0_14, %c0_15] : memref<128x256xbf16, #tpu.memory_space<vmem>>, vector<128x256xbf16>
    %cst_16 = arith.constant dense<0.000000e+00> : vector<128x256xf32>
    %32 = tpu.matmul %30, %31, %cst_16 {dimension_numbers = #tpu.dot_dimension_numbers<[1], [0], [0], [1], [0, 0, 1, 1], [], []>} : vector<128x128xbf16>, vector<128x256xbf16>, vector<128x256xf32> -> vector<128x256xf32>
    %33 = arith.truncf %23 : vector<128x128xf32> to vector<128x128xbf16>
    %c0_17 = arith.constant 0 : index
    %c0_18 = arith.constant 0 : index
    %34 = vector.load %arg10[%c0_17, %c0_18] : memref<128x256xbf16, #tpu.memory_space<vmem>>, vector<128x256xbf16>
    %cst_19 = arith.constant dense<0.000000e+00> : vector<128x256xf32>
    %35 = tpu.matmul %33, %34, %cst_19 {dimension_numbers = #tpu.dot_dimension_numbers<[1], [0], [0], [1], [0, 0, 1, 1], [], []>} : vector<128x128xbf16>, vector<128x256xbf16>, vector<128x256xf32> -> vector<128x256xf32>
    %36 = arith.addf %32, %35 : vector<128x256xf32>
    %c0_20 = arith.constant 0 : index
    %c0_21 = arith.constant 0 : index
    %37 = vector.load %arg11[%c0_20, %c0_21] : memref<128x256xbf16, #tpu.memory_space<vmem>>, vector<128x256xbf16>
    %cst_22 = arith.constant dense<0.000000e+00> : vector<128x256xf32>
    %38 = tpu.matmul %8, %37, %cst_22 {dimension_numbers = #tpu.dot_dimension_numbers<[1], [0], [0], [1], [0, 0, 1, 1], [], []>} : vector<128x128xbf16>, vector<128x256xbf16>, vector<128x256xf32> -> vector<128x256xf32>
    %39 = arith.addf %36, %38 : vector<128x256xf32>
    %c0_23 = arith.constant 0 : index
    %c0_24 = arith.constant 0 : index
    %40 = vector.load %arg12[%c0_23, %c0_24] : memref<1x256xf32, #tpu.memory_space<vmem>>, vector<1x256xf32>
    %41 = vector.broadcast %29 : vector<128x1xf32> to vector<128x256xf32>
    %42 = vector.broadcast %40 : vector<1x256xf32> to vector<128x256xf32>
    %43 = arith.mulf %41, %42 : vector<128x256xf32>
    %44 = arith.addf %39, %43 : vector<128x256xf32>
    %c0_25 = arith.constant 0 : index
    %c0_26 = arith.constant 0 : index
    %45 = vector.load %arg13[%c0_25, %c0_26] : memref<1x256xf32, #tpu.memory_space<vmem>>, vector<1x256xf32>
    %46 = vector.broadcast %45 : vector<1x256xf32> to vector<128x256xf32>
    %47 = arith.addf %44, %46 : vector<128x256xf32>
    %48 = arith.negf %47 : vector<128x256xf32>
    %49 = math.exp %48 : vector<128x256xf32>
    %cst_27 = arith.constant 1.000000e+00 : f32
    %50 = vector.broadcast %cst_27 : f32 to vector<128x256xf32>
    %51 = arith.addf %50, %49 : vector<128x256xf32>
    %52 = arith.divf %50, %51 : vector<128x256xf32>
    %53 = arith.mulf %47, %52 : vector<128x256xf32>
    %54 = arith.truncf %53 : vector<128x256xf32> to vector<128x256xbf16>
    %c0_28 = arith.constant 0 : index
    %c0_29 = arith.constant 0 : index
    %55 = vector.load %arg14[%c0_28, %c0_29] : memref<256x128xbf16, #tpu.memory_space<vmem>>, vector<256x128xbf16>
    %cst_30 = arith.constant dense<0.000000e+00> : vector<128x128xf32>
    %56 = tpu.matmul %54, %55, %cst_30 {dimension_numbers = #tpu.dot_dimension_numbers<[1], [0], [0], [1], [0, 0, 1, 1], [], []>} : vector<128x256xbf16>, vector<256x128xbf16>, vector<128x128xf32> -> vector<128x128xf32>
    %c0_31 = arith.constant 0 : index
    %c0_32 = arith.constant 0 : index
    %57 = vector.load %arg15[%c0_31, %c0_32] : memref<1x128xf32, #tpu.memory_space<vmem>>, vector<1x128xf32>
    %58 = vector.broadcast %57 : vector<1x128xf32> to vector<128x128xf32>
    %59 = arith.addf %56, %58 : vector<128x128xf32>
    %60 = arith.negf %59 : vector<128x128xf32>
    %61 = math.exp %60 : vector<128x128xf32>
    %cst_33 = arith.constant 1.000000e+00 : f32
    %62 = vector.broadcast %cst_33 : f32 to vector<128x128xf32>
    %63 = arith.addf %62, %61 : vector<128x128xf32>
    %64 = arith.divf %62, %63 : vector<128x128xf32>
    %65 = arith.mulf %59, %64 : vector<128x128xf32>
    %66 = arith.truncf %65 : vector<128x128xf32> to vector<128x128xbf16>
    %c0_34 = arith.constant 0 : index
    %c0_35 = arith.constant 0 : index
    %67 = vector.load %arg16[%c0_34, %c0_35] : memref<128x128xbf16, #tpu.memory_space<vmem>>, vector<128x128xbf16>
    %cst_36 = arith.constant dense<0.000000e+00> : vector<128x128xf32>
    %68 = tpu.matmul %8, %67, %cst_36 {dimension_numbers = #tpu.dot_dimension_numbers<[1], [0], [0], [1], [0, 0, 1, 1], [], []>} : vector<128x128xbf16>, vector<128x128xbf16>, vector<128x128xf32> -> vector<128x128xf32>
    %c0_37 = arith.constant 0 : index
    %c0_38 = arith.constant 0 : index
    %69 = vector.load %arg17[%c0_37, %c0_38] : memref<128x128xbf16, #tpu.memory_space<vmem>>, vector<128x128xbf16>
    %cst_39 = arith.constant dense<0.000000e+00> : vector<128x128xf32>
    %70 = tpu.matmul %66, %69, %cst_39 {dimension_numbers = #tpu.dot_dimension_numbers<[1], [0], [0], [1], [0, 0, 1, 1], [], []>} : vector<128x128xbf16>, vector<128x128xbf16>, vector<128x128xf32> -> vector<128x128xf32>
    %71 = arith.addf %68, %70 : vector<128x128xf32>
    %c0_40 = arith.constant 0 : index
    %c0_41 = arith.constant 0 : index
    %72 = vector.load %arg18[%c0_40, %c0_41] : memref<1x128xf32, #tpu.memory_space<vmem>>, vector<1x128xf32>
    %73 = vector.broadcast %72 : vector<1x128xf32> to vector<128x128xf32>
    %74 = arith.addf %71, %73 : vector<128x128xf32>
    %75 = arith.negf %74 : vector<128x128xf32>
    %76 = math.exp %75 : vector<128x128xf32>
    %cst_42 = arith.constant 1.000000e+00 : f32
    %77 = vector.broadcast %cst_42 : f32 to vector<128x128xf32>
    %78 = arith.addf %77, %76 : vector<128x128xf32>
    %79 = arith.divf %77, %78 : vector<128x128xf32>
    %80 = arith.mulf %74, %79 : vector<128x128xf32>
    %c0_43 = arith.constant 0 : index
    %c0_44 = arith.constant 0 : index
    %81 = vector.load %arg36[%c0_43, %c0_44] : memref<128x128xf32, #tpu.memory_space<vmem>>, vector<128x128xf32>
    tpu.vector_store %arg36[%c0_43, %c0_44], %80 {strides = array<i32>} : memref<128x128xf32, #tpu.memory_space<vmem>>, vector<128x128xf32>,
    %c0_45 = arith.constant 0 : index
    %c0_46 = arith.constant 0 : index
    %82 = vector.load %arg19[%c0_45, %c0_46] : memref<128x128xbf16, #tpu.memory_space<vmem>>, vector<128x128xbf16>
    %cst_47 = arith.constant dense<0.000000e+00> : vector<128x128xf32>
    %83 = tpu.matmul %66, %82, %cst_47 {dimension_numbers = #tpu.dot_dimension_numbers<[1], [0], [0], [1], [0, 0, 1, 1], [], []>} : vector<128x128xbf16>, vector<128x128xbf16>, vector<128x128xf32> -> vector<128x128xf32>
    %c0_48 = arith.constant 0 : index
    %c0_49 = arith.constant 0 : index
    %84 = vector.load %arg20[%c0_48, %c0_49] : memref<1x128xf32, #tpu.memory_space<vmem>>, vector<1x128xf32>
    %85 = vector.broadcast %84 : vector<1x128xf32> to vector<128x128xf32>
    %86 = arith.addf %83, %85 : vector<128x128xf32>
    %87 = arith.negf %86 : vector<128x128xf32>
    %88 = math.exp %87 : vector<128x128xf32>
    %cst_50 = arith.constant 1.000000e+00 : f32
    %89 = vector.broadcast %cst_50 : f32 to vector<128x128xf32>
    %90 = arith.addf %89, %88 : vector<128x128xf32>
    %91 = arith.divf %89, %90 : vector<128x128xf32>
    %92 = arith.mulf %86, %91 : vector<128x128xf32>
    %93 = arith.truncf %92 : vector<128x128xf32> to vector<128x128xbf16>
    %c0_51 = arith.constant 0 : index
    %c0_52 = arith.constant 0 : index
    %94 = vector.load %arg21[%c0_51, %c0_52] : memref<128x128xbf16, #tpu.memory_space<vmem>>, vector<128x128xbf16>
    %cst_53 = arith.constant dense<0.000000e+00> : vector<128x128xf32>
    %95 = tpu.matmul %93, %94, %cst_53 {dimension_numbers = #tpu.dot_dimension_numbers<[1], [0], [0], [1], [0, 0, 1, 1], [], []>} : vector<128x128xbf16>, vector<128x128xbf16>, vector<128x128xf32> -> vector<128x128xf32>
    %c0_54 = arith.constant 0 : index
    %c0_55 = arith.constant 0 : index
    %96 = vector.load %arg22[%c0_54, %c0_55] : memref<1x128xf32, #tpu.memory_space<vmem>>, vector<1x128xf32>
    %97 = vector.broadcast %96 : vector<1x128xf32> to vector<128x128xf32>
    %98 = arith.addf %95, %97 : vector<128x128xf32>
    %99 = vector.extract_strided_slice %98 {offsets = [0, 0], sizes = [128, 1], strides = [1, 1]} : vector<128x128xf32> to vector<128x1xf32>
    %100 = vector.broadcast %99 : vector<128x1xf32> to vector<128x128xf32>
    %101 = arith.mulf %100, %26 : vector<128x128xf32>
    %c0_56 = arith.constant 0 : index
    %c0_57 = arith.constant 0 : index
    %102 = vector.load %arg39[%c0_56, %c0_57] : memref<16x128xf32, #tpu.memory_space<vmem>>, vector<16x128xf32>
    %cst_58 = arith.constant dense<0.000000e+00> : vector<16x128xf32>
    %103 = tpu.matmul %16, %66, %cst_58 {dimension_numbers = #tpu.dot_dimension_numbers<[0], [0], [1], [1], [0, 1, 1, 1], [], []>} : vector<128x16xbf16>, vector<128x128xbf16>, vector<16x128xf32> -> vector<16x128xf32>
    %104 = arith.addf %102, %103 : vector<16x128xf32>
    %c0_59 = arith.constant 0 : index
    %c0_60 = arith.constant 0 : index
    %105 = vector.load %arg39[%c0_59, %c0_60] : memref<16x128xf32, #tpu.memory_space<vmem>>, vector<16x128xf32>
    tpu.vector_store %arg39[%c0_59, %c0_60], %104 {strides = array<i32>} : memref<16x128xf32, #tpu.memory_space<vmem>>, vector<16x128xf32>,
    %c0_61 = arith.constant 0 : index
    %c0_62 = arith.constant 0 : index
    %106 = vector.load %arg40[%c0_61, %c0_62] : memref<16x128xf32, #tpu.memory_space<vmem>>, vector<16x128xf32>
    %107 = arith.truncf %101 : vector<128x128xf32> to vector<128x128xbf16>
    %cst_63 = arith.constant dense<0.000000e+00> : vector<16x128xf32>
    %108 = tpu.matmul %16, %107, %cst_63 {dimension_numbers = #tpu.dot_dimension_numbers<[0], [0], [1], [1], [0, 1, 1, 1], [], []>} : vector<128x16xbf16>, vector<128x128xbf16>, vector<16x128xf32> -> vector<16x128xf32>
    %109 = arith.addf %106, %108 : vector<16x128xf32>
    %c0_64 = arith.constant 0 : index
    %c0_65 = arith.constant 0 : index
    %110 = vector.load %arg40[%c0_64, %c0_65] : memref<16x128xf32, #tpu.memory_space<vmem>>, vector<16x128xf32>
    tpu.vector_store %arg40[%c0_64, %c0_65], %109 {strides = array<i32>} : memref<16x128xf32, #tpu.memory_space<vmem>>, vector<16x128xf32>,
    %c0_i32_66 = arith.constant 0 : i32
    %111 = arith.cmpi eq, %arg0, %c0_i32_66 : i32
    %112 = arith.extui %111 : i1 to i32
    %c0_i32_67 = arith.constant 0 : i32
    %113 = arith.cmpi ne, %112, %c0_i32_67 : i32
    scf.if %113 {
      %c0_68 = arith.constant 0 : index
      %c0_69 = arith.constant 0 : index
      %114 = vector.load %arg7[%c0_68, %c0_69] : memref<16x1xi32, #tpu.memory_space<vmem>>, vector<16x1xi32>
      %c0_i32_70 = arith.constant 0 : i32
      %115 = vector.broadcast %c0_i32_70 : i32 to vector<16x1xi32>
      %116 = arith.cmpi sge, %114, %115 : vector<16x1xi32>
      %117 = arith.extui %116 : vector<16x1xi1> to vector<16x1xi32>
      %118 = arith.sitofp %117 : vector<16x1xi32> to vector<16x1xf32>
      %c0_71 = arith.constant 0 : index
      %c0_72 = arith.constant 0 : index
      %119 = vector.load %arg5[%c0_71, %c0_72] : memref<16x128xf32, #tpu.memory_space<vmem>>, vector<16x128xf32>
      %c0_73 = arith.constant 0 : index
      %c0_74 = arith.constant 0 : index
      %120 = vector.load %arg40[%c0_73, %c0_74] : memref<16x128xf32, #tpu.memory_space<vmem>>, vector<16x128xf32>
      %121 = arith.addf %119, %120 : vector<16x128xf32>
      %122 = vector.broadcast %118 : vector<16x1xf32> to vector<16x128xf32>
      %123 = arith.mulf %121, %122 : vector<16x128xf32>
      %c0_75 = arith.constant 0 : index
      %c0_76 = arith.constant 0 : index
      %124 = vector.load %arg37[%c0_75, %c0_76] : memref<16x128xf32, #tpu.memory_space<vmem>>, vector<16x128xf32>
      tpu.vector_store %arg37[%c0_75, %c0_76], %123 {strides = array<i32>} : memref<16x128xf32, #tpu.memory_space<vmem>>, vector<16x128xf32>,
      %c0_77 = arith.constant 0 : index
      %c0_78 = arith.constant 0 : index
      %125 = vector.load %arg23[%c0_77, %c0_78] : memref<128x128xbf16, #tpu.memory_space<vmem>>, vector<128x128xbf16>
      %cst_79 = arith.constant dense<0.000000e+00> : vector<16x128xf32>
      %126 = tpu.matmul %4, %125, %cst_79 {dimension_numbers = #tpu.dot_dimension_numbers<[1], [0], [0], [1], [0, 0, 1, 1], [], []>} : vector<16x128xbf16>, vector<128x128xbf16>, vector<16x128xf32> -> vector<16x128xf32>
      %c0_80 = arith.constant 0 : index
      %c0_81 = arith.constant 0 : index
      %127 = vector.load %arg39[%c0_80, %c0_81] : memref<16x128xf32, #tpu.memory_space<vmem>>, vector<16x128xf32>
      %128 = arith.truncf %127 : vector<16x128xf32> to vector<16x128xbf16>
      %c0_82 = arith.constant 0 : index
      %c0_83 = arith.constant 0 : index
      %129 = vector.load %arg24[%c0_82, %c0_83] : memref<128x128xbf16, #tpu.memory_space<vmem>>, vector<128x128xbf16>
      %cst_84 = arith.constant dense<0.000000e+00> : vector<16x128xf32>
      %130 = tpu.matmul %128, %129, %cst_84 {dimension_numbers = #tpu.dot_dimension_numbers<[1], [0], [0], [1], [0, 0, 1, 1], [], []>} : vector<16x128xbf16>, vector<128x128xbf16>, vector<16x128xf32> -> vector<16x128xf32>
      %131 = arith.addf %126, %130 : vector<16x128xf32>
      %c0_85 = arith.constant 0 : index
      %c0_86 = arith.constant 0 : index
      %132 = vector.load %arg25[%c0_85, %c0_86] : memref<1x128xf32, #tpu.memory_space<vmem>>, vector<1x128xf32>
      %133 = vector.broadcast %132 : vector<1x128xf32> to vector<16x128xf32>
      %134 = arith.addf %131, %133 : vector<16x128xf32>
      %135 = arith.negf %134 : vector<16x128xf32>
      %136 = math.exp %135 : vector<16x128xf32>
      %cst_87 = arith.constant 1.000000e+00 : f32
      %137 = vector.broadcast %cst_87 : f32 to vector<16x128xf32>
      %138 = arith.addf %137, %136 : vector<16x128xf32>
      %139 = arith.divf %137, %138 : vector<16x128xf32>
      %140 = arith.mulf %134, %139 : vector<16x128xf32>
      %141 = arith.truncf %140 : vector<16x128xf32> to vector<16x128xbf16>
      %c0_88 = arith.constant 0 : index
      %c0_89 = arith.constant 0 : index
      %142 = vector.load %arg26[%c0_88, %c0_89] : memref<128x128xbf16, #tpu.memory_space<vmem>>, vector<128x128xbf16>
      %cst_90 = arith.constant dense<0.000000e+00> : vector<16x128xf32>
      %143 = tpu.matmul %141, %142, %cst_90 {dimension_numbers = #tpu.dot_dimension_numbers<[1], [0], [0], [1], [0, 0, 1, 1], [], []>} : vector<16x128xbf16>, vector<128x128xbf16>, vector<16x128xf32> -> vector<16x128xf32>
      %c0_91 = arith.constant 0 : index
      %c0_92 = arith.constant 0 : index
      %144 = vector.load %arg27[%c0_91, %c0_92] : memref<1x128xf32, #tpu.memory_space<vmem>>, vector<1x128xf32>
      %145 = vector.broadcast %144 : vector<1x128xf32> to vector<16x128xf32>
      %146 = arith.addf %143, %145 : vector<16x128xf32>
      %c0_93 = arith.constant 0 : index
      %c0_94 = arith.constant 0 : index
      %147 = vector.load %arg6[%c0_93, %c0_94] : memref<8x128xf32, #tpu.memory_space<vmem>>, vector<8x128xf32>
      %148 = arith.negf %147 : vector<8x128xf32>
      %149 = math.exp %148 : vector<8x128xf32>
      %cst_95 = arith.constant 1.000000e+00 : f32
      %150 = vector.broadcast %cst_95 : f32 to vector<8x128xf32>
      %151 = arith.addf %150, %149 : vector<8x128xf32>
      %152 = arith.divf %150, %151 : vector<8x128xf32>
      %153 = arith.mulf %147, %152 : vector<8x128xf32>
      %154 = arith.truncf %153 : vector<8x128xf32> to vector<8x128xbf16>
      %c0_96 = arith.constant 0 : index
      %c0_97 = arith.constant 0 : index
      %155 = vector.load %arg28[%c0_96, %c0_97] : memref<128x256xbf16, #tpu.memory_space<vmem>>, vector<128x256xbf16>
      %cst_98 = arith.constant dense<0.000000e+00> : vector<8x256xf32>
      %156 = tpu.matmul %154, %155, %cst_98 {dimension_numbers = #tpu.dot_dimension_numbers<[1], [0], [0], [1], [0, 0, 1, 1], [], []>} : vector<8x128xbf16>, vector<128x256xbf16>, vector<8x256xf32> -> vector<8x256xf32>
      %c0_99 = arith.constant 0 : index
      %c0_100 = arith.constant 0 : index
      %157 = vector.load %arg29[%c0_99, %c0_100] : memref<1x256xf32, #tpu.memory_space<vmem>>, vector<1x256xf32>
      %158 = vector.broadcast %157 : vector<1x256xf32> to vector<8x256xf32>
      %159 = arith.addf %156, %158 : vector<8x256xf32>
      %160 = vector.extract_strided_slice %159 {offsets = [0, 0], sizes = [8, 128], strides = [1, 1]} : vector<8x256xf32> to vector<8x128xf32>
      %161 = vector.extract_strided_slice %159 {offsets = [0, 128], sizes = [8, 128], strides = [1, 1]} : vector<8x256xf32> to vector<8x128xf32>
      %162 = tpu.iota {dimensions = array<i32: 1>} : vector<16x8xi32>
      %163 = vector.broadcast %114 : vector<16x1xi32> to vector<16x8xi32>
      %164 = arith.cmpi eq, %162, %163 : vector<16x8xi32>
      %165 = arith.extui %164 : vector<16x8xi1> to vector<16x8xi32>
      %166 = arith.sitofp %165 : vector<16x8xi32> to vector<16x8xf32>
      %cst_101 = arith.constant dense<0.000000e+00> : vector<16x128xf32>
      %167 = tpu.matmul %166, %160, %cst_101 {dimension_numbers = #tpu.dot_dimension_numbers<[1], [0], [0], [1], [0, 0, 1, 1], [], []>} : vector<16x8xf32>, vector<8x128xf32>, vector<16x128xf32> -> vector<16x128xf32>
      %cst_102 = arith.constant 1.000000e+00 : f32
      %168 = vector.broadcast %cst_102 : f32 to vector<16x128xf32>
      %169 = arith.addf %167, %168 : vector<16x128xf32>
      %170 = arith.mulf %146, %169 : vector<16x128xf32>
      %cst_103 = arith.constant dense<0.000000e+00> : vector<16x128xf32>
      %171 = tpu.matmul %166, %161, %cst_103 {dimension_numbers = #tpu.dot_dimension_numbers<[1], [0], [0], [1], [0, 0, 1, 1], [], []>} : vector<16x8xf32>, vector<8x128xf32>, vector<16x128xf32> -> vector<16x128xf32>
      %172 = arith.addf %170, %171 : vector<16x128xf32>
      %c0_104 = arith.constant 0 : index
      %c0_105 = arith.constant 0 : index
      %173 = vector.load %arg8[%c0_104, %c0_105] : memref<8x1xf32, #tpu.memory_space<vmem>>, vector<8x1xf32>
      %cst_106 = arith.constant dense<0.000000e+00> : vector<8x128xf32>
      %174 = tpu.matmul %166, %172, %cst_106 {dimension_numbers = #tpu.dot_dimension_numbers<[0], [0], [1], [1], [0, 1, 1, 1], [], []>} : vector<16x8xf32>, vector<16x128xf32>, vector<8x128xf32> -> vector<8x128xf32>
      %175 = arith.mulf %172, %172 : vector<16x128xf32>
      %cst_107 = arith.constant dense<0.000000e+00> : vector<8x128xf32>
      %176 = tpu.matmul %166, %175, %cst_107 {dimension_numbers = #tpu.dot_dimension_numbers<[0], [0], [1], [1], [0, 1, 1, 1], [], []>} : vector<16x8xf32>, vector<16x128xf32>, vector<8x128xf32> -> vector<8x128xf32>
      %cst_108 = arith.constant dense<0.000000e+00> : vector<8xf32>
      %177 = vector.multi_reduction <add>, %174, %cst_108 [1] : vector<8x128xf32> to vector<8xf32>
      %178 = vector.shape_cast %177 : vector<8xf32> to vector<8x1xf32>
      %179 = arith.mulf %178, %173 : vector<8x1xf32>
      %cst_109 = arith.constant dense<0.000000e+00> : vector<8xf32>
      %180 = vector.multi_reduction <add>, %176, %cst_109 [1] : vector<8x128xf32> to vector<8xf32>
      %181 = vector.shape_cast %180 : vector<8xf32> to vector<8x1xf32>
      %182 = arith.mulf %181, %173 : vector<8x1xf32>
      %183 = arith.mulf %179, %179 : vector<8x1xf32>
      %184 = arith.subf %182, %183 : vector<8x1xf32>
      %cst_110 = arith.constant 0.000000e+00 : f32
      %185 = vector.broadcast %cst_110 : f32 to vector<8x1xf32>
      %186 = arith.maximumf %184, %185 : vector<8x1xf32>
      %cst_111 = arith.constant dense<0.000000e+00> : vector<16x1xf32>
      %187 = tpu.matmul %166, %179, %cst_111 {dimension_numbers = #tpu.dot_dimension_numbers<[1], [0], [0], [1], [0, 0, 1, 1], [], []>} : vector<16x8xf32>, vector<8x1xf32>, vector<16x1xf32> -> vector<16x1xf32>
      %cst_112 = arith.constant dense<0.000000e+00> : vector<16x1xf32>
      %188 = tpu.matmul %166, %186, %cst_112 {dimension_numbers = #tpu.dot_dimension_numbers<[1], [0], [0], [1], [0, 0, 1, 1], [], []>} : vector<16x8xf32>, vector<8x1xf32>, vector<16x1xf32> -> vector<16x1xf32>
      %189 = vector.broadcast %187 : vector<16x1xf32> to vector<16x128xf32>
      %190 = arith.subf %172, %189 : vector<16x128xf32>
      %cst_113 = arith.constant 9.99999974E-6 : f32
      %191 = vector.broadcast %cst_113 : f32 to vector<16x1xf32>
      %192 = arith.addf %188, %191 : vector<16x1xf32>
      %193 = math.rsqrt %192 : vector<16x1xf32>
      %194 = vector.broadcast %193 : vector<16x1xf32> to vector<16x128xf32>
      %195 = arith.mulf %190, %194 : vector<16x128xf32>
      %c0_114 = arith.constant 0 : index
      %c0_115 = arith.constant 0 : index
      %196 = vector.load %arg30[%c0_114, %c0_115] : memref<1x128xf32, #tpu.memory_space<vmem>>, vector<1x128xf32>
      %197 = vector.broadcast %196 : vector<1x128xf32> to vector<16x128xf32>
      %198 = arith.mulf %195, %197 : vector<16x128xf32>
      %c0_116 = arith.constant 0 : index
      %c0_117 = arith.constant 0 : index
      %199 = vector.load %arg31[%c0_116, %c0_117] : memref<1x128xf32, #tpu.memory_space<vmem>>, vector<1x128xf32>
      %200 = vector.broadcast %199 : vector<1x128xf32> to vector<16x128xf32>
      %201 = arith.addf %198, %200 : vector<16x128xf32>
      %202 = arith.truncf %201 : vector<16x128xf32> to vector<16x128xbf16>
      %c0_118 = arith.constant 0 : index
      %c0_119 = arith.constant 0 : index
      %203 = vector.load %arg32[%c0_118, %c0_119] : memref<128x128xbf16, #tpu.memory_space<vmem>>, vector<128x128xbf16>
      %cst_120 = arith.constant dense<0.000000e+00> : vector<16x128xf32>
      %204 = tpu.matmul %202, %203, %cst_120 {dimension_numbers = #tpu.dot_dimension_numbers<[1], [0], [0], [1], [0, 0, 1, 1], [], []>} : vector<16x128xbf16>, vector<128x128xbf16>, vector<16x128xf32> -> vector<16x128xf32>
      %c0_121 = arith.constant 0 : index
      %c0_122 = arith.constant 0 : index
      %205 = vector.load %arg33[%c0_121, %c0_122] : memref<1x128xf32, #tpu.memory_space<vmem>>, vector<1x128xf32>
      %206 = vector.broadcast %205 : vector<1x128xf32> to vector<16x128xf32>
      %207 = arith.addf %204, %206 : vector<16x128xf32>
      %cst_123 = arith.constant 5.000000e-01 : f32
      %208 = vector.broadcast %cst_123 : f32 to vector<16x128xf32>
      %209 = arith.mulf %208, %207 : vector<16x128xf32>
      %cst_124 = arith.constant 4.471500e-02 : f32
      %210 = vector.broadcast %cst_124 : f32 to vector<16x128xf32>
      %211 = arith.mulf %210, %207 : vector<16x128xf32>
      %212 = arith.mulf %211, %207 : vector<16x128xf32>
      %213 = arith.mulf %212, %207 : vector<16x128xf32>
      %214 = arith.addf %207, %213 : vector<16x128xf32>
      %cst_125 = arith.constant 0.797884583 : f32
      %215 = vector.broadcast %cst_125 : f32 to vector<16x128xf32>
      %216 = arith.mulf %215, %214 : vector<16x128xf32>
      %217 = math.tanh %216 : vector<16x128xf32>
      %cst_126 = arith.constant 1.000000e+00 : f32
      %218 = vector.broadcast %cst_126 : f32 to vector<16x128xf32>
      %219 = arith.addf %218, %217 : vector<16x128xf32>
      %220 = arith.mulf %209, %219 : vector<16x128xf32>
      %221 = arith.truncf %220 : vector<16x128xf32> to vector<16x128xbf16>
      %c0_127 = arith.constant 0 : index
      %c0_128 = arith.constant 0 : index
      %222 = vector.load %arg34[%c0_127, %c0_128] : memref<128x128xbf16, #tpu.memory_space<vmem>>, vector<128x128xbf16>
      %cst_129 = arith.constant dense<0.000000e+00> : vector<16x128xf32>
      %223 = tpu.matmul %221, %222, %cst_129 {dimension_numbers = #tpu.dot_dimension_numbers<[1], [0], [0], [1], [0, 0, 1, 1], [], []>} : vector<16x128xbf16>, vector<128x128xbf16>, vector<16x128xf32> -> vector<16x128xf32>
      %c0_130 = arith.constant 0 : index
      %c0_131 = arith.constant 0 : index
      %224 = vector.load %arg35[%c0_130, %c0_131] : memref<1x128xf32, #tpu.memory_space<vmem>>, vector<1x128xf32>
      %225 = vector.broadcast %224 : vector<1x128xf32> to vector<16x128xf32>
      %226 = arith.addf %223, %225 : vector<16x128xf32>
      %227 = arith.addf %226, %201 : vector<16x128xf32>
      %228 = vector.broadcast %118 : vector<16x1xf32> to vector<16x128xf32>
      %229 = arith.mulf %227, %228 : vector<16x128xf32>
      %c0_132 = arith.constant 0 : index
      %c0_133 = arith.constant 0 : index
      %230 = vector.load %arg38[%c0_132, %c0_133] : memref<16x128xf32, #tpu.memory_space<vmem>>, vector<16x128xf32>
      tpu.vector_store %arg38[%c0_132, %c0_133], %229 {strides = array<i32>} : memref<16x128xf32, #tpu.memory_space<vmem>>, vector<16x128xf32>,
    } else {
    }
    return
  }
  func.func @transform_0(%arg0: i32) -> (i32, i32) {
    %c0_i32 = arith.constant 0 : i32
    %c0_i32_0 = arith.constant 0 : i32
    return %arg0, %c0_i32 : i32, i32
  }
  func.func @transform_1(%arg0: i32) -> (i32, i32) {
    %c0_i32 = arith.constant 0 : i32
    %c0_i32_0 = arith.constant 0 : i32
    return %arg0, %c0_i32 : i32, i32
  }
  func.func @transform_2(%arg0: i32) -> (i32, i32) {
    %c0_i32 = arith.constant 0 : i32
    %c0_i32_0 = arith.constant 0 : i32
    return %arg0, %c0_i32 : i32, i32
  }
  func.func @transform_3(%arg0: i32) -> (i32, i32) {
    %c0_i32 = arith.constant 0 : i32
    %c0_i32_0 = arith.constant 0 : i32
    %c0_i32_1 = arith.constant 0 : i32
    return %c0_i32, %c0_i32_0 : i32, i32
  }
  func.func @transform_4(%arg0: i32) -> (i32, i32) {
    %c0_i32 = arith.constant 0 : i32
    %c0_i32_0 = arith.constant 0 : i32
    %c0_i32_1 = arith.constant 0 : i32
    return %c0_i32, %c0_i32_0 : i32, i32
  }
  func.func @transform_5(%arg0: i32) -> (i32, i32) {
    %c0_i32 = arith.constant 0 : i32
    %c0_i32_0 = arith.constant 0 : i32
    %c0_i32_1 = arith.constant 0 : i32
    return %c0_i32, %c0_i32_0 : i32, i32
  }
  func.func @transform_6(%arg0: i32) -> (i32, i32) {
    %c0_i32 = arith.constant 0 : i32
    %c0_i32_0 = arith.constant 0 : i32
    %c0_i32_1 = arith.constant 0 : i32
    return %c0_i32, %c0_i32_0 : i32, i32
  }
  func.func @transform_7(%arg0: i32) -> (i32, i32) {
    %c0_i32 = arith.constant 0 : i32
    %c0_i32_0 = arith.constant 0 : i32
    %c0_i32_1 = arith.constant 0 : i32
    return %c0_i32, %c0_i32_0 : i32, i32
  }
  func.func @transform_8(%arg0: i32) -> (i32, i32) {
    %c0_i32 = arith.constant 0 : i32
    %c0_i32_0 = arith.constant 0 : i32
    %c0_i32_1 = arith.constant 0 : i32
    return %c0_i32, %c0_i32_0 : i32, i32
  }
  func.func @transform_9(%arg0: i32) -> (i32, i32) {
    %c0_i32 = arith.constant 0 : i32
    %c0_i32_0 = arith.constant 0 : i32
    %c0_i32_1 = arith.constant 0 : i32
    return %c0_i32, %c0_i32_0 : i32, i32
  }
  func.func @transform_10(%arg0: i32) -> (i32, i32) {
    %c0_i32 = arith.constant 0 : i32
    %c0_i32_0 = arith.constant 0 : i32
    %c0_i32_1 = arith.constant 0 : i32
    return %c0_i32, %c0_i32_0 : i32, i32
  }
  func.func @transform_11(%arg0: i32) -> (i32, i32) {
    %c0_i32 = arith.constant 0 : i32
    %c0_i32_0 = arith.constant 0 : i32
    %c0_i32_1 = arith.constant 0 : i32
    return %c0_i32, %c0_i32_0 : i32, i32
  }
  func.func @transform_12(%arg0: i32) -> (i32, i32) {
    %c0_i32 = arith.constant 0 : i32
    %c0_i32_0 = arith.constant 0 : i32
    %c0_i32_1 = arith.constant 0 : i32
    return %c0_i32, %c0_i32_0 : i32, i32
  }
  func.func @transform_13(%arg0: i32) -> (i32, i32) {
    %c0_i32 = arith.constant 0 : i32
    %c0_i32_0 = arith.constant 0 : i32
    %c0_i32_1 = arith.constant 0 : i32
    return %c0_i32, %c0_i32_0 : i32, i32
  }
  func.func @transform_14(%arg0: i32) -> (i32, i32) {
    %c0_i32 = arith.constant 0 : i32
    %c0_i32_0 = arith.constant 0 : i32
    %c0_i32_1 = arith.constant 0 : i32
    return %c0_i32, %c0_i32_0 : i32, i32
  }
  func.func @transform_15(%arg0: i32) -> (i32, i32) {
    %c0_i32 = arith.constant 0 : i32
    %c0_i32_0 = arith.constant 0 : i32
    %c0_i32_1 = arith.constant 0 : i32
    return %c0_i32, %c0_i32_0 : i32, i32
  }
  func.func @transform_16(%arg0: i32) -> (i32, i32) {
    %c0_i32 = arith.constant 0 : i32
    %c0_i32_0 = arith.constant 0 : i32
    %c0_i32_1 = arith.constant 0 : i32
    return %c0_i32, %c0_i32_0 : i32, i32
  }
  func.func @transform_17(%arg0: i32) -> (i32, i32) {
    %c0_i32 = arith.constant 0 : i32
    %c0_i32_0 = arith.constant 0 : i32
    %c0_i32_1 = arith.constant 0 : i32
    return %c0_i32, %c0_i32_0 : i32, i32
  }
  func.func @transform_18(%arg0: i32) -> (i32, i32) {
    %c0_i32 = arith.constant 0 : i32
    %c0_i32_0 = arith.constant 0 : i32
    %c0_i32_1 = arith.constant 0 : i32
    return %c0_i32, %c0_i32_0 : i32, i32
  }
  func.func @transform_19(%arg0: i32) -> (i32, i32) {
    %c0_i32 = arith.constant 0 : i32
    %c0_i32_0 = arith.constant 0 : i32
    %c0_i32_1 = arith.constant 0 : i32
    return %c0_i32, %c0_i32_0 : i32, i32
  }
  func.func @transform_20(%arg0: i32) -> (i32, i32) {
    %c0_i32 = arith.constant 0 : i32
    %c0_i32_0 = arith.constant 0 : i32
    %c0_i32_1 = arith.constant 0 : i32
    return %c0_i32, %c0_i32_0 : i32, i32
  }
  func.func @transform_21(%arg0: i32) -> (i32, i32) {
    %c0_i32 = arith.constant 0 : i32
    %c0_i32_0 = arith.constant 0 : i32
    %c0_i32_1 = arith.constant 0 : i32
    return %c0_i32, %c0_i32_0 : i32, i32
  }
  func.func @transform_22(%arg0: i32) -> (i32, i32) {
    %c0_i32 = arith.constant 0 : i32
    %c0_i32_0 = arith.constant 0 : i32
    %c0_i32_1 = arith.constant 0 : i32
    return %c0_i32, %c0_i32_0 : i32, i32
  }
  func.func @transform_23(%arg0: i32) -> (i32, i32) {
    %c0_i32 = arith.constant 0 : i32
    %c0_i32_0 = arith.constant 0 : i32
    %c0_i32_1 = arith.constant 0 : i32
    return %c0_i32, %c0_i32_0 : i32, i32
  }
  func.func @transform_24(%arg0: i32) -> (i32, i32) {
    %c0_i32 = arith.constant 0 : i32
    %c0_i32_0 = arith.constant 0 : i32
    %c0_i32_1 = arith.constant 0 : i32
    return %c0_i32, %c0_i32_0 : i32, i32
  }
  func.func @transform_25(%arg0: i32) -> (i32, i32) {
    %c0_i32 = arith.constant 0 : i32
    %c0_i32_0 = arith.constant 0 : i32
    %c0_i32_1 = arith.constant 0 : i32
    return %c0_i32, %c0_i32_0 : i32, i32
  }
  func.func @transform_26(%arg0: i32) -> (i32, i32) {
    %c0_i32 = arith.constant 0 : i32
    %c0_i32_0 = arith.constant 0 : i32
    %c0_i32_1 = arith.constant 0 : i32
    return %c0_i32, %c0_i32_0 : i32, i32
  }
  func.func @transform_27(%arg0: i32) -> (i32, i32) {
    %c0_i32 = arith.constant 0 : i32
    %c0_i32_0 = arith.constant 0 : i32
    %c0_i32_1 = arith.constant 0 : i32
    return %c0_i32, %c0_i32_0 : i32, i32
  }
  func.func @transform_28(%arg0: i32) -> (i32, i32) {
    %c0_i32 = arith.constant 0 : i32
    %c0_i32_0 = arith.constant 0 : i32
    %c0_i32_1 = arith.constant 0 : i32
    return %c0_i32, %c0_i32_0 : i32, i32
  }
  func.func @transform_29(%arg0: i32) -> (i32, i32) {
    %c0_i32 = arith.constant 0 : i32
    %c0_i32_0 = arith.constant 0 : i32
    %c0_i32_1 = arith.constant 0 : i32
    return %c0_i32, %c0_i32_0 : i32, i32
  }
  func.func @transform_30(%arg0: i32) -> (i32, i32) {
    %c0_i32 = arith.constant 0 : i32
    %c0_i32_0 = arith.constant 0 : i32
    %c0_i32_1 = arith.constant 0 : i32
    return %c0_i32, %c0_i32_0 : i32, i32
  }
  func.func @transform_31(%arg0: i32) -> (i32, i32) {
    %c0_i32 = arith.constant 0 : i32
    %c0_i32_0 = arith.constant 0 : i32
    %c0_i32_1 = arith.constant 0 : i32
    return %c0_i32, %c0_i32_0 : i32, i32
  }
  func.func @transform_32(%arg0: i32) -> (i32, i32) {
    %c0_i32 = arith.constant 0 : i32
    %c0_i32_0 = arith.constant 0 : i32
    %c0_i32_1 = arith.constant 0 : i32
    return %c0_i32, %c0_i32_0 : i32, i32
  }
  func.func @transform_33(%arg0: i32) -> (i32, i32) {
    %c0_i32 = arith.constant 0 : i32
    %c0_i32_0 = arith.constant 0 : i32
    %c0_i32_1 = arith.constant 0 : i32
    return %c0_i32, %c0_i32_0 : i32, i32
  }
  func.func @transform_34(%arg0: i32) -> (i32, i32) {
    %c0_i32 = arith.constant 0 : i32
    %c0_i32_0 = arith.constant 0 : i32
    %c0_i32_1 = arith.constant 0 : i32
    return %c0_i32, %c0_i32_0 : i32, i32
  }
  func.func @transform_35(%arg0: i32) -> (i32, i32) {
    %c0_i32 = arith.constant 0 : i32
    %c0_i32_0 = arith.constant 0 : i32
    return %arg0, %c0_i32 : i32, i32
  }
  func.func @transform_36(%arg0: i32) -> (i32, i32) {
    %c0_i32 = arith.constant 0 : i32
    %c0_i32_0 = arith.constant 0 : i32
    %c0_i32_1 = arith.constant 0 : i32
    return %c0_i32, %c0_i32_0 : i32, i32
  }
  func.func @transform_37(%arg0: i32) -> (i32, i32) {
    %c0_i32 = arith.constant 0 : i32
    %c0_i32_0 = arith.constant 0 : i32
    %c0_i32_1 = arith.constant 0 : i32
    return %c0_i32, %c0_i32_0 : i32, i32
  }
}

module attributes {stable_mosaic.version = 11 : i64} {
  func.func @_mlp2_kernel(%arg0: i32, %arg1: memref<16x128xf32, #tpu.memory_space<vmem>>, %arg2: memref<128x128xbf16, #tpu.memory_space<vmem>>, %arg3: memref<1x128xf32, #tpu.memory_space<vmem>>, %arg4: memref<128x128xbf16, #tpu.memory_space<vmem>>, %arg5: memref<1x128xf32, #tpu.memory_space<vmem>>, %arg6: memref<16x128xf32, #tpu.memory_space<vmem>>) attributes {dimension_semantics = [#tpu.dimension_semantics<parallel>], iteration_bounds = array<i64: 1>, scalar_prefetch = 0 : i64, scratch_operands = 0 : i64, tpu.core_type = #tpu.core_type<tc>, window_params = [{transform_indices = @transform_0, window_bounds = array<i64: 16, 128>}, {pipeline_mode = #tpu.pipeline_mode<synchronous>, transform_indices = @transform_1, window_bounds = array<i64: 128, 128>}, {pipeline_mode = #tpu.pipeline_mode<synchronous>, transform_indices = @transform_2, window_bounds = array<i64: 1, 128>}, {pipeline_mode = #tpu.pipeline_mode<synchronous>, transform_indices = @transform_3, window_bounds = array<i64: 128, 128>}, {pipeline_mode = #tpu.pipeline_mode<synchronous>, transform_indices = @transform_4, window_bounds = array<i64: 1, 128>}, {transform_indices = @transform_5, window_bounds = array<i64: 16, 128>}]} {
    %c0 = arith.constant 0 : index
    %c0_0 = arith.constant 0 : index
    %0 = vector.load %arg1[%c0, %c0_0] : memref<16x128xf32, #tpu.memory_space<vmem>>, vector<16x128xf32>
    %1 = arith.truncf %0 : vector<16x128xf32> to vector<16x128xbf16>
    %c0_1 = arith.constant 0 : index
    %c0_2 = arith.constant 0 : index
    %2 = vector.load %arg2[%c0_1, %c0_2] : memref<128x128xbf16, #tpu.memory_space<vmem>>, vector<128x128xbf16>
    %cst = arith.constant dense<0.000000e+00> : vector<16x128xf32>
    %3 = tpu.matmul %1, %2, %cst {dimension_numbers = #tpu.dot_dimension_numbers<[1], [0], [0], [1], [0, 0, 1, 1], [], []>} : vector<16x128xbf16>, vector<128x128xbf16>, vector<16x128xf32> -> vector<16x128xf32>
    %c0_3 = arith.constant 0 : index
    %c0_4 = arith.constant 0 : index
    %4 = vector.load %arg3[%c0_3, %c0_4] : memref<1x128xf32, #tpu.memory_space<vmem>>, vector<1x128xf32>
    %5 = vector.broadcast %4 : vector<1x128xf32> to vector<16x128xf32>
    %6 = arith.addf %3, %5 : vector<16x128xf32>
    %7 = arith.negf %6 : vector<16x128xf32>
    %8 = math.exp %7 : vector<16x128xf32>
    %cst_5 = arith.constant 1.000000e+00 : f32
    %9 = vector.broadcast %cst_5 : f32 to vector<16x128xf32>
    %10 = arith.addf %9, %8 : vector<16x128xf32>
    %11 = arith.divf %9, %10 : vector<16x128xf32>
    %12 = arith.mulf %6, %11 : vector<16x128xf32>
    %13 = arith.truncf %12 : vector<16x128xf32> to vector<16x128xbf16>
    %c0_6 = arith.constant 0 : index
    %c0_7 = arith.constant 0 : index
    %14 = vector.load %arg4[%c0_6, %c0_7] : memref<128x128xbf16, #tpu.memory_space<vmem>>, vector<128x128xbf16>
    %cst_8 = arith.constant dense<0.000000e+00> : vector<16x128xf32>
    %15 = tpu.matmul %13, %14, %cst_8 {dimension_numbers = #tpu.dot_dimension_numbers<[1], [0], [0], [1], [0, 0, 1, 1], [], []>} : vector<16x128xbf16>, vector<128x128xbf16>, vector<16x128xf32> -> vector<16x128xf32>
    %c0_9 = arith.constant 0 : index
    %c0_10 = arith.constant 0 : index
    %16 = vector.load %arg5[%c0_9, %c0_10] : memref<1x128xf32, #tpu.memory_space<vmem>>, vector<1x128xf32>
    %17 = vector.broadcast %16 : vector<1x128xf32> to vector<16x128xf32>
    %18 = arith.addf %15, %17 : vector<16x128xf32>
    %c0_11 = arith.constant 0 : index
    %c0_12 = arith.constant 0 : index
    %19 = vector.load %arg6[%c0_11, %c0_12] : memref<16x128xf32, #tpu.memory_space<vmem>>, vector<16x128xf32>
    tpu.vector_store %arg6[%c0_11, %c0_12], %18 {strides = array<i32>} : memref<16x128xf32, #tpu.memory_space<vmem>>, vector<16x128xf32>,
    return
  }
  func.func @transform_0(%arg0: i32) -> (i32, i32) {
    %c0_i32 = arith.constant 0 : i32
    %c0_i32_0 = arith.constant 0 : i32
    return %arg0, %c0_i32 : i32, i32
  }
  func.func @transform_1(%arg0: i32) -> (i32, i32) {
    %c0_i32 = arith.constant 0 : i32
    %c0_i32_0 = arith.constant 0 : i32
    %c0_i32_1 = arith.constant 0 : i32
    return %c0_i32, %c0_i32_0 : i32, i32
  }
  func.func @transform_2(%arg0: i32) -> (i32, i32) {
    %c0_i32 = arith.constant 0 : i32
    %c0_i32_0 = arith.constant 0 : i32
    %c0_i32_1 = arith.constant 0 : i32
    return %c0_i32, %c0_i32_0 : i32, i32
  }
  func.func @transform_3(%arg0: i32) -> (i32, i32) {
    %c0_i32 = arith.constant 0 : i32
    %c0_i32_0 = arith.constant 0 : i32
    %c0_i32_1 = arith.constant 0 : i32
    return %c0_i32, %c0_i32_0 : i32, i32
  }
  func.func @transform_4(%arg0: i32) -> (i32, i32) {
    %c0_i32 = arith.constant 0 : i32
    %c0_i32_0 = arith.constant 0 : i32
    %c0_i32_1 = arith.constant 0 : i32
    return %c0_i32, %c0_i32_0 : i32, i32
  }
  func.func @transform_5(%arg0: i32) -> (i32, i32) {
    %c0_i32 = arith.constant 0 : i32
    %c0_i32_0 = arith.constant 0 : i32
    return %arg0, %c0_i32 : i32, i32
  }
}

</mosaic_0001>

<bundles_post_ra>
// kernel: egnn_net2_forward.7
= control target key start
LH: loop header
LB: loop body
LE: loop exit
PB: predicated region body
PF: predicated region fallthrough
CT: control target
= control target key end

     0   :  { %v393_v1 = vmov 0.0   ;;  %vm394_vm0 = vmmov 0   ;;  %s495_s0 = inlined_call_operand.vmem [shape: f32[8,128], index: 0, kind: input, shape index: {}]   ;;  %s496_s1 = inlined_call_operand.vmem [shape: bf16[128,128], index: 1, kind: input, shape index: {}]   ;;  %s497_s2 = inlined_call_operand.vmem [shape: f32[1,128], index: 2, kind: input, shape index: {}]   ;;  %s498_s3 = inlined_call_operand.vmem [shape: bf16[128,128], index: 3, kind: input, shape index: {}]   ;;  %s499_s4 = inlined_call_operand.vmem [shape: f32[1,128], index: 4, kind: input, shape index: {}]   ;;  %s500_s5 = inlined_call_operand.hbm [shape: f32[8,128], index: 5, kind: output, shape index: {}]  }
   0x1   :  { %v349_v0 = vld [vmem:[%s496_s1] sm:$0xff]   ;;  %306 = vmatprep.subr.bf16.mxu0 %v393_v1  ;;  %326 = vmatprep.subr.bf16.mxu1 %v393_v1  ;;  %v350_v2 = vld [vmem:[%s496_s1 + $0x8] sm:$0xff]   ;;  %v351_v3 = vld [vmem:[%s496_s1 + $0x10] sm:$0xff]  }
   0x2   :  { %307 = vmatpush3.bf16.msra.mxu0 %v349_v0  ;;  %322 = vmatprep.mubr.msk.bf16.mxu0 %vm394_vm0, %v393_v1  ;;  %v352_v4 = vld [vmem:[%s496_s1 + $0x18] sm:$0xff]   ;;  %v353_v5 = vld [vmem:[%s496_s1 + $0x20] sm:$0xff]  }
   0x3   :  { %308 = vmatprep.subr.bf16.mxu0 %v393_v1  ;;  %342 = vmatprep.mubr.msk.bf16.mxu1 %vm394_vm0, %v393_v1 }
   0x6   :  { %309 = vmatpush3.bf16.msra.mxu0 %v350_v2 }
   0x7   :  { %310 = vmatprep.subr.bf16.mxu0 %v393_v1 }
   0xa   :  { %311 = vmatpush3.bf16.msra.mxu0 %v351_v3 }
   0xb   :  { %312 = vmatprep.subr.bf16.mxu0 %v393_v1 }
   0xe   :  { %313 = vmatpush3.bf16.msra.mxu0 %v352_v4 }
   0xf   :  { %10 = vsyncpa [#allocation3], 0  ;;  %314 = vmatprep.subr.bf16.mxu0 %v393_v1  ;;  %v354_v6 = vld [vmem:[%s496_s1 + $0x28] sm:$0xff]   ;;  %v355_v7 = vld [vmem:[%s496_s1 + $0x30] sm:$0xff]   ;;  %s395_s28 = smov [#allocation2]  }
  0x10   :  { %v356_v8 = vld [vmem:[%s496_s1 + $0x38] sm:$0xff]   ;;  %v22_v9 = vld [vmem:[%s495_s0] sm:$0xff]  ;;  %v358_v12 = vld [vmem:[%s498_s3 + $0x8] sm:$0xff]  }
  0x11   :  { %v23_v10 = vpack.c.bf16 %v22_v9, %v22_v9  ;;  %v357_v11 = vld [vmem:[%s498_s3] sm:$0xff]   ;;  %v359_v13 = vld [vmem:[%s498_s3 + $0x10] sm:$0xff]   ;;  %v360_v14 = vld [vmem:[%s498_s3 + $0x18] sm:$0xff]  }
  0x12   :  { %315 = vmatpush3.bf16.msra.mxu0 %v353_v5  ;;  %327 = vmatpush3.bf16.msra.mxu1 %v357_v11  ;;  %v361_v15 = vld [vmem:[%s498_s3 + $0x20] sm:$0xff]   ;;  %v362_v16 = vld [vmem:[%s498_s3 + $0x28] sm:$0xff]   ;;  %v363_v17 = vld [vmem:[%s498_s3 + $0x30] sm:$0xff]  }
  0x13   :  { %316 = vmatprep.subr.bf16.mxu0 %v393_v1  ;;  %328 = vmatprep.subr.bf16.mxu1 %v393_v1  ;;  %v364_v18 = vld [vmem:[%s498_s3 + $0x38] sm:$0xff]   ;;  %v269_v19 = vld [vmem:[%s497_s2] ss:$0 sm:$0xff]  ;;  %s261_s2 = sshll.u32 %s395_s28, 4  ;;  %s262_s2 = int_to_ptr.vmem [resolvable:$true] %s261_s2 }
  0x14   :  { %v279_v31 = vld [vmem:[%s499_s4] ss:$0 sm:$0xff]  ;;  %s369_s29 = scalar_lea.vmem %s262_s2, 128  ;;  %p374_p1 = scmp.lt.s32.totalorder %s262_s2, %s262_s2 }
  0x15   :  { %p370_p0 = scmp.ne.s32.totalorder %s262_s2, %s369_s29  ;;  %p375_p2 = scmp.lt.s32.totalorder %s369_s29, %s369_s29 }
  0x16   :  { %317 = vmatpush3.bf16.msra.mxu0 %v354_v6  ;;  %329 = vmatpush3.bf16.msra.mxu1 %v358_v12 }
  0x17   :  { %318 = vmatprep.subr.bf16.mxu0 %v393_v1  ;;  %330 = vmatprep.subr.bf16.mxu1 %v393_v1  ;;  %p376_p3 = por %p375_p2, %p374_p1 }
  0x19   :  { %p377_p4 = pnand %p376_p3, %p370_p0 }
  0x1a   :  { %319 = vmatpush3.bf16.msra.mxu0 %v355_v7  ;;  %331 = vmatpush3.bf16.msra.mxu1 %v359_v13 }
  0x1b   :  { %320 = vmatprep.subr.bf16.mxu0 %v393_v1  ;;  %332 = vmatprep.subr.bf16.mxu1 %v393_v1 }
  0x1e   :  { %321 = vmatpush3.bf16.msra.mxu0 %v356_v8  ;;  %333 = vmatpush3.bf16.msra.mxu1 %v360_v14 }
  0x1f   :  { %334 = vmatprep.subr.bf16.mxu1 %v393_v1 }
  0x21   :  { %323 = vmatmul.mubr.bf16.vlgmr.msra.gmra.mrb[0].mxu0 %v23_v10 }
  0x22   :  { %335 = vmatpush3.bf16.msra.mxu1 %v361_v15 }
  0x23   :  { %336 = vmatprep.subr.bf16.mxu1 %v393_v1 }
  0x26   :  { %337 = vmatpush3.bf16.msra.mxu1 %v362_v16 }
  0x27   :  { %338 = vmatprep.subr.bf16.mxu1 %v393_v1 }
  0x2a   :  { %339 = vmatpush3.bf16.msra.mxu1 %v363_v17 }
  0x2b   :  { %340 = vmatprep.subr.bf16.mxu1 %v393_v1 }
  0x2e   :  { %341 = vmatpush3.bf16.msra.mxu1 %v364_v18 }
  0xf4   :  { %v129_v20 = vpop.f32.mrb[0].mxu0 }
  0xf5   :  { %v130_v21 = vadd.f32 %v269_v19, %v129_v20  ;;  %v324_v22 = vpop.f32.mrb[1].mxu0 }
  0xf6   :  { %v132_v23 = vpop.f32.mrb[2].mxu0 }
  0xf7   :  { %v278_v24 = vmul.f32 -1.442695, %v130_v21  ;;  %v325_v25 = vpop.f32.mrb[3].mxu0 }
  0xf9   :  { %365 = vpow2.f32 %v278_v24 }
 0x103   :  { %v366_v26 = vpop.eup %365 }
 0x104   :  { %v138_v27 = vadd.f32 1.0, %v366_v26 }
 0x106   :  { %367 = vrcp.f32 %v138_v27 }
 0x110   :  { %v368_v28 = vpop.eup %367 }
 0x111   :  { %v141_v29 = vmul.f32 %v368_v28, %v130_v21 }
 0x113   :  { %v142_v30 = vpack.c.bf16 %v141_v29, %v141_v29 }
 0x115   :  { %343 = vmatmul.mubr.bf16.vlgmr.msra.gmra.mrb[0].mxu1 %v142_v30 }
 0x1e8   :  { %v248_v32 = vpop.f32.mrb[0].mxu1 }
 0x1e9   :  { %v249_v33 = vadd.f32 %v279_v31, %v248_v32  ;;  %v344_v34 = vpop.f32.mrb[1].mxu1 }
 0x1ea   :  { %v251_v35 = vpop.f32.mrb[2].mxu1 }
 0x1eb   :  { %254 = vst [vmem:[#allocation2] sm:$0xff] %v249_v33  ;;  %v345_v36 = vpop.f32.mrb[3].mxu1 }
 0x1ec   :  { %380 = shalt.err (!%p377_p4)
}
 0x1ed   :  { %s381_s4 = scalar_lea.hbm %s500_s5, 128 }
 0x1ee   :  { %p382_p5 = scmp.ne.s32.totalorder %s500_s5, %s381_s4  ;;  %p385_p6 = scmp.lt.u32.totalorder %s381_s4, %s500_s5 }
 0x1f0   :  { %p387_p7 = pnand %p385_p6, %p382_p5 }
 0x1f2   :  { %390 = shalt.err (!%p387_p7)
}
 0x1f3   :  { %264 = dma.vmem_to_hbm [thread:$0]  %s262_s2, 128, %s500_s5, [#allocation3]  }
 0x1f4   :  { %391 = dma.done.wait [#allocation3], 128  }
 0x1f5   :  { %392 = vsyncadd [#allocation3], 4294967168 }
 0x1f6   :  { %268 = vsyncpa [#allocation3], 1 }

// kernel: egnn_net2_forward.8
= control target key start
LH: loop header
LB: loop body
LE: loop exit
PB: predicated region body
PF: predicated region fallthrough
CT: control target
= control target key end

     0   :  { %s458_s0 = inlined_call_operand.vmem [shape: f32[128,128], index: 0, kind: input, shape index: {}]   ;;  %s459_s1 = inlined_call_operand.vmem [shape: bf16[128,128], index: 1, kind: input, shape index: {}]   ;;  %s460_s2 = inlined_call_operand.vmem [shape: f32[1,128], index: 2, kind: input, shape index: {}]   ;;  %s461_s3 = inlined_call_operand.hbm [shape: f32[128,128], index: 3, kind: output, shape index: {}]  }
   0x1   :  { %v316_v0 = vld [vmem:[%s459_s1] sm:$0xff]   ;;  %v317_v1 = vld [vmem:[%s459_s1 + $0x8] sm:$0xff]   ;;  %v318_v2 = vld [vmem:[%s459_s1 + $0x10] sm:$0xff]  }
   0x2   :  { %265 = vmatprep.subr.bf16.mxu0 %v316_v0  ;;  %297 = vmatprep.subr.bf16.mxu1 %v316_v0  ;;  %v319_v3 = vld [vmem:[%s459_s1 + $0x18] sm:$0xff]   ;;  %v16_v4 = vld [vmem:[%s458_s0] sm:$0xff]  ;;  %v17_v5 = vld [vmem:[%s458_s0 + $0x8] sm:$0xff] }
   0x3   :  { %266 = vmatpush3.bf16.msra.mxu0 %v316_v0  ;;  %305 = vmatpush3.bf16.msra.mxu1 %v316_v0  ;;  %v24_v6 = vld [vmem:[%s458_s0 + $0x40] sm:$0xff]  ;;  %v32_v7 = vpack.c.bf16 %v17_v5, %v16_v4  ;;  %v25_v8 = vld [vmem:[%s458_s0 + $0x48] sm:$0xff] }
   0x4   :  { %267 = vmatprep.subr.bf16.mxu0 %v317_v1  ;;  %298 = vmatprep.subr.bf16.mxu1 %v317_v1  ;;  %v36_v9 = vpack.c.bf16 %v25_v8, %v24_v6  ;;  %v320_v10 = vld [vmem:[%s459_s1 + $0x20] sm:$0xff]  }
   0x5   :  { %281 = vmatprep.mubr.bf16.mxu0 %v32_v7 }
   0x6   :  { %289 = vmatprep.mubr.bf16.mxu1 %v36_v9 }
   0x7   :  { %268 = vmatpush3.bf16.msra.mxu0 %v317_v1  ;;  %306 = vmatpush3.bf16.msra.mxu1 %v317_v1 }
   0x8   :  { %269 = vmatprep.subr.bf16.mxu0 %v318_v2  ;;  %299 = vmatprep.subr.bf16.mxu1 %v318_v2 }
   0xb   :  { %270 = vmatpush3.bf16.msra.mxu0 %v318_v2  ;;  %307 = vmatpush3.bf16.msra.mxu1 %v318_v2 }
   0xc   :  { %271 = vmatprep.subr.bf16.mxu0 %v319_v3  ;;  %300 = vmatprep.subr.bf16.mxu1 %v319_v3 }
   0xd   :  { %8 = vsyncpa [#allocation3], 0  ;;  %v321_v11 = vld [vmem:[%s459_s1 + $0x28] sm:$0xff]   ;;  %v322_v12 = vld [vmem:[%s459_s1 + $0x30] sm:$0xff]  }
   0xe   :  { %v323_v13 = vld [vmem:[%s459_s1 + $0x38] sm:$0xff]   ;;  %v18_v14 = vld [vmem:[%s458_s0 + $0x10] sm:$0xff]  ;;  %v20_v18 = vld [vmem:[%s458_s0 + $0x20] sm:$0xff] }
   0xf   :  { %272 = vmatpush3.bf16.msra.mxu0 %v319_v3  ;;  %308 = vmatpush3.bf16.msra.mxu1 %v319_v3  ;;  %v19_v15 = vld [vmem:[%s458_s0 + $0x18] sm:$0xff]  ;;  %v26_v16 = vld [vmem:[%s458_s0 + $0x50] sm:$0xff]  ;;  %v21_v19 = vld [vmem:[%s458_s0 + $0x28] sm:$0xff] }
  0x10   :  { %273 = vmatprep.subr.bf16.mxu0 %v320_v10  ;;  %301 = vmatprep.subr.bf16.mxu1 %v320_v10  ;;  %v27_v17 = vld [vmem:[%s458_s0 + $0x58] sm:$0xff]  ;;  %v28_v20 = vld [vmem:[%s458_s0 + $0x60] sm:$0xff]  ;;  %v29_v21 = vld [vmem:[%s458_s0 + $0x68] sm:$0xff]  ;;  %v33_v22 = vpack.c.bf16 %v19_v15, %v18_v14  ;;  %v34_v24 = vpack.c.bf16 %v21_v19, %v20_v18 }
  0x11   :  { %v37_v23 = vpack.c.bf16 %v27_v17, %v26_v16  ;;  %v38_v25 = vpack.c.bf16 %v29_v21, %v28_v20  ;;  %v22_v26 = vld [vmem:[%s458_s0 + $0x30] sm:$0xff]  ;;  %v23_v27 = vld [vmem:[%s458_s0 + $0x38] sm:$0xff]  ;;  %v240_v32 = vld [vmem:[%s460_s2] ss:$0 sm:$0xff] }
  0x12   :  { %v30_v28 = vld [vmem:[%s458_s0 + $0x70] sm:$0xff]  ;;  %v31_v29 = vld [vmem:[%s458_s0 + $0x78] sm:$0xff]  ;;  %v35_v30 = vpack.c.bf16 %v23_v27, %v22_v26  ;;  %s348_s0 = smov [#allocation2]  }
  0x13   :  { %274 = vmatpush3.bf16.msra.mxu0 %v320_v10  ;;  %309 = vmatpush3.bf16.msra.mxu1 %v320_v10  ;;  %v39_v31 = vpack.c.bf16 %v31_v29, %v30_v28  ;;  %s229_s2 = sshll.u32 %s348_s0, 4  ;;  %s230_s2 = int_to_ptr.vmem [resolvable:$true] %s229_s2 }
  0x14   :  { %275 = vmatprep.subr.bf16.mxu0 %v321_v11  ;;  %302 = vmatprep.subr.bf16.mxu1 %v321_v11  ;;  %s324_s7 = scalar_lea.vmem %s230_s2, 2048  ;;  %p329_p1 = scmp.lt.s32.totalorder %s230_s2, %s230_s2 }
  0x15   :  { %p325_p0 = scmp.ne.s32.totalorder %s230_s2, %s324_s7  ;;  %p330_p2 = scmp.lt.s32.totalorder %s324_s7, %s324_s7 }
  0x17   :  { %276 = vmatpush3.bf16.msra.mxu0 %v321_v11  ;;  %310 = vmatpush3.bf16.msra.mxu1 %v321_v11  ;;  %p331_p3 = por %p330_p2, %p329_p1 }
  0x18   :  { %277 = vmatprep.subr.bf16.mxu0 %v322_v12  ;;  %303 = vmatprep.subr.bf16.mxu1 %v322_v12 }
  0x19   :  { %p332_p4 = pnand %p331_p3, %p325_p0 }
  0x1b   :  { %278 = vmatpush3.bf16.msra.mxu0 %v322_v12  ;;  %311 = vmatpush3.bf16.msra.mxu1 %v322_v12 }
  0x1c   :  { %279 = vmatprep.subr.bf16.mxu0 %v323_v13  ;;  %304 = vmatprep.subr.bf16.mxu1 %v323_v13 }
  0x1f   :  { %280 = vmatpush3.bf16.msra.mxu0 %v323_v13  ;;  %312 = vmatpush3.bf16.msra.mxu1 %v323_v13 }
  0x22   :  { %282 = vmatmul.mubr.bf16.vlgmr.msra.gmra.mrb[0].mxu0 %v33_v22  ;;  %290 = vmatmul.mubr.bf16.vlgmr.msra.gmra.mrb[0].mxu1 %v37_v23 }
  0x23   :  { %285 = vmatprep.mubr.bf16.mxu0 %v34_v24  ;;  %293 = vmatprep.mubr.bf16.mxu1 %v38_v25 }
  0x2a   :  { %286 = vmatmul.mubr.bf16.gmra.mrb[4].mxu0 %v35_v30  ;;  %294 = vmatmul.mubr.bf16.gmra.mrb[4].mxu1 %v39_v31 }
  0xf5   :  { %v283_v33 = vpop.f32.mrb[0].mxu0  ;;  %v291_v34 = vpop.f32.mrb[0].mxu1 }
  0xf6   :  { %v154_v35 = vadd.f32 %v283_v33, %v240_v32  ;;  %v186_v36 = vadd.f32 %v291_v34, %v240_v32  ;;  %v145_v37 = vpop.f32.mrb[1].mxu0  ;;  %v177_v38 = vpop.f32.mrb[1].mxu1 }
  0xf7   :  { %v146_v39 = vadd.f32 %v240_v32, %v145_v37  ;;  %v178_v40 = vadd.f32 %v240_v32, %v177_v38  ;;  %v284_v41 = vpop.f32.mrb[2].mxu0  ;;  %v292_v42 = vpop.f32.mrb[2].mxu1 }
  0xf8   :  { %210 = vst [vmem:[#allocation2 + $0x10] sm:$0xff] %v154_v35  ;;  %218 = vst [vmem:[#allocation2 + $0x50] sm:$0xff] %v186_v36  ;;  %v157_v43 = vadd.f32 %v284_v41, %v240_v32  ;;  %v189_v44 = vadd.f32 %v292_v42, %v240_v32  ;;  %v148_v45 = vpop.f32.mrb[3].mxu0  ;;  %v180_v46 = vpop.f32.mrb[3].mxu1 }
  0xf9   :  { %208 = vst [vmem:[#allocation2] sm:$0xff] %v146_v39  ;;  %216 = vst [vmem:[#allocation2 + $0x40] sm:$0xff] %v178_v40  ;;  %v149_v47 = vadd.f32 %v240_v32, %v148_v45  ;;  %v181_v48 = vadd.f32 %v240_v32, %v180_v46 }
  0xfa   :  { %211 = vst [vmem:[#allocation2 + $0x18] sm:$0xff] %v157_v43  ;;  %219 = vst [vmem:[#allocation2 + $0x58] sm:$0xff] %v189_v44 }
  0xfb   :  { %209 = vst [vmem:[#allocation2 + $0x8] sm:$0xff] %v149_v47  ;;  %217 = vst [vmem:[#allocation2 + $0x48] sm:$0xff] %v181_v48 }
  0xfd   :  { %v287_v49 = vpop.f32.mrb[4].mxu0  ;;  %v295_v50 = vpop.f32.mrb[4].mxu1 }
  0xfe   :  { %v170_v51 = vadd.f32 %v287_v49, %v240_v32  ;;  %v202_v52 = vadd.f32 %v295_v50, %v240_v32  ;;  %v161_v53 = vpop.f32.mrb[5].mxu0  ;;  %v193_v54 = vpop.f32.mrb[5].mxu1 }
  0xff   :  { %v162_v55 = vadd.f32 %v240_v32, %v161_v53  ;;  %v194_v56 = vadd.f32 %v240_v32, %v193_v54  ;;  %v288_v57 = vpop.f32.mrb[6].mxu0  ;;  %v296_v58 = vpop.f32.mrb[6].mxu1 }
 0x100   :  { %214 = vst [vmem:[#allocation2 + $0x30] sm:$0xff] %v170_v51  ;;  %222 = vst [vmem:[#allocation2 + $0x70] sm:$0xff] %v202_v52  ;;  %v173_v59 = vadd.f32 %v288_v57, %v240_v32  ;;  %v205_v60 = vadd.f32 %v296_v58, %v240_v32  ;;  %v164_v61 = vpop.f32.mrb[7].mxu0  ;;  %v196_v62 = vpop.f32.mrb[7].mxu1 }
 0x101   :  { %212 = vst [vmem:[#allocation2 + $0x20] sm:$0xff] %v162_v55  ;;  %220 = vst [vmem:[#allocation2 + $0x60] sm:$0xff] %v194_v56  ;;  %v165_v63 = vadd.f32 %v240_v32, %v164_v61  ;;  %v197_v0 = vadd.f32 %v240_v32, %v196_v62 }
 0x102   :  { %215 = vst [vmem:[#allocation2 + $0x38] sm:$0xff] %v173_v59  ;;  %223 = vst [vmem:[#allocation2 + $0x78] sm:$0xff] %v205_v60 }
 0x103   :  { %213 = vst [vmem:[#allocation2 + $0x28] sm:$0xff] %v165_v63  ;;  %221 = vst [vmem:[#allocation2 + $0x68] sm:$0xff] %v197_v0 }
 0x104   :  { %335 = shalt.err (!%p332_p4)
}
 0x105   :  { %s336_s10 = scalar_lea.hbm %s461_s3, 2048 }
 0x106   :  { %p337_p5 = scmp.ne.s32.totalorder %s461_s3, %s336_s10  ;;  %p340_p6 = scmp.lt.u32.totalorder %s336_s10, %s461_s3 }
 0x108   :  { %p342_p7 = pnand %p340_p6, %p337_p5 }
 0x10a   :  { %345 = shalt.err (!%p342_p7)
}
 0x10b   :  { %s349_s15 = smov 128   ;;  %s350_s16 = smov 8  }
 0x10c   :  { %235 = dma.vmem_to_hbm [thread:$0]  %s230_s2, 2048, %s461_s3, [#allocation3], %s349_s15, %s349_s15, %s350_s16  }
 0x10d   :  { %346 = dma.done.wait [#allocation3], 2048  }
 0x10e   :  { %347 = vsyncadd [#allocation3], 4294965248 }
 0x10f   :  { %239 = vsyncpa [#allocation3], 1 }

// kernel: egnn_net2_forward.6
= control target key start
LH: loop header
LB: loop body
LE: loop exit
PB: predicated region body
PF: predicated region fallthrough
CT: control target
= control target key end

     0   :  { %v782_v1 = vmov 0.0   ;;  %vm783_vm0 = vmmov 0   ;;  %s1014_s0 = inlined_call_operand.vmem [shape: f32[16,128], index: 0, kind: input, shape index: {}]   ;;  %s1015_s1 = inlined_call_operand.vmem [shape: f32[16,128], index: 1, kind: input, shape index: {}]   ;;  %s1016_s2 = inlined_call_operand.vmem [shape: bf16[128,128], index: 2, kind: input, shape index: {}]   ;;  %s1017_s3 = inlined_call_operand.vmem [shape: f32[1,128], index: 3, kind: input, shape index: {}]   ;;  %s1018_s4 = inlined_call_operand.vmem [shape: bf16[128,128], index: 4, kind: input, shape index: {}]   ;;  %s1019_s5 = inlined_call_operand.vmem [shape: f32[1,128], index: 5, kind: input, shape index: {}]   ;;  %s1020_s6 = inlined_call_operand.vmem [shape: bf16[128,128], index: 6, kind: input, shape index: {}]   ;;  %s1021_s7 = inlined_call_operand.vmem [shape: f32[1,128], index: 7, kind: input, shape index: {}]   ;;  %s1022_s8 = inlined_call_operand.vmem [shape: bf16[128,128], index: 8, kind: input, shape index: {}]   ;;  %s1023_s9 = inlined_call_operand.vmem [shape: f32[1,128], index: 9, kind: input, shape index: {}]   ;;  %s1024_s10 = inlined_call_operand.hbm [shape: f32[16,128], index: 10, kind: output, shape index: {}]  }
   0x1   :  { %v710_v0 = vld [vmem:[%s1016_s2] sm:$0xff]   ;;  %617 = vmatprep.subr.bf16.mxu0 %v782_v1  ;;  %637 = vmatprep.subr.bf16.mxu1 %v782_v1  ;;  %v711_v2 = vld [vmem:[%s1016_s2 + $0x8] sm:$0xff]   ;;  %v712_v3 = vld [vmem:[%s1016_s2 + $0x10] sm:$0xff]  }
   0x2   :  { %618 = vmatpush3.bf16.msra.mxu0 %v710_v0  ;;  %633 = vmatprep.mubr.msk.bf16.mxu0 %vm783_vm0, %v782_v1  ;;  %v713_v4 = vld [vmem:[%s1016_s2 + $0x18] sm:$0xff]   ;;  %v714_v5 = vld [vmem:[%s1016_s2 + $0x20] sm:$0xff]   ;;  %v715_v6 = vld [vmem:[%s1016_s2 + $0x28] sm:$0xff]  }
   0x3   :  { %619 = vmatprep.subr.bf16.mxu0 %v782_v1  ;;  %653 = vmatprep.mubr.msk.bf16.mxu1 %vm783_vm0, %v782_v1  ;;  %v716_v7 = vld [vmem:[%s1016_s2 + $0x30] sm:$0xff]   ;;  %v717_v8 = vld [vmem:[%s1016_s2 + $0x38] sm:$0xff]   ;;  %v37_v9 = vld [vmem:[%s1014_s0] sm:$0xff] }
   0x4   :  { %v38_v10 = vld [vmem:[%s1014_s0 + $0x8] sm:$0xff] }
   0x6   :  { %620 = vmatpush3.bf16.msra.mxu0 %v711_v2 }
   0x7   :  { %621 = vmatprep.subr.bf16.mxu0 %v782_v1 }
   0xa   :  { %622 = vmatpush3.bf16.msra.mxu0 %v712_v3 }
   0xb   :  { %623 = vmatprep.subr.bf16.mxu0 %v782_v1 }
   0xe   :  { %624 = vmatpush3.bf16.msra.mxu0 %v713_v4 }
   0xf   :  { %625 = vmatprep.subr.bf16.mxu0 %v782_v1 }
  0x12   :  { %626 = vmatpush3.bf16.msra.mxu0 %v714_v5 }
  0x13   :  { %627 = vmatprep.subr.bf16.mxu0 %v782_v1 }
  0x16   :  { %628 = vmatpush3.bf16.msra.mxu0 %v715_v6 }
  0x17   :  { %629 = vmatprep.subr.bf16.mxu0 %v782_v1 }
  0x1a   :  { %630 = vmatpush3.bf16.msra.mxu0 %v716_v7 }
  0x1b   :  { %631 = vmatprep.subr.bf16.mxu0 %v782_v1 }
  0x1c   :  { %15 = vsyncpa [#allocation3], 0  ;;  %v39_v11 = vpack.c.bf16 %v38_v10, %v37_v9  ;;  %v718_v12 = vld [vmem:[%s1020_s6] sm:$0xff]   ;;  %v719_v13 = vld [vmem:[%s1020_s6 + $0x8] sm:$0xff]   ;;  %s784_s20 = smov [#allocation2]  }
  0x1d   :  { %v720_v14 = vld [vmem:[%s1020_s6 + $0x10] sm:$0xff]   ;;  %v721_v15 = vld [vmem:[%s1020_s6 + $0x18] sm:$0xff]   ;;  %v722_v16 = vld [vmem:[%s1020_s6 + $0x20] sm:$0xff]   ;;  %s530_s21 = sshll.u32 %s784_s20, 4  ;;  %s531_s21 = int_to_ptr.vmem [resolvable:$true] %s530_s21 }
  0x1e   :  { %632 = vmatpush3.bf16.msra.mxu0 %v717_v8  ;;  %v723_v17 = vld [vmem:[%s1020_s6 + $0x28] sm:$0xff]   ;;  %v724_v18 = vld [vmem:[%s1020_s6 + $0x30] sm:$0xff]   ;;  %v725_v19 = vld [vmem:[%s1020_s6 + $0x38] sm:$0xff]   ;;  %p763_p1 = scmp.lt.s32.totalorder %s531_s21, %s531_s21 }
  0x1f   :  { %657 = vmatprep.subr.bf16.mxu0 %v782_v1  ;;  %v279_v20 = vld [vmem:[%s1015_s1] sm:$0xff]  ;;  %v280_v21 = vld [vmem:[%s1015_s1 + $0x8] sm:$0xff]  ;;  %v728_v25 = vld [vmem:[%s1018_s4 + $0x10] sm:$0xff]  }
  0x20   :  { %v281_v22 = vpack.c.bf16 %v280_v21, %v279_v20  ;;  %v726_v23 = vld [vmem:[%s1018_s4] sm:$0xff]   ;;  %v727_v24 = vld [vmem:[%s1018_s4 + $0x8] sm:$0xff]   ;;  %v729_v26 = vld [vmem:[%s1018_s4 + $0x18] sm:$0xff]  }
  0x21   :  { %634 = vmatmul.mubr.bf16.vlgmr.msra.gmra.mrb[0].mxu0 %v39_v11  ;;  %638 = vmatpush3.bf16.msra.mxu1 %v726_v23  ;;  %v730_v27 = vld [vmem:[%s1018_s4 + $0x20] sm:$0xff]   ;;  %v731_v28 = vld [vmem:[%s1018_s4 + $0x28] sm:$0xff]   ;;  %v732_v29 = vld [vmem:[%s1018_s4 + $0x30] sm:$0xff]  }
  0x22   :  { %658 = vmatpush3.bf16.msra.mxu0 %v718_v12  ;;  %673 = vmatprep.mubr.msk.bf16.mxu0 %vm783_vm0, %v782_v1  ;;  %v733_v30 = vld [vmem:[%s1018_s4 + $0x38] sm:$0xff]   ;;  %v541_v31 = vld [vmem:[%s1017_s3] ss:$0 sm:$0xff]  ;;  %v735_v58 = vld [vmem:[%s1022_s8 + $0x8] sm:$0xff]  }
  0x23   :  { %659 = vmatprep.subr.bf16.mxu0 %v782_v1  ;;  %639 = vmatprep.subr.bf16.mxu1 %v782_v1  ;;  %v561_v46 = vld [vmem:[%s1021_s7] ss:$0 sm:$0xff]  ;;  %v736_v60 = vld [vmem:[%s1022_s8 + $0x10] sm:$0xff]   ;;  %v737_v61 = vld [vmem:[%s1022_s8 + $0x18] sm:$0xff]  }
  0x24   :  { %v734_v50 = vld [vmem:[%s1022_s8] sm:$0xff]   ;;  %v739_v4 = vld [vmem:[%s1022_s8 + $0x28] sm:$0xff]   ;;  %v740_v5 = vld [vmem:[%s1022_s8 + $0x30] sm:$0xff]  }
  0x25   :  { %640 = vmatpush3.bf16.msra.mxu1 %v727_v24  ;;  %v738_v0 = vld [vmem:[%s1022_s8 + $0x20] sm:$0xff]   ;;  %v741_v7 = vld [vmem:[%s1022_s8 + $0x38] sm:$0xff]   ;;  %s758_s8 = scalar_lea.vmem %s531_s21, 256 }
  0x26   :  { %660 = vmatpush3.bf16.msra.mxu0 %v719_v13  ;;  %641 = vmatprep.subr.bf16.mxu1 %v782_v1  ;;  %v552_v12 = vld [vmem:[%s1019_s5] ss:$0 sm:$0xff]  ;;  %p759_p0 = scmp.ne.s32.totalorder %s531_s21, %s758_s8  ;;  %p764_p2 = scmp.lt.s32.totalorder %s758_s8, %s758_s8 }
  0x27   :  { %661 = vmatprep.subr.bf16.mxu0 %v782_v1  ;;  %v572_v13 = vld [vmem:[%s1023_s9] ss:$0 sm:$0xff] }
  0x28   :  { %p765_p3 = por %p764_p2, %p763_p1 }
  0x29   :  { %642 = vmatpush3.bf16.msra.mxu1 %v728_v25 }
  0x2a   :  { %662 = vmatpush3.bf16.msra.mxu0 %v720_v14  ;;  %643 = vmatprep.subr.bf16.mxu1 %v782_v1  ;;  %v697_v14 = vadd.f32 %v572_v13, %v552_v12  ;;  %p766_p4 = pnand %p765_p3, %p759_p0 }
  0x2b   :  { %663 = vmatprep.subr.bf16.mxu0 %v782_v1 }
  0x2d   :  { %644 = vmatpush3.bf16.msra.mxu1 %v729_v26 }
  0x2e   :  { %664 = vmatpush3.bf16.msra.mxu0 %v721_v15  ;;  %645 = vmatprep.subr.bf16.mxu1 %v782_v1 }
  0x2f   :  { %665 = vmatprep.subr.bf16.mxu0 %v782_v1 }
  0x31   :  { %646 = vmatpush3.bf16.msra.mxu1 %v730_v27 }
  0x32   :  { %666 = vmatpush3.bf16.msra.mxu0 %v722_v16  ;;  %647 = vmatprep.subr.bf16.mxu1 %v782_v1 }
  0x33   :  { %667 = vmatprep.subr.bf16.mxu0 %v782_v1 }
  0x35   :  { %648 = vmatpush3.bf16.msra.mxu1 %v731_v28 }
  0x36   :  { %668 = vmatpush3.bf16.msra.mxu0 %v723_v17  ;;  %649 = vmatprep.subr.bf16.mxu1 %v782_v1 }
  0x37   :  { %669 = vmatprep.subr.bf16.mxu0 %v782_v1 }
  0x39   :  { %650 = vmatpush3.bf16.msra.mxu1 %v732_v29 }
  0x3a   :  { %670 = vmatpush3.bf16.msra.mxu0 %v724_v18  ;;  %651 = vmatprep.subr.bf16.mxu1 %v782_v1 }
  0x3b   :  { %671 = vmatprep.subr.bf16.mxu0 %v782_v1 }
  0x3d   :  { %652 = vmatpush3.bf16.msra.mxu1 %v733_v30 }
  0x3e   :  { %672 = vmatpush3.bf16.msra.mxu0 %v725_v19  ;;  %677 = vmatprep.subr.bf16.mxu1 %v782_v1 }
  0x41   :  { %674 = vmatmul.mubr.bf16.vlgmr.msra.gmra.mrb[4].mxu0 %v281_v22 }
  0xf4   :  { %v145_v32 = vpop.f32.mrb[0].mxu0 }
  0xf5   :  { %v146_v33 = vadd.f32 %v541_v31, %v145_v32  ;;  %v635_v34 = vpop.f32.mrb[1].mxu0 }
  0xf6   :  { %v148_v35 = vpop.f32.mrb[2].mxu0 }
  0xf7   :  { %v550_v36 = vmul.f32 -1.442695, %v146_v33  ;;  %v149_v37 = vadd.f32 %v541_v31, %v148_v35  ;;  %v636_v38 = vpop.f32.mrb[3].mxu0 }
  0xf9   :  { %742 = vpow2.f32 %v550_v36  ;;  %v551_v39 = vmul.f32 -1.442695, %v149_v37 }
  0xfb   :  { %744 = vpow2.f32 %v551_v39 }
 0x103   :  { %v743_v40 = vpop.eup %742 }
 0x104   :  { %v158_v41 = vadd.f32 1.0, %v743_v40 }
 0x105   :  { %v745_v42 = vpop.eup %744 }
 0x106   :  { %746 = vrcp.f32 %v158_v41  ;;  %v159_v43 = vadd.f32 1.0, %v745_v42 }
 0x108   :  { %748 = vrcp.f32 %v159_v43 }
 0x110   :  { %v747_v44 = vpop.eup %746 }
 0x111   :  { %v164_v47 = vmul.f32 %v747_v44, %v146_v33 }
 0x112   :  { %v749_v45 = vpop.eup %748 }
 0x113   :  { %v165_v48 = vmul.f32 %v749_v45, %v149_v37 }
 0x114   :  { %v387_v49 = vpop.f32.mrb[4].mxu0 }
 0x115   :  { %v388_v51 = vadd.f32 %v561_v46, %v387_v49  ;;  %v675_v52 = vpop.f32.mrb[5].mxu0  ;;  %v166_v53 = vpack.c.bf16 %v165_v48, %v164_v47 }
 0x116   :  { %v390_v54 = vpop.f32.mrb[6].mxu0 }
 0x117   :  { %v570_v55 = vmul.f32 -1.442695, %v388_v51  ;;  %v391_v56 = vadd.f32 %v561_v46, %v390_v54  ;;  %654 = vmatmul.mubr.bf16.vlgmr.msra.gmra.mrb[0].mxu1 %v166_v53  ;;  %v676_v57 = vpop.f32.mrb[7].mxu0 }
 0x118   :  { %678 = vmatpush3.bf16.msra.mxu1 %v734_v50  ;;  %693 = vmatprep.mubr.msk.bf16.mxu1 %vm783_vm0, %v782_v1 }
 0x119   :  { %750 = vpow2.f32 %v570_v55  ;;  %v571_v59 = vmul.f32 -1.442695, %v391_v56  ;;  %679 = vmatprep.subr.bf16.mxu1 %v782_v1 }
 0x11b   :  { %752 = vpow2.f32 %v571_v59 }
 0x11c   :  { %680 = vmatpush3.bf16.msra.mxu1 %v735_v58 }
 0x11d   :  { %681 = vmatprep.subr.bf16.mxu1 %v782_v1 }
 0x120   :  { %682 = vmatpush3.bf16.msra.mxu1 %v736_v60 }
 0x121   :  { %683 = vmatprep.subr.bf16.mxu1 %v782_v1 }
 0x123   :  { %v751_v62 = vpop.eup %750 }
 0x124   :  { %v400_v63 = vadd.f32 1.0, %v751_v62  ;;  %684 = vmatpush3.bf16.msra.mxu1 %v737_v61 }
 0x125   :  { %v753_v2 = vpop.eup %752  ;;  %685 = vmatprep.subr.bf16.mxu1 %v782_v1 }
 0x126   :  { %754 = vrcp.f32 %v400_v63  ;;  %v401_v3 = vadd.f32 1.0, %v753_v2 }
 0x128   :  { %756 = vrcp.f32 %v401_v3  ;;  %686 = vmatpush3.bf16.msra.mxu1 %v738_v0 }
 0x129   :  { %687 = vmatprep.subr.bf16.mxu1 %v782_v1 }
 0x12c   :  { %688 = vmatpush3.bf16.msra.mxu1 %v739_v4 }
 0x12d   :  { %689 = vmatprep.subr.bf16.mxu1 %v782_v1 }
 0x130   :  { %v755_v6 = vpop.eup %754  ;;  %690 = vmatpush3.bf16.msra.mxu1 %v740_v5 }
 0x131   :  { %691 = vmatprep.subr.bf16.mxu1 %v782_v1  ;;  %v406_v9 = vmul.f32 %v755_v6, %v388_v51 }
 0x132   :  { %v757_v8 = vpop.eup %756 }
 0x133   :  { %v407_v10 = vmul.f32 %v757_v8, %v391_v56 }
 0x134   :  { %692 = vmatpush3.bf16.msra.mxu1 %v741_v7 }
 0x135   :  { %v408_v11 = vpack.c.bf16 %v407_v10, %v406_v9 }
 0x137   :  { %694 = vmatmul.mubr.bf16.vlgmr.msra.gmra.mrb[0].mxu1 %v408_v11 }
 0x20a   :  { %v514_v15 = vpop.f32.mrb[0].mxu1 }
 0x20b   :  { %v698_v16 = vadd.f32 %v697_v14, %v514_v15  ;;  %v695_v1 = vpop.f32.mrb[1].mxu1 }
 0x20c   :  { %v517_v17 = vpop.f32.mrb[2].mxu1 }
 0x20d   :  { %523 = vst [vmem:[#allocation2] sm:$0xff] %v698_v16  ;;  %v700_v18 = vadd.f32 %v697_v14, %v517_v17  ;;  %v696_v19 = vpop.f32.mrb[3].mxu1 }
 0x20f   :  { %524 = vst [vmem:[#allocation2 + $0x8] sm:$0xff] %v700_v18 }
 0x210   :  { %769 = shalt.err (!%p766_p4)
}
 0x211   :  { %s770_s22 = scalar_lea.hbm %s1024_s10, 256 }
 0x212   :  { %p771_p5 = scmp.ne.s32.totalorder %s1024_s10, %s770_s22  ;;  %p774_p6 = scmp.lt.u32.totalorder %s770_s22, %s1024_s10 }
 0x214   :  { %p776_p7 = pnand %p774_p6, %p771_p5 }
 0x216   :  { %779 = shalt.err (!%p776_p7)
}
 0x217   :  { %s785_s25 = smov 128   ;;  %s786_s26 = smov 8  }
 0x218   :  { %536 = dma.vmem_to_hbm [thread:$0]  %s531_s21, 256, %s1024_s10, [#allocation3], %s785_s25, %s785_s25, %s786_s26  }
 0x219   :  { %780 = dma.done.wait [#allocation3], 256  }
 0x21a   :  { %781 = vsyncadd [#allocation3], 4294967040 }
 0x21b   :  { %540 = vsyncpa [#allocation3], 1 }

// kernel: egnn_net2_forward.11
= control target key start
LH: loop header
LB: loop body
LE: loop exit
PB: predicated region body
PF: predicated region fallthrough
CT: control target
= control target key end

     0   :  { %10 = vsyncpa [#allocation3], 0  ;;  %s586_s0 = inlined_call_operand.hbm [shape: f32[16,128], index: 0, kind: input, shape index: {}]   ;;  %s587_s1 = inlined_call_operand.hbm [shape: bf16[128,128], index: 1, kind: input, shape index: {}]   ;;  %s588_s2 = inlined_call_operand.vmem [shape: f32[1,128], index: 2, kind: input, shape index: {}]   ;;  %s589_s3 = inlined_call_operand.hbm [shape: bf16[128,128], index: 3, kind: input, shape index: {}]   ;;  %s590_s4 = inlined_call_operand.vmem [shape: f32[1,128], index: 4, kind: input, shape index: {}]   ;;  %s591_s5 = inlined_call_operand.vmem [shape: f32[16,128], index: 5, kind: output, shape index: {}]  }
   0x1   :  { %11 = vsyncpa [#allocation5], 0  ;;  %s493_s18 = smov [#allocation4]   ;;  %s423_s22 = scalar_lea.hbm %s587_s1, 1024 }
   0x2   :  { %s29_s19 = sshll.u32 %s493_s18, 4  ;;  %p424_p0 = scmp.ne.s32.totalorder %s587_s1, %s423_s22  ;;  %s30_s19 = int_to_ptr.vmem [resolvable:$true] %s29_s19 }
   0x3   :  { %p427_p1 = scmp.lt.u32.totalorder %s423_s22, %s587_s1 }
   0x5   :  { %p429_p2 = pnand %p427_p1, %p424_p0 }
   0x7   :  { %432 = shalt.err (!%p429_p2)
}
   0x8   :  { %s433_s27 = scalar_lea.vmem %s30_s19, 1024  ;;  %p438_p4 = scmp.lt.s32.totalorder %s30_s19, %s30_s19 }
   0x9   :  { %p434_p3 = scmp.ne.s32.totalorder %s30_s19, %s433_s27  ;;  %p439_p5 = scmp.lt.s32.totalorder %s433_s27, %s433_s27 }
   0xb   :  { %p440_p6 = por %p439_p5, %p438_p4 }
   0xd   :  { %p441_p7 = pnand %p440_p6, %p434_p3 }
   0xf   :  { %444 = shalt.err (!%p441_p7)
}
  0x10   :  { %s494_s28 = smov 64   ;;  %s495_s29 = smov 4  }
  0x11   :  { %35 = dma.hbm_to_vmem [thread:$0]  %s587_s1, 1024, %s30_s19, [#allocation5], %s494_s28, %s494_s28, %s495_s29  }
  0x12   :  { %s496_s7 = smov [#allocation2]   ;;  %s445_s11 = scalar_lea.hbm %s586_s0, 256 }
  0x13   :  { %s17_s8 = sshll.u32 %s496_s7, 4  ;;  %p446_p8 = scmp.ne.s32.totalorder %s586_s0, %s445_s11  ;;  %s18_s8 = int_to_ptr.vmem [resolvable:$true] %s17_s8 }
  0x14   :  { %p449_p9 = scmp.lt.u32.totalorder %s445_s11, %s586_s0 }
  0x16   :  { %p451_p10 = pnand %p449_p9, %p446_p8 }
  0x18   :  { %454 = shalt.err (!%p451_p10)
}
  0x19   :  { %s455_s16 = scalar_lea.vmem %s18_s8, 256  ;;  %p460_p12 = scmp.lt.s32.totalorder %s18_s8, %s18_s8 }
  0x1a   :  { %p456_p11 = scmp.ne.s32.totalorder %s18_s8, %s455_s16  ;;  %p461_p13 = scmp.lt.s32.totalorder %s455_s16, %s455_s16 }
  0x1c   :  { %p462_p0 = por %p461_p13, %p460_p12 }
  0x1e   :  { %p463_p1 = pnand %p462_p0, %p456_p11 }
  0x20   :  { %466 = shalt.err (!%p463_p1)
}
  0x21   :  { %s497_s1 = smov 128   ;;  %s498_s17 = smov 8  }
  0x22   :  { %23 = dma.hbm_to_vmem [thread:$0]  %s586_s0, 256, %s18_s8, [#allocation3], %s497_s1, %s497_s1, %s498_s17  }
  0x23   :  { %s499_s20 = smov [#allocation6]   ;;  %s467_s24 = scalar_lea.hbm %s589_s3, 1024 }
  0x24   :  { %s43_s21 = sshll.u32 %s499_s20, 4  ;;  %p468_p2 = scmp.ne.s32.totalorder %s589_s3, %s467_s24  ;;  %s44_s21 = int_to_ptr.vmem [resolvable:$true] %s43_s21 }
  0x25   :  { %p471_p3 = scmp.lt.u32.totalorder %s467_s24, %s589_s3 }
  0x27   :  { %p473_p4 = pnand %p471_p3, %p468_p2 }
  0x29   :  { %476 = shalt.err (!%p473_p4)
}
  0x2a   :  { %s477_s6 = scalar_lea.vmem %s44_s21, 1024  ;;  %p482_p6 = scmp.lt.s32.totalorder %s44_s21, %s44_s21 }
  0x2b   :  { %p478_p5 = scmp.ne.s32.totalorder %s44_s21, %s477_s6  ;;  %p483_p7 = scmp.lt.s32.totalorder %s477_s6, %s477_s6 }
  0x2d   :  { %p484_p8 = por %p483_p7, %p482_p6 }
  0x2f   :  { %p485_p9 = pnand %p484_p8, %p478_p5 }
  0x31   :  { %488 = shalt.err (!%p485_p9)
}
  0x32   :  { %49 = dma.hbm_to_vmem [thread:$0]  %s589_s3, 1024, %s44_s21, [#allocation5], %s494_s28, %s494_s28, %s495_s29  }
  0x33   :  { %489 = dma.done.wait [#allocation3], 256  }
  0x34   :  { %490 = vsyncadd [#allocation3], 4294967040 }
  0x35   :  { %491 = dma.done.wait [#allocation5], 2048  }
  0x36   :  { %492 = vsyncadd [#allocation5], 4294965248  ;;  %v500_v0 = vmov 0.0   ;;  %vm501_vm0 = vmmov 0   ;;  %v399_v1 = vld [vmem:[#allocation4] sm:$0xff]   ;;  %v400_v2 = vld [vmem:[#allocation4 + $0x8] sm:$0xff]  }
  0x37   :  { %350 = vmatprep.subr.bf16.mxu0 %v500_v0  ;;  %366 = vmatprep.mubr.msk.bf16.mxu0 %vm501_vm0, %v500_v0  ;;  %v401_v3 = vld [vmem:[#allocation4 + $0x10] sm:$0xff]   ;;  %v402_v4 = vld [vmem:[#allocation4 + $0x18] sm:$0xff]   ;;  %v403_v5 = vld [vmem:[#allocation4 + $0x20] sm:$0xff]  }
  0x38   :  { %370 = vmatprep.subr.bf16.mxu1 %v500_v0  ;;  %386 = vmatprep.mubr.msk.bf16.mxu1 %vm501_vm0, %v500_v0  ;;  %v404_v6 = vld [vmem:[#allocation4 + $0x28] sm:$0xff]   ;;  %v405_v7 = vld [vmem:[#allocation4 + $0x30] sm:$0xff]   ;;  %v406_v8 = vld [vmem:[#allocation4 + $0x38] sm:$0xff]  }
  0x39   :  { %351 = vmatpush3.bf16.msra.mxu0 %v399_v1  ;;  %v62_v9 = vld [vmem:[#allocation2] sm:$0xff]  ;;  %v63_v10 = vld [vmem:[#allocation2 + $0x8] sm:$0xff]  ;;  %v407_v12 = vld [vmem:[#allocation6] sm:$0xff]  }
  0x3a   :  { %352 = vmatprep.subr.bf16.mxu0 %v500_v0  ;;  %v64_v11 = vpack.c.bf16 %v63_v10, %v62_v9  ;;  %371 = vmatpush3.bf16.msra.mxu1 %v407_v12  ;;  %v408_v13 = vld [vmem:[#allocation6 + $0x8] sm:$0xff]   ;;  %v409_v14 = vld [vmem:[#allocation6 + $0x10] sm:$0xff]   ;;  %v410_v15 = vld [vmem:[#allocation6 + $0x18] sm:$0xff]  }
  0x3b   :  { %372 = vmatprep.subr.bf16.mxu1 %v500_v0  ;;  %v411_v16 = vld [vmem:[#allocation6 + $0x20] sm:$0xff]   ;;  %v412_v17 = vld [vmem:[#allocation6 + $0x28] sm:$0xff]   ;;  %v413_v18 = vld [vmem:[#allocation6 + $0x30] sm:$0xff]  }
  0x3c   :  { %v414_v19 = vld [vmem:[#allocation6 + $0x38] sm:$0xff]   ;;  %v312_v20 = vld [vmem:[%s588_s2] ss:$0 sm:$0xff] }
  0x3d   :  { %353 = vmatpush3.bf16.msra.mxu0 %v400_v2  ;;  %v323_v38 = vld [vmem:[%s590_s4] ss:$0 sm:$0xff] }
  0x3e   :  { %354 = vmatprep.subr.bf16.mxu0 %v500_v0  ;;  %373 = vmatpush3.bf16.msra.mxu1 %v408_v13 }
  0x3f   :  { %374 = vmatprep.subr.bf16.mxu1 %v500_v0 }
  0x41   :  { %355 = vmatpush3.bf16.msra.mxu0 %v401_v3 }
  0x42   :  { %356 = vmatprep.subr.bf16.mxu0 %v500_v0  ;;  %375 = vmatpush3.bf16.msra.mxu1 %v409_v14 }
  0x43   :  { %376 = vmatprep.subr.bf16.mxu1 %v500_v0 }
  0x45   :  { %357 = vmatpush3.bf16.msra.mxu0 %v402_v4 }
  0x46   :  { %358 = vmatprep.subr.bf16.mxu0 %v500_v0  ;;  %377 = vmatpush3.bf16.msra.mxu1 %v410_v15 }
  0x47   :  { %378 = vmatprep.subr.bf16.mxu1 %v500_v0 }
  0x49   :  { %359 = vmatpush3.bf16.msra.mxu0 %v403_v5 }
  0x4a   :  { %360 = vmatprep.subr.bf16.mxu0 %v500_v0  ;;  %379 = vmatpush3.bf16.msra.mxu1 %v411_v16 }
  0x4b   :  { %380 = vmatprep.subr.bf16.mxu1 %v500_v0 }
  0x4d   :  { %361 = vmatpush3.bf16.msra.mxu0 %v404_v6 }
  0x4e   :  { %362 = vmatprep.subr.bf16.mxu0 %v500_v0  ;;  %381 = vmatpush3.bf16.msra.mxu1 %v412_v17 }
  0x4f   :  { %382 = vmatprep.subr.bf16.mxu1 %v500_v0 }
  0x51   :  { %363 = vmatpush3.bf16.msra.mxu0 %v405_v7 }
  0x52   :  { %364 = vmatprep.subr.bf16.mxu0 %v500_v0  ;;  %383 = vmatpush3.bf16.msra.mxu1 %v413_v18 }
  0x53   :  { %384 = vmatprep.subr.bf16.mxu1 %v500_v0 }
  0x55   :  { %365 = vmatpush3.bf16.msra.mxu0 %v406_v8 }
  0x56   :  { %385 = vmatpush3.bf16.msra.mxu1 %v414_v19 }
  0x58   :  { %367 = vmatmul.mubr.bf16.vlgmr.msra.gmra.mrb[0].mxu0 %v64_v11 }
 0x12b   :  { %v170_v21 = vpop.f32.mrb[0].mxu0 }
 0x12c   :  { %v171_v22 = vadd.f32 %v312_v20, %v170_v21  ;;  %v368_v23 = vpop.f32.mrb[1].mxu0 }
 0x12d   :  { %v173_v24 = vpop.f32.mrb[2].mxu0 }
 0x12e   :  { %v321_v25 = vmul.f32 -1.442695, %v171_v22  ;;  %v174_v26 = vadd.f32 %v312_v20, %v173_v24  ;;  %v369_v27 = vpop.f32.mrb[3].mxu0 }
 0x130   :  { %415 = vpow2.f32 %v321_v25  ;;  %v322_v28 = vmul.f32 -1.442695, %v174_v26 }
 0x132   :  { %417 = vpow2.f32 %v322_v28 }
 0x13a   :  { %v416_v29 = vpop.eup %415 }
 0x13b   :  { %v183_v30 = vadd.f32 1.0, %v416_v29 }
 0x13c   :  { %v418_v31 = vpop.eup %417 }
 0x13d   :  { %419 = vrcp.f32 %v183_v30  ;;  %v184_v32 = vadd.f32 1.0, %v418_v31 }
 0x13f   :  { %421 = vrcp.f32 %v184_v32 }
 0x147   :  { %v420_v33 = vpop.eup %419 }
 0x148   :  { %v189_v35 = vmul.f32 %v420_v33, %v171_v22 }
 0x149   :  { %v422_v34 = vpop.eup %421 }
 0x14a   :  { %v190_v36 = vmul.f32 %v422_v34, %v174_v26 }
 0x14c   :  { %v191_v37 = vpack.c.bf16 %v190_v36, %v189_v35 }
 0x14e   :  { %387 = vmatmul.mubr.bf16.vlgmr.msra.gmra.mrb[0].mxu1 %v191_v37 }
 0x221   :  { %v297_v39 = vpop.f32.mrb[0].mxu1 }
 0x222   :  { %v298_v40 = vadd.f32 %v323_v38, %v297_v39  ;;  %v388_v41 = vpop.f32.mrb[1].mxu1 }
 0x223   :  { %v300_v42 = vpop.f32.mrb[2].mxu1 }
 0x224   :  { %304 = vst [vmem:[%s591_s5] sm:$0xff] %v298_v40  ;;  %v301_v43 = vadd.f32 %v323_v38, %v300_v42  ;;  %v389_v44 = vpop.f32.mrb[3].mxu1 }
 0x226   :  { %305 = vst [vmem:[%s591_s5 + $0x8] sm:$0xff] %v301_v43 }
 0x227   :  { %310 = vsyncpa [#allocation3], 1 }
 0x228   :  { %311 = vsyncpa [#allocation5], 1 }

// kernel: egnn_net2_forward.9
= control target key start
LH: loop header
LB: loop body
LE: loop exit
PB: predicated region body
PF: predicated region fallthrough
CT: control target
= control target key end

     0   :  { %s7870_s6 = smov 1   ;;  %s7871_s10 = smov 2   ;;  %s9431_s0 = inlined_call_operand.smem [shape: u32[38], index: -1, kind: input, shape index: {}] }
   0x1   :  { %s7961_s5 = sld [smem:[%s9431_s0]]   ;;  %s7872_s14 = smov 3  }
   0x2   :  { %s7966_s9 = sld [smem:[%s9431_s0 + %s7870_s6]]   ;;  %s7873_s18 = smov 4  }
   0x3   :  { %s7971_s13 = sld [smem:[%s9431_s0 + %s7871_s10]]   ;;  %s7874_s22 = smov 5  }
   0x4   :  { %s7976_s17 = sld [smem:[%s9431_s0 + %s7872_s14]]   ;;  %s7875_s26 = smov 6  }
   0x5   :  { %s7981_s21 = sld [smem:[%s9431_s0 + %s7873_s18]]   ;;  %s7876_s30 = smov 7  }
   0x6   :  { %s7986_s25 = sld [smem:[%s9431_s0 + %s7874_s22]]   ;;  %s7877_s4 = smov 8  }
   0x7   :  { %9466 = sst [smem:[#allocation82_spill]] %s7961_s5  ;;  %s7878_s10 = smov 9  }
   0x8   :  { %s7991_s29 = sld [smem:[%s9431_s0 + %s7875_s26]]   ;;  %s7879_s15 = smov 10  }
   0x9   :  { %9467 = sst [smem:[#allocation83_spill]] %s7971_s13  ;;  %s7880_s20 = smov 11  }
   0xa   :  { %s7996_s3 = sld [smem:[%s9431_s0 + %s7876_s30]]   ;;  %s7881_s26 = smov 12  }
   0xb   :  { %9468 = sst [smem:[#allocation84_spill]] %s7981_s21  ;;  %s7882_s1 = smov 13  }
   0xc   :  { %s8001_s8 = sld [smem:[%s9431_s0 + %s7877_s4]]   ;;  %s7883_s7 = smov 14  }
   0xd   :  { %s8006_s14 = sld [smem:[%s9431_s0 + %s7878_s10]]   ;;  %s7885_s22 = smov 16  }
   0xe   :  { %9469 = sst [smem:[#allocation85_spill]] %s7991_s29  ;;  %s7886_s28 = smov 17  }
   0xf   :  { %s8011_s19 = sld [smem:[%s9431_s0 + %s7879_s15]]   ;;  %s7884_s15 = smov 15  }
  0x10   :  { %s8016_s24 = sld [smem:[%s9431_s0 + %s7880_s20]]  }
  0x11   :  { %s8021_s30 = sld [smem:[%s9431_s0 + %s7881_s26]]  }
  0x12   :  { %9470 = sst [smem:[#allocation86_spill]] %s8001_s8 }
  0x13   :  { %s8026_s6 = sld [smem:[%s9431_s0 + %s7882_s1]]  }
  0x14   :  { %s8031_s12 = sld [smem:[%s9431_s0 + %s7883_s7]]   ;;  %s7887_s7 = smov 18  }
  0x15   :  { %9471 = sst [smem:[#allocation87_spill]] %s8011_s19 }
  0x16   :  { %s8036_s20 = sld [smem:[%s9431_s0 + %s7884_s15]]   ;;  %s7888_s15 = smov 19  }
  0x17   :  { %9472 = sst [smem:[#allocation88_spill]] %s8021_s30 }
  0x18   :  { %s8041_s27 = sld [smem:[%s9431_s0 + %s7885_s22]]   ;;  %s7889_s22 = smov 20  }
  0x19   :  { %s8046_s4 = sld [smem:[%s9431_s0 + %s7886_s28]]   ;;  %s7890_s28 = smov 21  }
  0x1a   :  { %9473 = sst [smem:[#allocation89_spill]] %s8031_s12 }
  0x1b   :  { %s8051_s12 = sld [smem:[%s9431_s0 + %s7887_s7]]   ;;  %s7891_s7 = smov 22  }
  0x1c   :  { %s8056_s30 = sld [smem:[%s9431_s0 + %s7888_s15]]   ;;  %s7892_s15 = smov 23  }
  0x1d   :  { %s8066_s19 = sld [smem:[%s9431_s0 + %s7890_s28]]   ;;  %s7894_s28 = smov 25  }
  0x1e   :  { %9474 = sst [smem:[#allocation90_spill]] %s8041_s27 }
  0x1f   :  { %s8061_s27 = sld [smem:[%s9431_s0 + %s7889_s22]]   ;;  %s7893_s22 = smov 24  }
  0x20   :  { %s8076_s8 = sld [smem:[%s9431_s0 + %s7892_s15]]   ;;  %s7896_s15 = smov 27  }
  0x21   :  { %9475 = sst [smem:[#allocation91_spill]] %s8051_s12 }
  0x22   :  { %s8071_s12 = sld [smem:[%s9431_s0 + %s7891_s7]]   ;;  %s7895_s7 = smov 26  }
  0x23   :  { %s8086_s29 = sld [smem:[%s9431_s0 + %s7894_s28]]   ;;  %s7898_s28 = smov 29  }
  0x24   :  { %s8096_s21 = sld [smem:[%s9431_s0 + %s7896_s15]]   ;;  %s7900_s15 = smov 31  }
  0x25   :  { %9476 = sst [smem:[#allocation92_spill]] %s8061_s27 }
  0x26   :  { %s8081_s27 = sld [smem:[%s9431_s0 + %s7893_s22]]   ;;  %s7897_s22 = smov 28  }
  0x27   :  { %s8106_s13 = sld [smem:[%s9431_s0 + %s7898_s28]]   ;;  %s7902_s28 = smov 33  }
  0x28   :  { %9477 = sst [smem:[#allocation93_spill]] %s8071_s12 }
  0x29   :  { %s8091_s12 = sld [smem:[%s9431_s0 + %s7895_s7]]   ;;  %s7899_s7 = smov 30  }
  0x2a   :  { %s8116_s5 = sld [smem:[%s9431_s0 + %s7900_s15]]   ;;  %s7904_s15 = smov 35  }
  0x2c   :  { %9478 = sst [smem:[#allocation94_spill]] %s8081_s27 }
  0x2d   :  { %s8101_s27 = sld [smem:[%s9431_s0 + %s7897_s22]]   ;;  %s7901_s22 = smov 32  }
  0x2e   :  { %9481 = sst [smem:[#allocation97_spill]] %s8106_s13 }
  0x2f   :  { %9479 = sst [smem:[#allocation95_spill]] %s8091_s12 }
  0x30   :  { %s8111_s12 = sld [smem:[%s9431_s0 + %s7899_s7]]   ;;  %s7903_s7 = smov 34  }
  0x31   :  { %9483 = sst [smem:[#allocation99_spill]] %s8116_s5 }
  0x32   :  { %s8126_s13 = sld [smem:[%s9431_s0 + %s7902_s28]]   ;;  %s7906_s28 = smov 37  }
  0x33   :  { %9480 = sst [smem:[#allocation96_spill]] %s8101_s27 }
  0x34   :  { %s8121_s27 = sld [smem:[%s9431_s0 + %s7901_s22]]   ;;  %s7905_s22 = smov 36  }
  0x35   :  { %s8136_s5 = sld [smem:[%s9431_s0 + %s7904_s15]]  }
  0x36   :  { %9482 = sst [smem:[#allocation98_spill]] %s8111_s12 }
  0x37   :  { %s8131_s12 = sld [smem:[%s9431_s0 + %s7903_s7]]  }
  0x38   :  { %9485 = sst [smem:[#allocation101_spill]] %s8126_s13 }
  0x39   :  { %s8146_s13 = sld [smem:[%s9431_s0 + %s7906_s28]]  }
  0x3a   :  { %9484 = sst [smem:[#allocation100_spill]] %s8121_s27 }
  0x3b   :  { %s8141_s27 = sld [smem:[%s9431_s0 + %s7905_s22]]  }
  0x3c   :  { %81 = vsyncpa [#allocation5], 0 }
  0x3d   :  { %82 = vsyncpa [#allocation8], 0 }
  0x3e   :  { %83 = vsyncpa [#allocation11], 0 }
  0x3f   :  { %84 = vsyncpa [#allocation14], 0 }
  0x40   :  { %85 = vsyncpa [#allocation17], 0 }
  0x41   :  { %86 = vsyncpa [#allocation20], 0 }
  0x42   :  { %87 = vsyncpa [#allocation23], 0 }
  0x43   :  { %88 = vsyncpa [#allocation26], 0 }
  0x44   :  { %89 = vsyncpa [#allocation29], 0 }
  0x45   :  { %90 = vsyncpa [#allocation32], 0 }
  0x46   :  { %91 = vsyncpa [#allocation35], 0 }
  0x47   :  { %92 = vsyncpa [#allocation38], 0 }
  0x48   :  { %93 = vsyncpa [#allocation41], 0 }
  0x49   :  { %94 = vsyncpa [#allocation44], 0 }
  0x4a   :  { %95 = vsyncpa [#allocation47], 0 }
  0x4b   :  { %96 = vsyncpa [#allocation50], 0 }
  0x4c   :  { %97 = vsyncpa [#allocation53], 0 }
  0x4d   :  { %98 = vsyncpa [#allocation56], 0 }
  0x4e   :  { %99 = vsyncpa [#allocation6], 0 }
  0x4f   :  { %100 = vsyncpa [#allocation60], 0  ;;  %s7907_s0 = smov [#allocation7]   ;;  %s7908_s10 = smov [#allocation10]  }
  0x50   :  { %s118_s7 = sshll.u32 %s7907_s0, 4  ;;  %s142_s11 = sshll.u32 %s7908_s10, 4  ;;  %s119_s7 = int_to_ptr.vmem [resolvable:$true] %s118_s7  ;;  %s8148_s11 = int_to_ptr.vmem [resolvable:$true] %s142_s11 }
  0x51   :  { %s6994_s15 = scalar_lea.hbm %s7966_s9, 2048 }
  0x52   :  { %p6995_p0 = scmp.ne.s32.totalorder %s7966_s9, %s6994_s15  ;;  %p6998_p1 = scmp.lt.u32.totalorder %s6994_s15, %s7966_s9 }
  0x54   :  { %p7000_p2 = pnand %p6998_p1, %p6995_p0 }
  0x56   :  { %7003 = shalt.err (!%p7000_p2)
}
  0x57   :  { %s7004_s16 = scalar_lea.vmem %s119_s7, 2048  ;;  %p7009_p4 = scmp.lt.s32.totalorder %s119_s7, %s119_s7 }
  0x58   :  { %p7005_p3 = scmp.ne.s32.totalorder %s119_s7, %s7004_s16  ;;  %p7010_p5 = scmp.lt.s32.totalorder %s7004_s16, %s7004_s16 }
  0x5a   :  { %p7011_p6 = por %p7010_p5, %p7009_p4 }
  0x5c   :  { %p7012_p7 = pnand %p7011_p6, %p7005_p3 }
  0x5e   :  { %7015 = shalt.err (!%p7012_p7)
}
  0x5f   :  { %s7909_s18 = smov 128   ;;  %s7910_s22 = smov 8  }
  0x60   :  { %124 = dma.hbm_to_vmem [thread:$0]  %s7966_s9, 2048, %s119_s7, [#allocation8], %s7909_s18, %s7909_s18, %s7910_s22  }
  0x61   :  { %s7016_s23 = scalar_lea.hbm %s7976_s17, 256 }
  0x62   :  { %p7017_p8 = scmp.ne.s32.totalorder %s7976_s17, %s7016_s23  ;;  %p7020_p9 = scmp.lt.u32.totalorder %s7016_s23, %s7976_s17 }
  0x64   :  { %p7022_p10 = pnand %p7020_p9, %p7017_p8 }
  0x66   :  { %7025 = shalt.err (!%p7022_p10)
}
  0x67   :  { %s7026_s26 = scalar_lea.vmem %s8148_s11, 256  ;;  %p7031_p12 = scmp.lt.s32.totalorder %s8148_s11, %s8148_s11 }
  0x68   :  { %p7027_p11 = scmp.ne.s32.totalorder %s8148_s11, %s7026_s26  ;;  %p7032_p13 = scmp.lt.s32.totalorder %s7026_s26, %s7026_s26 }
  0x6a   :  { %p7033_p0 = por %p7032_p13, %p7031_p12 }
  0x6c   :  { %p7034_p1 = pnand %p7033_p0, %p7027_p11 }
  0x6e   :  { %7037 = shalt.err (!%p7034_p1)
}
  0x6f   :  { %148 = dma.hbm_to_vmem [thread:$0]  %s7976_s17, 256, %s8148_s11, [#allocation11], %s7909_s18, %s7909_s18, %s7910_s22  }
  0x70   :  { %s7911_s9 = smov [#allocation13]   ;;  %s7912_s1 = smov [#allocation16]  }
  0x71   :  { %s167_s28 = sshll.u32 %s7911_s9, 4  ;;  %s189_s2 = sshll.u32 %s7912_s1, 4  ;;  %s168_s28 = int_to_ptr.vmem [resolvable:$true] %s167_s28  ;;  %s190_s2 = int_to_ptr.vmem [resolvable:$true] %s189_s2 }
  0x72   :  { %s7038_s0 = scalar_lea.hbm %s7986_s25, 128 }
  0x73   :  { %p7039_p2 = scmp.ne.s32.totalorder %s7986_s25, %s7038_s0  ;;  %p7042_p3 = scmp.lt.u32.totalorder %s7038_s0, %s7986_s25 }
  0x75   :  { %p7044_p4 = pnand %p7042_p3, %p7039_p2 }
  0x77   :  { %7047 = shalt.err (!%p7044_p4)
}
  0x78   :  { %s7048_s7 = scalar_lea.vmem %s168_s28, 128  ;;  %p7053_p6 = scmp.lt.s32.totalorder %s168_s28, %s168_s28 }
  0x79   :  { %p7049_p5 = scmp.ne.s32.totalorder %s168_s28, %s7048_s7  ;;  %p7054_p7 = scmp.lt.s32.totalorder %s7048_s7, %s7048_s7 }
  0x7b   :  { %p7055_p8 = por %p7054_p7, %p7053_p6 }
  0x7d   :  { %p7056_p9 = pnand %p7055_p8, %p7049_p5 }
  0x7f   :  { %7059 = shalt.err (!%p7056_p9)
}
  0x80   :  { %170 = dma.hbm_to_vmem [thread:$0]  %s7986_s25, 128, %s168_s28, [#allocation14]  }
  0x81   :  { %s7060_s17 = scalar_lea.hbm %s7996_s3, 128 }
  0x82   :  { %p7061_p10 = scmp.ne.s32.totalorder %s7996_s3, %s7060_s17  ;;  %p7064_p11 = scmp.lt.u32.totalorder %s7060_s17, %s7996_s3 }
  0x84   :  { %p7066_p12 = pnand %p7064_p11, %p7061_p10 }
  0x86   :  { %7069 = shalt.err (!%p7066_p12)
}
  0x87   :  { %s7070_s10 = scalar_lea.vmem %s190_s2, 128  ;;  %p7075_p0 = scmp.lt.s32.totalorder %s190_s2, %s190_s2 }
  0x88   :  { %p7071_p13 = scmp.ne.s32.totalorder %s190_s2, %s7070_s10  ;;  %p7076_p1 = scmp.lt.s32.totalorder %s7070_s10, %s7070_s10 }
  0x8a   :  { %p7077_p2 = por %p7076_p1, %p7075_p0 }
  0x8c   :  { %p7078_p3 = pnand %p7077_p2, %p7071_p13 }
  0x8e   :  { %7081 = shalt.err (!%p7078_p3)
}
  0x8f   :  { %192 = dma.hbm_to_vmem [thread:$0]  %s7996_s3, 128, %s190_s2, [#allocation17]  }
  0x90   :  { %s7913_s11 = smov [#allocation19]   ;;  %s7914_s25 = smov [#allocation22]  }
  0x91   :  { %s210_s15 = sshll.u32 %s7913_s11, 4  ;;  %s235_s16 = sshll.u32 %s7914_s25, 4  ;;  %s211_s15 = int_to_ptr.vmem [resolvable:$true] %s210_s15  ;;  %s236_s16 = int_to_ptr.vmem [resolvable:$true] %s235_s16 }
  0x92   :  { %s7082_s23 = scalar_lea.hbm %s8006_s14, 2048 }
  0x93   :  { %p7083_p4 = scmp.ne.s32.totalorder %s8006_s14, %s7082_s23  ;;  %p7086_p5 = scmp.lt.u32.totalorder %s7082_s23, %s8006_s14 }
  0x95   :  { %p7088_p6 = pnand %p7086_p5, %p7083_p4 }
  0x97   :  { %7091 = shalt.err (!%p7088_p6)
}
  0x98   :  { %s7092_s26 = scalar_lea.vmem %s211_s15, 2048  ;;  %p7097_p8 = scmp.lt.s32.totalorder %s211_s15, %s211_s15 }
  0x99   :  { %p7093_p7 = scmp.ne.s32.totalorder %s211_s15, %s7092_s26  ;;  %p7098_p9 = scmp.lt.s32.totalorder %s7092_s26, %s7092_s26 }
  0x9b   :  { %p7099_p10 = por %p7098_p9, %p7097_p8 }
  0x9d   :  { %p7100_p11 = pnand %p7099_p10, %p7093_p7 }
  0x9f   :  { %7103 = shalt.err (!%p7100_p11)
}
  0xa0   :  { %216 = dma.hbm_to_vmem [thread:$0]  %s8006_s14, 2048, %s211_s15, [#allocation20], %s7909_s18, %s7909_s18, %s7910_s22  }
  0xa1   :  { %s7104_s3 = scalar_lea.hbm %s8016_s24, 32 }
  0xa2   :  { %p7105_p12 = scmp.ne.s32.totalorder %s8016_s24, %s7104_s3  ;;  %p7108_p13 = scmp.lt.u32.totalorder %s7104_s3, %s8016_s24 }
  0xa4   :  { %p7110_p0 = pnand %p7108_p13, %p7105_p12 }
  0xa6   :  { %7113 = shalt.err (!%p7110_p0)
}
  0xa7   :  { %s7114_s9 = scalar_lea.vmem %s236_s16, 32  ;;  %p7119_p2 = scmp.lt.s32.totalorder %s236_s16, %s236_s16 }
  0xa8   :  { %p7115_p1 = scmp.ne.s32.totalorder %s236_s16, %s7114_s9  ;;  %p7120_p3 = scmp.lt.s32.totalorder %s7114_s9, %s7114_s9 }
  0xaa   :  { %p7121_p4 = por %p7120_p3, %p7119_p2 }
  0xac   :  { %p7122_p5 = pnand %p7121_p4, %p7115_p1 }
  0xae   :  { %7125 = shalt.err (!%p7122_p5)
}
  0xaf   :  { %238 = dma.hbm_to_vmem [thread:$0]  %s8016_s24, 32, %s236_s16, [#allocation23]  }
  0xb0   :  { %s7915_s28 = smov [#allocation25]   ;;  %s7126_s14 = scalar_lea.hbm %s8026_s6, 2048 }
  0xb1   :  { %s254_s1 = sshll.u32 %s7915_s28, 4  ;;  %p7127_p6 = scmp.ne.s32.totalorder %s8026_s6, %s7126_s14  ;;  %s255_s1 = int_to_ptr.vmem [resolvable:$true] %s254_s1 }
  0xb2   :  { %p7130_p7 = scmp.lt.u32.totalorder %s7126_s14, %s8026_s6 }
  0xb4   :  { %p7132_p8 = pnand %p7130_p7, %p7127_p6 }
  0xb6   :  { %7135 = shalt.err (!%p7132_p8)
}
  0xb7   :  { %s7136_s2 = scalar_lea.vmem %s255_s1, 2048  ;;  %p7141_p10 = scmp.lt.s32.totalorder %s255_s1, %s255_s1 }
  0xb8   :  { %p7137_p9 = scmp.ne.s32.totalorder %s255_s1, %s7136_s2  ;;  %p7142_p11 = scmp.lt.s32.totalorder %s7136_s2, %s7136_s2 }
  0xba   :  { %p7143_p12 = por %p7142_p11, %p7141_p10 }
  0xbc   :  { %p7144_p13 = pnand %p7143_p12, %p7137_p9 }
  0xbe   :  { %7147 = shalt.err (!%p7144_p13)
}
  0xbf   :  { %s7916_s0 = smov 64   ;;  %s7917_s24 = smov 4  }
  0xc0   :  { %260 = dma.hbm_to_vmem [thread:$0]  %s8026_s6, 2048, %s255_s1, [#allocation26], %s7916_s0, %s7916_s0, %s7917_s24  }
  0xc1   :  { %s7918_s7 = smov [#allocation28]   ;;  %s7919_s10 = smov [#allocation31]  }
  0xc2   :  { %s276_s17 = sshll.u32 %s7918_s7, 4  ;;  %s301_s11 = sshll.u32 %s7919_s10, 4  ;;  %s277_s17 = int_to_ptr.vmem [resolvable:$true] %s276_s17  ;;  %s302_s11 = int_to_ptr.vmem [resolvable:$true] %s301_s11 }
  0xc3   :  { %s7148_s15 = scalar_lea.hbm %s8036_s20, 1024 }
  0xc4   :  { %p7149_p0 = scmp.ne.s32.totalorder %s8036_s20, %s7148_s15  ;;  %p7152_p1 = scmp.lt.u32.totalorder %s7148_s15, %s8036_s20 }
  0xc6   :  { %p7154_p2 = pnand %p7152_p1, %p7149_p0 }
  0xc8   :  { %7157 = shalt.err (!%p7154_p2)
}
  0xc9   :  { %s7158_s25 = scalar_lea.vmem %s277_s17, 1024  ;;  %p7163_p4 = scmp.lt.s32.totalorder %s277_s17, %s277_s17 }
  0xca   :  { %p7159_p3 = scmp.ne.s32.totalorder %s277_s17, %s7158_s25  ;;  %p7164_p5 = scmp.lt.s32.totalorder %s7158_s25, %s7158_s25 }
  0xcc   :  { %p7165_p6 = por %p7164_p5, %p7163_p4 }
  0xce   :  { %p7166_p7 = pnand %p7165_p6, %p7159_p3 }
  0xd0   :  { %7169 = shalt.err (!%p7166_p7)
}
  0xd1   :  { %282 = dma.hbm_to_vmem [thread:$0]  %s8036_s20, 1024, %s277_s17, [#allocation29], %s7916_s0, %s7916_s0, %s7917_s24  }
  0xd2   :  { %s7170_s6 = scalar_lea.hbm %s8046_s4, 16 }
  0xd3   :  { %p7171_p8 = scmp.ne.s32.totalorder %s8046_s4, %s7170_s6  ;;  %p7174_p9 = scmp.lt.u32.totalorder %s7170_s6, %s8046_s4 }
  0xd5   :  { %p7176_p10 = pnand %p7174_p9, %p7171_p8 }
  0xd7   :  { %7179 = shalt.err (!%p7176_p10)
}
  0xd8   :  { %s7180_s16 = scalar_lea.vmem %s302_s11, 16  ;;  %s7184_s23 = scalar_lea.vmem %s302_s11, 32 }
  0xd9   :  { %p7181_p11 = scmp.ne.s32.totalorder %s302_s11, %s7180_s16  ;;  %p7185_p12 = scmp.lt.s32.totalorder %s302_s11, %s302_s11 }
  0xda   :  { %p7186_p13 = scmp.lt.s32.totalorder %s7184_s23, %s7180_s16 }
  0xdc   :  { %p7187_p0 = por %p7186_p13, %p7185_p12 }
  0xde   :  { %p7188_p1 = pnand %p7187_p0, %p7181_p11 }
  0xe0   :  { %7191 = shalt.err (!%p7188_p1)
}
  0xe1   :  { %304 = dma.hbm_to_vmem [thread:$0]  %s8046_s4, 16, %s302_s11, [#allocation32]  }
  0xe2   :  { %s7920_s20 = smov [#allocation34]   ;;  %s7921_s3 = smov [#allocation37]  }
  0xe3   :  { %s323_s26 = sshll.u32 %s7920_s20, 4  ;;  %s345_s9 = sshll.u32 %s7921_s3, 4  ;;  %s324_s26 = int_to_ptr.vmem [resolvable:$true] %s323_s26  ;;  %s346_s9 = int_to_ptr.vmem [resolvable:$true] %s345_s9 }
  0xe4   :  { %s7192_s28 = scalar_lea.hbm %s8056_s30, 16 }
  0xe5   :  { %p7193_p2 = scmp.ne.s32.totalorder %s8056_s30, %s7192_s28  ;;  %p7196_p3 = scmp.lt.u32.totalorder %s7192_s28, %s8056_s30 }
  0xe7   :  { %p7198_p4 = pnand %p7196_p3, %p7193_p2 }
  0xe9   :  { %7201 = shalt.err (!%p7198_p4)
}
  0xea   :  { %s7202_s1 = scalar_lea.vmem %s324_s26, 16  ;;  %s7206_s14 = scalar_lea.vmem %s324_s26, 32 }
  0xeb   :  { %p7203_p5 = scmp.ne.s32.totalorder %s324_s26, %s7202_s1  ;;  %p7207_p6 = scmp.lt.s32.totalorder %s324_s26, %s324_s26 }
  0xec   :  { %p7208_p7 = scmp.lt.s32.totalorder %s7206_s14, %s7202_s1 }
  0xee   :  { %p7209_p8 = por %p7208_p7, %p7207_p6 }
  0xf0   :  { %p7210_p9 = pnand %p7209_p8, %p7203_p5 }
  0xf2   :  { %7213 = shalt.err (!%p7210_p9)
}
  0xf3   :  { %326 = dma.hbm_to_vmem [thread:$0]  %s8056_s30, 16, %s324_s26, [#allocation35]  }
  0xf4   :  { %s7214_s4 = scalar_lea.hbm %s8066_s19, 16 }
  0xf5   :  { %p7215_p10 = scmp.ne.s32.totalorder %s8066_s19, %s7214_s4  ;;  %p7218_p11 = scmp.lt.u32.totalorder %s7214_s4, %s8066_s19 }
  0xf7   :  { %p7220_p12 = pnand %p7218_p11, %p7215_p10 }
  0xf9   :  { %7223 = shalt.err (!%p7220_p12)
}
  0xfa   :  { %s7224_s2 = scalar_lea.vmem %s346_s9, 16  ;;  %s7228_s7 = scalar_lea.vmem %s346_s9, 32 }
  0xfb   :  { %p7225_p13 = scmp.ne.s32.totalorder %s346_s9, %s7224_s2  ;;  %p7229_p0 = scmp.lt.s32.totalorder %s346_s9, %s346_s9 }
  0xfc   :  { %p7230_p1 = scmp.lt.s32.totalorder %s7228_s7, %s7224_s2 }
  0xfe   :  { %p7231_p2 = por %p7230_p1, %p7229_p0 }
 0x100   :  { %p7232_p3 = pnand %p7231_p2, %p7225_p13 }
 0x102   :  { %7235 = shalt.err (!%p7232_p3)
}
 0x103   :  { %348 = dma.hbm_to_vmem [thread:$0]  %s8066_s19, 16, %s346_s9, [#allocation38]  }
 0x104   :  { %s7922_s30 = smov [#allocation40]   ;;  %s7923_s10 = smov [#allocation43]  }
 0x105   :  { %s366_s17 = sshll.u32 %s7922_s30, 4  ;;  %s388_s11 = sshll.u32 %s7923_s10, 4  ;;  %s367_s17 = int_to_ptr.vmem [resolvable:$true] %s366_s17  ;;  %s389_s11 = int_to_ptr.vmem [resolvable:$true] %s388_s11 }
 0x106   :  { %s7236_s15 = scalar_lea.hbm %s8076_s8, 1024 }
 0x107   :  { %p7237_p4 = scmp.ne.s32.totalorder %s8076_s8, %s7236_s15  ;;  %p7240_p5 = scmp.lt.u32.totalorder %s7236_s15, %s8076_s8 }
 0x109   :  { %p7242_p6 = pnand %p7240_p5, %p7237_p4 }
 0x10b   :  { %7245 = shalt.err (!%p7242_p6)
}
 0x10c   :  { %s7246_s25 = scalar_lea.vmem %s367_s17, 1024  ;;  %p7251_p8 = scmp.lt.s32.totalorder %s367_s17, %s367_s17 }
 0x10d   :  { %p7247_p7 = scmp.ne.s32.totalorder %s367_s17, %s7246_s25  ;;  %p7252_p9 = scmp.lt.s32.totalorder %s7246_s25, %s7246_s25 }
 0x10f   :  { %p7253_p10 = por %p7252_p9, %p7251_p8 }
 0x111   :  { %p7254_p11 = pnand %p7253_p10, %p7247_p7 }
 0x113   :  { %7257 = shalt.err (!%p7254_p11)
}
 0x114   :  { %372 = dma.hbm_to_vmem [thread:$0]  %s8076_s8, 1024, %s367_s17, [#allocation41], %s7916_s0, %s7916_s0, %s7917_s24  }
 0x115   :  { %s7258_s19 = scalar_lea.hbm %s8086_s29, 1024 }
 0x116   :  { %p7259_p12 = scmp.ne.s32.totalorder %s8086_s29, %s7258_s19  ;;  %p7262_p13 = scmp.lt.u32.totalorder %s7258_s19, %s8086_s29 }
 0x118   :  { %p7264_p0 = pnand %p7262_p13, %p7259_p12 }
 0x11a   :  { %7267 = shalt.err (!%p7264_p0)
}
 0x11b   :  { %s7268_s6 = scalar_lea.vmem %s389_s11, 1024  ;;  %p7273_p2 = scmp.lt.s32.totalorder %s389_s11, %s389_s11 }
 0x11c   :  { %p7269_p1 = scmp.ne.s32.totalorder %s389_s11, %s7268_s6  ;;  %p7274_p3 = scmp.lt.s32.totalorder %s7268_s6, %s7268_s6 }
 0x11e   :  { %p7275_p4 = por %p7274_p3, %p7273_p2 }
 0x120   :  { %p7276_p5 = pnand %p7275_p4, %p7269_p1 }
 0x122   :  { %7279 = shalt.err (!%p7276_p5)
}
 0x123   :  { %394 = dma.hbm_to_vmem [thread:$0]  %s8086_s29, 1024, %s389_s11, [#allocation44], %s7916_s0, %s7916_s0, %s7917_s24  }
 0x124   :  { %s7924_s8 = smov [#allocation46]   ;;  %s7925_s23 = smov [#allocation49]  }
 0x125   :  { %s410_s16 = sshll.u32 %s7924_s8, 4  ;;  %s433_s20 = sshll.u32 %s7925_s23, 4  ;;  %s411_s16 = int_to_ptr.vmem [resolvable:$true] %s410_s16  ;;  %s434_s20 = int_to_ptr.vmem [resolvable:$true] %s433_s20 }
 0x126   :  { %s7280_s26 = scalar_lea.hbm %s8096_s21, 2048 }
 0x127   :  { %p7281_p6 = scmp.ne.s32.totalorder %s8096_s21, %s7280_s26  ;;  %p7284_p7 = scmp.lt.u32.totalorder %s7280_s26, %s8096_s21 }
 0x129   :  { %p7286_p8 = pnand %p7284_p7, %p7281_p6 }
 0x12b   :  { %7289 = shalt.err (!%p7286_p8)
}
 0x12c   :  { %s7290_s3 = scalar_lea.vmem %s411_s16, 2048  ;;  %p7295_p10 = scmp.lt.s32.totalorder %s411_s16, %s411_s16 }
 0x12d   :  { %p7291_p9 = scmp.ne.s32.totalorder %s411_s16, %s7290_s3  ;;  %p7296_p11 = scmp.lt.s32.totalorder %s7290_s3, %s7290_s3 }
 0x12f   :  { %p7297_p12 = por %p7296_p11, %p7295_p10 }
 0x131   :  { %p7298_p13 = pnand %p7297_p12, %p7291_p9 }
 0x133   :  { %7301 = shalt.err (!%p7298_p13)
}
 0x134   :  { %s9486_s29 = sld [smem:[#allocation97_spill]] }
 0x135   :  { %416 = dma.hbm_to_vmem [thread:$0]  %s8096_s21, 2048, %s411_s16, [#allocation47], %s7909_s18, %s7909_s18, %s7910_s22  }
 0x13a   :  { %s7302_s9 = scalar_lea.hbm %s9486_s29, 16 }
 0x13b   :  { %p7303_p0 = scmp.ne.s32.totalorder %s9486_s29, %s7302_s9  ;;  %p7306_p1 = scmp.lt.u32.totalorder %s7302_s9, %s9486_s29 }
 0x13d   :  { %p7308_p2 = pnand %p7306_p1, %p7303_p0 }
 0x13f   :  { %7311 = shalt.err (!%p7308_p2)
}
 0x140   :  { %s7312_s28 = scalar_lea.vmem %s434_s20, 16  ;;  %s7316_s1 = scalar_lea.vmem %s434_s20, 32 }
 0x141   :  { %p7313_p3 = scmp.ne.s32.totalorder %s434_s20, %s7312_s28  ;;  %p7317_p4 = scmp.lt.s32.totalorder %s434_s20, %s434_s20 }
 0x142   :  { %p7318_p5 = scmp.lt.s32.totalorder %s7316_s1, %s7312_s28 }
 0x144   :  { %p7319_p6 = por %p7318_p5, %p7317_p4 }
 0x146   :  { %p7320_p7 = pnand %p7319_p6, %p7313_p3 }
 0x148   :  { %7323 = shalt.err (!%p7320_p7)
}
 0x149   :  { %s9487_s14 = sld [smem:[#allocation99_spill]]  ;;  %s7926_s21 = smov [#allocation52]  }
 0x14a   :  { %436 = dma.hbm_to_vmem [thread:$0]  %s9486_s29, 16, %s434_s20, [#allocation50]  }
 0x14b   :  { %s452_s4 = sshll.u32 %s7926_s21, 4  ;;  %s7927_s2 = smov [#allocation55]   ;;  %s453_s4 = int_to_ptr.vmem [resolvable:$true] %s452_s4 }
 0x14c   :  { %s474_s7 = sshll.u32 %s7927_s2, 4  ;;  %s475_s7 = int_to_ptr.vmem [resolvable:$true] %s474_s7 }
 0x14f   :  { %s7324_s30 = scalar_lea.hbm %s9487_s14, 1024 }
 0x150   :  { %p7325_p8 = scmp.ne.s32.totalorder %s9487_s14, %s7324_s30  ;;  %p7328_p9 = scmp.lt.u32.totalorder %s7324_s30, %s9487_s14 }
 0x152   :  { %p7330_p10 = pnand %p7328_p9, %p7325_p8 }
 0x154   :  { %7333 = shalt.err (!%p7330_p10)
}
 0x155   :  { %s7334_s17 = scalar_lea.vmem %s453_s4, 1024  ;;  %p7339_p12 = scmp.lt.s32.totalorder %s453_s4, %s453_s4 }
 0x156   :  { %p7335_p11 = scmp.ne.s32.totalorder %s453_s4, %s7334_s17  ;;  %p7340_p13 = scmp.lt.s32.totalorder %s7334_s17, %s7334_s17 }
 0x158   :  { %p7341_p0 = por %p7340_p13, %p7339_p12 }
 0x15a   :  { %p7342_p1 = pnand %p7341_p0, %p7335_p11 }
 0x15c   :  { %7345 = shalt.err (!%p7342_p1)
}
 0x15d   :  { %s9488_s10 = sld [smem:[#allocation101_spill]] }
 0x15e   :  { %458 = dma.hbm_to_vmem [thread:$0]  %s9487_s14, 1024, %s453_s4, [#allocation53], %s7916_s0, %s7916_s0, %s7917_s24  }
 0x163   :  { %s7346_s11 = scalar_lea.hbm %s9488_s10, 1024 }
 0x164   :  { %p7347_p2 = scmp.ne.s32.totalorder %s9488_s10, %s7346_s11  ;;  %p7350_p3 = scmp.lt.u32.totalorder %s7346_s11, %s9488_s10 }
 0x166   :  { %p7352_p4 = pnand %p7350_p3, %p7347_p2 }
 0x168   :  { %7355 = shalt.err (!%p7352_p4)
}
 0x169   :  { %s7356_s15 = scalar_lea.vmem %s475_s7, 1024  ;;  %p7361_p6 = scmp.lt.s32.totalorder %s475_s7, %s475_s7 }
 0x16a   :  { %p7357_p5 = scmp.ne.s32.totalorder %s475_s7, %s7356_s15  ;;  %p7362_p7 = scmp.lt.s32.totalorder %s7356_s15, %s7356_s15 }
 0x16c   :  { %p7363_p8 = por %p7362_p7, %p7361_p6 }
 0x16e   :  { %p7364_p9 = pnand %p7363_p8, %p7357_p5 }
 0x170   :  { %7367 = shalt.err (!%p7364_p9)
}
 0x171   :  { %s9489_s25 = sld [smem:[#allocation82_spill]]  ;;  %s7928_s19 = smov [#allocation4]  }
 0x172   :  { %480 = dma.hbm_to_vmem [thread:$0]  %s9488_s10, 1024, %s475_s7, [#allocation56], %s7916_s0, %s7916_s0, %s7917_s24  }
 0x173   :  { %s106_s6 = sshll.u32 %s7928_s19, 4  ;;  %s7929_s8 = smov [#allocation9]   ;;  %s107_s6 = int_to_ptr.vmem [resolvable:$true] %s106_s6 }
 0x174   :  { %s130_s16 = sshll.u32 %s7929_s8, 4  ;;  %s131_s16 = int_to_ptr.vmem [resolvable:$true] %s130_s16 }
 0x177   :  { %s7368_s23 = scalar_lea.hbm %s9489_s25, 2048 }
 0x178   :  { %p7369_p10 = scmp.ne.s32.totalorder %s9489_s25, %s7368_s23  ;;  %p7372_p11 = scmp.lt.u32.totalorder %s7368_s23, %s9489_s25 }
 0x17a   :  { %p7374_p12 = pnand %p7372_p11, %p7369_p10 }
 0x17c   :  { %7377 = shalt.err (!%p7374_p12)
}
 0x17d   :  { %s7378_s20 = scalar_lea.vmem %s107_s6, 2048  ;;  %p7383_p0 = scmp.lt.s32.totalorder %s107_s6, %s107_s6 }
 0x17e   :  { %p7379_p13 = scmp.ne.s32.totalorder %s107_s6, %s7378_s20  ;;  %p7384_p1 = scmp.lt.s32.totalorder %s7378_s20, %s7378_s20 }
 0x180   :  { %p7385_p2 = por %p7384_p1, %p7383_p0 }
 0x182   :  { %p7386_p3 = pnand %p7385_p2, %p7379_p13 }
 0x184   :  { %7389 = shalt.err (!%p7386_p3)
}
 0x185   :  { %s9490_s26 = sld [smem:[#allocation83_spill]] }
 0x186   :  { %112 = dma.hbm_to_vmem [thread:$0]  %s9489_s25, 2048, %s107_s6, [#allocation5], %s7909_s18, %s7909_s18, %s7910_s22  }
 0x18b   :  { %s7390_s3 = scalar_lea.hbm %s9490_s26, 2048 }
 0x18c   :  { %p7391_p4 = scmp.ne.s32.totalorder %s9490_s26, %s7390_s3  ;;  %p7394_p5 = scmp.lt.u32.totalorder %s7390_s3, %s9490_s26 }
 0x18e   :  { %p7396_p6 = pnand %p7394_p5, %p7391_p4 }
 0x190   :  { %7399 = shalt.err (!%p7396_p6)
}
 0x191   :  { %s7400_s29 = scalar_lea.vmem %s131_s16, 2048  ;;  %p7405_p8 = scmp.lt.s32.totalorder %s131_s16, %s131_s16 }
 0x192   :  { %p7401_p7 = scmp.ne.s32.totalorder %s131_s16, %s7400_s29  ;;  %p7406_p9 = scmp.lt.s32.totalorder %s7400_s29, %s7400_s29 }
 0x194   :  { %p7407_p10 = por %p7406_p9, %p7405_p8 }
 0x196   :  { %p7408_p11 = pnand %p7407_p10, %p7401_p7 }
 0x198   :  { %7411 = shalt.err (!%p7408_p11)
}
 0x199   :  { %s9491_s9 = sld [smem:[#allocation84_spill]]  ;;  %s7930_s28 = smov [#allocation12]  }
 0x19a   :  { %136 = dma.hbm_to_vmem [thread:$0]  %s9490_s26, 2048, %s131_s16, [#allocation8], %s7909_s18, %s7909_s18, %s7910_s22  }
 0x19b   :  { %s154_s1 = sshll.u32 %s7930_s28, 4  ;;  %s7931_s14 = smov [#allocation15]   ;;  %s155_s1 = int_to_ptr.vmem [resolvable:$true] %s154_s1 }
 0x19c   :  { %s176_s21 = sshll.u32 %s7931_s14, 4  ;;  %s177_s21 = int_to_ptr.vmem [resolvable:$true] %s176_s21 }
 0x19f   :  { %s7412_s4 = scalar_lea.hbm %s9491_s9, 256 }
 0x1a0   :  { %p7413_p12 = scmp.ne.s32.totalorder %s9491_s9, %s7412_s4  ;;  %p7416_p13 = scmp.lt.u32.totalorder %s7412_s4, %s9491_s9 }
 0x1a2   :  { %p7418_p0 = pnand %p7416_p13, %p7413_p12 }
 0x1a4   :  { %7421 = shalt.err (!%p7418_p0)
}
 0x1a5   :  { %s7422_s2 = scalar_lea.vmem %s155_s1, 256  ;;  %p7427_p2 = scmp.lt.s32.totalorder %s155_s1, %s155_s1 }
 0x1a6   :  { %p7423_p1 = scmp.ne.s32.totalorder %s155_s1, %s7422_s2  ;;  %p7428_p3 = scmp.lt.s32.totalorder %s7422_s2, %s7422_s2 }
 0x1a8   :  { %p7429_p4 = por %p7428_p3, %p7427_p2 }
 0x1aa   :  { %p7430_p5 = pnand %p7429_p4, %p7423_p1 }
 0x1ac   :  { %7433 = shalt.err (!%p7430_p5)
}
 0x1ad   :  { %s9492_s7 = sld [smem:[#allocation85_spill]] }
 0x1ae   :  { %160 = dma.hbm_to_vmem [thread:$0]  %s9491_s9, 256, %s155_s1, [#allocation11], %s7909_s18, %s7909_s18, %s7910_s22  }
 0x1b3   :  { %s7434_s30 = scalar_lea.hbm %s9492_s7, 256 }
 0x1b4   :  { %p7435_p6 = scmp.ne.s32.totalorder %s9492_s7, %s7434_s30  ;;  %p7438_p7 = scmp.lt.u32.totalorder %s7434_s30, %s9492_s7 }
 0x1b6   :  { %p7440_p8 = pnand %p7438_p7, %p7435_p6 }
 0x1b8   :  { %7443 = shalt.err (!%p7440_p8)
}
 0x1b9   :  { %s7444_s17 = scalar_lea.vmem %s177_s21, 256  ;;  %p7449_p10 = scmp.lt.s32.totalorder %s177_s21, %s177_s21 }
 0x1ba   :  { %p7445_p9 = scmp.ne.s32.totalorder %s177_s21, %s7444_s17  ;;  %p7450_p11 = scmp.lt.s32.totalorder %s7444_s17, %s7444_s17 }
 0x1bc   :  { %p7451_p12 = por %p7450_p11, %p7449_p10 }
 0x1be   :  { %p7452_p13 = pnand %p7451_p12, %p7445_p9 }
 0x1c0   :  { %7455 = shalt.err (!%p7452_p13)
}
 0x1c1   :  { %s9493_s10 = sld [smem:[#allocation86_spill]]  ;;  %s7932_s11 = smov [#allocation18]  }
 0x1c2   :  { %182 = dma.hbm_to_vmem [thread:$0]  %s9492_s7, 256, %s177_s21, [#allocation14], %s7909_s18, %s7909_s18, %s7910_s22  }
 0x1c3   :  { %s198_s15 = sshll.u32 %s7932_s11, 4  ;;  %s7933_s25 = smov [#allocation21]   ;;  %s199_s15 = int_to_ptr.vmem [resolvable:$true] %s198_s15 }
 0x1c4   :  { %s222_s19 = sshll.u32 %s7933_s25, 4  ;;  %s223_s19 = int_to_ptr.vmem [resolvable:$true] %s222_s19 }
 0x1c7   :  { %s7456_s6 = scalar_lea.hbm %s9493_s10, 2048 }
 0x1c8   :  { %p7457_p0 = scmp.ne.s32.totalorder %s9493_s10, %s7456_s6  ;;  %p7460_p1 = scmp.lt.u32.totalorder %s7456_s6, %s9493_s10 }
 0x1ca   :  { %p7462_p2 = pnand %p7460_p1, %p7457_p0 }
 0x1cc   :  { %7465 = shalt.err (!%p7462_p2)
}
 0x1cd   :  { %s7466_s8 = scalar_lea.vmem %s199_s15, 2048  ;;  %p7471_p4 = scmp.lt.s32.totalorder %s199_s15, %s199_s15 }
 0x1ce   :  { %p7467_p3 = scmp.ne.s32.totalorder %s199_s15, %s7466_s8  ;;  %p7472_p5 = scmp.lt.s32.totalorder %s7466_s8, %s7466_s8 }
 0x1d0   :  { %p7473_p6 = por %p7472_p5, %p7471_p4 }
 0x1d2   :  { %p7474_p7 = pnand %p7473_p6, %p7467_p3 }
 0x1d4   :  { %7477 = shalt.err (!%p7474_p7)
}
 0x1d5   :  { %s9494_s16 = sld [smem:[#allocation87_spill]] }
 0x1d6   :  { %204 = dma.hbm_to_vmem [thread:$0]  %s9493_s10, 2048, %s199_s15, [#allocation17], %s7909_s18, %s7909_s18, %s7910_s22  }
 0x1db   :  { %s7478_s23 = scalar_lea.hbm %s9494_s16, 2048 }
 0x1dc   :  { %p7479_p8 = scmp.ne.s32.totalorder %s9494_s16, %s7478_s23  ;;  %p7482_p9 = scmp.lt.u32.totalorder %s7478_s23, %s9494_s16 }
 0x1de   :  { %p7484_p10 = pnand %p7482_p9, %p7479_p8 }
 0x1e0   :  { %7487 = shalt.err (!%p7484_p10)
}
 0x1e1   :  { %s7488_s20 = scalar_lea.vmem %s223_s19, 2048  ;;  %p7493_p12 = scmp.lt.s32.totalorder %s223_s19, %s223_s19 }
 0x1e2   :  { %p7489_p11 = scmp.ne.s32.totalorder %s223_s19, %s7488_s20  ;;  %p7494_p13 = scmp.lt.s32.totalorder %s7488_s20, %s7488_s20 }
 0x1e4   :  { %p7495_p0 = por %p7494_p13, %p7493_p12 }
 0x1e6   :  { %p7496_p1 = pnand %p7495_p0, %p7489_p11 }
 0x1e8   :  { %7499 = shalt.err (!%p7496_p1)
}
 0x1e9   :  { %s9495_s26 = sld [smem:[#allocation88_spill]]  ;;  %s7934_s3 = smov [#allocation24]  }
 0x1ea   :  { %228 = dma.hbm_to_vmem [thread:$0]  %s9494_s16, 2048, %s223_s19, [#allocation20], %s7909_s18, %s7909_s18, %s7910_s22  }
 0x1eb   :  { %s245_s29 = sshll.u32 %s7934_s3, 4  ;;  %s7935_s9 = smov [#allocation27]   ;;  %s246_s29 = int_to_ptr.vmem [resolvable:$true] %s245_s29 }
 0x1ec   :  { %s267_s28 = sshll.u32 %s7935_s9, 4  ;;  %s268_s28 = int_to_ptr.vmem [resolvable:$true] %s267_s28 }
 0x1ef   :  { %s7500_s1 = scalar_lea.hbm %s9495_s26, 32 }
 0x1f0   :  { %p7501_p2 = scmp.ne.s32.totalorder %s9495_s26, %s7500_s1  ;;  %p7504_p3 = scmp.lt.u32.totalorder %s7500_s1, %s9495_s26 }
 0x1f2   :  { %p7506_p4 = pnand %p7504_p3, %p7501_p2 }
 0x1f4   :  { %7509 = shalt.err (!%p7506_p4)
}
 0x1f5   :  { %s7510_s14 = scalar_lea.vmem %s246_s29, 32  ;;  %p7515_p6 = scmp.lt.s32.totalorder %s246_s29, %s246_s29 }
 0x1f6   :  { %p7511_p5 = scmp.ne.s32.totalorder %s246_s29, %s7510_s14  ;;  %p7516_p7 = scmp.lt.s32.totalorder %s7510_s14, %s7510_s14 }
 0x1f8   :  { %p7517_p8 = por %p7516_p7, %p7515_p6 }
 0x1fa   :  { %p7518_p9 = pnand %p7517_p8, %p7511_p5 }
 0x1fc   :  { %7521 = shalt.err (!%p7518_p9)
}
 0x1fd   :  { %s9496_s21 = sld [smem:[#allocation89_spill]] }
 0x1fe   :  { %248 = dma.hbm_to_vmem [thread:$0]  %s9495_s26, 32, %s246_s29, [#allocation23]  }
 0x203   :  { %s7522_s4 = scalar_lea.hbm %s9496_s21, 16 }
 0x204   :  { %p7523_p10 = scmp.ne.s32.totalorder %s9496_s21, %s7522_s4  ;;  %p7526_p11 = scmp.lt.u32.totalorder %s7522_s4, %s9496_s21 }
 0x206   :  { %p7528_p12 = pnand %p7526_p11, %p7523_p10 }
 0x208   :  { %7531 = shalt.err (!%p7528_p12)
}
 0x209   :  { %s7532_s2 = scalar_lea.vmem %s268_s28, 16  ;;  %s7536_s7 = scalar_lea.vmem %s268_s28, 32 }
 0x20a   :  { %p7533_p13 = scmp.ne.s32.totalorder %s268_s28, %s7532_s2  ;;  %p7537_p0 = scmp.lt.s32.totalorder %s268_s28, %s268_s28 }
 0x20b   :  { %p7538_p1 = scmp.lt.s32.totalorder %s7536_s7, %s7532_s2 }
 0x20d   :  { %p7539_p2 = por %p7538_p1, %p7537_p0 }
 0x20f   :  { %p7540_p3 = pnand %p7539_p2, %p7533_p13 }
 0x211   :  { %7543 = shalt.err (!%p7540_p3)
}
 0x212   :  { %s9497_s30 = sld [smem:[#allocation90_spill]]  ;;  %s7936_s17 = smov [#allocation30]  }
 0x213   :  { %270 = dma.hbm_to_vmem [thread:$0]  %s9496_s21, 16, %s268_s28, [#allocation26]  }
 0x214   :  { %s288_s10 = sshll.u32 %s7936_s17, 4  ;;  %s7937_s11 = smov [#allocation33]   ;;  %s289_s10 = int_to_ptr.vmem [resolvable:$true] %s288_s10 }
 0x215   :  { %s310_s15 = sshll.u32 %s7937_s11, 4  ;;  %s311_s15 = int_to_ptr.vmem [resolvable:$true] %s310_s15 }
 0x218   :  { %s7544_s25 = scalar_lea.hbm %s9497_s30, 1024 }
 0x219   :  { %p7545_p4 = scmp.ne.s32.totalorder %s9497_s30, %s7544_s25  ;;  %p7548_p5 = scmp.lt.u32.totalorder %s7544_s25, %s9497_s30 }
 0x21b   :  { %p7550_p6 = pnand %p7548_p5, %p7545_p4 }
 0x21d   :  { %7553 = shalt.err (!%p7550_p6)
}
 0x21e   :  { %s7554_s19 = scalar_lea.vmem %s289_s10, 1024  ;;  %p7559_p8 = scmp.lt.s32.totalorder %s289_s10, %s289_s10 }
 0x21f   :  { %p7555_p7 = scmp.ne.s32.totalorder %s289_s10, %s7554_s19  ;;  %p7560_p9 = scmp.lt.s32.totalorder %s7554_s19, %s7554_s19 }
 0x221   :  { %p7561_p10 = por %p7560_p9, %p7559_p8 }
 0x223   :  { %p7562_p11 = pnand %p7561_p10, %p7555_p7 }
 0x225   :  { %7565 = shalt.err (!%p7562_p11)
}
 0x226   :  { %s9498_s6 = sld [smem:[#allocation91_spill]] }
 0x227   :  { %294 = dma.hbm_to_vmem [thread:$0]  %s9497_s30, 1024, %s289_s10, [#allocation29], %s7916_s0, %s7916_s0, %s7917_s24  }
 0x22c   :  { %s7566_s8 = scalar_lea.hbm %s9498_s6, 1024 }
 0x22d   :  { %p7567_p12 = scmp.ne.s32.totalorder %s9498_s6, %s7566_s8  ;;  %p7570_p13 = scmp.lt.u32.totalorder %s7566_s8, %s9498_s6 }
 0x22f   :  { %p7572_p0 = pnand %p7570_p13, %p7567_p12 }
 0x231   :  { %7575 = shalt.err (!%p7572_p0)
}
 0x232   :  { %s7576_s16 = scalar_lea.vmem %s311_s15, 1024  ;;  %p7581_p2 = scmp.lt.s32.totalorder %s311_s15, %s311_s15 }
 0x233   :  { %p7577_p1 = scmp.ne.s32.totalorder %s311_s15, %s7576_s16  ;;  %p7582_p3 = scmp.lt.s32.totalorder %s7576_s16, %s7576_s16 }
 0x235   :  { %p7583_p4 = por %p7582_p3, %p7581_p2 }
 0x237   :  { %p7584_p5 = pnand %p7583_p4, %p7577_p1 }
 0x239   :  { %7587 = shalt.err (!%p7584_p5)
}
 0x23a   :  { %s9499_s23 = sld [smem:[#allocation92_spill]]  ;;  %s7938_s20 = smov [#allocation36]  }
 0x23b   :  { %316 = dma.hbm_to_vmem [thread:$0]  %s9498_s6, 1024, %s311_s15, [#allocation32], %s7916_s0, %s7916_s0, %s7917_s24  }
 0x23c   :  { %s332_s26 = sshll.u32 %s7938_s20, 4  ;;  %s7939_s3 = smov [#allocation39]   ;;  %s333_s26 = int_to_ptr.vmem [resolvable:$true] %s332_s26 }
 0x23d   :  { %s354_s29 = sshll.u32 %s7939_s3, 4  ;;  %s355_s29 = int_to_ptr.vmem [resolvable:$true] %s354_s29 }
 0x240   :  { %s7588_s9 = scalar_lea.hbm %s9499_s23, 1024 }
 0x241   :  { %p7589_p6 = scmp.ne.s32.totalorder %s9499_s23, %s7588_s9  ;;  %p7592_p7 = scmp.lt.u32.totalorder %s7588_s9, %s9499_s23 }
 0x243   :  { %p7594_p8 = pnand %p7592_p7, %p7589_p6 }
 0x245   :  { %7597 = shalt.err (!%p7594_p8)
}
 0x246   :  { %s7598_s28 = scalar_lea.vmem %s333_s26, 1024  ;;  %p7603_p10 = scmp.lt.s32.totalorder %s333_s26, %s333_s26 }
 0x247   :  { %p7599_p9 = scmp.ne.s32.totalorder %s333_s26, %s7598_s28  ;;  %p7604_p11 = scmp.lt.s32.totalorder %s7598_s28, %s7598_s28 }
 0x249   :  { %p7605_p12 = por %p7604_p11, %p7603_p10 }
 0x24b   :  { %p7606_p13 = pnand %p7605_p12, %p7599_p9 }
 0x24d   :  { %7609 = shalt.err (!%p7606_p13)
}
 0x24e   :  { %s9500_s1 = sld [smem:[#allocation93_spill]] }
 0x24f   :  { %338 = dma.hbm_to_vmem [thread:$0]  %s9499_s23, 1024, %s333_s26, [#allocation35], %s7916_s0, %s7916_s0, %s7917_s24  }
 0x254   :  { %s7610_s14 = scalar_lea.hbm %s9500_s1, 1024 }
 0x255   :  { %p7611_p0 = scmp.ne.s32.totalorder %s9500_s1, %s7610_s14  ;;  %p7614_p1 = scmp.lt.u32.totalorder %s7610_s14, %s9500_s1 }
 0x257   :  { %p7616_p2 = pnand %p7614_p1, %p7611_p0 }
 0x259   :  { %7619 = shalt.err (!%p7616_p2)
}
 0x25a   :  { %s7620_s21 = scalar_lea.vmem %s355_s29, 1024  ;;  %p7625_p4 = scmp.lt.s32.totalorder %s355_s29, %s355_s29 }
 0x25b   :  { %p7621_p3 = scmp.ne.s32.totalorder %s355_s29, %s7620_s21  ;;  %p7626_p5 = scmp.lt.s32.totalorder %s7620_s21, %s7620_s21 }
 0x25d   :  { %p7627_p6 = por %p7626_p5, %p7625_p4 }
 0x25f   :  { %p7628_p7 = pnand %p7627_p6, %p7621_p3 }
 0x261   :  { %7631 = shalt.err (!%p7628_p7)
}
 0x262   :  { %s9501_s4 = sld [smem:[#allocation94_spill]]  ;;  %s7940_s2 = smov [#allocation42]  }
 0x263   :  { %360 = dma.hbm_to_vmem [thread:$0]  %s9500_s1, 1024, %s355_s29, [#allocation38], %s7916_s0, %s7916_s0, %s7917_s24  }
 0x264   :  { %s379_s7 = sshll.u32 %s7940_s2, 4  ;;  %s7941_s30 = smov [#allocation45]   ;;  %s380_s7 = int_to_ptr.vmem [resolvable:$true] %s379_s7 }
 0x265   :  { %s401_s17 = sshll.u32 %s7941_s30, 4  ;;  %s402_s17 = int_to_ptr.vmem [resolvable:$true] %s401_s17 }
 0x268   :  { %s7632_s10 = scalar_lea.hbm %s9501_s4, 16 }
 0x269   :  { %p7633_p8 = scmp.ne.s32.totalorder %s9501_s4, %s7632_s10  ;;  %p7636_p9 = scmp.lt.u32.totalorder %s7632_s10, %s9501_s4 }
 0x26b   :  { %p7638_p10 = pnand %p7636_p9, %p7633_p8 }
 0x26d   :  { %7641 = shalt.err (!%p7638_p10)
}
 0x26e   :  { %s7642_s11 = scalar_lea.vmem %s380_s7, 16  ;;  %s7646_s15 = scalar_lea.vmem %s380_s7, 32 }
 0x26f   :  { %p7643_p11 = scmp.ne.s32.totalorder %s380_s7, %s7642_s11  ;;  %p7647_p12 = scmp.lt.s32.totalorder %s380_s7, %s380_s7 }
 0x270   :  { %p7648_p13 = scmp.lt.s32.totalorder %s7646_s15, %s7642_s11 }
 0x272   :  { %p7649_p0 = por %p7648_p13, %p7647_p12 }
 0x274   :  { %p7650_p1 = pnand %p7649_p0, %p7643_p11 }
 0x276   :  { %7653 = shalt.err (!%p7650_p1)
}
 0x277   :  { %s9502_s0 = sld [smem:[#allocation95_spill]] }
 0x278   :  { %382 = dma.hbm_to_vmem [thread:$0]  %s9501_s4, 16, %s380_s7, [#allocation41]  }
 0x27d   :  { %s7654_s24 = scalar_lea.hbm %s9502_s0, 16 }
 0x27e   :  { %p7655_p2 = scmp.ne.s32.totalorder %s9502_s0, %s7654_s24  ;;  %p7658_p3 = scmp.lt.u32.totalorder %s7654_s24, %s9502_s0 }
 0x280   :  { %p7660_p4 = pnand %p7658_p3, %p7655_p2 }
 0x282   :  { %7663 = shalt.err (!%p7660_p4)
}
 0x283   :  { %s7664_s25 = scalar_lea.vmem %s402_s17, 16  ;;  %s7668_s19 = scalar_lea.vmem %s402_s17, 32 }
 0x284   :  { %p7665_p5 = scmp.ne.s32.totalorder %s402_s17, %s7664_s25  ;;  %p7669_p6 = scmp.lt.s32.totalorder %s402_s17, %s402_s17 }
 0x285   :  { %p7670_p7 = scmp.lt.s32.totalorder %s7668_s19, %s7664_s25 }
 0x287   :  { %p7671_p8 = por %p7670_p7, %p7669_p6 }
 0x289   :  { %p7672_p9 = pnand %p7671_p8, %p7665_p5 }
 0x28b   :  { %7675 = shalt.err (!%p7672_p9)
}
 0x28c   :  { %s9503_s6 = sld [smem:[#allocation96_spill]]  ;;  %s7942_s8 = smov [#allocation48]  }
 0x28d   :  { %404 = dma.hbm_to_vmem [thread:$0]  %s9502_s0, 16, %s402_s17, [#allocation44]  }
 0x28e   :  { %s423_s16 = sshll.u32 %s7942_s8, 4  ;;  %s7943_s23 = smov [#allocation51]   ;;  %s424_s16 = int_to_ptr.vmem [resolvable:$true] %s423_s16 }
 0x28f   :  { %s443_s20 = sshll.u32 %s7943_s23, 4  ;;  %s444_s20 = int_to_ptr.vmem [resolvable:$true] %s443_s20 }
 0x292   :  { %s7676_s26 = scalar_lea.hbm %s9503_s6, 32 }
 0x293   :  { %p7677_p10 = scmp.ne.s32.totalorder %s9503_s6, %s7676_s26  ;;  %p7680_p11 = scmp.lt.u32.totalorder %s7676_s26, %s9503_s6 }
 0x295   :  { %p7682_p12 = pnand %p7680_p11, %p7677_p10 }
 0x297   :  { %7685 = shalt.err (!%p7682_p12)
}
 0x298   :  { %s7686_s3 = scalar_lea.vmem %s424_s16, 32  ;;  %p7691_p0 = scmp.lt.s32.totalorder %s424_s16, %s424_s16 }
 0x299   :  { %p7687_p13 = scmp.ne.s32.totalorder %s424_s16, %s7686_s3  ;;  %p7692_p1 = scmp.lt.s32.totalorder %s7686_s3, %s7686_s3 }
 0x29b   :  { %p7693_p2 = por %p7692_p1, %p7691_p0 }
 0x29d   :  { %p7694_p3 = pnand %p7693_p2, %p7687_p13 }
 0x29f   :  { %7697 = shalt.err (!%p7694_p3)
}
 0x2a0   :  { %s9504_s29 = sld [smem:[#allocation98_spill]] }
 0x2a1   :  { %426 = dma.hbm_to_vmem [thread:$0]  %s9503_s6, 32, %s424_s16, [#allocation47]  }
 0x2a6   :  { %s7698_s9 = scalar_lea.hbm %s9504_s29, 16 }
 0x2a7   :  { %p7699_p4 = scmp.ne.s32.totalorder %s9504_s29, %s7698_s9  ;;  %p7702_p5 = scmp.lt.u32.totalorder %s7698_s9, %s9504_s29 }
 0x2a9   :  { %p7704_p6 = pnand %p7702_p5, %p7699_p4 }
 0x2ab   :  { %7707 = shalt.err (!%p7704_p6)
}
 0x2ac   :  { %s7708_s28 = scalar_lea.vmem %s444_s20, 16  ;;  %s7712_s1 = scalar_lea.vmem %s444_s20, 32 }
 0x2ad   :  { %p7709_p7 = scmp.ne.s32.totalorder %s444_s20, %s7708_s28  ;;  %p7713_p8 = scmp.lt.s32.totalorder %s444_s20, %s444_s20 }
 0x2ae   :  { %p7714_p9 = scmp.lt.s32.totalorder %s7712_s1, %s7708_s28 }
 0x2b0   :  { %p7715_p10 = por %p7714_p9, %p7713_p8 }
 0x2b2   :  { %p7716_p11 = pnand %p7715_p10, %p7709_p7 }
 0x2b4   :  { %7719 = shalt.err (!%p7716_p11)
}
 0x2b5   :  { %s9505_s14 = sld [smem:[#allocation100_spill]]  ;;  %s7944_s21 = smov [#allocation54]  }
 0x2b6   :  { %446 = dma.hbm_to_vmem [thread:$0]  %s9504_s29, 16, %s444_s20, [#allocation50]  }
 0x2b7   :  { %s465_s4 = sshll.u32 %s7944_s21, 4  ;;  %s7945_s2 = smov [#allocation57]   ;;  %s466_s4 = int_to_ptr.vmem [resolvable:$true] %s465_s4 }
 0x2b8   :  { %s487_s7 = sshll.u32 %s7945_s2, 4  ;;  %s488_s7 = int_to_ptr.vmem [resolvable:$true] %s487_s7 }
 0x2bb   :  { %s7720_s30 = scalar_lea.hbm %s9505_s14, 16 }
 0x2bc   :  { %p7721_p12 = scmp.ne.s32.totalorder %s9505_s14, %s7720_s30  ;;  %p7724_p13 = scmp.lt.u32.totalorder %s7720_s30, %s9505_s14 }
 0x2be   :  { %p7726_p0 = pnand %p7724_p13, %p7721_p12 }
 0x2c0   :  { %7729 = shalt.err (!%p7726_p0)
}
 0x2c1   :  { %s7730_s17 = scalar_lea.vmem %s466_s4, 16  ;;  %s7734_s10 = scalar_lea.vmem %s466_s4, 32 }
 0x2c2   :  { %p7731_p1 = scmp.ne.s32.totalorder %s466_s4, %s7730_s17  ;;  %p7735_p2 = scmp.lt.s32.totalorder %s466_s4, %s466_s4 }
 0x2c3   :  { %p7736_p3 = scmp.lt.s32.totalorder %s7734_s10, %s7730_s17 }
 0x2c5   :  { %p7737_p4 = por %p7736_p3, %p7735_p2 }
 0x2c7   :  { %p7738_p5 = pnand %p7737_p4, %p7731_p1 }
 0x2c9   :  { %7741 = shalt.err (!%p7738_p5)
}
 0x2ca   :  { %468 = dma.hbm_to_vmem [thread:$0]  %s9505_s14, 16, %s466_s4, [#allocation53]  }
 0x2cb   :  { %s7742_s11 = scalar_lea.hbm %s8131_s12, 16 }
 0x2cc   :  { %p7743_p6 = scmp.ne.s32.totalorder %s8131_s12, %s7742_s11  ;;  %p7746_p7 = scmp.lt.u32.totalorder %s7742_s11, %s8131_s12 }
 0x2ce   :  { %p7748_p8 = pnand %p7746_p7, %p7743_p6 }
 0x2d0   :  { %7751 = shalt.err (!%p7748_p8)
}
 0x2d1   :  { %s7752_s15 = scalar_lea.vmem %s488_s7, 16  ;;  %s7756_s0 = scalar_lea.vmem %s488_s7, 32 }
 0x2d2   :  { %p7753_p9 = scmp.ne.s32.totalorder %s488_s7, %s7752_s15  ;;  %p7757_p10 = scmp.lt.s32.totalorder %s488_s7, %s488_s7 }
 0x2d3   :  { %p7758_p11 = scmp.lt.s32.totalorder %s7756_s0, %s7752_s15 }
 0x2d5   :  { %p7759_p12 = por %p7758_p11, %p7757_p10 }
 0x2d7   :  { %p7760_p13 = pnand %p7759_p12, %p7753_p9 }
 0x2d9   :  { %7763 = shalt.err (!%p7760_p13)
}
 0x2da   :  { %490 = dma.hbm_to_vmem [thread:$0]  %s8131_s12, 16, %s488_s7, [#allocation56]  }
 0x2db   :  { %7830 = dma.done.wait [#allocation5], 2048  }
 0x2dc   :  { %7831 = vsyncadd [#allocation5], 4294965248 }
 0x2dd   :  { %7832 = dma.done.wait [#allocation8], 4096  }
 0x2de   :  { %7833 = vsyncadd [#allocation8], 4294963200 }
 0x2df   :  { %7834 = dma.done.wait [#allocation11], 512  }
 0x2e0   :  { %7835 = vsyncadd [#allocation11], 4294966784 }
 0x2e1   :  { %7836 = dma.done.wait [#allocation14], 384  }
 0x2e2   :  { %7837 = vsyncadd [#allocation14], 4294966912 }
 0x2e3   :  { %7838 = dma.done.wait [#allocation17], 2176  }
 0x2e4   :  { %7839 = vsyncadd [#allocation17], 4294965120 }
 0x2e5   :  { %7840 = dma.done.wait [#allocation20], 4096  }
 0x2e6   :  { %7841 = vsyncadd [#allocation20], 4294963200 }
 0x2e7   :  { %7842 = dma.done.wait [#allocation23], 64  }
 0x2e8   :  { %7843 = vsyncadd [#allocation23], 4294967232 }
 0x2e9   :  { %7844 = dma.done.wait [#allocation26], 2064  }
 0x2ea   :  { %7845 = vsyncadd [#allocation26], 4294965232 }
 0x2eb   :  { %7846 = dma.done.wait [#allocation29], 2048  }
 0x2ec   :  { %7847 = vsyncadd [#allocation29], 4294965248 }
 0x2ed   :  { %7848 = dma.done.wait [#allocation32], 1040  }
 0x2ee   :  { %7849 = vsyncadd [#allocation32], 4294966256 }
 0x2ef   :  { %7850 = dma.done.wait [#allocation35], 1040  }
 0x2f0   :  { %7851 = vsyncadd [#allocation35], 4294966256 }
 0x2f1   :  { %7852 = dma.done.wait [#allocation38], 1040  }
 0x2f2   :  { %7853 = vsyncadd [#allocation38], 4294966256 }
 0x2f3   :  { %7854 = dma.done.wait [#allocation41], 1040  }
 0x2f4   :  { %7855 = vsyncadd [#allocation41], 4294966256 }
 0x2f5   :  { %7856 = dma.done.wait [#allocation44], 1040  }
 0x2f6   :  { %7857 = vsyncadd [#allocation44], 4294966256 }
 0x2f7   :  { %7858 = dma.done.wait [#allocation47], 2080  }
 0x2f8   :  { %7859 = vsyncadd [#allocation47], 4294965216 }
 0x2f9   :  { %7860 = dma.done.wait [#allocation50], 32  }
 0x2fa   :  { %7861 = vsyncadd [#allocation50], 4294967264 }
 0x2fb   :  { %7862 = dma.done.wait [#allocation53], 1040  }
 0x2fc   :  { %7863 = vsyncadd [#allocation53], 4294966256 }
 0x2fd   :  { %7864 = dma.done.wait [#allocation56], 1040  }
 0x2fe   :  { %7865 = vsyncadd [#allocation56], 4294966256  ;;  %v9452_v0 = vmov 0   ;;  %v637_v1 = vld [vmem:[#allocation4 + $0x10] sm:$0xff]  ;;  %v635_v2 = vld [vmem:[#allocation4] sm:$0xff]  ;;  %v667_v39 = vlaneseq  ;;  %vm877_vm4 = vcmask 130048  }
 0x2ff   :  { %6464 = vset.pattern.permute.xlu1 %v9452_v0  ;;  %6463 = vset.pattern.permute.xlu0 %v9452_v0  ;;  %v638_v3 = vld [vmem:[#allocation4 + $0x18] sm:$0xff]  ;;  %v636_v4 = vld [vmem:[#allocation4 + $0x8] sm:$0xff]  ;;  %v639_v6 = vld [vmem:[#allocation4 + $0x20] sm:$0xff]  ;;  %v9453_v45 = vmov 0.0   ;;  %s7950_s12 = smov [#allocation59]   ;;  %s7951_s25 = smov [#allocation58]  }
 0x300   :  { %780 = vperm.xlu1 %6464, %v637_v1   ;;  %774 = vperm.xlu0 %6463, %v635_v2   ;;  %v640_v5 = vld [vmem:[#allocation4 + $0x28] sm:$0xff]  ;;  %v642_v7 = vld [vmem:[#allocation4 + $0x38] sm:$0xff]  ;;  %v641_v8 = vld [vmem:[#allocation4 + $0x30] sm:$0xff]  ;;  %v8368_v40 = vand.u32 127, %v667_v39  ;;  %s5267_s24 = sshll.u32 %s7950_s12, 4  ;;  %s5255_s19 = sshll.u32 %s7951_s25, 4  ;;  %s5268_s24 = int_to_ptr.vmem [resolvable:$true] %s5267_s24  ;;  %s5256_s19 = int_to_ptr.vmem [resolvable:$true] %s5255_s19 }
 0x301   :  { %v605_v9 = vld [vmem:[#allocation10] sm:$0xff]  ;;  %v606_v10 = vld [vmem:[#allocation10 + $0x8] sm:$0xff]  ;;  %v646_v14 = vld [vmem:[#allocation4 + $0x58] sm:$0xff]  ;;  %s7764_s6 = scalar_lea.vmem %s5268_s24, 256  ;;  %p7769_p1 = scmp.lt.s32.totalorder %s5268_s24, %s5268_s24 }
 0x302   :  { %v644_v11 = vld [vmem:[#allocation4 + $0x48] sm:$0xff]  ;;  %v643_v12 = vld [vmem:[#allocation4 + $0x40] sm:$0xff]  ;;  %v8357_v13 = vpack.c.bf16 %v606_v10, %v605_v9  ;;  %v645_v15 = vld [vmem:[#allocation4 + $0x50] sm:$0xff]  ;;  %p7765_p0 = scmp.ne.s32.totalorder %s5268_s24, %s7764_s6  ;;  %p7770_p2 = scmp.lt.s32.totalorder %s7764_s6, %s7764_s6 }
 0x303   :  { %v648_v16 = vld [vmem:[#allocation4 + $0x68] sm:$0xff]  ;;  %v647_v17 = vld [vmem:[#allocation4 + $0x60] sm:$0xff]  ;;  %v650_v18 = vld [vmem:[#allocation4 + $0x78] sm:$0xff] }
 0x304   :  { %783 = vperm.xlu1 %6464, %v638_v3   ;;  %777 = vperm.xlu0 %6463, %v636_v4   ;;  %9506 = vst [vmem:[#allocation102_spill] sm:$0xff] %v8357_v13  ;;  %v649_v19 = vld [vmem:[#allocation4 + $0x70] sm:$0xff]  ;;  %v652_v20 = vld [vmem:[#allocation7 + $0x8] sm:$0xff]  ;;  %v651_v21 = vld [vmem:[#allocation7] sm:$0xff]  ;;  %p7771_p3 = por %p7770_p2, %p7769_p1 }
 0x305   :  { %5938 = vmatprep.subr.bf16.mxu1 %v8357_v13  ;;  %5920 = vmatprep.subr.bf16.mxu0 %v8357_v13  ;;  %v654_v22 = vld [vmem:[#allocation7 + $0x18] sm:$0xff]  ;;  %v653_v23 = vld [vmem:[#allocation7 + $0x10] sm:$0xff]  ;;  %v656_v26 = vld [vmem:[#allocation7 + $0x28] sm:$0xff] }
 0x306   :  { %5939 = vmatpush3.bf16.msra.mxu1 %v8357_v13  ;;  %5921 = vmatpush3.bf16.msra.mxu0 %v8357_v13  ;;  %v608_v24 = vld [vmem:[#allocation12] sm:$0xff]  ;;  %v609_v25 = vld [vmem:[#allocation12 + $0x8] sm:$0xff]  ;;  %v655_v27 = vld [vmem:[#allocation7 + $0x20] sm:$0xff]  ;;  %p7772_p4 = pnand %p7771_p3, %p7765_p0 }
 0x307   :  { %v8363_v28 = vpack.c.bf16 %v609_v25, %v608_v24  ;;  %v658_v29 = vld [vmem:[#allocation7 + $0x38] sm:$0xff]  ;;  %v657_v30 = vld [vmem:[#allocation7 + $0x30] sm:$0xff]  ;;  %v660_v31 = vld [vmem:[#allocation7 + $0x48] sm:$0xff] }
 0x308   :  { %789 = vperm.xlu1 %6464, %v640_v5   ;;  %786 = vperm.xlu0 %6463, %v639_v6   ;;  %v659_v32 = vld [vmem:[#allocation7 + $0x40] sm:$0xff]  ;;  %v662_v33 = vld [vmem:[#allocation7 + $0x58] sm:$0xff]  ;;  %v661_v34 = vld [vmem:[#allocation7 + $0x50] sm:$0xff] }
 0x309   :  { %5974 = vmatprep.subr.bf16.mxu1 %v8363_v28  ;;  %5956 = vmatprep.subr.bf16.mxu0 %v8363_v28  ;;  %v664_v35 = vld [vmem:[#allocation7 + $0x68] sm:$0xff]  ;;  %v663_v36 = vld [vmem:[#allocation7 + $0x60] sm:$0xff]  ;;  %v666_v37 = vld [vmem:[#allocation7 + $0x78] sm:$0xff] }
 0x30a   :  { %v665_v38 = vld [vmem:[#allocation7 + $0x70] sm:$0xff] }
 0x30c   :  { %795 = vperm.xlu1 %6464, %v642_v7   ;;  %792 = vperm.xlu0 %6463, %v641_v8  }
 0x310   :  { %801 = vperm.xlu1 %6464, %v644_v11   ;;  %798 = vperm.xlu0 %6463, %v643_v12  }
 0x314   :  { %807 = vperm.xlu1 %6464, %v646_v14   ;;  %804 = vperm.xlu0 %6463, %v645_v15  }
 0x318   :  { %813 = vperm.xlu1 %6464, %v648_v16   ;;  %810 = vperm.xlu0 %6463, %v647_v17  }
 0x31c   :  { %819 = vperm.xlu1 %6464, %v650_v18   ;;  %816 = vperm.xlu0 %6463, %v649_v19  }
 0x320   :  { %673 = vperm.xlu1 %6464, %v652_v20   ;;  %670 = vperm.xlu0 %6463, %v651_v21  }
 0x324   :  { %679 = vperm.xlu1 %6464, %v654_v22   ;;  %676 = vperm.xlu0 %6463, %v653_v23  }
 0x328   :  { %685 = vperm.xlu1 %6464, %v656_v26   ;;  %682 = vperm.xlu0 %6463, %v655_v27  }
 0x32c   :  { %691 = vperm.xlu1 %6464, %v658_v29   ;;  %688 = vperm.xlu0 %6463, %v657_v30  }
 0x330   :  { %697 = vperm.xlu1 %6464, %v660_v31   ;;  %694 = vperm.xlu0 %6463, %v659_v32   ;;  %v6472_v31 = vld [vmem:[#allocation19 + $0x4] ss:$8 sps:$4 sm:$0xff]  }
 0x334   :  { %703 = vperm.xlu1 %6464, %v662_v33   ;;  %700 = vperm.xlu0 %6463, %v661_v34  }
 0x338   :  { %709 = vperm.xlu1 %6464, %v664_v35   ;;  %706 = vperm.xlu0 %6463, %v663_v36  }
 0x33c   :  { %715 = vperm.xlu1 %6464, %v666_v37   ;;  %712 = vperm.xlu0 %6463, %v665_v38  }
 0x37f   :  { %v781_v41 = vpop.permute.xlu1 %780  ;;  %v775_v42 = vpop.permute.xlu0 %774 }
 0x380   :  { %vm823_vm0 = vcmp.eq.s32.totalorder %v8368_v40, %v781_v41  ;;  %vm821_vm1 = vcmp.eq.s32.totalorder %v8368_v40, %v775_v42 }
 0x381   :  { %v5370_v46 = vsel %vm823_vm0, 1.0, %v9453_v45  ;;  %v5368_v47 = vsel %vm821_vm1, 1.0, %v9453_v45 }
 0x383   :  { %v784_v43 = vpop.permute.xlu1 %783  ;;  %v778_v44 = vpop.permute.xlu0 %777 }
 0x384   :  { %vm824_vm2 = vcmp.eq.s32.totalorder %v8368_v40, %v784_v43  ;;  %vm822_vm3 = vcmp.eq.s32.totalorder %v8368_v40, %v778_v44 }
 0x385   :  { %v5371_v48 = vsel %vm824_vm2, 1.0, %v9453_v45  ;;  %v5369_v49 = vsel %vm822_vm3, 1.0, %v9453_v45 }
 0x386   :  { %v8378_v50 = vpack.c.bf16 %v5371_v48, %v5370_v46  ;;  %v8380_v51 = vpack.c.bf16 %v5369_v49, %v5368_v47 }
 0x387   :  { %v790_v52 = vpop.permute.xlu1 %789  ;;  %v787_v53 = vpop.permute.xlu0 %786 }
 0x388   :  { %vm826_vm5 = vcmp.eq.s32.totalorder %v8368_v40, %v790_v52  ;;  %vm825_vm6 = vcmp.eq.s32.totalorder %v8368_v40, %v787_v53  ;;  %5940 = vmatprep.mubr.msk.bf16.mxu1 %vm877_vm4, %v8380_v51 }
 0x389   :  { %v5373_v54 = vsel %vm826_vm5, 1.0, %v9453_v45  ;;  %v5372_v55 = vsel %vm825_vm6, 1.0, %v9453_v45  ;;  %5941 = vmatmul.mubr.msk.bf16.vlgmr.msra.gmra.mrb[0].mxu1 %vm877_vm4, %v8378_v50 }
 0x38a   :  { %v8390_v56 = vpack.c.bf16 %v5373_v54, %v5372_v55  ;;  %5975 = vmatpush3.bf16.msra.mxu1 %v8363_v28 }
 0x38b   :  { %v796_v57 = vpop.permute.xlu1 %795  ;;  %v793_v58 = vpop.permute.xlu0 %792 }
 0x38c   :  { %vm828_vm7 = vcmp.eq.s32.totalorder %v8368_v40, %v796_v57  ;;  %vm827_vm8 = vcmp.eq.s32.totalorder %v8368_v40, %v793_v58  ;;  %5944 = vmatprep.mubr.msk.bf16.mxu1 %vm877_vm4, %v8390_v56 }
 0x38d   :  { %v5375_v59 = vsel %vm828_vm7, 1.0, %v9453_v45  ;;  %v5374_v60 = vsel %vm827_vm8, 1.0, %v9453_v45 }
 0x38e   :  { %v8399_v61 = vpack.c.bf16 %v5375_v59, %v5374_v60 }
 0x38f   :  { %v802_v62 = vpop.permute.xlu1 %801  ;;  %v799_v63 = vpop.permute.xlu0 %798 }
 0x390   :  { %vm830_vm9 = vcmp.eq.s32.totalorder %v8368_v40, %v802_v62  ;;  %vm829_vm10 = vcmp.eq.s32.totalorder %v8368_v40, %v799_v63 }
 0x391   :  { %v5377_v1 = vsel %vm830_vm9, 1.0, %v9453_v45  ;;  %v5376_v2 = vsel %vm829_vm10, 1.0, %v9453_v45  ;;  %5945 = vmatmul.mubr.msk.bf16.gmra.mrb[4].mxu1 %vm877_vm4, %v8399_v61 }
 0x392   :  { %v8407_v3 = vpack.c.bf16 %v5377_v1, %v5376_v2 }
 0x393   :  { %v808_v4 = vpop.permute.xlu1 %807  ;;  %v805_v5 = vpop.permute.xlu0 %804 }
 0x394   :  { %vm832_vm11 = vcmp.eq.s32.totalorder %v8368_v40, %v808_v4  ;;  %vm831_vm12 = vcmp.eq.s32.totalorder %v8368_v40, %v805_v5  ;;  %5948 = vmatprep.mubr.msk.bf16.mxu1 %vm877_vm4, %v8407_v3 }
 0x395   :  { %v5379_v6 = vsel %vm832_vm11, 1.0, %v9453_v45  ;;  %v5378_v7 = vsel %vm831_vm12, 1.0, %v9453_v45 }
 0x396   :  { %v8415_v8 = vpack.c.bf16 %v5379_v6, %v5378_v7  ;;  %v6470_v6 = vld [vmem:[#allocation19] ss:$8 sps:$4 sm:$0xff]   ;;  %v6475_v7 = vld [vmem:[#allocation19 + $0x14] ss:$8 sps:$4 sm:$0xff]  }
 0x397   :  { %v814_v9 = vpop.permute.xlu1 %813  ;;  %v811_v10 = vpop.permute.xlu0 %810 }
 0x398   :  { %vm834_vm13 = vcmp.eq.s32.totalorder %v8368_v40, %v814_v9  ;;  %vm833_vm14 = vcmp.eq.s32.totalorder %v8368_v40, %v811_v10  ;;  %v6473_v9 = vld [vmem:[#allocation19 + $0x10] ss:$8 sps:$4 sm:$0xff]   ;;  %v6478_v10 = vld [vmem:[#allocation19 + $0x24] ss:$8 sps:$4 sm:$0xff]  }
 0x399   :  { %v5381_v11 = vsel %vm834_vm13, 1.0, %v9453_v45  ;;  %v5380_v12 = vsel %vm833_vm14, 1.0, %v9453_v45  ;;  %5949 = vmatmul.mubr.msk.bf16.gmra.mrb[8].mxu1 %vm877_vm4, %v8415_v8 }
 0x39a   :  { %v8423_v14 = vpack.c.bf16 %v5381_v11, %v5380_v12  ;;  %v6476_v11 = vld [vmem:[#allocation19 + $0x20] ss:$8 sps:$4 sm:$0xff]   ;;  %v6481_v12 = vld [vmem:[#allocation19 + $0x34] ss:$8 sps:$4 sm:$0xff]  }
 0x39b   :  { %v820_v15 = vpop.permute.xlu1 %819  ;;  %v817_v16 = vpop.permute.xlu0 %816 }
 0x39c   :  { %vm836_vm15 = vcmp.eq.s32.totalorder %v8368_v40, %v820_v15  ;;  %vm835_vm0 = vcmp.eq.s32.totalorder %v8368_v40, %v817_v16  ;;  %5952 = vmatprep.mubr.msk.bf16.mxu1 %vm877_vm4, %v8423_v14  ;;  %v6487_v15 = vld [vmem:[#allocation19 + $0x54] ss:$8 sps:$4 sm:$0xff]   ;;  %v6485_v16 = vld [vmem:[#allocation19 + $0x50] ss:$8 sps:$4 sm:$0xff]  }
 0x39d   :  { %v5383_v17 = vsel %vm836_vm15, 1.0, %v9453_v45  ;;  %v5382_v18 = vsel %vm835_vm0, 1.0, %v9453_v45 }
 0x39e   :  { %v8431_v19 = vpack.c.bf16 %v5383_v17, %v5382_v18  ;;  %v6493_v17 = vld [vmem:[#allocation19 + $0x74] ss:$8 sps:$4 sm:$0xff]   ;;  %v6491_v18 = vld [vmem:[#allocation19 + $0x70] ss:$8 sps:$4 sm:$0xff]  }
 0x39f   :  { %v674_v20 = vpop.permute.xlu1 %673  ;;  %v671_v21 = vpop.permute.xlu0 %670 }
 0x3a0   :  { %vm718_vm1 = vcmp.eq.s32.totalorder %v8368_v40, %v674_v20  ;;  %vm717_vm2 = vcmp.eq.s32.totalorder %v8368_v40, %v671_v21 }
 0x3a1   :  { %v5353_v22 = vsel %vm718_vm1, 1.0, %v9453_v45  ;;  %v5352_v23 = vsel %vm717_vm2, 1.0, %v9453_v45  ;;  %5953 = vmatmul.mubr.msk.bf16.gmra.mrb[12].mxu1 %vm877_vm4, %v8431_v19  ;;  %vm7948_vm2 = vmmov 0  }
 0x3a2   :  { %v8439_v24 = vpack.c.bf16 %v5353_v22, %v5352_v23 }
 0x3a3   :  { %v680_v25 = vpop.permute.xlu1 %679  ;;  %v677_v26 = vpop.permute.xlu0 %676 }
 0x3a4   :  { %vm720_vm3 = vcmp.eq.s32.totalorder %v8368_v40, %v680_v25  ;;  %vm719_vm5 = vcmp.eq.s32.totalorder %v8368_v40, %v677_v26  ;;  %5922 = vmatprep.mubr.msk.bf16.mxu0 %vm877_vm4, %v8439_v24  ;;  %5976 = vmatprep.mubr.msk.bf16.mxu1 %vm877_vm4, %v8439_v24  ;;  %v6494_v25 = vld [vmem:[#allocation18] ss:$8 sps:$4 sm:$0xff]  }
 0x3a5   :  { %v5355_v27 = vsel %vm720_vm3, 1.0, %v9453_v45  ;;  %v5354_v29 = vsel %vm719_vm5, 1.0, %v9453_v45 }
 0x3a6   :  { %v8449_v30 = vpack.c.bf16 %v5355_v27, %v5354_v29  ;;  %v6499_v27 = vld [vmem:[#allocation18 + $0x14] ss:$8 sps:$4 sm:$0xff]  }
 0x3a7   :  { %v686_v32 = vpop.permute.xlu1 %685  ;;  %v683_v33 = vpop.permute.xlu0 %682 }
 0x3a8   :  { %vm722_vm6 = vcmp.eq.s32.totalorder %v8368_v40, %v686_v32  ;;  %vm721_vm7 = vcmp.eq.s32.totalorder %v8368_v40, %v683_v33  ;;  %5923 = vmatmul.mubr.msk.bf16.vlgmr.msra.gmra.mrb[0].mxu0 %vm877_vm4, %v8449_v30 }
 0x3a9   :  { %v5357_v34 = vsel %vm722_vm6, 1.0, %v9453_v45  ;;  %v5356_v35 = vsel %vm721_vm7, 1.0, %v9453_v45  ;;  %5977 = vmatmul.mubr.msk.bf16.vlgmr.msra.gmra.mrb[16].mxu1 %vm877_vm4, %v8449_v30  ;;  %5957 = vmatpush3.bf16.msra.mxu0 %v8363_v28  ;;  %vm4458_vm6 = vcmask 64512  }
 0x3aa   :  { %v8460_v36 = vpack.c.bf16 %v5357_v34, %v5356_v35  ;;  %1506 = vmatprep.subr.bf16.mxu0 %v6472_v31  ;;  %v6502_v31 = vld [vmem:[#allocation18 + $0x24] ss:$8 sps:$4 sm:$0xff]  }
 0x3ab   :  { %v692_v37 = vpop.permute.xlu1 %691  ;;  %v689_v38 = vpop.permute.xlu0 %688 }
 0x3ac   :  { %vm724_vm8 = vcmp.eq.s32.totalorder %v8368_v40, %v692_v37  ;;  %vm723_vm9 = vcmp.eq.s32.totalorder %v8368_v40, %v689_v38  ;;  %5926 = vmatprep.mubr.msk.bf16.mxu0 %vm877_vm4, %v8460_v36  ;;  %5980 = vmatprep.mubr.msk.bf16.mxu1 %vm877_vm4, %v8460_v36  ;;  %v6500_v37 = vld [vmem:[#allocation18 + $0x20] ss:$8 sps:$4 sm:$0xff]  }
 0x3ad   :  { %v5359_v41 = vsel %vm724_vm8, 1.0, %v9453_v45  ;;  %v5358_v42 = vsel %vm723_vm9, 1.0, %v9453_v45 }
 0x3ae   :  { %v8470_v28 = vpack.c.bf16 %v5359_v41, %v5358_v42  ;;  %v6505_v41 = vld [vmem:[#allocation18 + $0x34] ss:$8 sps:$4 sm:$0xff]   ;;  %v6503_v42 = vld [vmem:[#allocation18 + $0x30] ss:$8 sps:$4 sm:$0xff]  }
 0x3af   :  { %v698_v43 = vpop.permute.xlu1 %697  ;;  %v695_v44 = vpop.permute.xlu0 %694 }
 0x3b0   :  { %vm726_vm10 = vcmp.eq.s32.totalorder %v8368_v40, %v698_v43  ;;  %vm725_vm11 = vcmp.eq.s32.totalorder %v8368_v40, %v695_v44  ;;  %5927 = vmatmul.mubr.msk.bf16.gmra.mrb[4].mxu0 %vm877_vm4, %v8470_v28  ;;  %v6508_v44 = vld [vmem:[#allocation18 + $0x44] ss:$8 sps:$4 sm:$0xff]  }
 0x3b1   :  { %v5361_v46 = vsel %vm726_vm10, 1.0, %v9453_v45  ;;  %v5360_v47 = vsel %vm725_vm11, 1.0, %v9453_v45  ;;  %5981 = vmatmul.mubr.msk.bf16.gmra.mrb[20].mxu1 %vm877_vm4, %v8470_v28 }
 0x3b2   :  { %v8480_v48 = vpack.c.bf16 %v5361_v46, %v5360_v47 }
 0x3b3   :  { %v704_v49 = vpop.permute.xlu1 %703  ;;  %v701_v52 = vpop.permute.xlu0 %700 }
 0x3b4   :  { %vm728_vm12 = vcmp.eq.s32.totalorder %v8368_v40, %v704_v49  ;;  %vm727_vm13 = vcmp.eq.s32.totalorder %v8368_v40, %v701_v52  ;;  %5930 = vmatprep.mubr.msk.bf16.mxu0 %vm877_vm4, %v8480_v48  ;;  %5984 = vmatprep.mubr.msk.bf16.mxu1 %vm877_vm4, %v8480_v48 }
 0x3b5   :  { %v5363_v53 = vsel %vm728_vm12, 1.0, %v9453_v45  ;;  %v5362_v54 = vsel %vm727_vm13, 1.0, %v9453_v45 }
 0x3b6   :  { %v8490_v55 = vpack.c.bf16 %v5363_v53, %v5362_v54  ;;  %v6506_v53 = vld [vmem:[#allocation18 + $0x40] ss:$8 sps:$4 sm:$0xff]  }
 0x3b7   :  { %v710_v57 = vpop.permute.xlu1 %709  ;;  %v707_v58 = vpop.permute.xlu0 %706 }
 0x3b8   :  { %vm730_vm14 = vcmp.eq.s32.totalorder %v8368_v40, %v710_v57  ;;  %vm729_vm15 = vcmp.eq.s32.totalorder %v8368_v40, %v707_v58  ;;  %5931 = vmatmul.mubr.msk.bf16.gmra.mrb[8].mxu0 %vm877_vm4, %v8490_v55  ;;  %v6511_v57 = vld [vmem:[#allocation18 + $0x54] ss:$8 sps:$4 sm:$0xff]   ;;  %v6509_v58 = vld [vmem:[#allocation18 + $0x50] ss:$8 sps:$4 sm:$0xff]  }
 0x3b9   :  { %v5365_v59 = vsel %vm730_vm14, 1.0, %v9453_v45  ;;  %v5364_v60 = vsel %vm729_vm15, 1.0, %v9453_v45  ;;  %5985 = vmatmul.mubr.msk.bf16.gmra.mrb[24].mxu1 %vm877_vm4, %v8490_v55 }
 0x3ba   :  { %v8500_v62 = vpack.c.bf16 %v5365_v59, %v5364_v60  ;;  %v6514_v60 = vld [vmem:[#allocation18 + $0x64] ss:$8 sps:$4 sm:$0xff]  }
 0x3bb   :  { %v716_v63 = vpop.permute.xlu1 %715  ;;  %v713_v1 = vpop.permute.xlu0 %712 }
 0x3bc   :  { %vm732_vm0 = vcmp.eq.s32.totalorder %v8368_v40, %v716_v63  ;;  %vm731_vm1 = vcmp.eq.s32.totalorder %v8368_v40, %v713_v1  ;;  %5934 = vmatprep.mubr.msk.bf16.mxu0 %vm877_vm4, %v8500_v62  ;;  %5988 = vmatprep.mubr.msk.bf16.mxu1 %vm877_vm4, %v8500_v62 }
 0x3bd   :  { %v5367_v2 = vsel %vm732_vm0, 1.0, %v9453_v45  ;;  %v5366_v4 = vsel %vm731_vm1, 1.0, %v9453_v45 }
 0x3be   :  { %v8510_v5 = vpack.c.bf16 %v5367_v2, %v5366_v4 }
 0x3c0   :  { %5935 = vmatmul.mubr.msk.bf16.gmra.mrb[12].mxu0 %vm877_vm4, %v8510_v5 }
 0x3c1   :  { %5958 = vmatprep.mubr.msk.bf16.mxu0 %vm877_vm4, %v8380_v51  ;;  %5989 = vmatmul.mubr.msk.bf16.gmra.mrb[28].mxu1 %vm877_vm4, %v8510_v5  ;;  %v6479_v51 = vld [vmem:[#allocation19 + $0x30] ss:$8 sps:$4 sm:$0xff]  }
 0x3c8   :  { %5959 = vmatmul.mubr.msk.bf16.vlgmr.msra.gmra.mrb[16].mxu0 %vm877_vm4, %v8378_v50  ;;  %v6484_v50 = vld [vmem:[#allocation19 + $0x44] ss:$8 sps:$4 sm:$0xff]  }
 0x3c9   :  { %5962 = vmatprep.mubr.msk.bf16.mxu0 %vm877_vm4, %v8390_v56  ;;  %1507 = vmatpush1.bf16.msra.mxu0 %v6470_v6  ;;  %v6482_v56 = vld [vmem:[#allocation19 + $0x40] ss:$8 sps:$4 sm:$0xff]  }
 0x3ca   :  { %1508 = vmatprep.subr.bf16.mxu0 %v6475_v7  ;;  %v6512_v6 = vld [vmem:[#allocation18 + $0x60] ss:$8 sps:$4 sm:$0xff]  }
 0x3cd   :  { %1509 = vmatpush1.bf16.msra.mxu0 %v6473_v9  ;;  %v6517_v9 = vld [vmem:[#allocation18 + $0x74] ss:$8 sps:$4 sm:$0xff]  }
 0x3ce   :  { %1510 = vmatprep.subr.bf16.mxu0 %v6478_v10 }
 0x3d0   :  { %5963 = vmatmul.mubr.msk.bf16.gmra.mrb[20].mxu0 %vm877_vm4, %v8399_v61  ;;  %v6490_v61 = vld [vmem:[#allocation19 + $0x64] ss:$8 sps:$4 sm:$0xff]  }
 0x3d1   :  { %5966 = vmatprep.mubr.msk.bf16.mxu0 %vm877_vm4, %v8407_v3  ;;  %1511 = vmatpush1.bf16.msra.mxu0 %v6476_v11  ;;  %v6488_v3 = vld [vmem:[#allocation19 + $0x60] ss:$8 sps:$4 sm:$0xff]   ;;  %v6515_v11 = vld [vmem:[#allocation18 + $0x70] ss:$8 sps:$4 sm:$0xff]  }
 0x3d2   :  { %1512 = vmatprep.subr.bf16.mxu0 %v6481_v12 }
 0x3d5   :  { %1513 = vmatpush1.bf16.msra.mxu0 %v6479_v51 }
 0x3d6   :  { %1514 = vmatprep.subr.bf16.mxu0 %v6484_v50  ;;  %v6520_v50 = vld [vmem:[#allocation21 + $0x4] ss:$8 sps:$4 sm:$0xff]  }
 0x3d8   :  { %5967 = vmatmul.mubr.msk.bf16.gmra.mrb[24].mxu0 %vm877_vm4, %v8415_v8  ;;  %v6496_v8 = vld [vmem:[#allocation18 + $0x4] ss:$8 sps:$4 sm:$0xff]  }
 0x3d9   :  { %5970 = vmatprep.mubr.msk.bf16.mxu0 %vm877_vm4, %v8423_v14  ;;  %1515 = vmatpush1.bf16.msra.mxu0 %v6482_v56 }
 0x3da   :  { %1516 = vmatprep.subr.bf16.mxu0 %v6487_v15 }
 0x3dd   :  { %1517 = vmatpush1.bf16.msra.mxu0 %v6485_v16 }
 0x3de   :  { %1518 = vmatprep.subr.bf16.mxu0 %v6490_v61 }
 0x3e0   :  { %5971 = vmatmul.mubr.msk.bf16.gmra.mrb[28].mxu0 %vm877_vm4, %v8431_v19  ;;  %v6497_v19 = vld [vmem:[#allocation18 + $0x10] ss:$8 sps:$4 sm:$0xff]  }
 0x3e1   :  { %1519 = vmatpush1.bf16.msra.mxu0 %v6488_v3  ;;  %1538 = vmatprep.mubr.bf16.mxu0 %v9452_v0 }
 0x3e2   :  { %1520 = vmatprep.subr.bf16.mxu0 %v6493_v17 }
 0x3e5   :  { %1521 = vmatpush1.bf16.msra.mxu0 %v6491_v18 }
 0x3e6   :  { %1699 = vmatprep.subr.bf16.mxu0 %v6496_v8 }
 0x45c   :  { %v5942_v14 = vpop.f32.mrb[0].mxu1 }
 0x45d   :  { %v1057_v20 = vpop.f32.mrb[1].mxu1 }
 0x45e   :  { %v5943_v21 = vpop.f32.mrb[2].mxu1 }
 0x45f   :  { %v1403_v22 = vpack.c.bf16 %v5943_v21, %v5942_v14  ;;  %v1060_v23 = vpop.f32.mrb[3].mxu1 }
 0x460   :  { %v1402_v26 = vpack.c.bf16 %v1060_v23, %v1057_v20 }
 0x462   :  { %1539 = vmatmul.mubr.bf16.vlgmr.msra.gmra.mrb[32].mxu0 %v1402_v26 }
 0x463   :  { %1700 = vmatpush1.bf16.msra.mxu0 %v6494_v25  ;;  %1548 = vmatprep.mubr.bf16.mxu0 %v9452_v0 }
 0x464   :  { %v5946_v29 = vpop.f32.mrb[4].mxu1  ;;  %1701 = vmatprep.subr.bf16.mxu0 %v6499_v27 }
 0x465   :  { %v1073_v32 = vpop.f32.mrb[5].mxu1 }
 0x466   :  { %v5947_v33 = vpop.f32.mrb[6].mxu1 }
 0x467   :  { %v1405_v34 = vpack.c.bf16 %v5947_v33, %v5946_v29  ;;  %v1076_v35 = vpop.f32.mrb[7].mxu1  ;;  %1702 = vmatpush1.bf16.msra.mxu0 %v6497_v19 }
 0x468   :  { %v1404_v38 = vpack.c.bf16 %v1076_v35, %v1073_v32  ;;  %1703 = vmatprep.subr.bf16.mxu0 %v6502_v31 }
 0x46a   :  { %1549 = vmatmul.mubr.bf16.gmra.mrb[36].mxu0 %v1403_v22 }
 0x46b   :  { %1558 = vmatprep.mubr.bf16.mxu0 %v9452_v0  ;;  %1704 = vmatpush1.bf16.msra.mxu0 %v6500_v37 }
 0x46c   :  { %v5950_v43 = vpop.f32.mrb[8].mxu1  ;;  %1705 = vmatprep.subr.bf16.mxu0 %v6505_v41 }
 0x46d   :  { %v1089_v46 = vpop.f32.mrb[9].mxu1 }
 0x46e   :  { %v5951_v47 = vpop.f32.mrb[10].mxu1 }
 0x46f   :  { %v1407_v49 = vpack.c.bf16 %v5951_v47, %v5950_v43  ;;  %v1092_v52 = vpop.f32.mrb[11].mxu1  ;;  %1706 = vmatpush1.bf16.msra.mxu0 %v6503_v42 }
 0x470   :  { %v1406_v54 = vpack.c.bf16 %v1092_v52, %v1089_v46  ;;  %1707 = vmatprep.subr.bf16.mxu0 %v6508_v44 }
 0x472   :  { %1559 = vmatmul.mubr.bf16.gmra.mrb[40].mxu0 %v1404_v38 }
 0x473   :  { %1568 = vmatprep.mubr.bf16.mxu0 %v9452_v0  ;;  %1708 = vmatpush1.bf16.msra.mxu0 %v6506_v53 }
 0x474   :  { %v8536_v59 = vpop.f32.mrb[12].mxu1  ;;  %1709 = vmatprep.subr.bf16.mxu0 %v6511_v57 }
 0x475   :  { %v1105_v63 = vpop.f32.mrb[13].mxu1 }
 0x476   :  { %v5955_v1 = vpop.f32.mrb[14].mxu1 }
 0x477   :  { %v1409_v2 = vpack.c.bf16 %v5955_v1, %v8536_v59  ;;  %v1108_v4 = vpop.f32.mrb[15].mxu1  ;;  %1710 = vmatpush1.bf16.msra.mxu0 %v6509_v58 }
 0x478   :  { %v1408_v7 = vpack.c.bf16 %v1108_v4, %v1105_v63  ;;  %1711 = vmatprep.subr.bf16.mxu0 %v6514_v60 }
 0x47a   :  { %1569 = vmatmul.mubr.bf16.gmra.mrb[44].mxu0 %v1405_v34 }
 0x47b   :  { %v8539_v10 = vpop.f32.mrb[0].mxu0  ;;  %1578 = vmatprep.mubr.bf16.mxu0 %v9452_v0  ;;  %1712 = vmatpush1.bf16.msra.mxu0 %v6512_v6 }
 0x47c   :  { %v8542_v12 = vpop.f32.mrb[1].mxu0  ;;  %v5978_v51 = vpop.f32.mrb[16].mxu1  ;;  %1713 = vmatprep.subr.bf16.mxu0 %v6517_v9 }
 0x47d   :  { %v8544_v56 = vpop.f32.mrb[2].mxu0  ;;  %v1251_v15 = vpop.f32.mrb[17].mxu1 }
 0x47e   :  { %v1379_v16 = vpack.c.bf16 %v8544_v56, %v8539_v10  ;;  %v939_v61 = vpop.f32.mrb[3].mxu0  ;;  %v5979_v3 = vpop.f32.mrb[18].mxu1 }
 0x47f   :  { %v1378_v17 = vpack.c.bf16 %v939_v61, %v8542_v12  ;;  %v1254_v18 = vpop.f32.mrb[19].mxu1  ;;  %1714 = vmatpush1.bf16.msra.mxu0 %v6515_v11  ;;  %v6518_v12 = vld [vmem:[#allocation21] ss:$8 sps:$4 sm:$0xff]   ;;  %v6521_v61 = vld [vmem:[#allocation21 + $0x10] ss:$8 sps:$4 sm:$0xff]  }
 0x480   :  { %1908 = vmatprep.subr.bf16.mxu0 %v6520_v50  ;;  %v6523_v50 = vld [vmem:[#allocation21 + $0x14] ss:$8 sps:$4 sm:$0xff]  }
 0x482   :  { %1579 = vmatmul.mubr.bf16.gmra.mrb[48].mxu0 %v1406_v54 }
 0x483   :  { %v8549_v8 = vpop.f32.mrb[4].mxu0  ;;  %1588 = vmatprep.mubr.bf16.mxu0 %v9452_v0 }
 0x484   :  { %v8552_v14 = vpop.f32.mrb[5].mxu0  ;;  %v5982_v20 = vpop.f32.mrb[20].mxu1 }
 0x485   :  { %v8554_v21 = vpop.f32.mrb[6].mxu0  ;;  %v1267_v22 = vpop.f32.mrb[21].mxu1 }
 0x486   :  { %v1381_v23 = vpack.c.bf16 %v8554_v21, %v8549_v8  ;;  %v8558_v25 = vpop.f32.mrb[7].mxu0  ;;  %v5983_v26 = vpop.f32.mrb[22].mxu1  ;;  %v611_v8 = vld [vmem:[#allocation9] sm:$0xff]  ;;  %v612_v21 = vld [vmem:[#allocation9 + $0x8] sm:$0xff] }
 0x487   :  { %v1380_v27 = vpack.c.bf16 %v8558_v25, %v8552_v14  ;;  %v1270_v19 = vpop.f32.mrb[23].mxu1 }
 0x48a   :  { %1589 = vmatmul.mubr.bf16.gmra.mrb[52].mxu0 %v1407_v49 }
 0x48b   :  { %v8562_v29 = vpop.f32.mrb[8].mxu0  ;;  %1598 = vmatprep.mubr.bf16.mxu0 %v9452_v0 }
 0x48c   :  { %v8565_v31 = vpop.f32.mrb[9].mxu0  ;;  %v8567_v32 = vpop.f32.mrb[24].mxu1 }
 0x48d   :  { %v8569_v33 = vpop.f32.mrb[10].mxu0  ;;  %v8571_v34 = vpop.f32.mrb[25].mxu1 }
 0x48e   :  { %v1383_v35 = vpack.c.bf16 %v8569_v33, %v8562_v29  ;;  %v8575_v37 = vpop.f32.mrb[11].mxu0  ;;  %v8577_v38 = vpop.f32.mrb[26].mxu1  ;;  %v613_v29 = vld [vmem:[#allocation9 + $0x10] sm:$0xff] }
 0x48f   :  { %v1382_v41 = vpack.c.bf16 %v8575_v37, %v8565_v31  ;;  %v8581_v42 = vpop.f32.mrb[27].mxu1  ;;  %v614_v31 = vld [vmem:[#allocation9 + $0x18] sm:$0xff]  ;;  %v616_v37 = vld [vmem:[#allocation9 + $0x28] sm:$0xff] }
 0x490   :  { %v8711_v33 = vpack.c.bf16 %v614_v31, %v613_v29 }
 0x492   :  { %1599 = vmatmul.mubr.bf16.gmra.mrb[56].mxu0 %v1408_v7 }
 0x493   :  { %v8583_v43 = vpop.f32.mrb[12].mxu0  ;;  %1608 = vmatprep.mubr.bf16.mxu0 %v9452_v0 }
 0x494   :  { %v8586_v44 = vpop.f32.mrb[13].mxu0  ;;  %v8588_v46 = vpop.f32.mrb[28].mxu1 }
 0x495   :  { %v8590_v47 = vpop.f32.mrb[14].mxu0  ;;  %v8592_v49 = vpop.f32.mrb[29].mxu1 }
 0x496   :  { %v1385_v52 = vpack.c.bf16 %v8590_v47, %v8583_v43  ;;  %v8596_v53 = vpop.f32.mrb[15].mxu0  ;;  %v8598_v54 = vpop.f32.mrb[30].mxu1  ;;  %v617_v43 = vld [vmem:[#allocation9 + $0x30] sm:$0xff] }
 0x497   :  { %v1384_v57 = vpack.c.bf16 %v8596_v53, %v8586_v44  ;;  %v8602_v58 = vpop.f32.mrb[31].mxu1  ;;  %v618_v44 = vld [vmem:[#allocation9 + $0x38] sm:$0xff] }
 0x498   :  { %v8723_v47 = vpack.c.bf16 %v618_v44, %v617_v43 }
 0x49a   :  { %1609 = vmatmul.mubr.bf16.gmra.mrb[60].mxu0 %v1409_v2 }
 0x49b   :  { %v5960_v59 = vpop.f32.mrb[16].mxu0  ;;  %1731 = vmatprep.mubr.bf16.mxu0 %v9452_v0 }
 0x49c   :  { %v8605_v60 = vsub.f32 %v5960_v59, %v5978_v51  ;;  %v1154_v63 = vpop.f32.mrb[17].mxu0  ;;  %v6526_v59 = vld [vmem:[#allocation21 + $0x24] ss:$8 sps:$4 sm:$0xff]  }
 0x49d   :  { %v8607_v1 = vsub.f32 %v1154_v63, %v1251_v15  ;;  %v5961_v4 = vpop.f32.mrb[18].mxu0 }
 0x49e   :  { %v8609_v6 = vsub.f32 %v5961_v4, %v5979_v3  ;;  %v1157_v7 = vpop.f32.mrb[19].mxu0  ;;  %v1332_v15 = vmul.f32 %v8605_v60, %v8605_v60 }
 0x49f   :  { %v8611_v9 = vsub.f32 %v1157_v7, %v1254_v18  ;;  %v1330_v11 = vmul.f32 %v8607_v1, %v8607_v1 }
 0x4a1   :  { %1346 = vadd.xlane.f32.xlu0 %v1330_v11  ;;  %v1331_v2 = vmul.f32 %v8611_v9, %v8611_v9 }
 0x4a2   :  { %1732 = vmatmul.mubr.bf16.vlgmr.msra.gmra.mrb[32].mxu0 %v1378_v17 }
 0x4a3   :  { %1348 = vadd.xlane.f32.xlu1 %v1331_v2  ;;  %v5964_v51 = vpop.f32.mrb[20].mxu0  ;;  %1909 = vmatpush1.bf16.msra.mxu0 %v6518_v12  ;;  %v1333_v12 = vmul.f32 %v8609_v6, %v8609_v6  ;;  %v6524_v2 = vld [vmem:[#allocation21 + $0x20] ss:$8 sps:$4 sm:$0xff]  }
 0x4a4   :  { %v8619_v3 = vsub.f32 %v5964_v51, %v5982_v20  ;;  %v1170_v18 = vpop.f32.mrb[21].mxu0  ;;  %1741 = vmatprep.mubr.bf16.mxu0 %v9452_v0  ;;  %1910 = vmatprep.subr.bf16.mxu0 %v6523_v50  ;;  %v6529_v50 = vld [vmem:[#allocation21 + $0x34] ss:$8 sps:$4 sm:$0xff]   ;;  %v6527_v51 = vld [vmem:[#allocation21 + $0x30] ss:$8 sps:$4 sm:$0xff]  }
 0x4a5   :  { %v8622_v63 = vsub.f32 %v1170_v18, %v1267_v22  ;;  %1350 = vadd.xlane.f32.xlu0 %v1332_v15  ;;  %v5965_v4 = vpop.f32.mrb[22].mxu0  ;;  %v6532_v18 = vld [vmem:[#allocation21 + $0x44] ss:$8 sps:$4 sm:$0xff]  }
 0x4a6   :  { %v8624_v7 = vsub.f32 %v5965_v4, %v5983_v26  ;;  %v1173_v17 = vpop.f32.mrb[23].mxu0  ;;  %v1336_v26 = vmul.f32 %v8619_v3, %v8619_v3 }
 0x4a7   :  { %v8626_v11 = vsub.f32 %v1173_v17, %v1270_v19  ;;  %v1334_v20 = vmul.f32 %v8622_v63, %v8622_v63  ;;  %1911 = vmatpush1.bf16.msra.mxu0 %v6521_v61 }
 0x4a8   :  { %1912 = vmatprep.subr.bf16.mxu0 %v6526_v59 }
 0x4a9   :  { %1352 = vadd.xlane.f32.xlu0 %v1333_v12  ;;  %1354 = vadd.xlane.f32.xlu1 %v1334_v20  ;;  %v1335_v19 = vmul.f32 %v8626_v11, %v8626_v11  ;;  %v6530_v12 = vld [vmem:[#allocation21 + $0x40] ss:$8 sps:$4 sm:$0xff]  }
 0x4aa   :  { %1742 = vmatmul.mubr.bf16.gmra.mrb[36].mxu0 %v1379_v16 }
 0x4ab   :  { %v5968_v22 = vpop.f32.mrb[24].mxu0  ;;  %1751 = vmatprep.mubr.bf16.mxu0 %v9452_v0  ;;  %1913 = vmatpush1.bf16.msra.mxu0 %v6524_v2  ;;  %v6533_v2 = vld [vmem:[#allocation21 + $0x50] ss:$8 sps:$4 sm:$0xff]  }
 0x4ac   :  { %v8641_v15 = vsub.f32 %v5968_v22, %v8567_v32  ;;  %v1186_v61 = vpop.f32.mrb[25].mxu0  ;;  %1914 = vmatprep.subr.bf16.mxu0 %v6529_v50  ;;  %v1337_v32 = vmul.f32 %v8624_v7, %v8624_v7 }
 0x4ad   :  { %v8644_v10 = vsub.f32 %v1186_v61, %v8571_v34  ;;  %1358 = vadd.xlane.f32.xlu1 %v1336_v26  ;;  %1356 = vadd.xlane.f32.xlu0 %v1335_v19  ;;  %v5969_v56 = vpop.f32.mrb[26].mxu0  ;;  %v6535_v34 = vld [vmem:[#allocation21 + $0x54] ss:$8 sps:$4 sm:$0xff]   ;;  %v6538_v26 = vld [vmem:[#allocation21 + $0x64] ss:$8 sps:$4 sm:$0xff]  }
 0x4ae   :  { %9507 = vst [vmem:[#allocation103_spill] sm:$0xff] %v8641_v15  ;;  %v8647_v16 = vsub.f32 %v5969_v56, %v8577_v38  ;;  %v1189_v59 = vpop.f32.mrb[27].mxu0  ;;  %v6539_v56 = vld [vmem:[#allocation21 + $0x70] ss:$8 sps:$4 sm:$0xff]  }
 0x4af   :  { %9508 = vst [vmem:[#allocation104_spill] sm:$0xff] %v8644_v10  ;;  %v8650_v4 = vsub.f32 %v1189_v59, %v8581_v42  ;;  %v1338_v17 = vmul.f32 %v8644_v10, %v8644_v10  ;;  %1915 = vmatpush1.bf16.msra.mxu0 %v6527_v51  ;;  %v1340_v42 = vmul.f32 %v8641_v15, %v8641_v15 }
 0x4b0   :  { %9509 = vst [vmem:[#allocation105_spill] sm:$0xff] %v8647_v16  ;;  %1916 = vmatprep.subr.bf16.mxu0 %v6532_v18  ;;  %v6536_v18 = vld [vmem:[#allocation21 + $0x60] ss:$8 sps:$4 sm:$0xff]  }
 0x4b1   :  { %9510 = vst [vmem:[#allocation106_spill] sm:$0xff] %v8650_v4  ;;  %1360 = vadd.xlane.f32.xlu0 %v1337_v32  ;;  %1362 = vadd.xlane.f32.xlu1 %v1338_v17  ;;  %v1339_v20 = vmul.f32 %v8650_v4, %v8650_v4  ;;  %v626_v32 = vld [vmem:[#allocation9 + $0x78] sm:$0xff] }
 0x4b2   :  { %1752 = vmatmul.mubr.bf16.gmra.mrb[40].mxu0 %v1380_v27 }
 0x4b3   :  { %v5972_v38 = vpop.f32.mrb[28].mxu0  ;;  %1761 = vmatprep.mubr.bf16.mxu0 %v9452_v0  ;;  %1917 = vmatpush1.bf16.msra.mxu0 %v6530_v12  ;;  %v6543_v12 = vld [vmem:[#allocation25] sm:$0xff]  }
 0x4b4   :  { %v8665_v50 = vsub.f32 %v5972_v38, %v8588_v46  ;;  %v1202_v22 = vpop.f32.mrb[29].mxu0  ;;  %1918 = vmatprep.subr.bf16.mxu0 %v6535_v34  ;;  %v1341_v46 = vmul.f32 %v8647_v16, %v8647_v16  ;;  %v6544_v34 = vld [vmem:[#allocation25 + $0x48] sm:$0xff]  }
 0x4b5   :  { %v8668_v14 = vsub.f32 %v1202_v22, %v8592_v49  ;;  %1366 = vadd.xlane.f32.xlu1 %v1340_v42  ;;  %1364 = vadd.xlane.f32.xlu0 %v1339_v20  ;;  %v5973_v25 = vpop.f32.mrb[30].mxu0  ;;  %v6541_v49 = vld [vmem:[#allocation21 + $0x74] ss:$8 sps:$4 sm:$0xff]   ;;  %v6545_v38 = vld [vmem:[#allocation25 + $0x8] sm:$0xff]  }
 0x4b6   :  { %9511 = vst [vmem:[#allocation107_spill] sm:$0xff] %v8665_v50  ;;  %v8671_v27 = vsub.f32 %v5973_v25, %v8598_v54  ;;  %v1205_v19 = vpop.f32.mrb[31].mxu0  ;;  %v1344_v54 = vmul.f32 %v8665_v50, %v8665_v50  ;;  %v6546_v42 = vld [vmem:[#allocation25 + $0x50] sm:$0xff]   ;;  %v6549_v22 = vld [vmem:[#allocation25 + $0x18] sm:$0xff]   ;;  %v6551_v25 = vld [vmem:[#allocation25 + $0x20] sm:$0xff]  }
 0x4b7   :  { %9512 = vst [vmem:[#allocation108_spill] sm:$0xff] %v8668_v14  ;;  %v8674_v51 = vsub.f32 %v1205_v19, %v8602_v58  ;;  %v1342_v61 = vmul.f32 %v8668_v14, %v8668_v14  ;;  %1919 = vmatpush1.bf16.msra.mxu0 %v6533_v2  ;;  %v6547_v20 = vld [vmem:[#allocation25 + $0x10] sm:$0xff]   ;;  %v6548_v2 = vld [vmem:[#allocation25 + $0x58] sm:$0xff]   ;;  %v6552_v19 = vld [vmem:[#allocation25 + $0x68] sm:$0xff]  }
 0x4b8   :  { %9513 = vst [vmem:[#allocation109_spill] sm:$0xff] %v8671_v27  ;;  %1920 = vmatprep.subr.bf16.mxu0 %v6538_v26  ;;  %v1345_v59 = vmul.f32 %v8671_v27, %v8671_v27  ;;  %v6550_v26 = vld [vmem:[#allocation25 + $0x60] sm:$0xff]  }
 0x4b9   :  { %9514 = vst [vmem:[#allocation110_spill] sm:$0xff] %v8674_v51  ;;  %1368 = vadd.xlane.f32.xlu0 %v1341_v46  ;;  %1370 = vadd.xlane.f32.xlu1 %v1342_v61  ;;  %v1343_v58 = vmul.f32 %v8674_v51, %v8674_v51  ;;  %v6553_v46 = vld [vmem:[#allocation25 + $0x28] sm:$0xff]   ;;  %v6554_v61 = vld [vmem:[#allocation25 + $0x70] sm:$0xff]  }
 0x4ba   :  { %1762 = vmatmul.mubr.bf16.gmra.mrb[44].mxu0 %v1381_v23  ;;  %v8707_v23 = vpack.c.bf16 %v612_v21, %v611_v8 }
 0x4bb   :  { %1771 = vmatprep.mubr.bf16.mxu0 %v9452_v0  ;;  %1921 = vmatpush1.bf16.msra.mxu0 %v6536_v18  ;;  %v6555_v18 = vld [vmem:[#allocation25 + $0x30] sm:$0xff]  }
 0x4bc   :  { %1922 = vmatprep.subr.bf16.mxu0 %v6541_v49  ;;  %v6556_v49 = vld [vmem:[#allocation25 + $0x78] sm:$0xff]  }
 0x4bd   :  { %1374 = vadd.xlane.f32.xlu1 %v1344_v54  ;;  %1372 = vadd.xlane.f32.xlu0 %v1343_v58  ;;  %v6557_v54 = vld [vmem:[#allocation25 + $0x38] sm:$0xff]   ;;  %v2056_v58 = vshrl.u32 %v667_v39, 7 }
 0x4bf   :  { %1923 = vmatpush1.bf16.msra.mxu0 %v6539_v56  ;;  %v8747_v56 = vsub.s32 0, %v2056_v58  ;;  %v8749_v8 = vsub.s32 1, %v2056_v58 }
 0x4c0   :  { %6120 = vmatprep.subr.bf16.mxu0 %v9453_v45 }
 0x4c1   :  { %1376 = vadd.xlane.f32.xlu0 %v1345_v59  ;;  %9515 = vst [vmem:[#allocation111_spill] sm:$0xff] %v8747_v56  ;;  %v2053_v59 = vld [vmem:[#allocation22] sm:$0x3]  ;;  %9516 = vst [vmem:[#allocation112_spill] sm:$0xff] %v8749_v8 }
 0x4c2   :  { %1772 = vmatmul.mubr.bf16.gmra.mrb[48].mxu0 %v1382_v41  ;;  %v8752_v29 = vrot.slane %v2053_v59, %v8747_v56  ;;  %v8755_v31 = vrot.slane %v2053_v59, %v8749_v8 }
 0x4c3   :  { %1781 = vmatprep.mubr.bf16.mxu0 %v9452_v0 }
 0x4ca   :  { %1782 = vmatmul.mubr.bf16.gmra.mrb[52].mxu0 %v1383_v35  ;;  %v615_v35 = vld [vmem:[#allocation9 + $0x20] sm:$0xff] }
 0x4cb   :  { %1791 = vmatprep.mubr.bf16.mxu0 %v9452_v0  ;;  %v8717_v41 = vpack.c.bf16 %v616_v37, %v615_v35  ;;  %v2129_v35 = vld [vmem:[#allocation24] sm:$0x3] }
 0x4cc   :  { %v8759_v44 = vrot.slane %v2129_v35, %v8747_v56 }
 0x4d2   :  { %1792 = vmatmul.mubr.bf16.gmra.mrb[56].mxu0 %v1384_v57 }
 0x4d3   :  { %1801 = vmatprep.mubr.bf16.mxu0 %v9452_v0 }
 0x4da   :  { %1802 = vmatmul.mubr.bf16.gmra.mrb[60].mxu0 %v1385_v52 }
 0x4db   :  { %1940 = vmatprep.mubr.bf16.mxu0 %v9452_v0 }
 0x4e2   :  { %1941 = vmatmul.mubr.bf16.vlgmr.msra.gmra.mrb[32].mxu0 %v8707_v23 }
 0x4e3   :  { %1950 = vmatprep.mubr.bf16.mxu0 %v9452_v0 }
 0x4ea   :  { %1951 = vmatmul.mubr.bf16.gmra.mrb[36].mxu0 %v8711_v33  ;;  %3792 = vxpose.xlu1.c.b16.start [1/8] (narrow) %v8439_v24, 16  ;;  %v619_v24 = vld [vmem:[#allocation9 + $0x40] sm:$0xff] }
 0x4eb   :  { %1960 = vmatprep.mubr.bf16.mxu0 %v9452_v0 }
 0x4ee   :  { %3793 = vxpose.xlu1.c.b16.cont [2/8] (narrow) %v8449_v30, 16  ;;  %v620_v30 = vld [vmem:[#allocation9 + $0x48] sm:$0xff] }
 0x4ef   :  { %v8729_v52 = vpack.c.bf16 %v620_v30, %v619_v24 }
 0x4f2   :  { %1961 = vmatmul.mubr.bf16.gmra.mrb[40].mxu0 %v8717_v41  ;;  %3794 = vxpose.xlu1.c.b16.cont [3/8] (narrow) %v8460_v36, 16  ;;  %v621_v36 = vld [vmem:[#allocation9 + $0x50] sm:$0xff] }
 0x4f3   :  { %1970 = vmatprep.mubr.bf16.mxu0 %v9452_v0 }
 0x4f6   :  { %3795 = vxpose.xlu1.c.b16.cont [4/8] (narrow) %v8470_v28, 16  ;;  %v622_v28 = vld [vmem:[#allocation9 + $0x58] sm:$0xff] }
 0x4f7   :  { %v8735_v53 = vpack.c.bf16 %v622_v28, %v621_v36  ;;  %v8763_v36 = vrot.slane %v2129_v35, %v8749_v8 }
 0x4fa   :  { %1971 = vmatmul.mubr.bf16.gmra.mrb[44].mxu0 %v8723_v47  ;;  %3796 = vxpose.xlu1.c.b16.cont [5/8] (narrow) %v8480_v48, 16  ;;  %v623_v48 = vld [vmem:[#allocation9 + $0x60] sm:$0xff] }
 0x4fb   :  { %1980 = vmatprep.mubr.bf16.mxu0 %v9452_v0 }
 0x4fe   :  { %3797 = vxpose.xlu1.c.b16.cont [6/8] (narrow) %v8490_v55, 16  ;;  %v624_v55 = vld [vmem:[#allocation9 + $0x68] sm:$0xff] }
 0x4ff   :  { %v8739_v57 = vpack.c.bf16 %v624_v55, %v623_v48 }
 0x502   :  { %1981 = vmatmul.mubr.bf16.gmra.mrb[48].mxu0 %v8729_v52  ;;  %3798 = vxpose.xlu1.c.b16.cont [7/8] (narrow) %v8500_v62, 16  ;;  %v625_v62 = vld [vmem:[#allocation9 + $0x70] sm:$0xff] }
 0x503   :  { %1990 = vmatprep.mubr.bf16.mxu0 %v9452_v0  ;;  %v8743_v17 = vpack.c.bf16 %v626_v32, %v625_v62 }
 0x506   :  { %3799 = vxpose.xlu1.c.b16.end [8/8] (narrow) %v8510_v5, 16  ;;  %v6542_v5 = vld [vmem:[#allocation25 + $0x40] sm:$0xff]  }
 0x507   :  { %5711 = vmatprep.subr.bf16.mxu1 %v6542_v5 }
 0x508   :  { %5712 = vmatpush3.bf16.msra.mxu1 %v6543_v12 }
 0x509   :  { %5713 = vmatprep.subr.bf16.mxu1 %v6544_v34 }
 0x50a   :  { %1991 = vmatmul.mubr.bf16.gmra.mrb[52].mxu0 %v8735_v53 }
 0x50b   :  { %2000 = vmatprep.mubr.bf16.mxu0 %v9452_v0 }
 0x50c   :  { %5714 = vmatpush3.bf16.msra.mxu1 %v6545_v38 }
 0x50d   :  { %5715 = vmatprep.subr.bf16.mxu1 %v6546_v42 }
 0x510   :  { %5716 = vmatpush3.bf16.msra.mxu1 %v6547_v20 }
 0x511   :  { %5717 = vmatprep.subr.bf16.mxu1 %v6548_v2 }
 0x512   :  { %2001 = vmatmul.mubr.bf16.gmra.mrb[56].mxu0 %v8739_v57 }
 0x513   :  { %2010 = vmatprep.mubr.bf16.mxu0 %v9452_v0 }
 0x514   :  { %5718 = vmatpush3.bf16.msra.mxu1 %v6549_v22 }
 0x515   :  { %5719 = vmatprep.subr.bf16.mxu1 %v6550_v26 }
 0x518   :  { %5720 = vmatpush3.bf16.msra.mxu1 %v6551_v25 }
 0x519   :  { %5721 = vmatprep.subr.bf16.mxu1 %v6552_v19 }
 0x51a   :  { %2011 = vmatmul.mubr.bf16.gmra.mrb[60].mxu0 %v8743_v17 }
 0x51c   :  { %5722 = vmatpush3.bf16.msra.mxu1 %v6553_v46 }
 0x51d   :  { %5723 = vmatprep.subr.bf16.mxu1 %v6554_v61 }
 0x520   :  { %5724 = vmatpush3.bf16.msra.mxu1 %v6555_v18 }
 0x521   :  { %5725 = vmatprep.subr.bf16.mxu1 %v6556_v49 }
 0x524   :  { %5726 = vmatpush3.bf16.msra.mxu1 %v6557_v54 }
 0x52e   :  { %v1347_v21 = vpop.xlane.xlu0 %1346 }
 0x52f   :  { %v2065_v43 = vmul.f32 %v8752_v29, %v1347_v21  ;;  %v2066_v39 = vmul.f32 %v8755_v31, %v1347_v21 }
 0x530   :  { %v1349_v37 = vpop.xlane.xlu1 %1348 }
 0x531   :  { %v2067_v28 = vmul.f32 %v8752_v29, %v1349_v37  ;;  %v2068_v62 = vmul.f32 %v8755_v31, %v1349_v37 }
 0x532   :  { %v1351_v24 = vpop.xlane.xlu0 %1350 }
 0x533   :  { %v2069_v46 = vmul.f32 %v8752_v29, %v1351_v24  ;;  %v2070_v18 = vmul.f32 %v8755_v31, %v1351_v24 }
 0x536   :  { %v1353_v26 = vpop.xlane.xlu0 %1352  ;;  %v1355_v37 = vpop.xlane.xlu1 %1354 }
 0x537   :  { %v2071_v58 = vmul.f32 %v8752_v29, %v1353_v26  ;;  %v2072_v35 = vmul.f32 %v8755_v31, %v1353_v26  ;;  %v2074_v26 = vmul.f32 %v8755_v31, %v1355_v37 }
 0x5b5   :  { %v1942_v30 = vpop.f32.mrb[32].mxu0 }
 0x5b6   :  { %v2097_v48 = vadd.f32 %v2065_v43, %v1942_v30  ;;  %v1944_v55 = vpop.f32.mrb[33].mxu0 }
 0x5b7   :  { %v2098_v32 = vadd.f32 %v2066_v39, %v1944_v55  ;;  %v1946_v5 = vpop.f32.mrb[34].mxu0 }
 0x5b8   :  { %v8768_v12 = vadd.f32 %v8759_v44, %v2097_v48  ;;  %v2099_v34 = vadd.f32 %v2067_v28, %v1946_v5  ;;  %v1948_v38 = vpop.f32.mrb[35].mxu0  ;;  %v1357_v5 = vpop.xlane.xlu0 %1356 }
 0x5b9   :  { %v8771_v42 = vadd.f32 %v8763_v36, %v2098_v32  ;;  %v2100_v20 = vadd.f32 %v2068_v62, %v1948_v38 }
 0x5ba   :  { %v5464_v2 = vmul.f32 -1.442695, %v8768_v12  ;;  %v8775_v22 = vadd.f32 %v8759_v44, %v2099_v34 }
 0x5bb   :  { %v5465_v25 = vmul.f32 -1.442695, %v8771_v42  ;;  %v8779_v19 = vadd.f32 %v8763_v36, %v2100_v20  ;;  %v2073_v20 = vmul.f32 %v8752_v29, %v1355_v37 }
 0x5bc   :  { %6654 = vpow2.f32 %v5464_v2  ;;  %v5466_v61 = vmul.f32 -1.442695, %v8775_v22 }
 0x5bd   :  { %6656 = vpow2.f32 %v5465_v25  ;;  %v5467_v49 = vmul.f32 -1.442695, %v8779_v19  ;;  %v1952_v54 = vpop.f32.mrb[36].mxu0  ;;  %v1359_v25 = vpop.xlane.xlu1 %1358 }
 0x5be   :  { %6658 = vpow2.f32 %v5466_v61  ;;  %v2101_v59 = vadd.f32 %v2069_v46, %v1952_v54  ;;  %v1954_v21 = vpop.f32.mrb[37].mxu0 }
 0x5bf   :  { %6660 = vpow2.f32 %v5467_v49  ;;  %v2102_v43 = vadd.f32 %v2070_v18, %v1954_v21  ;;  %v1956_v39 = vpop.f32.mrb[38].mxu0  ;;  %v2075_v49 = vmul.f32 %v8752_v29, %v1357_v5  ;;  %v2076_v21 = vmul.f32 %v8755_v31, %v1357_v5 }
 0x5c0   :  { %v8788_v30 = vadd.f32 %v8759_v44, %v2101_v59  ;;  %v2103_v28 = vadd.f32 %v2071_v58, %v1956_v39  ;;  %v1958_v24 = vpop.f32.mrb[39].mxu0 }
 0x5c1   :  { %v8791_v48 = vadd.f32 %v8763_v36, %v2102_v43  ;;  %v2104_v55 = vadd.f32 %v2072_v35, %v1958_v24 }
 0x5c2   :  { %v5468_v62 = vmul.f32 -1.442695, %v8788_v30  ;;  %v8795_v32 = vadd.f32 %v8759_v44, %v2103_v28 }
 0x5c3   :  { %v5469_v34 = vmul.f32 -1.442695, %v8791_v48  ;;  %v8799_v38 = vadd.f32 %v8763_v36, %v2104_v55 }
 0x5c4   :  { %6662 = vpow2.f32 %v5468_v62  ;;  %v5470_v2 = vmul.f32 -1.442695, %v8795_v32 }
 0x5c5   :  { %6664 = vpow2.f32 %v5469_v34  ;;  %v5471_v46 = vmul.f32 -1.442695, %v8799_v38  ;;  %v1962_v61 = vpop.f32.mrb[40].mxu0 }
 0x5c6   :  { %v6655_v18 = vpop.eup %6654  ;;  %6666 = vpow2.f32 %v5470_v2  ;;  %v2105_v54 = vadd.f32 %v2073_v20, %v1962_v61  ;;  %v1964_v58 = vpop.f32.mrb[41].mxu0 }
 0x5c7   :  { %v6657_v59 = vpop.eup %6656  ;;  %v2269_v35 = vadd.f32 1.0, %v6655_v18  ;;  %6668 = vpow2.f32 %v5471_v46  ;;  %v2106_v43 = vadd.f32 %v2074_v26, %v1964_v58  ;;  %v1966_v39 = vpop.f32.mrb[42].mxu0  ;;  %v2077_v58 = vmul.f32 %v8752_v29, %v1359_v25 }
 0x5c8   :  { %v6659_v28 = vpop.eup %6658  ;;  %v2270_v37 = vadd.f32 1.0, %v6657_v59  ;;  %v8808_v24 = vadd.f32 %v8759_v44, %v2105_v54  ;;  %v2107_v55 = vadd.f32 %v2075_v49, %v1966_v39  ;;  %v1968_v62 = vpop.f32.mrb[43].mxu0 }
 0x5c9   :  { %v6661_v34 = vpop.eup %6660  ;;  %6670 = vrcp.f32 %v2269_v35  ;;  %v2271_v0 = vadd.f32 1.0, %v6659_v28  ;;  %v8811_v20 = vadd.f32 %v8763_v36, %v2106_v43  ;;  %v2108_v2 = vadd.f32 %v2076_v21, %v1968_v62  ;;  %v1361_v61 = vpop.xlane.xlu0 %1360 }
 0x5ca   :  { %6672 = vrcp.f32 %v2270_v37  ;;  %v2272_v5 = vadd.f32 1.0, %v6661_v34  ;;  %v5472_v46 = vmul.f32 -1.442695, %v8808_v24  ;;  %v8815_v26 = vadd.f32 %v8759_v44, %v2107_v55  ;;  %v1363_v18 = vpop.xlane.xlu1 %1362 }
 0x5cb   :  { %6674 = vrcp.f32 %v2271_v0  ;;  %v5473_v49 = vmul.f32 -1.442695, %v8811_v20  ;;  %v8819_v54 = vadd.f32 %v8763_v36, %v2108_v2  ;;  %v2078_v21 = vmul.f32 %v8755_v31, %v1359_v25 }
 0x5cc   :  { %6676 = vrcp.f32 %v2272_v5  ;;  %v5474_v59 = vmul.f32 -1.442695, %v8815_v26  ;;  %v2079_v28 = vmul.f32 %v8752_v29, %v1361_v61  ;;  %v2080_v0 = vmul.f32 %v8755_v31, %v1361_v61 }
 0x5cd   :  { %6678 = vpow2.f32 %v5472_v46  ;;  %v5475_v35 = vmul.f32 -1.442695, %v8819_v54  ;;  %v1972_v43 = vpop.f32.mrb[44].mxu0  ;;  %v2081_v34 = vmul.f32 %v8752_v29, %v1363_v18 }
 0x5ce   :  { %v6663_v39 = vpop.eup %6662  ;;  %6680 = vpow2.f32 %v5473_v49  ;;  %v2109_v37 = vadd.f32 %v2077_v58, %v1972_v43  ;;  %v1974_v55 = vpop.f32.mrb[45].mxu0 }
 0x5cf   :  { %v6665_v62 = vpop.eup %6664  ;;  %v2273_v2 = vadd.f32 1.0, %v6663_v39  ;;  %6682 = vpow2.f32 %v5474_v59  ;;  %v2110_v5 = vadd.f32 %v2078_v21, %v1974_v55  ;;  %v1976_v45 = vpop.f32.mrb[46].mxu0 }
 0x5d0   :  { %v6667_v25 = vpop.eup %6666  ;;  %v2274_v46 = vadd.f32 1.0, %v6665_v62  ;;  %6684 = vpow2.f32 %v5475_v35  ;;  %v8829_v8 = vadd.f32 %v8759_v44, %v2109_v37  ;;  %v2111_v56 = vadd.f32 %v2079_v28, %v1976_v45  ;;  %v1978_v13 = vpop.f32.mrb[47].mxu0 }
 0x5d1   :  { %v6669_v27 = vpop.eup %6668  ;;  %v1367_v61 = vpop.xlane.xlu1 %1366  ;;  %6686 = vrcp.f32 %v2273_v2  ;;  %v2275_v49 = vadd.f32 1.0, %v6667_v25  ;;  %v8832_v58 = vadd.f32 %v8763_v36, %v2110_v5  ;;  %v2112_v43 = vadd.f32 %v2080_v0, %v1978_v13 }
 0x5d2   :  { %v1365_v39 = vpop.xlane.xlu0 %1364  ;;  %6688 = vrcp.f32 %v2274_v46  ;;  %v2276_v59 = vadd.f32 1.0, %v6669_v27  ;;  %v5476_v21 = vmul.f32 -1.442695, %v8829_v8  ;;  %v8836_v35 = vadd.f32 %v8759_v44, %v2111_v56 }
 0x5d3   :  { %v6671_v37 = vpop.eup %6670  ;;  %v2082_v45 = vmul.f32 %v8755_v31, %v1363_v18  ;;  %6690 = vrcp.f32 %v2275_v49  ;;  %v5477_v28 = vmul.f32 -1.442695, %v8832_v58  ;;  %v8841_v55 = vadd.f32 %v8763_v36, %v2112_v43 }
 0x5d4   :  { %v6673_v62 = vpop.eup %6672  ;;  %v2085_v13 = vmul.f32 %v8752_v29, %v1367_v61  ;;  %v8845_v0 = vmul.f32 %v8755_v31, %v1367_v61  ;;  %6692 = vrcp.f32 %v2276_v59  ;;  %v5478_v27 = vmul.f32 -1.442695, %v8836_v35 }
 0x5d5   :  { %v6675_v56 = vpop.eup %6674  ;;  %v2083_v2 = vmul.f32 %v8752_v29, %v1365_v39  ;;  %v2084_v18 = vmul.f32 %v8755_v31, %v1365_v39  ;;  %6694 = vpow2.f32 %v5476_v21  ;;  %v5479_v5 = vmul.f32 -1.442695, %v8841_v55  ;;  %v1982_v25 = vpop.f32.mrb[48].mxu0 }
 0x5d6   :  { %v6677_v46 = vpop.eup %6676  ;;  %v2365_v49 = vmul.f32 %v6671_v37, %v8768_v12  ;;  %v2367_v43 = vmul.f32 %v6675_v56, %v8775_v22  ;;  %6696 = vpow2.f32 %v5477_v28  ;;  %v2113_v61 = vadd.f32 %v2081_v34, %v1982_v25  ;;  %v1984_v50 = vpop.f32.mrb[49].mxu0 }
 0x5d7   :  { %v6679_v59 = vpop.eup %6678  ;;  %v2366_v51 = vmul.f32 %v6673_v62, %v8771_v42  ;;  %v2368_v14 = vmul.f32 %v6677_v46, %v8779_v19  ;;  %6698 = vpow2.f32 %v5478_v27  ;;  %v2114_v15 = vadd.f32 %v2082_v45, %v1984_v50  ;;  %v1986_v39 = vpop.f32.mrb[50].mxu0 }
 0x5d8   :  { %v6681_v21 = vpop.eup %6680  ;;  %v2397_v16 = vpack.c.bf16 %v2367_v43, %v2365_v49  ;;  %v2277_v4 = vadd.f32 1.0, %v6679_v59  ;;  %6700 = vpow2.f32 %v5479_v5  ;;  %v8856_v10 = vadd.f32 %v8759_v44, %v2113_v61  ;;  %v1988_v12 = vpop.f32.mrb[51].mxu0 }
 0x5d9   :  { %v6683_v22 = vpop.eup %6682  ;;  %v1369_v37 = vpop.xlane.xlu0 %1368  ;;  %v2278_v34 = vadd.f32 1.0, %v6681_v21  ;;  %v8859_v28 = vadd.f32 %v8763_v36, %v2114_v15  ;;  %v2115_v42 = vadd.f32 %v2083_v2, %v1986_v39  ;;  %v2116_v62 = vadd.f32 %v2084_v18, %v1988_v12 }
 0x5da   :  { %v6685_v19 = vpop.eup %6684  ;;  %v8861_v27 = vpop.xlane.xlu1 %1370  ;;  %6702 = vrcp.f32 %v2277_v4  ;;  %v2279_v50 = vadd.f32 1.0, %v6683_v22  ;;  %v5480_v45 = vmul.f32 -1.442695, %v8856_v10  ;;  %v2398_v56 = vpack.c.bf16 %v2368_v14, %v2366_v51 }
 0x5db   :  { %v6687_v5 = vpop.eup %6686  ;;  %6704 = vrcp.f32 %v2278_v34  ;;  %v2280_v25 = vadd.f32 1.0, %v6685_v19  ;;  %v5481_v46 = vmul.f32 -1.442695, %v8859_v28  ;;  %v8866_v49 = vadd.f32 %v8759_v44, %v2115_v42 }
 0x5dc   :  { %v6689_v15 = vpop.eup %6688  ;;  %v2087_v2 = vmul.f32 %v8752_v29, %v1369_v37  ;;  %v2088_v18 = vmul.f32 %v8755_v31, %v1369_v37  ;;  %6706 = vrcp.f32 %v2279_v50  ;;  %v8871_v4 = vadd.f32 %v8763_v36, %v2116_v62  ;;  %2580 = vmatprep.mubr.bf16.mxu1 %v2398_v56 }
 0x5dd   :  { %v6691_v43 = vpop.eup %6690  ;;  %v2089_v14 = vmul.f32 %v8752_v29, %v8861_v27  ;;  %v2369_v51 = vmul.f32 %v6687_v5, %v8788_v30  ;;  %6708 = vrcp.f32 %v2280_v25  ;;  %v5482_v61 = vmul.f32 -1.442695, %v8866_v49  ;;  %2581 = vmatmul.mubr.bf16.vlgmr.msra.gmra.mrb[32].mxu1 %v2397_v16  ;;  %v1992_v59 = vpop.f32.mrb[52].mxu0 }
 0x5de   :  { %v6693_v39 = vpop.eup %6692  ;;  %v2370_v21 = vmul.f32 %v6689_v15, %v8791_v48  ;;  %6710 = vpow2.f32 %v5480_v45  ;;  %v5483_v12 = vmul.f32 -1.442695, %v8871_v4  ;;  %v2117_v22 = vadd.f32 %v2085_v13, %v1992_v59  ;;  %v1994_v37 = vpop.f32.mrb[53].mxu0 }
 0x5df   :  { %v6695_v34 = vpop.eup %6694  ;;  %v2371_v42 = vmul.f32 %v6691_v43, %v8795_v32  ;;  %v2372_v62 = vmul.f32 %v6693_v39, %v8799_v38  ;;  %6712 = vpow2.f32 %v5481_v46  ;;  %v2118_v30 = vadd.f32 %v8845_v0, %v1994_v37  ;;  %v1996_v19 = vpop.f32.mrb[54].mxu0 }
 0x5e0   :  { %v6697_v50 = vpop.eup %6696  ;;  %v2281_v16 = vadd.f32 1.0, %v6695_v34  ;;  %6714 = vpow2.f32 %v5482_v61  ;;  %v8883_v56 = vadd.f32 %v8759_v44, %v2117_v22  ;;  %v2119_v48 = vadd.f32 %v2087_v2, %v1996_v19  ;;  %v1998_v45 = vpop.f32.mrb[55].mxu0 }
 0x5e1   :  { %v6699_v5 = vpop.eup %6698  ;;  %v2282_v13 = vadd.f32 1.0, %v6697_v50  ;;  %6716 = vpow2.f32 %v5483_v12  ;;  %v8886_v25 = vadd.f32 %v8763_v36, %v2118_v30  ;;  %v2120_v32 = vadd.f32 %v2088_v18, %v1998_v45  ;;  %v8888_v46 = vpop.xlane.xlu1 %1374 }
 0x5e2   :  { %v6701_v38 = vpop.eup %6700  ;;  %6718 = vrcp.f32 %v2281_v16  ;;  %v2283_v0 = vadd.f32 1.0, %v6699_v5  ;;  %v5484_v15 = vmul.f32 -1.442695, %v8883_v56  ;;  %v8892_v43 = vadd.f32 %v8759_v44, %v2119_v48  ;;  %v1373_v61 = vpop.xlane.xlu0 %1372 }
 0x5e3   :  { %6720 = vrcp.f32 %v2282_v13  ;;  %v2284_v2 = vadd.f32 1.0, %v6701_v38  ;;  %v5485_v59 = vmul.f32 -1.442695, %v8886_v25  ;;  %v8896_v39 = vadd.f32 %v8763_v36, %v2120_v32 }
 0x5e4   :  { %v6703_v12 = vpop.eup %6702  ;;  %6722 = vrcp.f32 %v2283_v0  ;;  %v5486_v18 = vmul.f32 -1.442695, %v8892_v43  ;;  %v2400_v22 = vpack.c.bf16 %v2372_v62, %v2370_v21  ;;  %v2399_v37 = vpack.c.bf16 %v2371_v42, %v2369_v51 }
 0x5e5   :  { %v6705_v34 = vpop.eup %6704  ;;  %v2090_v30 = vmul.f32 %v8755_v31, %v8861_v27  ;;  %v2093_v19 = vmul.f32 %v8752_v29, %v8888_v46  ;;  %6724 = vrcp.f32 %v2284_v2  ;;  %v5487_v50 = vmul.f32 -1.442695, %v8896_v39  ;;  %v2002_v16 = vpop.f32.mrb[56].mxu0 }
 0x5e6   :  { %v6707_v48 = vpop.eup %6706  ;;  %v2091_v45 = vmul.f32 %v8752_v29, %v1373_v61  ;;  %v2092_v5 = vmul.f32 %v8755_v31, %v1373_v61  ;;  %6726 = vpow2.f32 %v5484_v15  ;;  %2588 = vmatprep.mubr.bf16.mxu1 %v2400_v22  ;;  %v2121_v21 = vadd.f32 %v2089_v14, %v2002_v16  ;;  %v2004_v51 = vpop.f32.mrb[57].mxu0 }
 0x5e7   :  { %v6709_v42 = vpop.eup %6708  ;;  %v2374_v62 = vmul.f32 %v6705_v34, %v8811_v20  ;;  %v2375_v27 = vmul.f32 %v6707_v48, %v8815_v26  ;;  %6728 = vpow2.f32 %v5485_v59  ;;  %2589 = vmatmul.mubr.bf16.gmra.mrb[36].mxu1 %v2399_v37  ;;  %v2122_v13 = vadd.f32 %v2090_v30, %v2004_v51  ;;  %v2006_v32 = vpop.f32.mrb[58].mxu0 }
 0x5e8   :  { %v6711_v38 = vpop.eup %6710  ;;  %v2376_v0 = vmul.f32 %v6709_v42, %v8819_v54  ;;  %6730 = vpow2.f32 %v5486_v18  ;;  %v8910_v2 = vadd.f32 %v8759_v44, %v2121_v21  ;;  %v2123_v15 = vadd.f32 %v2091_v45, %v2006_v32  ;;  %v2008_v61 = vpop.f32.mrb[59].mxu0 }
 0x5e9   :  { %v6713_v14 = vpop.eup %6712  ;;  %v2285_v22 = vadd.f32 1.0, %v6711_v38  ;;  %6732 = vpow2.f32 %v5487_v50  ;;  %v8913_v20 = vadd.f32 %v8763_v36, %v2122_v13  ;;  %v2124_v26 = vadd.f32 %v2092_v5, %v2008_v61  ;;  %v1377_v37 = vpop.xlane.xlu0 %1376 }
 0x5ea   :  { %v6715_v59 = vpop.eup %6714  ;;  %v2373_v34 = vmul.f32 %v6703_v12, %v8808_v24  ;;  %v2286_v30 = vadd.f32 1.0, %v6713_v14  ;;  %v8917_v54 = vadd.f32 %v8759_v44, %v2123_v15  ;;  %v2402_v18 = vpack.c.bf16 %v2376_v0, %v2374_v62 }
 0x5eb   :  { %v6717_v16 = vpop.eup %6716  ;;  %6734 = vrcp.f32 %v2285_v22  ;;  %v2287_v48 = vadd.f32 1.0, %v6715_v59  ;;  %v5488_v45 = vmul.f32 -1.442695, %v8910_v2  ;;  %v8921_v50 = vadd.f32 %v8763_v36, %v2124_v26 }
 0x5ec   :  { %v6719_v21 = vpop.eup %6718  ;;  %6736 = vrcp.f32 %v2286_v30  ;;  %v2288_v5 = vadd.f32 1.0, %v6717_v16  ;;  %v5489_v51 = vmul.f32 -1.442695, %v8913_v20  ;;  %2596 = vmatprep.mubr.bf16.mxu1 %v2402_v18  ;;  %v2401_v24 = vpack.c.bf16 %v2375_v27, %v2373_v34 }
 0x5ed   :  { %v6721_v12 = vpop.eup %6720  ;;  %v2094_v42 = vmul.f32 %v8755_v31, %v8888_v46  ;;  %v2095_v62 = vmul.f32 %v8752_v29, %v1377_v37  ;;  %6738 = vrcp.f32 %v2287_v48  ;;  %v5490_v13 = vmul.f32 -1.442695, %v8917_v54  ;;  %v2012_v32 = vpop.f32.mrb[60].mxu0 }
 0x5ee   :  { %v6723_v38 = vpop.eup %6722  ;;  %v2096_v0 = vmul.f32 %v8755_v31, %v1377_v37  ;;  %6740 = vrcp.f32 %v2288_v5  ;;  %v5491_v15 = vmul.f32 -1.442695, %v8921_v50  ;;  %v2125_v61 = vadd.f32 %v2093_v19, %v2012_v32  ;;  %v2014_v14 = vpop.f32.mrb[61].mxu0 }
 0x5ef   :  { %v6725_v22 = vpop.eup %6724  ;;  %v2377_v27 = vmul.f32 %v6719_v21, %v8829_v8  ;;  %v2379_v26 = vmul.f32 %v6723_v38, %v8836_v35  ;;  %6742 = vpow2.f32 %v5488_v45  ;;  %2597 = vmatmul.mubr.bf16.gmra.mrb[40].mxu1 %v2401_v24  ;;  %v2126_v29 = vadd.f32 %v2094_v42, %v2014_v14  ;;  %v2016_v46 = vpop.f32.mrb[62].mxu0 }
 0x5f0   :  { %v6727_v59 = vpop.eup %6726  ;;  %v2380_v34 = vmul.f32 %v6725_v22, %v8841_v55  ;;  %6744 = vpow2.f32 %v5489_v51  ;;  %v8934_v31 = vadd.f32 %v8759_v44, %v2125_v61  ;;  %v2127_v37 = vadd.f32 %v2095_v62, %v2016_v46  ;;  %v2018_v30 = vpop.f32.mrb[63].mxu0 }
 0x5f1   :  { %v6729_v19 = vpop.eup %6728  ;;  %v2289_v18 = vadd.f32 1.0, %v6727_v59  ;;  %6746 = vpow2.f32 %v5490_v13  ;;  %v8937_v8 = vadd.f32 %v8763_v36, %v2126_v29  ;;  %v2128_v35 = vadd.f32 %v2096_v0, %v2018_v30 }
 0x5f2   :  { %v6731_v16 = vpop.eup %6730  ;;  %v2378_v48 = vmul.f32 %v6721_v12, %v8832_v58  ;;  %v2290_v45 = vadd.f32 1.0, %v6729_v19  ;;  %6748 = vpow2.f32 %v5491_v15  ;;  %v8941_v55 = vadd.f32 %v8759_v44, %v2127_v37 }
 0x5f3   :  { %v6733_v21 = vpop.eup %6732  ;;  %6750 = vrcp.f32 %v2289_v18  ;;  %v2291_v5 = vadd.f32 1.0, %v6731_v16  ;;  %v5492_v51 = vmul.f32 -1.442695, %v8934_v31  ;;  %v8945_v24 = vadd.f32 %v8763_v36, %v2128_v35 }
 0x5f4   :  { %6752 = vrcp.f32 %v2290_v45  ;;  %v2292_v42 = vadd.f32 1.0, %v6733_v21  ;;  %v5493_v62 = vmul.f32 -1.442695, %v8937_v8  ;;  %v2404_v13 = vpack.c.bf16 %v2380_v34, %v2378_v48 }
 0x5f5   :  { %v6735_v32 = vpop.eup %6734  ;;  %6754 = vrcp.f32 %v2291_v5  ;;  %v5494_v58 = vmul.f32 -1.442695, %v8941_v55  ;;  %v2403_v12 = vpack.c.bf16 %v2379_v26, %v2377_v27  ;;  %v5495_v38 = vmul.f32 -1.442695, %v8945_v24 }
 0x5f6   :  { %v6737_v44 = vpop.eup %6736  ;;  %6756 = vrcp.f32 %v2292_v42  ;;  %2604 = vmatprep.mubr.bf16.mxu1 %v2404_v13  ;;  %v2381_v15 = vmul.f32 %v6735_v32, %v8856_v10 }
 0x5f7   :  { %v6739_v0 = vpop.eup %6738  ;;  %6758 = vpow2.f32 %v5492_v51  ;;  %2605 = vmatmul.mubr.bf16.gmra.mrb[44].mxu1 %v2403_v12  ;;  %v2382_v22 = vmul.f32 %v6737_v44, %v8859_v28 }
 0x5f8   :  { %v6741_v36 = vpop.eup %6740  ;;  %v2383_v61 = vmul.f32 %v6739_v0, %v8866_v49  ;;  %6760 = vpow2.f32 %v5493_v62 }
 0x5f9   :  { %v6743_v14 = vpop.eup %6742  ;;  %v2384_v29 = vmul.f32 %v6741_v36, %v8871_v4  ;;  %6762 = vpow2.f32 %v5494_v58 }
 0x5fa   :  { %v6745_v27 = vpop.eup %6744  ;;  %v2293_v26 = vadd.f32 1.0, %v6743_v14  ;;  %6764 = vpow2.f32 %v5495_v38  ;;  %v2405_v46 = vpack.c.bf16 %v2383_v61, %v2381_v15 }
 0x5fb   :  { %v6747_v59 = vpop.eup %6746  ;;  %v2294_v34 = vadd.f32 1.0, %v6745_v27  ;;  %v2406_v37 = vpack.c.bf16 %v2384_v29, %v2382_v22 }
 0x5fc   :  { %v6749_v30 = vpop.eup %6748  ;;  %6766 = vrcp.f32 %v2293_v26  ;;  %v2295_v19 = vadd.f32 1.0, %v6747_v59 }
 0x5fd   :  { %v6751_v10 = vpop.eup %6750  ;;  %6768 = vrcp.f32 %v2294_v34  ;;  %v2296_v49 = vadd.f32 1.0, %v6749_v30  ;;  %2612 = vmatprep.mubr.bf16.mxu1 %v2406_v37  ;;  %v6559_v37 = vld [vmem:[#allocation30 + $0x8] sm:$0xff]   ;;  %v6560_v30 = vld [vmem:[#allocation30 + $0x10] sm:$0xff]  }
 0x5fe   :  { %v6753_v18 = vpop.eup %6752  ;;  %6770 = vrcp.f32 %v2295_v19  ;;  %v2385_v35 = vmul.f32 %v6751_v10, %v8883_v56  ;;  %v6565_v19 = vld [vmem:[#allocation30 + $0x38] sm:$0xff]   ;;  %v8966_v10 = vld [vmem:[#allocation28] sm:$0xff]  }
 0x5ff   :  { %v6755_v28 = vpop.eup %6754  ;;  %6772 = vrcp.f32 %v2296_v49  ;;  %2613 = vmatmul.mubr.bf16.gmra.mrb[48].mxu1 %v2405_v46  ;;  %v2386_v45 = vmul.f32 %v6753_v18, %v8886_v25  ;;  %v8969_v18 = vld [vmem:[#allocation27] ss:$0 sm:$0xff] }
 0x600   :  { %v6757_v4 = vpop.eup %6756  ;;  %v2387_v16 = vmul.f32 %v6755_v28, %v8892_v43 }
 0x601   :  { %v6759_v48 = vpop.eup %6758  ;;  %v2388_v21 = vmul.f32 %v6757_v4, %v8896_v39 }
 0x602   :  { %v6761_v5 = vpop.eup %6760  ;;  %v2297_v51 = vadd.f32 1.0, %v6759_v48  ;;  %v2407_v42 = vpack.c.bf16 %v2387_v16, %v2385_v35 }
 0x603   :  { %v6763_v62 = vpop.eup %6762  ;;  %v2298_v13 = vadd.f32 1.0, %v6761_v5  ;;  %v2408_v32 = vpack.c.bf16 %v2388_v21, %v2386_v45 }
 0x604   :  { %v6765_v58 = vpop.eup %6764  ;;  %6774 = vrcp.f32 %v2297_v51  ;;  %v2299_v12 = vadd.f32 1.0, %v6763_v62 }
 0x605   :  { %6776 = vrcp.f32 %v2298_v13  ;;  %v2300_v44 = vadd.f32 1.0, %v6765_v58  ;;  %2620 = vmatprep.mubr.bf16.mxu1 %v2408_v32 }
 0x606   :  { %v6767_v56 = vpop.eup %6766  ;;  %6778 = vrcp.f32 %v2299_v12 }
 0x607   :  { %v6769_v43 = vpop.eup %6768  ;;  %6780 = vrcp.f32 %v2300_v44  ;;  %2621 = vmatmul.mubr.bf16.gmra.mrb[52].mxu1 %v2407_v42  ;;  %v2389_v39 = vmul.f32 %v6767_v56, %v8910_v2 }
 0x608   :  { %v6771_v25 = vpop.eup %6770  ;;  %v2390_v36 = vmul.f32 %v6769_v43, %v8913_v20 }
 0x609   :  { %v6773_v38 = vpop.eup %6772  ;;  %v2391_v0 = vmul.f32 %v6771_v25, %v8917_v54 }
 0x60a   :  { %v2392_v15 = vmul.f32 %v6773_v38, %v8921_v50  ;;  %v6558_v50 = vld [vmem:[#allocation30] sm:$0xff]  }
 0x60b   :  { %v2409_v61 = vpack.c.bf16 %v2391_v0, %v2389_v39  ;;  %5992 = vmatprep.subr.bf16.mxu1 %v6558_v50 }
 0x60c   :  { %v2410_v14 = vpack.c.bf16 %v2392_v15, %v2390_v36  ;;  %5993 = vmatpush3.bf16.msra.mxu1 %v6558_v50 }
 0x60d   :  { %5994 = vmatprep.subr.bf16.mxu1 %v6559_v37 }
 0x60e   :  { %v6775_v22 = vpop.eup %6774  ;;  %2628 = vmatprep.mubr.bf16.mxu1 %v2410_v14 }
 0x60f   :  { %v6777_v29 = vpop.eup %6776  ;;  %2629 = vmatmul.mubr.bf16.gmra.mrb[56].mxu1 %v2409_v61  ;;  %v2393_v46 = vmul.f32 %v6775_v22, %v8934_v31  ;;  %v6561_v31 = vld [vmem:[#allocation30 + $0x18] sm:$0xff]  }
 0x610   :  { %v6779_v27 = vpop.eup %6778  ;;  %v2394_v2 = vmul.f32 %v6777_v29, %v8937_v8  ;;  %5995 = vmatpush3.bf16.msra.mxu1 %v6559_v37  ;;  %v6563_v8 = vld [vmem:[#allocation30 + $0x28] sm:$0xff]  }
 0x611   :  { %v6781_v26 = vpop.eup %6780  ;;  %v2395_v59 = vmul.f32 %v6779_v27, %v8941_v55  ;;  %5996 = vmatprep.subr.bf16.mxu1 %v6560_v30  ;;  %v6562_v55 = vld [vmem:[#allocation30 + $0x20] sm:$0xff]  }
 0x612   :  { %v2396_v54 = vmul.f32 %v6781_v26, %v8945_v24  ;;  %v6564_v24 = vld [vmem:[#allocation30 + $0x30] sm:$0xff]  }
 0x613   :  { %v2411_v34 = vpack.c.bf16 %v2395_v59, %v2393_v46 }
 0x614   :  { %v2412_v20 = vpack.c.bf16 %v2396_v54, %v2394_v2  ;;  %5997 = vmatpush3.bf16.msra.mxu1 %v6560_v30 }
 0x615   :  { %5998 = vmatprep.subr.bf16.mxu1 %v6561_v31 }
 0x616   :  { %2636 = vmatprep.mubr.bf16.mxu1 %v2412_v20 }
 0x617   :  { %2637 = vmatmul.mubr.bf16.gmra.mrb[60].mxu1 %v2411_v34 }
 0x618   :  { %5999 = vmatpush3.bf16.msra.mxu1 %v6561_v31 }
 0x619   :  { %6000 = vmatprep.subr.bf16.mxu1 %v6562_v55 }
 0x61c   :  { %6001 = vmatpush3.bf16.msra.mxu1 %v6562_v55 }
 0x61d   :  { %6002 = vmatprep.subr.bf16.mxu1 %v6563_v8 }
 0x620   :  { %6003 = vmatpush3.bf16.msra.mxu1 %v6563_v8 }
 0x621   :  { %6004 = vmatprep.subr.bf16.mxu1 %v6564_v24 }
 0x624   :  { %6005 = vmatpush3.bf16.msra.mxu1 %v6564_v24 }
 0x625   :  { %6006 = vmatprep.subr.bf16.mxu1 %v6565_v19 }
 0x628   :  { %6007 = vmatpush3.bf16.msra.mxu1 %v6565_v19 }
 0x629   :  { %6024 = vmatprep.subr.bf16.mxu1 %v8966_v10 }
 0x6b0   :  { %v5727_v49 = vpop.f32.mrb[32].mxu1 }
 0x6b1   :  { %v5728_v28 = vpop.f32.mrb[33].mxu1 }
 0x6b2   :  { %v5729_v4 = vadd.f32 %v5728_v28, %v5727_v49  ;;  %v5730_v35 = vpop.f32.mrb[34].mxu1 }
 0x6b3   :  { %v5731_v16 = vpop.f32.mrb[35].mxu1 }
 0x6b4   :  { %v2583_v48 = vadd.f32 %v5729_v4, %v8969_v18  ;;  %v5732_v45 = vadd.f32 %v5731_v16, %v5730_v35 }
 0x6b6   :  { %v5513_v21 = vmul.f32 -1.442695, %v2583_v48  ;;  %v2586_v5 = vadd.f32 %v5732_v45, %v8969_v18 }
 0x6b8   :  { %6782 = vpow2.f32 %v5513_v21  ;;  %v5514_v51 = vmul.f32 -1.442695, %v2586_v5 }
 0x6ba   :  { %6784 = vpow2.f32 %v5514_v51  ;;  %v5733_v42 = vpop.f32.mrb[36].mxu1 }
 0x6bb   :  { %v5734_v62 = vpop.f32.mrb[37].mxu1 }
 0x6bc   :  { %v5735_v13 = vadd.f32 %v5734_v62, %v5733_v42  ;;  %v5736_v32 = vpop.f32.mrb[38].mxu1 }
 0x6bd   :  { %v5737_v58 = vpop.f32.mrb[39].mxu1 }
 0x6be   :  { %v8974_v12 = vadd.f32 %v5735_v13, %v8969_v18  ;;  %v5738_v44 = vadd.f32 %v5737_v58, %v5736_v32 }
 0x6c0   :  { %v5515_v56 = vmul.f32 -1.442695, %v8974_v12  ;;  %v8978_v43 = vadd.f32 %v5738_v44, %v8969_v18 }
 0x6c2   :  { %v6783_v25 = vpop.eup %6782  ;;  %6786 = vpow2.f32 %v5515_v56  ;;  %v5516_v38 = vmul.f32 -1.442695, %v8978_v43  ;;  %v5739_v39 = vpop.f32.mrb[40].mxu1 }
 0x6c3   :  { %v2693_v0 = vadd.f32 1.0, %v6783_v25  ;;  %v5740_v36 = vpop.f32.mrb[41].mxu1 }
 0x6c4   :  { %v6785_v15 = vpop.eup %6784  ;;  %6788 = vpow2.f32 %v5516_v38  ;;  %v5741_v61 = vadd.f32 %v5740_v36, %v5739_v39  ;;  %v5742_v14 = vpop.f32.mrb[42].mxu1 }
 0x6c5   :  { %6790 = vrcp.f32 %v2693_v0  ;;  %v2694_v22 = vadd.f32 1.0, %v6785_v15  ;;  %v5743_v29 = vpop.f32.mrb[43].mxu1 }
 0x6c6   :  { %v8982_v27 = vadd.f32 %v5741_v61, %v8969_v18  ;;  %v5744_v26 = vadd.f32 %v5743_v29, %v5742_v14 }
 0x6c7   :  { %6792 = vrcp.f32 %v2694_v22 }
 0x6c8   :  { %v5517_v46 = vmul.f32 -1.442695, %v8982_v27  ;;  %v8986_v59 = vadd.f32 %v5744_v26, %v8969_v18 }
 0x6ca   :  { %6794 = vpow2.f32 %v5517_v46  ;;  %v5518_v2 = vmul.f32 -1.442695, %v8986_v59  ;;  %v5745_v54 = vpop.f32.mrb[44].mxu1 }
 0x6cb   :  { %v5746_v34 = vpop.f32.mrb[45].mxu1 }
 0x6cc   :  { %v6787_v20 = vpop.eup %6786  ;;  %6796 = vpow2.f32 %v5518_v2  ;;  %v5747_v50 = vadd.f32 %v5746_v34, %v5745_v54  ;;  %v5748_v37 = vpop.f32.mrb[46].mxu1 }
 0x6cd   :  { %v2695_v30 = vadd.f32 1.0, %v6787_v20  ;;  %v5749_v31 = vpop.f32.mrb[47].mxu1 }
 0x6ce   :  { %v6789_v55 = vpop.eup %6788  ;;  %v8990_v8 = vadd.f32 %v5747_v50, %v8969_v18  ;;  %v5750_v24 = vadd.f32 %v5749_v31, %v5748_v37 }
 0x6cf   :  { %v6791_v19 = vpop.eup %6790  ;;  %6798 = vrcp.f32 %v2695_v30  ;;  %v2696_v49 = vadd.f32 1.0, %v6789_v55 }
 0x6d0   :  { %v5519_v28 = vmul.f32 -1.442695, %v8990_v8  ;;  %v8994_v4 = vadd.f32 %v5750_v24, %v8969_v18  ;;  %v2741_v16 = vmul.f32 %v6791_v19, %v2583_v48  ;;  %v6567_v24 = vld [vmem:[#allocation28 + $0x8] sm:$0xff]  }
 0x6d1   :  { %v6793_v35 = vpop.eup %6792  ;;  %6800 = vrcp.f32 %v2696_v49 }
 0x6d2   :  { %v2742_v45 = vmul.f32 %v6793_v35, %v2586_v5  ;;  %6802 = vpow2.f32 %v5519_v28  ;;  %v5520_v21 = vmul.f32 -1.442695, %v8994_v4  ;;  %v5751_v51 = vpop.f32.mrb[48].mxu1  ;;  %v9517_v5 = vmov 0.0  }
 0x6d3   :  { %v5752_v42 = vpop.f32.mrb[49].mxu1  ;;  %6136 = vmatprep.mubr.msk.bf16.mxu0 %vm7948_vm2, %v9517_v5 }
 0x6d4   :  { %v6795_v62 = vpop.eup %6794  ;;  %6804 = vpow2.f32 %v5520_v21  ;;  %v5753_v13 = vadd.f32 %v5752_v42, %v5751_v51  ;;  %v5754_v32 = vpop.f32.mrb[50].mxu1  ;;  %v8997_v58 = vpack.c.bf16 %v2742_v45, %v2741_v16  ;;  %v6568_v16 = vld [vmem:[#allocation28 + $0x10] sm:$0xff]  }
 0x6d5   :  { %v2697_v44 = vadd.f32 1.0, %v6795_v62  ;;  %v5755_v56 = vpop.f32.mrb[51].mxu1 }
 0x6d6   :  { %v6797_v25 = vpop.eup %6796  ;;  %v9000_v38 = vadd.f32 %v5753_v13, %v8969_v18  ;;  %v5756_v39 = vadd.f32 %v5755_v56, %v5754_v32  ;;  %6008 = vmatprep.mubr.bf16.mxu1 %v8997_v58  ;;  %6121 = vmatpush3.bf16.msra.mxu0 %v8997_v58 }
 0x6d7   :  { %6806 = vrcp.f32 %v2697_v44  ;;  %v2698_v48 = vadd.f32 1.0, %v6797_v25  ;;  %6122 = vmatprep.subr.bf16.mxu0 %v9517_v5 }
 0x6d8   :  { %v5521_v0 = vmul.f32 -1.442695, %v9000_v38  ;;  %v9007_v36 = vadd.f32 %v5756_v39, %v8969_v18 }
 0x6d9   :  { %v6799_v15 = vpop.eup %6798  ;;  %6808 = vrcp.f32 %v2698_v48 }
 0x6da   :  { %6810 = vpow2.f32 %v5521_v0  ;;  %v5522_v61 = vmul.f32 -1.442695, %v9007_v36  ;;  %v5757_v14 = vpop.f32.mrb[52].mxu1  ;;  %v2743_v46 = vmul.f32 %v6799_v15, %v8974_v12  ;;  %v6569_v0 = vld [vmem:[#allocation28 + $0x18] sm:$0xff]  }
 0x6db   :  { %v6801_v22 = vpop.eup %6800  ;;  %v5758_v29 = vpop.f32.mrb[53].mxu1 }
 0x6dc   :  { %v6803_v26 = vpop.eup %6802  ;;  %v2744_v2 = vmul.f32 %v6801_v22, %v8978_v43  ;;  %6812 = vpow2.f32 %v5522_v61  ;;  %v5759_v54 = vadd.f32 %v5758_v29, %v5757_v14  ;;  %v5760_v34 = vpop.f32.mrb[54].mxu1  ;;  %v6570_v29 = vld [vmem:[#allocation28 + $0x20] sm:$0xff]  }
 0x6dd   :  { %v2699_v20 = vadd.f32 1.0, %v6803_v26  ;;  %v5761_v50 = vpop.f32.mrb[55].mxu1 }
 0x6de   :  { %v6805_v37 = vpop.eup %6804  ;;  %v9012_v30 = vpack.c.bf16 %v2744_v2, %v2743_v46  ;;  %v9015_v31 = vadd.f32 %v5759_v54, %v8969_v18  ;;  %v5762_v55 = vadd.f32 %v5761_v50, %v5760_v34 }
 0x6df   :  { %6814 = vrcp.f32 %v2699_v20  ;;  %v2700_v19 = vadd.f32 1.0, %v6805_v37 }
 0x6e0   :  { %v5523_v49 = vmul.f32 -1.442695, %v9015_v31  ;;  %v9019_v12 = vadd.f32 %v5762_v55, %v8969_v18  ;;  %6009 = vmatmul.mubr.bf16.vlgmr.msra.gmra.mrb[64].mxu1 %v9012_v30  ;;  %6123 = vmatpush3.bf16.msra.mxu0 %v9012_v30 }
 0x6e1   :  { %v6807_v43 = vpop.eup %6806  ;;  %6816 = vrcp.f32 %v2700_v19  ;;  %6124 = vmatprep.subr.bf16.mxu0 %v9517_v5  ;;  %6025 = vmatpush3.bf16.msra.mxu1 %v8966_v10 }
 0x6e2   :  { %6818 = vpow2.f32 %v5523_v49  ;;  %v5524_v28 = vmul.f32 -1.442695, %v9019_v12  ;;  %v5763_v35 = vpop.f32.mrb[56].mxu1  ;;  %6026 = vmatprep.subr.bf16.mxu1 %v6567_v24  ;;  %v2745_v42 = vmul.f32 %v6807_v43, %v8982_v27 }
 0x6e3   :  { %v6809_v45 = vpop.eup %6808  ;;  %v5764_v21 = vpop.f32.mrb[57].mxu1 }
 0x6e4   :  { %v6811_v51 = vpop.eup %6810  ;;  %v2746_v62 = vmul.f32 %v6809_v45, %v8986_v59  ;;  %6820 = vpow2.f32 %v5524_v28  ;;  %v5765_v13 = vadd.f32 %v5764_v21, %v5763_v35  ;;  %v5766_v32 = vpop.f32.mrb[58].mxu1  ;;  %v6571_v28 = vld [vmem:[#allocation28 + $0x28] sm:$0xff]   ;;  %v6572_v21 = vld [vmem:[#allocation28 + $0x30] sm:$0xff]  }
 0x6e5   :  { %v2701_v44 = vadd.f32 1.0, %v6811_v51  ;;  %v5767_v56 = vpop.f32.mrb[59].mxu1  ;;  %6027 = vmatpush3.bf16.msra.mxu1 %v6567_v24 }
 0x6e6   :  { %v6813_v10 = vpop.eup %6812  ;;  %v9029_v25 = vadd.f32 %v5765_v13, %v8969_v18  ;;  %v5768_v39 = vadd.f32 %v5767_v56, %v5766_v32  ;;  %v9031_v48 = vpack.c.bf16 %v2746_v62, %v2745_v42  ;;  %6028 = vmatprep.subr.bf16.mxu1 %v6568_v16  ;;  %v6573_v56 = vld [vmem:[#allocation28 + $0x38] sm:$0xff]  }
 0x6e7   :  { %6822 = vrcp.f32 %v2701_v44  ;;  %v2702_v15 = vadd.f32 1.0, %v6813_v10 }
 0x6e8   :  { %v5525_v27 = vmul.f32 -1.442695, %v9029_v25  ;;  %v9035_v59 = vadd.f32 %v5768_v39, %v8969_v18  ;;  %6012 = vmatprep.mubr.bf16.mxu1 %v9031_v48  ;;  %6125 = vmatpush3.bf16.msra.mxu0 %v9031_v48 }
 0x6e9   :  { %v6815_v61 = vpop.eup %6814  ;;  %6824 = vrcp.f32 %v2702_v15  ;;  %6126 = vmatprep.subr.bf16.mxu0 %v9517_v5  ;;  %6029 = vmatpush3.bf16.msra.mxu1 %v6568_v16 }
 0x6ea   :  { %6826 = vpow2.f32 %v5525_v27  ;;  %v5526_v14 = vmul.f32 -1.442695, %v9035_v59  ;;  %v5769_v22 = vpop.f32.mrb[60].mxu1  ;;  %6030 = vmatprep.subr.bf16.mxu1 %v6569_v0  ;;  %v2747_v54 = vmul.f32 %v6815_v61, %v8990_v8 }
 0x6eb   :  { %v6817_v26 = vpop.eup %6816  ;;  %v5770_v46 = vpop.f32.mrb[61].mxu1 }
 0x6ec   :  { %v6819_v2 = vpop.eup %6818  ;;  %v2748_v34 = vmul.f32 %v6817_v26, %v8994_v4  ;;  %6828 = vpow2.f32 %v5526_v14  ;;  %v5771_v20 = vadd.f32 %v5770_v46, %v5769_v22  ;;  %v5772_v50 = vpop.f32.mrb[62].mxu1 }
 0x6ed   :  { %v2703_v37 = vadd.f32 1.0, %v6819_v2  ;;  %v5773_v55 = vpop.f32.mrb[63].mxu1  ;;  %6031 = vmatpush3.bf16.msra.mxu1 %v6569_v0 }
 0x6ee   :  { %v6821_v24 = vpop.eup %6820  ;;  %v9044_v19 = vadd.f32 %v5771_v20, %v8969_v18  ;;  %v5774_v49 = vadd.f32 %v5773_v55, %v5772_v50  ;;  %v9046_v43 = vpack.c.bf16 %v2748_v34, %v2747_v54  ;;  %6032 = vmatprep.subr.bf16.mxu1 %v6570_v29  ;;  %v6577_v55 = vld [vmem:[#allocation33 + $0x18] sm:$0xff]  }
 0x6ef   :  { %6830 = vrcp.f32 %v2703_v37  ;;  %v2704_v35 = vadd.f32 1.0, %v6821_v24  ;;  %v6579_v24 = vld [vmem:[#allocation33 + $0x28] sm:$0xff]  }
 0x6f0   :  { %v5527_v8 = vmul.f32 -1.442695, %v9044_v19  ;;  %v2642_v4 = vadd.f32 %v5774_v49, %v8969_v18  ;;  %6013 = vmatmul.mubr.bf16.gmra.mrb[68].mxu1 %v9046_v43  ;;  %6127 = vmatpush3.bf16.msra.mxu0 %v9046_v43 }
 0x6f1   :  { %v6823_v16 = vpop.eup %6822  ;;  %6832 = vrcp.f32 %v2704_v35  ;;  %6128 = vmatprep.subr.bf16.mxu0 %v9517_v5  ;;  %6033 = vmatpush3.bf16.msra.mxu1 %v6570_v29 }
 0x6f2   :  { %6834 = vpow2.f32 %v5527_v8  ;;  %v5528_v45 = vmul.f32 -1.442695, %v2642_v4  ;;  %6034 = vmatprep.subr.bf16.mxu1 %v6571_v28  ;;  %v2749_v62 = vmul.f32 %v6823_v16, %v9000_v38  ;;  %v6574_v38 = vld [vmem:[#allocation33] sm:$0xff]  }
 0x6f3   :  { %v6825_v51 = vpop.eup %6824 }
 0x6f4   :  { %v6827_v42 = vpop.eup %6826  ;;  %v2750_v13 = vmul.f32 %v6825_v51, %v9007_v36  ;;  %6836 = vpow2.f32 %v5528_v45 }
 0x6f5   :  { %v2705_v18 = vadd.f32 1.0, %v6827_v42  ;;  %6035 = vmatpush3.bf16.msra.mxu1 %v6571_v28 }
 0x6f6   :  { %v6829_v32 = vpop.eup %6828  ;;  %v9055_v44 = vpack.c.bf16 %v2750_v13, %v2749_v62  ;;  %6036 = vmatprep.subr.bf16.mxu1 %v6572_v21 }
 0x6f7   :  { %6838 = vrcp.f32 %v2705_v18  ;;  %v2706_v10 = vadd.f32 1.0, %v6829_v32 }
 0x6f8   :  { %6016 = vmatprep.mubr.bf16.mxu1 %v9055_v44  ;;  %6129 = vmatpush3.bf16.msra.mxu0 %v9055_v44 }
 0x6f9   :  { %v6831_v39 = vpop.eup %6830  ;;  %6840 = vrcp.f32 %v2706_v10  ;;  %6130 = vmatprep.subr.bf16.mxu0 %v9517_v5  ;;  %6037 = vmatpush3.bf16.msra.mxu1 %v6572_v21 }
 0x6fa   :  { %6038 = vmatprep.subr.bf16.mxu1 %v6573_v56  ;;  %v2751_v15 = vmul.f32 %v6831_v39, %v9015_v31 }
 0x6fb   :  { %v6833_v36 = vpop.eup %6832 }
 0x6fc   :  { %v6835_v0 = vpop.eup %6834  ;;  %v2752_v27 = vmul.f32 %v6833_v36, %v9019_v12 }
 0x6fd   :  { %v2707_v61 = vadd.f32 1.0, %v6835_v0  ;;  %6039 = vmatpush3.bf16.msra.mxu1 %v6573_v56 }
 0x6fe   :  { %v6837_v14 = vpop.eup %6836  ;;  %v2762_v22 = vpack.c.bf16 %v2752_v27, %v2751_v15  ;;  %6056 = vmatprep.subr.bf16.mxu1 %v6574_v38 }
 0x6ff   :  { %6842 = vrcp.f32 %v2707_v61  ;;  %v2708_v29 = vadd.f32 1.0, %v6837_v14 }
 0x700   :  { %6017 = vmatmul.mubr.bf16.gmra.mrb[72].mxu1 %v2762_v22  ;;  %6131 = vmatpush3.bf16.msra.mxu0 %v2762_v22 }
 0x701   :  { %v6839_v26 = vpop.eup %6838  ;;  %6844 = vrcp.f32 %v2708_v29  ;;  %6132 = vmatprep.subr.bf16.mxu0 %v9517_v5 }
 0x702   :  { %v2753_v2 = vmul.f32 %v6839_v26, %v9029_v25  ;;  %v6575_v25 = vld [vmem:[#allocation33 + $0x8] sm:$0xff]  }
 0x703   :  { %v6841_v46 = vpop.eup %6840 }
 0x704   :  { %v2754_v31 = vmul.f32 %v6841_v46, %v9035_v59  ;;  %v6576_v59 = vld [vmem:[#allocation33 + $0x10] sm:$0xff]  }
 0x706   :  { %v2763_v54 = vpack.c.bf16 %v2754_v31, %v2753_v2 }
 0x708   :  { %6020 = vmatprep.mubr.bf16.mxu1 %v2763_v54  ;;  %6133 = vmatpush3.bf16.msra.mxu0 %v2763_v54 }
 0x709   :  { %v6843_v12 = vpop.eup %6842  ;;  %6134 = vmatprep.subr.bf16.mxu0 %v9517_v5 }
 0x70a   :  { %v2755_v20 = vmul.f32 %v6843_v12, %v9044_v19  ;;  %v9082_v19 = vld [vmem:[#allocation31] ss:$0 sm:$0xff] }
 0x70b   :  { %v6845_v34 = vpop.eup %6844 }
 0x70c   :  { %v2756_v50 = vmul.f32 %v6845_v34, %v2642_v4 }
 0x70e   :  { %v2764_v37 = vpack.c.bf16 %v2756_v50, %v2755_v20 }
 0x710   :  { %6021 = vmatmul.mubr.bf16.gmra.mrb[76].mxu1 %v2764_v37  ;;  %6135 = vmatpush3.bf16.msra.mxu0 %v2764_v37 }
 0x711   :  { %6040 = vmatprep.mubr.bf16.mxu1 %v8707_v23  ;;  %6160 = vmatprep.subr.bf16.mxu0 %v9517_v5  ;;  %v6578_v23 = vld [vmem:[#allocation33 + $0x20] sm:$0xff]  }
 0x718   :  { %6041 = vmatmul.mubr.bf16.vlgmr.msra.gmra.mrb[64].mxu1 %v8711_v33  ;;  %v6580_v33 = vld [vmem:[#allocation33 + $0x30] sm:$0xff]  }
 0x719   :  { %6057 = vmatpush3.bf16.msra.mxu1 %v6574_v38  ;;  %6044 = vmatprep.mubr.bf16.mxu1 %v8717_v41  ;;  %v6581_v41 = vld [vmem:[#allocation33 + $0x38] sm:$0xff]  }
 0x71a   :  { %6058 = vmatprep.subr.bf16.mxu1 %v6575_v25 }
 0x71d   :  { %6059 = vmatpush3.bf16.msra.mxu1 %v6575_v25 }
 0x71e   :  { %6060 = vmatprep.subr.bf16.mxu1 %v6576_v59 }
 0x720   :  { %6045 = vmatmul.mubr.bf16.gmra.mrb[68].mxu1 %v8723_v47  ;;  %v6582_v47 = vld [vmem:[#allocation36] sm:$0xff]  }
 0x721   :  { %6061 = vmatpush3.bf16.msra.mxu1 %v6576_v59  ;;  %6048 = vmatprep.mubr.bf16.mxu1 %v8729_v52  ;;  %v6583_v52 = vld [vmem:[#allocation36 + $0x8] sm:$0xff]  }
 0x722   :  { %6062 = vmatprep.subr.bf16.mxu1 %v6577_v55 }
 0x725   :  { %6063 = vmatpush3.bf16.msra.mxu1 %v6577_v55 }
 0x726   :  { %6064 = vmatprep.subr.bf16.mxu1 %v6578_v23 }
 0x728   :  { %6049 = vmatmul.mubr.bf16.gmra.mrb[72].mxu1 %v8735_v53  ;;  %v6584_v53 = vld [vmem:[#allocation36 + $0x10] sm:$0xff]  }
 0x729   :  { %6065 = vmatpush3.bf16.msra.mxu1 %v6578_v23  ;;  %6052 = vmatprep.mubr.bf16.mxu1 %v8739_v57  ;;  %v6585_v57 = vld [vmem:[#allocation36 + $0x18] sm:$0xff]  }
 0x72a   :  { %6066 = vmatprep.subr.bf16.mxu1 %v6579_v24 }
 0x72d   :  { %6067 = vmatpush3.bf16.msra.mxu1 %v6579_v24 }
 0x72e   :  { %6068 = vmatprep.subr.bf16.mxu1 %v6580_v33 }
 0x730   :  { %6053 = vmatmul.mubr.bf16.gmra.mrb[76].mxu1 %v8743_v17  ;;  %v6586_v17 = vld [vmem:[#allocation36 + $0x20] sm:$0xff]  }
 0x731   :  { %6069 = vmatpush3.bf16.msra.mxu1 %v6580_v33  ;;  %6072 = vmatprep.mubr.bf16.mxu1 %v8997_v58  ;;  %v6587_v58 = vld [vmem:[#allocation36 + $0x28] sm:$0xff]  }
 0x732   :  { %6070 = vmatprep.subr.bf16.mxu1 %v6581_v41 }
 0x735   :  { %6071 = vmatpush3.bf16.msra.mxu1 %v6581_v41 }
 0x736   :  { %6088 = vmatprep.subr.bf16.mxu1 %v6582_v47 }
 0x738   :  { %6073 = vmatmul.mubr.bf16.vlgmr.msra.gmra.mrb[80].mxu1 %v9012_v30  ;;  %v6588_v30 = vld [vmem:[#allocation36 + $0x30] sm:$0xff]  }
 0x739   :  { %6076 = vmatprep.mubr.bf16.mxu1 %v9031_v48  ;;  %6089 = vmatpush3.bf16.msra.mxu1 %v6582_v47  ;;  %v6589_v48 = vld [vmem:[#allocation36 + $0x38] sm:$0xff]  }
 0x73a   :  { %6090 = vmatprep.subr.bf16.mxu1 %v6583_v52 }
 0x73d   :  { %6091 = vmatpush3.bf16.msra.mxu1 %v6583_v52 }
 0x73e   :  { %6092 = vmatprep.subr.bf16.mxu1 %v6584_v53 }
 0x740   :  { %6077 = vmatmul.mubr.bf16.gmra.mrb[84].mxu1 %v9046_v43 }
 0x741   :  { %6080 = vmatprep.mubr.bf16.mxu1 %v9055_v44  ;;  %6093 = vmatpush3.bf16.msra.mxu1 %v6584_v53 }
 0x742   :  { %6094 = vmatprep.subr.bf16.mxu1 %v6585_v57 }
 0x745   :  { %6095 = vmatpush3.bf16.msra.mxu1 %v6585_v57 }
 0x746   :  { %6096 = vmatprep.subr.bf16.mxu1 %v6586_v17 }
 0x748   :  { %6081 = vmatmul.mubr.bf16.gmra.mrb[88].mxu1 %v2762_v22 }
 0x749   :  { %6084 = vmatprep.mubr.bf16.mxu1 %v2763_v54  ;;  %6097 = vmatpush3.bf16.msra.mxu1 %v6586_v17 }
 0x74a   :  { %6098 = vmatprep.subr.bf16.mxu1 %v6587_v58 }
 0x74d   :  { %6099 = vmatpush3.bf16.msra.mxu1 %v6587_v58 }
 0x74e   :  { %6100 = vmatprep.subr.bf16.mxu1 %v6588_v30 }
 0x750   :  { %6085 = vmatmul.mubr.bf16.gmra.mrb[92].mxu1 %v2764_v37 }
 0x751   :  { %6101 = vmatpush3.bf16.msra.mxu1 %v6588_v30 }
 0x752   :  { %6102 = vmatprep.subr.bf16.mxu1 %v6589_v48 }
 0x755   :  { %6103 = vmatpush3.bf16.msra.mxu1 %v6589_v48 }
 0x756   :  { %6140 = vmatprep.subr.bf16.mxu1 %v9517_v5 }
 0x7eb   :  { %v6042_v49 = vpop.f32.mrb[64].mxu1 }
 0x7ec   :  { %v9085_v43 = vadd.f32 %v6042_v49, %v9082_v19  ;;  %v3024_v28 = vpop.f32.mrb[65].mxu1 }
 0x7ed   :  { %v9088_v35 = vadd.f32 %v9082_v19, %v3024_v28  ;;  %v6043_v8 = vpop.f32.mrb[66].mxu1 }
 0x7ee   :  { %v5548_v4 = vmul.f32 -1.442695, %v9085_v43  ;;  %v9092_v16 = vadd.f32 %v6043_v8, %v9082_v19  ;;  %v3027_v45 = vpop.f32.mrb[67].mxu1 }
 0x7ef   :  { %v5546_v21 = vmul.f32 -1.442695, %v9088_v35  ;;  %v9096_v51 = vadd.f32 %v9082_v19, %v3027_v45 }
 0x7f0   :  { %6846 = vpow2.f32 %v5548_v4  ;;  %v5549_v42 = vmul.f32 -1.442695, %v9092_v16 }
 0x7f1   :  { %6848 = vpow2.f32 %v5546_v21  ;;  %v5547_v62 = vmul.f32 -1.442695, %v9096_v51 }
 0x7f2   :  { %6850 = vpow2.f32 %v5549_v42 }
 0x7f3   :  { %6852 = vpow2.f32 %v5547_v62  ;;  %v6046_v13 = vpop.f32.mrb[68].mxu1 }
 0x7f4   :  { %v9101_v18 = vadd.f32 %v6046_v13, %v9082_v19  ;;  %v3040_v32 = vpop.f32.mrb[69].mxu1 }
 0x7f5   :  { %v9104_v44 = vadd.f32 %v9082_v19, %v3040_v32  ;;  %v6047_v56 = vpop.f32.mrb[70].mxu1 }
 0x7f6   :  { %v5552_v10 = vmul.f32 -1.442695, %v9101_v18  ;;  %v9108_v39 = vadd.f32 %v6047_v56, %v9082_v19  ;;  %v3043_v38 = vpop.f32.mrb[71].mxu1 }
 0x7f7   :  { %v5550_v36 = vmul.f32 -1.442695, %v9104_v44  ;;  %v9112_v0 = vadd.f32 %v9082_v19, %v3043_v38 }
 0x7f8   :  { %6854 = vpow2.f32 %v5552_v10  ;;  %v5553_v15 = vmul.f32 -1.442695, %v9108_v39 }
 0x7f9   :  { %6856 = vpow2.f32 %v5550_v36  ;;  %v5551_v27 = vmul.f32 -1.442695, %v9112_v0 }
 0x7fa   :  { %v6847_v61 = vpop.eup %6846  ;;  %6858 = vpow2.f32 %v5553_v15 }
 0x7fb   :  { %v6849_v14 = vpop.eup %6848  ;;  %v3160_v22 = vadd.f32 1.0, %v6847_v61  ;;  %6860 = vpow2.f32 %v5551_v27  ;;  %v6050_v29 = vpop.f32.mrb[72].mxu1  ;;  %v9150_v61 = vld [vmem:[#allocation34] ss:$0 sm:$0xff] }
 0x7fc   :  { %v6851_v26 = vpop.eup %6850  ;;  %v3158_v46 = vadd.f32 1.0, %v6849_v14  ;;  %v9117_v2 = vadd.f32 %v6050_v29, %v9082_v19  ;;  %v3056_v31 = vpop.f32.mrb[73].mxu1 }
 0x7fd   :  { %v6853_v54 = vpop.eup %6852  ;;  %6862 = vrcp.f32 %v3160_v22  ;;  %v3161_v12 = vadd.f32 1.0, %v6851_v26  ;;  %v9120_v34 = vadd.f32 %v9082_v19, %v3056_v31  ;;  %v6051_v20 = vpop.f32.mrb[74].mxu1 }
 0x7fe   :  { %6864 = vrcp.f32 %v3158_v46  ;;  %v3159_v50 = vadd.f32 1.0, %v6853_v54  ;;  %v5556_v37 = vmul.f32 -1.442695, %v9117_v2  ;;  %v9124_v25 = vadd.f32 %v6051_v20, %v9082_v19  ;;  %v3059_v59 = vpop.f32.mrb[75].mxu1 }
 0x7ff   :  { %6866 = vrcp.f32 %v3161_v12  ;;  %v5554_v55 = vmul.f32 -1.442695, %v9120_v34  ;;  %v9128_v23 = vadd.f32 %v9082_v19, %v3059_v59 }
 0x800   :  { %6868 = vrcp.f32 %v3159_v50  ;;  %v5557_v24 = vmul.f32 -1.442695, %v9124_v25 }
 0x801   :  { %6870 = vpow2.f32 %v5556_v37  ;;  %v5555_v33 = vmul.f32 -1.442695, %v9128_v23 }
 0x802   :  { %v6855_v41 = vpop.eup %6854  ;;  %6872 = vpow2.f32 %v5554_v55 }
 0x803   :  { %v6857_v47 = vpop.eup %6856  ;;  %v3164_v52 = vadd.f32 1.0, %v6855_v41  ;;  %6874 = vpow2.f32 %v5557_v24  ;;  %v6054_v53 = vpop.f32.mrb[76].mxu1 }
 0x804   :  { %v6859_v57 = vpop.eup %6858  ;;  %v3162_v17 = vadd.f32 1.0, %v6857_v47  ;;  %6876 = vpow2.f32 %v5555_v33  ;;  %v9133_v58 = vadd.f32 %v6054_v53, %v9082_v19  ;;  %v3072_v30 = vpop.f32.mrb[77].mxu1 }
 0x805   :  { %v6861_v48 = vpop.eup %6860  ;;  %6878 = vrcp.f32 %v3164_v52  ;;  %v3165_v49 = vadd.f32 1.0, %v6859_v57  ;;  %v9136_v28 = vadd.f32 %v9082_v19, %v3072_v30  ;;  %v6055_v8 = vpop.f32.mrb[78].mxu1 }
 0x806   :  { %6880 = vrcp.f32 %v3162_v17  ;;  %v3163_v4 = vadd.f32 1.0, %v6861_v48  ;;  %v5560_v45 = vmul.f32 -1.442695, %v9133_v58  ;;  %v9140_v21 = vadd.f32 %v6055_v8, %v9082_v19  ;;  %v3075_v42 = vpop.f32.mrb[79].mxu1 }
 0x807   :  { %v6863_v62 = vpop.eup %6862  ;;  %6882 = vrcp.f32 %v3165_v49  ;;  %v5558_v13 = vmul.f32 -1.442695, %v9136_v28  ;;  %v9144_v32 = vadd.f32 %v9082_v19, %v3075_v42 }
 0x808   :  { %v6865_v56 = vpop.eup %6864  ;;  %v3208_v10 = vmul.f32 %v6863_v62, %v9085_v43  ;;  %6884 = vrcp.f32 %v3163_v4  ;;  %v5561_v38 = vmul.f32 -1.442695, %v9140_v21 }
 0x809   :  { %v6867_v36 = vpop.eup %6866  ;;  %v3206_v15 = vmul.f32 %v6865_v56, %v9088_v35  ;;  %6886 = vpow2.f32 %v5560_v45  ;;  %v5559_v27 = vmul.f32 -1.442695, %v9144_v32 }
 0x80a   :  { %v6869_v14 = vpop.eup %6868  ;;  %3224 = vst [vmem:[#allocation58 + $0x10] sm:$0xff] %v3208_v10  ;;  %v3209_v22 = vmul.f32 %v6867_v36, %v9092_v16  ;;  %6888 = vpow2.f32 %v5558_v13 }
 0x80b   :  { %v6871_v19 = vpop.eup %6870  ;;  %3222 = vst [vmem:[#allocation58] sm:$0xff] %v3206_v15  ;;  %v3207_v43 = vmul.f32 %v6869_v14, %v9096_v51  ;;  %6890 = vpow2.f32 %v5561_v38  ;;  %v6074_v29 = vpop.f32.mrb[80].mxu1 }
 0x80c   :  { %v6873_v26 = vpop.eup %6872  ;;  %3225 = vst [vmem:[#allocation58 + $0x18] sm:$0xff] %v3209_v22  ;;  %v3168_v46 = vadd.f32 1.0, %v6871_v19  ;;  %6892 = vpow2.f32 %v5559_v27  ;;  %v9155_v35 = vadd.f32 %v6074_v29, %v9150_v61  ;;  %v3343_v31 = vpop.f32.mrb[81].mxu1 }
 0x80d   :  { %v6875_v54 = vpop.eup %6874  ;;  %3223 = vst [vmem:[#allocation58 + $0x8] sm:$0xff] %v3207_v43  ;;  %v3166_v12 = vadd.f32 1.0, %v6873_v26  ;;  %v9158_v16 = vadd.f32 %v9150_v61, %v3343_v31  ;;  %v6075_v20 = vpop.f32.mrb[82].mxu1 }
 0x80e   :  { %v6877_v50 = vpop.eup %6876  ;;  %6894 = vrcp.f32 %v3168_v46  ;;  %v3169_v51 = vadd.f32 1.0, %v6875_v54  ;;  %v5573_v37 = vmul.f32 -1.442695, %v9155_v35  ;;  %v9162_v59 = vadd.f32 %v6075_v20, %v9150_v61  ;;  %v3346_v55 = vpop.f32.mrb[83].mxu1 }
 0x80f   :  { %v6879_v24 = vpop.eup %6878  ;;  %6896 = vrcp.f32 %v3166_v12  ;;  %v3167_v33 = vadd.f32 1.0, %v6877_v50  ;;  %v5571_v41 = vmul.f32 -1.442695, %v9158_v16  ;;  %v9166_v47 = vadd.f32 %v9150_v61, %v3346_v55 }
 0x810   :  { %v6881_v52 = vpop.eup %6880  ;;  %v3212_v53 = vmul.f32 %v6879_v24, %v9101_v18  ;;  %6898 = vrcp.f32 %v3169_v51  ;;  %v5574_v57 = vmul.f32 -1.442695, %v9162_v59 }
 0x811   :  { %v6883_v17 = vpop.eup %6882  ;;  %v3210_v30 = vmul.f32 %v6881_v52, %v9104_v44  ;;  %6900 = vrcp.f32 %v3167_v33  ;;  %v5572_v48 = vmul.f32 -1.442695, %v9166_v47 }
 0x812   :  { %v6885_v49 = vpop.eup %6884  ;;  %3228 = vst [vmem:[#allocation58 + $0x30] sm:$0xff] %v3212_v53  ;;  %v3213_v8 = vmul.f32 %v6883_v17, %v9108_v39  ;;  %6902 = vpow2.f32 %v5573_v37 }
 0x813   :  { %v6887_v4 = vpop.eup %6886  ;;  %3226 = vst [vmem:[#allocation58 + $0x20] sm:$0xff] %v3210_v30  ;;  %v3211_v45 = vmul.f32 %v6885_v49, %v9112_v0  ;;  %6904 = vpow2.f32 %v5571_v41  ;;  %v6078_v18 = vpop.f32.mrb[84].mxu1 }
 0x814   :  { %v6889_v42 = vpop.eup %6888  ;;  %3229 = vst [vmem:[#allocation58 + $0x38] sm:$0xff] %v3213_v8  ;;  %v3172_v62 = vadd.f32 1.0, %v6887_v4  ;;  %6906 = vpow2.f32 %v5574_v57  ;;  %v9175_v44 = vadd.f32 %v6078_v18, %v9150_v61  ;;  %v3359_v13 = vpop.f32.mrb[85].mxu1 }
 0x815   :  { %v6891_v56 = vpop.eup %6890  ;;  %3227 = vst [vmem:[#allocation58 + $0x28] sm:$0xff] %v3211_v45  ;;  %v3170_v10 = vadd.f32 1.0, %v6889_v42  ;;  %6908 = vpow2.f32 %v5572_v48  ;;  %v9178_v39 = vadd.f32 %v9150_v61, %v3359_v13  ;;  %v6079_v38 = vpop.f32.mrb[86].mxu1 }
 0x816   :  { %v6893_v36 = vpop.eup %6892  ;;  %6910 = vrcp.f32 %v3172_v62  ;;  %v3173_v0 = vadd.f32 1.0, %v6891_v56  ;;  %v5577_v15 = vmul.f32 -1.442695, %v9175_v44  ;;  %v9182_v27 = vadd.f32 %v6079_v38, %v9150_v61  ;;  %v3362_v14 = vpop.f32.mrb[87].mxu1 }
 0x817   :  { %6912 = vrcp.f32 %v3170_v10  ;;  %v3171_v22 = vadd.f32 1.0, %v6893_v36  ;;  %v5575_v19 = vmul.f32 -1.442695, %v9178_v39  ;;  %v9186_v43 = vadd.f32 %v9150_v61, %v3362_v14 }
 0x818   :  { %v6895_v29 = vpop.eup %6894  ;;  %6914 = vrcp.f32 %v3173_v0  ;;  %v5578_v26 = vmul.f32 -1.442695, %v9182_v27 }
 0x819   :  { %v6897_v46 = vpop.eup %6896  ;;  %v3216_v31 = vmul.f32 %v6895_v29, %v9117_v2  ;;  %6916 = vrcp.f32 %v3171_v22  ;;  %v5576_v54 = vmul.f32 -1.442695, %v9186_v43 }
 0x81a   :  { %v6899_v12 = vpop.eup %6898  ;;  %v3214_v20 = vmul.f32 %v6897_v46, %v9120_v34  ;;  %6918 = vpow2.f32 %v5577_v15 }
 0x81b   :  { %v6901_v50 = vpop.eup %6900  ;;  %3232 = vst [vmem:[#allocation58 + $0x50] sm:$0xff] %v3216_v31  ;;  %v3217_v51 = vmul.f32 %v6899_v12, %v9124_v25  ;;  %6920 = vpow2.f32 %v5575_v19  ;;  %v6082_v37 = vpop.f32.mrb[88].mxu1 }
 0x81c   :  { %v6903_v55 = vpop.eup %6902  ;;  %3230 = vst [vmem:[#allocation58 + $0x40] sm:$0xff] %v3214_v20  ;;  %v3215_v24 = vmul.f32 %v6901_v50, %v9128_v23  ;;  %6922 = vpow2.f32 %v5578_v26  ;;  %v9195_v2 = vadd.f32 %v6082_v37, %v9150_v61  ;;  %v3375_v33 = vpop.f32.mrb[89].mxu1 }
 0x81d   :  { %v6905_v41 = vpop.eup %6904  ;;  %3233 = vst [vmem:[#allocation58 + $0x58] sm:$0xff] %v3217_v51  ;;  %v3456_v52 = vadd.f32 1.0, %v6903_v55  ;;  %6924 = vpow2.f32 %v5576_v54  ;;  %v9198_v34 = vadd.f32 %v9150_v61, %v3375_v33  ;;  %v6083_v53 = vpop.f32.mrb[90].mxu1 }
 0x81e   :  { %v6907_v25 = vpop.eup %6906  ;;  %3231 = vst [vmem:[#allocation58 + $0x48] sm:$0xff] %v3215_v24  ;;  %v3454_v57 = vadd.f32 1.0, %v6905_v41  ;;  %v9201_v17 = vadd.f32 %v6083_v53, %v9150_v61  ;;  %v3378_v23 = vpop.f32.mrb[91].mxu1  ;;  %v5581_v49 = vmul.f32 -1.442695, %v9195_v2 }
 0x81f   :  { %v6909_v30 = vpop.eup %6908  ;;  %6926 = vrcp.f32 %v3456_v52  ;;  %v3457_v48 = vadd.f32 1.0, %v6907_v25  ;;  %v9205_v8 = vadd.f32 %v9150_v61, %v3378_v23  ;;  %v5579_v18 = vmul.f32 -1.442695, %v9198_v34 }
 0x820   :  { %v6911_v4 = vpop.eup %6910  ;;  %6928 = vrcp.f32 %v3454_v57  ;;  %v3455_v45 = vadd.f32 1.0, %v6909_v30  ;;  %v5582_v13 = vmul.f32 -1.442695, %v9201_v17 }
 0x821   :  { %v6913_v42 = vpop.eup %6912  ;;  %v3220_v62 = vmul.f32 %v6911_v4, %v9133_v58  ;;  %6930 = vrcp.f32 %v3457_v48  ;;  %v5580_v38 = vmul.f32 -1.442695, %v9205_v8 }
 0x822   :  { %v6915_v56 = vpop.eup %6914  ;;  %v3218_v10 = vmul.f32 %v6913_v42, %v9136_v28  ;;  %6932 = vrcp.f32 %v3455_v45 }
 0x823   :  { %v6917_v36 = vpop.eup %6916  ;;  %3236 = vst [vmem:[#allocation58 + $0x70] sm:$0xff] %v3220_v62  ;;  %v3221_v0 = vmul.f32 %v6915_v56, %v9140_v21  ;;  %6934 = vpow2.f32 %v5581_v49  ;;  %v6086_v15 = vpop.f32.mrb[92].mxu1 }
 0x824   :  { %v6919_v14 = vpop.eup %6918  ;;  %3234 = vst [vmem:[#allocation58 + $0x60] sm:$0xff] %v3218_v10  ;;  %v3219_v22 = vmul.f32 %v6917_v36, %v9144_v32  ;;  %6936 = vpow2.f32 %v5579_v18  ;;  %v9215_v58 = vadd.f32 %v6086_v15, %v9150_v61  ;;  %v3391_v19 = vpop.f32.mrb[93].mxu1 }
 0x825   :  { %v6921_v29 = vpop.eup %6920  ;;  %3237 = vst [vmem:[#allocation58 + $0x78] sm:$0xff] %v3221_v0  ;;  %v3460_v28 = vadd.f32 1.0, %v6919_v14  ;;  %6938 = vpow2.f32 %v5582_v13  ;;  %v9218_v26 = vadd.f32 %v9150_v61, %v3391_v19  ;;  %v6087_v46 = vpop.f32.mrb[94].mxu1 }
 0x826   :  { %v6923_v21 = vpop.eup %6922  ;;  %3235 = vst [vmem:[#allocation58 + $0x68] sm:$0xff] %v3219_v22  ;;  %v3458_v31 = vadd.f32 1.0, %v6921_v29  ;;  %6940 = vpow2.f32 %v5580_v38  ;;  %v9221_v54 = vadd.f32 %v6087_v46, %v9150_v61  ;;  %v3394_v32 = vpop.f32.mrb[95].mxu1  ;;  %v5585_v50 = vmul.f32 -1.442695, %v9215_v58 }
 0x827   :  { %v6925_v12 = vpop.eup %6924  ;;  %6942 = vrcp.f32 %v3460_v28  ;;  %v3461_v20 = vadd.f32 1.0, %v6923_v21  ;;  %v9225_v51 = vadd.f32 %v9150_v61, %v3394_v32  ;;  %v5583_v55 = vmul.f32 -1.442695, %v9218_v26 }
 0x828   :  { %6944 = vrcp.f32 %v3458_v31  ;;  %v3459_v37 = vadd.f32 1.0, %v6925_v12  ;;  %v5586_v33 = vmul.f32 -1.442695, %v9221_v54 }
 0x829   :  { %v6927_v24 = vpop.eup %6926  ;;  %6946 = vrcp.f32 %v3461_v20  ;;  %v5584_v52 = vmul.f32 -1.442695, %v9225_v51 }
 0x82a   :  { %v6929_v41 = vpop.eup %6928  ;;  %6948 = vrcp.f32 %v3459_v37  ;;  %v3504_v57 = vmul.f32 %v6927_v24, %v9155_v35 }
 0x82b   :  { %v6931_v53 = vpop.eup %6930  ;;  %6950 = vpow2.f32 %v5585_v50  ;;  %v3502_v30 = vmul.f32 %v6929_v41, %v9158_v16 }
 0x82c   :  { %v6933_v25 = vpop.eup %6932  ;;  %v3505_v61 = vmul.f32 %v6931_v53, %v9162_v59  ;;  %6952 = vpow2.f32 %v5583_v55 }
 0x82d   :  { %v6935_v23 = vpop.eup %6934  ;;  %v3503_v48 = vmul.f32 %v6933_v25, %v9166_v47  ;;  %6954 = vpow2.f32 %v5586_v33 }
 0x82e   :  { %v6937_v49 = vpop.eup %6936  ;;  %v3519_v4 = vpack.c.bf16 %v3505_v61, %v3504_v57  ;;  %v3464_v45 = vadd.f32 1.0, %v6935_v23  ;;  %6956 = vpow2.f32 %v5584_v52 }
 0x82f   :  { %v6939_v18 = vpop.eup %6938  ;;  %v3462_v42 = vadd.f32 1.0, %v6937_v49  ;;  %v3518_v62 = vpack.c.bf16 %v3503_v48, %v3502_v30 }
 0x830   :  { %v6941_v13 = vpop.eup %6940  ;;  %6958 = vrcp.f32 %v3464_v45  ;;  %v3465_v56 = vadd.f32 1.0, %v6939_v18 }
 0x831   :  { %v6943_v35 = vpop.eup %6942  ;;  %6960 = vrcp.f32 %v3462_v42  ;;  %v3463_v59 = vadd.f32 1.0, %v6941_v13  ;;  %6104 = vmatprep.mubr.bf16.mxu1 %v3518_v62 }
 0x832   :  { %v6945_v10 = vpop.eup %6944  ;;  %6962 = vrcp.f32 %v3465_v56  ;;  %6105 = vmatmul.mubr.bf16.vlgmr.msra.gmra.mrb[96].mxu1 %v3519_v4  ;;  %v3508_v38 = vmul.f32 %v6943_v35, %v9175_v44 }
 0x833   :  { %v6947_v16 = vpop.eup %6946  ;;  %6964 = vrcp.f32 %v3463_v59  ;;  %v3506_v15 = vmul.f32 %v6945_v10, %v9178_v39 }
 0x834   :  { %v6949_v47 = vpop.eup %6948  ;;  %v3509_v36 = vmul.f32 %v6947_v16, %v9182_v27 }
 0x835   :  { %v6951_v0 = vpop.eup %6950  ;;  %v3507_v14 = vmul.f32 %v6949_v47, %v9186_v43 }
 0x836   :  { %v6953_v22 = vpop.eup %6952  ;;  %v3468_v19 = vadd.f32 1.0, %v6951_v0  ;;  %v3521_v29 = vpack.c.bf16 %v3509_v36, %v3508_v38 }
 0x837   :  { %v6955_v28 = vpop.eup %6954  ;;  %v3466_v46 = vadd.f32 1.0, %v6953_v22  ;;  %v3520_v21 = vpack.c.bf16 %v3507_v14, %v3506_v15 }
 0x838   :  { %v6957_v31 = vpop.eup %6956  ;;  %6966 = vrcp.f32 %v3468_v19  ;;  %v3469_v32 = vadd.f32 1.0, %v6955_v28 }
 0x839   :  { %6968 = vrcp.f32 %v3466_v46  ;;  %v3467_v12 = vadd.f32 1.0, %v6957_v31  ;;  %6108 = vmatprep.mubr.bf16.mxu1 %v3520_v21 }
 0x83a   :  { %v6959_v44 = vpop.eup %6958  ;;  %6970 = vrcp.f32 %v3469_v32  ;;  %6109 = vmatmul.mubr.bf16.gmra.mrb[100].mxu1 %v3521_v29  ;;  %v9255_v29 = vld [vmem:[#allocation15] sm:$0xff] }
 0x83b   :  { %v6961_v27 = vpop.eup %6960  ;;  %6972 = vrcp.f32 %v3467_v12  ;;  %v3512_v43 = vmul.f32 %v6959_v44, %v9195_v2 }
 0x83c   :  { %v6963_v39 = vpop.eup %6962  ;;  %v3510_v37 = vmul.f32 %v6961_v27, %v9198_v34  ;;  %v9258_v27 = vld [vmem:[#allocation15 + $0x8] sm:$0xff] }
 0x83d   :  { %v6965_v20 = vpop.eup %6964  ;;  %v3513_v50 = vmul.f32 %v6963_v39, %v9201_v17  ;;  %v6590_v39 = vld [vmem:[#allocation40] sm:$0xff]   ;;  %vm3914_vm7 = vcmp.ge.s32.totalorder %v9258_v27, 0 }
 0x83e   :  { %v3511_v55 = vmul.f32 %v6965_v20, %v9205_v8  ;;  %v9246_v8 = vpop.trf.xlu1  ;;  %v6591_v20 = vld [vmem:[#allocation40 + $0x8] sm:$0xff]  }
 0x83f   :  { %v3523_v24 = vpack.c.bf16 %v3513_v50, %v3512_v43  ;;  %6137 = vmatmul.mubr.bf16.vlgmr.msra.gmra.mrb[64].mxu0 %v9246_v8  ;;  %v6593_v43 = vld [vmem:[#allocation40 + $0x10] sm:$0xff]   ;;  %v6595_v50 = vld [vmem:[#allocation40 + $0x18] sm:$0xff]  }
 0x840   :  { %v3522_v33 = vpack.c.bf16 %v3511_v55, %v3510_v37  ;;  %6176 = vmatprep.mubr.msk.bf16.mxu0 %vm7948_vm2, %v9517_v5  ;;  %6161 = vmatpush3.bf16.msra.mxu0 %v6590_v39  ;;  %v6597_v37 = vld [vmem:[#allocation40 + $0x20] sm:$0xff]   ;;  %v6599_v55 = vld [vmem:[#allocation40 + $0x28] sm:$0xff]  }
 0x841   :  { %6162 = vmatprep.subr.bf16.mxu0 %v9517_v5 }
 0x842   :  { %v6967_v41 = vpop.eup %6966  ;;  %6112 = vmatprep.mubr.bf16.mxu1 %v3522_v33  ;;  %v6603_v33 = vld [vmem:[#allocation40 + $0x38] sm:$0xff]  }
 0x843   :  { %v6969_v52 = vpop.eup %6968  ;;  %6113 = vmatmul.mubr.bf16.gmra.mrb[104].mxu1 %v3523_v24  ;;  %v3516_v57 = vmul.f32 %v6967_v41, %v9215_v58  ;;  %v5587_v58 = vld [vmem:[#allocation37] ss:$0 sm:$0xff]  ;;  %v6601_v24 = vld [vmem:[#allocation40 + $0x30] sm:$0xff]  }
 0x844   :  { %v6971_v53 = vpop.eup %6970  ;;  %v3514_v2 = vmul.f32 %v6969_v52, %v9218_v26  ;;  %6163 = vmatpush3.bf16.msra.mxu0 %v6591_v20  ;;  %v9525_v20 = vld [vmem:[#allocation109_spill] sm:$0xff] }
 0x845   :  { %v6973_v25 = vpop.eup %6972  ;;  %v3517_v61 = vmul.f32 %v6971_v53, %v9221_v54  ;;  %6164 = vmatprep.subr.bf16.mxu0 %v9517_v5 }
 0x846   :  { %v3515_v17 = vmul.f32 %v6973_v25, %v9225_v51 }
 0x847   :  { %v3525_v23 = vpack.c.bf16 %v3517_v61, %v3516_v57 }
 0x848   :  { %v3524_v34 = vpack.c.bf16 %v3515_v17, %v3514_v2  ;;  %6165 = vmatpush3.bf16.msra.mxu0 %v6593_v43 }
 0x849   :  { %6166 = vmatprep.subr.bf16.mxu0 %v9517_v5 }
 0x84a   :  { %6116 = vmatprep.mubr.bf16.mxu1 %v3524_v34 }
 0x84b   :  { %6117 = vmatmul.mubr.bf16.gmra.mrb[108].mxu1 %v3525_v23 }
 0x84c   :  { %6156 = vmatprep.mubr.msk.bf16.mxu1 %vm7948_vm2, %v9517_v5  ;;  %6167 = vmatpush3.bf16.msra.mxu0 %v6595_v50 }
 0x84d   :  { %6168 = vmatprep.subr.bf16.mxu0 %v9517_v5 }
 0x850   :  { %6169 = vmatpush3.bf16.msra.mxu0 %v6597_v37 }
 0x851   :  { %6170 = vmatprep.subr.bf16.mxu0 %v9517_v5 }
 0x854   :  { %6171 = vmatpush3.bf16.msra.mxu0 %v6599_v55  ;;  %v6592_v55 = vld [vmem:[#allocation39] sm:$0xff]  }
 0x855   :  { %6172 = vmatprep.subr.bf16.mxu0 %v9517_v5 }
 0x858   :  { %6173 = vmatpush3.bf16.msra.mxu0 %v6601_v24 }
 0x859   :  { %6174 = vmatprep.subr.bf16.mxu0 %v9517_v5 }
 0x85c   :  { %6175 = vmatpush3.bf16.msra.mxu0 %v6603_v33  ;;  %v6594_v33 = vld [vmem:[#allocation39 + $0x8] sm:$0xff]  }
 0x85d   :  { %6200 = vmatprep.subr.bf16.mxu0 %v9517_v5 }
 0x905   :  { %v6106_v26 = vpop.f32.mrb[96].mxu1 }
 0x906   :  { %v3640_v54 = vadd.f32 %v6106_v26, %v5587_v58  ;;  %v3631_v51 = vpop.f32.mrb[97].mxu1 }
 0x907   :  { %v6107_v30 = vpop.f32.mrb[98].mxu1  ;;  %v3632_v49 = vadd.f32 %v5587_v58, %v3631_v51 }
 0x908   :  { %3706 = vperm.xlu0 %6463, %v3640_v54   ;;  %v3634_v48 = vpop.f32.mrb[99].mxu1  ;;  %v3643_v45 = vadd.f32 %v6107_v30, %v5587_v58 }
 0x909   :  { %v3635_v13 = vadd.f32 %v5587_v58, %v3634_v48 }
 0x90c   :  { %3696 = vperm.xlu0 %6463, %v3632_v49  }
 0x90d   :  { %v6110_v4 = vpop.f32.mrb[100].mxu1 }
 0x90e   :  { %v3647_v18 = vpop.f32.mrb[101].mxu1  ;;  %v3656_v56 = vadd.f32 %v6110_v4, %v5587_v58 }
 0x90f   :  { %v6111_v42 = vpop.f32.mrb[102].mxu1  ;;  %v3648_v47 = vadd.f32 %v5587_v58, %v3647_v18 }
 0x910   :  { %v3650_v62 = vpop.f32.mrb[103].mxu1  ;;  %3711 = vperm.xlu0 %6463, %v3643_v45   ;;  %v3659_v38 = vadd.f32 %v6111_v42, %v5587_v58 }
 0x911   :  { %v3651_v19 = vadd.f32 %v5587_v58, %v3650_v62 }
 0x912   :  { %v3842_v41 = vpop.f32.mrb[64].mxu0 }
 0x913   :  { %v6138_v52 = vpop.f32.mrb[65].mxu0 }
 0x914   :  { %3701 = vperm.xlu0 %6463, %v3635_v13   ;;  %v3845_v53 = vpop.f32.mrb[66].mxu0  ;;  %v6600_v52 = vld [vmem:[#allocation39 + $0x20] sm:$0xff]  }
 0x915   :  { %v3957_v25 = vpack.c.bf16 %v3845_v53, %v3842_v41  ;;  %v6139_v57 = vpop.f32.mrb[67].mxu0  ;;  %v6598_v41 = vld [vmem:[#allocation39 + $0x18] sm:$0xff]  }
 0x916   :  { %v6114_v35 = vpop.f32.mrb[104].mxu1  ;;  %v4288_v53 = vld [vmem:[#allocation13] sm:$0xff] }
 0x917   :  { %v3663_v59 = vpop.f32.mrb[105].mxu1  ;;  %v3672_v28 = vadd.f32 %v6114_v35, %v5587_v58  ;;  %6177 = vmatmul.mubr.bf16.vlgmr.msra.gmra.mrb[68].mxu0 %v3957_v25  ;;  %v6604_v25 = vld [vmem:[#allocation39 + $0x30] sm:$0xff]   ;;  %v5626_v57 = vmul.f32 -1.442695, %v4288_v53 }
 0x918   :  { %v6115_v10 = vpop.f32.mrb[106].mxu1  ;;  %3726 = vperm.xlu0 %6463, %v3656_v56   ;;  %v3664_v46 = vadd.f32 %v5587_v58, %v3663_v59  ;;  %6216 = vmatprep.mubr.msk.bf16.mxu0 %vm7948_vm2, %v9517_v5 }
 0x919   :  { %v3666_v16 = vpop.f32.mrb[107].mxu1  ;;  %v3675_v21 = vadd.f32 %v6115_v10, %v5587_v58  ;;  %6974 = vpow2.f32 %v5626_v57 }
 0x91a   :  { %v3667_v31 = vadd.f32 %v5587_v58, %v3666_v16  ;;  %v9519_v16 = vld [vmem:[#allocation106_spill] sm:$0xff] }
 0x91c   :  { %3716 = vperm.xlu0 %6463, %v3648_v47  }
 0x91e   :  { %v6118_v36 = vpop.f32.mrb[108].mxu1 }
 0x91f   :  { %v3688_v0 = vadd.f32 %v6118_v36, %v5587_v58  ;;  %v3679_v15 = vpop.f32.mrb[109].mxu1 }
 0x920   :  { %v6119_v14 = vpop.f32.mrb[110].mxu1  ;;  %3731 = vperm.xlu0 %6463, %v3659_v38   ;;  %v3680_v32 = vadd.f32 %v5587_v58, %v3679_v15  ;;  %v9520_v38 = vld [vmem:[#allocation105_spill] sm:$0xff] }
 0x921   :  { %3766 = vperm.xlu1 %6464, %v3688_v0   ;;  %v3682_v22 = vpop.f32.mrb[111].mxu1  ;;  %v3691_v44 = vadd.f32 %v6119_v14, %v5587_v58  ;;  %v9521_v14 = vld [vmem:[#allocation103_spill] sm:$0xff] }
 0x922   :  { %v3683_v12 = vadd.f32 %v5587_v58, %v3682_v22 }
 0x924   :  { %3721 = vperm.xlu0 %6463, %v3651_v19  }
 0x925   :  { %4447 = vperm.xlu1 %6464, %v9255_v29  }
 0x928   :  { %3746 = vperm.xlu0 %6463, %v3672_v28   ;;  %v9522_v28 = vld [vmem:[#allocation108_spill] sm:$0xff] }
 0x92c   :  { %3736 = vperm.xlu0 %6463, %v3664_v46  }
 0x930   :  { %3751 = vperm.xlu0 %6463, %v3675_v21   ;;  %v9523_v21 = vld [vmem:[#allocation110_spill] sm:$0xff] }
 0x934   :  { %3741 = vperm.xlu0 %6463, %v3667_v31  }
 0x938   :  { %3756 = vperm.xlu0 %6463, %v3680_v32  }
 0x93c   :  { %3761 = vperm.xlu0 %6463, %v3683_v12  }
 0x940   :  { %3771 = vperm.xlu0 %6463, %v3691_v44   ;;  %v9524_v44 = vld [vmem:[#allocation107_spill] sm:$0xff] }
 0x944   :  { %4450 = vperm.xlu0 %6463, %v9258_v27  }
 0x987   :  { %v3707_v61 = vpop.permute.xlu0 %3706 }
 0x988   :  { %v3776_v30 = vmul.f32 %v3707_v61, %v8605_v60  ;;  %v6605_v61 = vld [vmem:[#allocation39 + $0x38] sm:$0xff]  }
 0x98b   :  { %v3697_v2 = vpop.permute.xlu0 %3696 }
 0x98c   :  { %v3774_v34 = vmul.f32 %v3697_v2, %v8607_v1  ;;  %v6608_v2 = vld [vmem:[#allocation46 + $0x4] ss:$8 sps:$4 sm:$0xff]  }
 0x98f   :  { %v3712_v17 = vpop.permute.xlu0 %3711 }
 0x990   :  { %v3777_v26 = vmul.f32 %v3712_v17, %v8609_v6  ;;  %v6606_v17 = vld [vmem:[#allocation46] ss:$8 sps:$4 sm:$0xff]  }
 0x992   :  { %v3856_v48 = vpack.c.bf16 %v3777_v26, %v3776_v30  ;;  %v9527_v26 = vmov 0   ;;  %v6612_v30 = vld [vmem:[#allocation46 + $0x20] ss:$8 sps:$4 sm:$0xff]  }
 0x993   :  { %v3702_v23 = vpop.permute.xlu0 %3701 }
 0x994   :  { %v3775_v58 = vmul.f32 %v3702_v23, %v8611_v9  ;;  %v6611_v23 = vld [vmem:[#allocation46 + $0x14] ss:$8 sps:$4 sm:$0xff]  }
 0x996   :  { %v3855_v54 = vpack.c.bf16 %v3775_v58, %v3774_v34  ;;  %v9526_v34 = vld [vmem:[#allocation102_spill] sm:$0xff] }
 0x997   :  { %v3727_v51 = vpop.permute.xlu0 %3726  ;;  %v6609_v58 = vld [vmem:[#allocation46 + $0x10] ss:$8 sps:$4 sm:$0xff]  }
 0x998   :  { %6141 = vmatpush3.bf16.msra.mxu1 %v3855_v54  ;;  %v3780_v56 = vmul.f32 %v3727_v51, %v8619_v3  ;;  %v6614_v54 = vld [vmem:[#allocation46 + $0x24] ss:$8 sps:$4 sm:$0xff]   ;;  %v6975_v51 = vpop.eup %6974 }
 0x999   :  { %6142 = vmatprep.subr.bf16.mxu1 %v9517_v5 }
 0x99b   :  { %v3717_v49 = vpop.permute.xlu0 %3716 }
 0x99c   :  { %6143 = vmatpush3.bf16.msra.mxu1 %v3856_v48  ;;  %v3778_v1 = vmul.f32 %v3717_v49, %v8622_v63  ;;  %v6617_v48 = vld [vmem:[#allocation46 + $0x34] ss:$8 sps:$4 sm:$0xff]   ;;  %v4292_v49 = vadd.f32 1.0, %v6975_v51 }
 0x99d   :  { %6144 = vmatprep.subr.bf16.mxu1 %v9517_v5 }
 0x99e   :  { %6976 = vrcp.f32 %v4292_v49 }
 0x99f   :  { %v3732_v4 = vpop.permute.xlu0 %3731 }
 0x9a0   :  { %v3767_v45 = vpop.permute.xlu1 %3766  ;;  %v3781_v60 = vmul.f32 %v3732_v4, %v8624_v7  ;;  %v9518_v7 = vld [vmem:[#allocation104_spill] sm:$0xff] }
 0x9a1   :  { %v3788_v39 = vmul.f32 %v3767_v45, %v9524_v44  ;;  %v6615_v4 = vld [vmem:[#allocation46 + $0x30] ss:$8 sps:$4 sm:$0xff]   ;;  %v6620_v45 = vld [vmem:[#allocation46 + $0x44] ss:$8 sps:$4 sm:$0xff]  }
 0x9a2   :  { %v3858_v63 = vpack.c.bf16 %v3781_v60, %v3780_v56 }
 0x9a3   :  { %v3722_v18 = vpop.permute.xlu0 %3721 }
 0x9a4   :  { %v4448_v9 = vpop.permute.xlu1 %4447  ;;  %v3779_v6 = vmul.f32 %v3722_v18, %v8626_v11  ;;  %v6618_v18 = vld [vmem:[#allocation46 + $0x40] ss:$8 sps:$4 sm:$0xff]  }
 0x9a5   :  { %vm4452_vm3 = vcmp.eq.s32.totalorder %v8368_v40, %v4448_v9  ;;  %v6621_v9 = vld [vmem:[#allocation46 + $0x50] ss:$8 sps:$4 sm:$0xff]  }
 0x9a6   :  { %v9282_v42 = vsel %vm4452_vm3, 1.0, %v9517_v5  ;;  %v3857_v62 = vpack.c.bf16 %v3779_v6, %v3778_v1  ;;  %v6623_v1 = vld [vmem:[#allocation46 + $0x54] ss:$8 sps:$4 sm:$0xff]   ;;  %v6626_v6 = vld [vmem:[#allocation46 + $0x64] ss:$8 sps:$4 sm:$0xff]  }
 0x9a7   :  { %4620 = vxpose.xlu1.b32.start [1/2] (short) (narrow) %v9282_v42, 8  ;;  %v3747_v13 = vpop.permute.xlu0 %3746 }
 0x9a8   :  { %6145 = vmatpush3.bf16.msra.mxu1 %v3857_v62  ;;  %v3784_v3 = vmul.f32 %v3747_v13, %v9521_v14  ;;  %v6977_v60 = vpop.eup %6976  ;;  %v6624_v62 = vld [vmem:[#allocation46 + $0x60] ss:$8 sps:$4 sm:$0xff]   ;;  %v6629_v13 = vld [vmem:[#allocation46 + $0x74] ss:$8 sps:$4 sm:$0xff]  }
 0x9a9   :  { %6146 = vmatprep.subr.bf16.mxu1 %v9517_v5  ;;  %v4295_v56 = vmul.f32 %v6977_v60, %v4288_v53  ;;  %v6636_v14 = vld [vmem:[#allocation43 + $0x30] sm:$0xff]  }
 0x9aa   :  { %v9528_v53 = vld [vmem:[#allocation111_spill] sm:$0xff] }
 0x9ab   :  { %v3737_v35 = vpop.permute.xlu0 %3736 }
 0x9ac   :  { %6147 = vmatpush3.bf16.msra.mxu1 %v3858_v63  ;;  %v3782_v10 = vmul.f32 %v3737_v35, %v9518_v7  ;;  %v6627_v63 = vld [vmem:[#allocation46 + $0x70] ss:$8 sps:$4 sm:$0xff]   ;;  %v4296_v35 = vpack.c.bf16 %v4295_v56, %v4295_v56 }
 0x9ad   :  { %6148 = vmatprep.subr.bf16.mxu1 %v9517_v5 }
 0x9af   :  { %v3752_v11 = vpop.permute.xlu0 %3751 }
 0x9b0   :  { %v3785_v36 = vmul.f32 %v3752_v11, %v9520_v38  ;;  %v6632_v38 = vld [vmem:[#allocation43 + $0x10] sm:$0xff]  }
 0x9b2   :  { %v3860_v22 = vpack.c.bf16 %v3785_v36, %v3784_v3  ;;  %v6633_v36 = vld [vmem:[#allocation43 + $0x18] sm:$0xff]  }
 0x9b3   :  { %v3742_v59 = vpop.permute.xlu0 %3741  ;;  %v6637_v3 = vld [vmem:[#allocation43 + $0x38] sm:$0xff]  }
 0x9b4   :  { %v3783_v47 = vmul.f32 %v3742_v59, %v9519_v16  ;;  %v6630_v16 = vld [vmem:[#allocation43] sm:$0xff]  }
 0x9b5   :  { %6201 = vmatpush3.bf16.msra.mxu0 %v6630_v16 }
 0x9b6   :  { %v3859_v0 = vpack.c.bf16 %v3783_v47, %v3782_v10  ;;  %6202 = vmatprep.subr.bf16.mxu0 %v9517_v5  ;;  %v6631_v47 = vld [vmem:[#allocation43 + $0x8] sm:$0xff]  }
 0x9b7   :  { %v3757_v15 = vpop.permute.xlu0 %3756 }
 0x9b8   :  { %6149 = vmatpush3.bf16.msra.mxu1 %v3859_v0  ;;  %v3786_v46 = vmul.f32 %v3757_v15, %v9522_v28  ;;  %v6634_v0 = vld [vmem:[#allocation43 + $0x20] sm:$0xff]   ;;  %v6635_v15 = vld [vmem:[#allocation43 + $0x28] sm:$0xff]  }
 0x9b9   :  { %6150 = vmatprep.subr.bf16.mxu1 %v9517_v5  ;;  %6203 = vmatpush3.bf16.msra.mxu0 %v6631_v47 }
 0x9ba   :  { %6204 = vmatprep.subr.bf16.mxu0 %v9517_v5 }
 0x9bb   :  { %v3762_v19 = vpop.permute.xlu0 %3761 }
 0x9bc   :  { %v3787_v31 = vmul.f32 %v3762_v19, %v9523_v21  ;;  %6151 = vmatpush3.bf16.msra.mxu1 %v3860_v22 }
 0x9bd   :  { %6152 = vmatprep.subr.bf16.mxu1 %v9517_v5  ;;  %6205 = vmatpush3.bf16.msra.mxu0 %v6632_v38 }
 0x9be   :  { %v3861_v32 = vpack.c.bf16 %v3787_v31, %v3786_v46  ;;  %6206 = vmatprep.subr.bf16.mxu0 %v9517_v5  ;;  %v5614_v31 = vld [vmem:[#allocation42] ss:$0 sm:$0xff] }
 0x9bf   :  { %v3772_v12 = vpop.permute.xlu0 %3771 }
 0x9c0   :  { %v3789_v43 = vmul.f32 %v3772_v12, %v9525_v20  ;;  %6153 = vmatpush3.bf16.msra.mxu1 %v3861_v32 }
 0x9c1   :  { %6154 = vmatprep.subr.bf16.mxu1 %v9517_v5  ;;  %6207 = vmatpush3.bf16.msra.mxu0 %v6633_v36 }
 0x9c2   :  { %v3862_v50 = vpack.c.bf16 %v3789_v43, %v3788_v39  ;;  %6208 = vmatprep.subr.bf16.mxu0 %v9517_v5 }
 0x9c3   :  { %v4451_v37 = vpop.permute.xlu0 %4450 }
 0x9c4   :  { %vm4453_vm5 = vcmp.eq.s32.totalorder %v8368_v40, %v4451_v37  ;;  %6155 = vmatpush3.bf16.msra.mxu1 %v3862_v50  ;;  %v6596_v40 = vld [vmem:[#allocation39 + $0x10] sm:$0xff]  }
 0x9c5   :  { %v9301_v24 = vsel %vm4453_vm5, 1.0, %v9517_v5  ;;  %6180 = vmatprep.subr.bf16.mxu1 %v9517_v5  ;;  %6209 = vmatpush3.bf16.msra.mxu0 %v6634_v0 }
 0x9c6   :  { %4621 = vxpose.xlu1.b32.end [2/2] (short) (narrow) %v9301_v24, 8  ;;  %6210 = vmatprep.subr.bf16.mxu0 %v9517_v5 }
 0x9c7   :  { %6157 = vmatmul.mubr.bf16.vlgmr.msra.gmra.mrb[112].mxu1 %v9246_v8  ;;  %v6602_v8 = vld [vmem:[#allocation39 + $0x28] sm:$0xff]  }
 0x9c8   :  { %6181 = vmatpush3.bf16.msra.mxu1 %v6592_v55  ;;  %6196 = vmatprep.mubr.msk.bf16.mxu1 %vm7948_vm2, %v9517_v5 }
 0x9c9   :  { %6182 = vmatprep.subr.bf16.mxu1 %v9517_v5  ;;  %6211 = vmatpush3.bf16.msra.mxu0 %v6635_v15 }
 0x9ca   :  { %6212 = vmatprep.subr.bf16.mxu0 %v9517_v5 }
 0x9cc   :  { %6183 = vmatpush3.bf16.msra.mxu1 %v6594_v33 }
 0x9cd   :  { %6184 = vmatprep.subr.bf16.mxu1 %v9517_v5  ;;  %6213 = vmatpush3.bf16.msra.mxu0 %v6636_v14 }
 0x9ce   :  { %6214 = vmatprep.subr.bf16.mxu0 %v9517_v5 }
 0x9d0   :  { %6185 = vmatpush3.bf16.msra.mxu1 %v6596_v40 }
 0x9d1   :  { %6186 = vmatprep.subr.bf16.mxu1 %v9517_v5  ;;  %6215 = vmatpush3.bf16.msra.mxu0 %v6637_v3 }
 0x9d4   :  { %6187 = vmatpush3.bf16.msra.mxu1 %v6598_v41 }
 0x9d5   :  { %6188 = vmatprep.subr.bf16.mxu1 %v9517_v5 }
 0x9d8   :  { %6189 = vmatpush3.bf16.msra.mxu1 %v6600_v52 }
 0x9d9   :  { %6190 = vmatprep.subr.bf16.mxu1 %v9517_v5 }
 0x9dc   :  { %6191 = vmatpush3.bf16.msra.mxu1 %v6602_v8  ;;  %v4313_v8 = vld [vmem:[#allocation48] sm:$0x3] }
 0x9dd   :  { %6192 = vmatprep.subr.bf16.mxu1 %v9517_v5 }
 0x9e0   :  { %6193 = vmatpush3.bf16.msra.mxu1 %v6604_v25  ;;  %v4318_v25 = vrot.slane %v4313_v8, %v9528_v53  ;;  %v6641_v53 = vld [vmem:[#allocation52 + $0x18] sm:$0xff]  }
 0x9e1   :  { %6194 = vmatprep.subr.bf16.mxu1 %v9517_v5 }
 0x9e4   :  { %6195 = vmatpush3.bf16.msra.mxu1 %v6605_v61  ;;  %v9529_v61 = vld [vmem:[#allocation112_spill] sm:$0xff] }
 0x9e5   :  { %4405 = vmatprep.subr.bf16.mxu1 %v6608_v2  ;;  %v4322_v2 = vrot.slane %v4313_v8, %v9529_v61  ;;  %v6643_v61 = vld [vmem:[#allocation52 + $0x28] sm:$0xff]  }
 0x9e7   :  { %6197 = vmatmul.mubr.bf16.vlgmr.msra.gmra.mrb[116].mxu1 %v9526_v34 }
 0x9e8   :  { %4406 = vmatpush1.bf16.msra.mxu1 %v6606_v17  ;;  %4437 = vmatprep.mubr.bf16.mxu1 %v9527_v26 }
 0x9e9   :  { %4407 = vmatprep.subr.bf16.mxu1 %v6611_v23 }
 0x9ea   :  { %v4056_v11 = vpop.f32.mrb[68].mxu0 }
 0x9eb   :  { %v6178_v59 = vpop.f32.mrb[69].mxu0 }
 0x9ec   :  { %4408 = vmatpush1.bf16.msra.mxu1 %v6609_v58  ;;  %v4059_v7 = vpop.f32.mrb[70].mxu0 }
 0x9ed   :  { %4409 = vmatprep.subr.bf16.mxu1 %v6614_v54  ;;  %v6179_v10 = vpop.f32.mrb[71].mxu0 }
 0x9f0   :  { %4410 = vmatpush1.bf16.msra.mxu1 %v6612_v30 }
 0x9f1   :  { %4411 = vmatprep.subr.bf16.mxu1 %v6617_v48 }
 0x9f4   :  { %4412 = vmatpush1.bf16.msra.mxu1 %v6615_v4  ;;  %v7949_v4 = vmov 0.0|0.0  }
 0x9f5   :  { %4413 = vmatprep.subr.bf16.mxu1 %v6620_v45 }
 0x9f8   :  { %4414 = vmatpush1.bf16.msra.mxu1 %v6618_v18 }
 0x9f9   :  { %4415 = vmatprep.subr.bf16.mxu1 %v6623_v1 }
 0x9fc   :  { %4416 = vmatpush1.bf16.msra.mxu1 %v6621_v9 }
 0x9fd   :  { %4417 = vmatprep.subr.bf16.mxu1 %v6626_v6 }
 0xa00   :  { %4418 = vmatpush1.bf16.msra.mxu1 %v6624_v62  ;;  %v5617_v62 = vld [vmem:[#allocation45] ss:$0 sm:$0xff] }
 0xa01   :  { %4419 = vmatprep.subr.bf16.mxu1 %v6629_v13 }
 0xa04   :  { %4420 = vmatpush1.bf16.msra.mxu1 %v6627_v63 }
 0xa07   :  { %4438 = vmatmul.mubr.bf16.vlgmr.msra.gmra.mrb[120].mxu1 %v4296_v35 }
 0xa08   :  { %6227 = vmatprep.mubr.msk.f32.mxu1 %vm4458_vm6, %v9282_v42 }
 0xa42   :  { %v4636_v15 = vpop.trf.xlu1 }
 0xa9a   :  { %v9326_v22 = vpop.f32.mrb[112].mxu1 }
 0xa9b   :  { %v6158_v19 = vpop.f32.mrb[113].mxu1 }
 0xa9c   :  { %v9328_v28 = vpop.f32.mrb[114].mxu1 }
 0xa9d   :  { %v6159_v46 = vpop.f32.mrb[115].mxu1 }
 0xaba   :  { %v4145_v21 = vpop.f32.mrb[116].mxu1 }
 0xabb   :  { %v4146_v32 = vadd.f32 %v4145_v21, %v4056_v11  ;;  %v6198_v12 = vpop.f32.mrb[117].mxu1 }
 0xabc   :  { %v4148_v44 = vpop.f32.mrb[118].mxu1 }
 0xabd   :  { %v4159_v39 = vadd.f32 %v5614_v31, %v4146_v32  ;;  %v4149_v20 = vadd.f32 %v4148_v44, %v4059_v7  ;;  %v6199_v43 = vpop.f32.mrb[119].mxu1 }
 0xabf   :  { %v5615_v50 = vmul.f32 -1.442695, %v4159_v39  ;;  %v4160_v37 = vadd.f32 %v5614_v31, %v4149_v20  ;;  %v4619_v31 = vld [vmem:[#allocation16] sm:$0xff] }
 0xac1   :  { %6978 = vpow2.f32 %v5615_v50  ;;  %v5616_v55 = vmul.f32 -1.442695, %v4160_v37 }
 0xac3   :  { %6980 = vpow2.f32 %v5616_v55  ;;  %v6638_v55 = vld [vmem:[#allocation52] sm:$0xff]  }
 0xacb   :  { %v6979_v33 = vpop.eup %6978 }
 0xacc   :  { %v4167_v40 = vadd.f32 1.0, %v6979_v33  ;;  %v6639_v33 = vld [vmem:[#allocation52 + $0x8] sm:$0xff]  }
 0xacd   :  { %v6981_v41 = vpop.eup %6980 }
 0xace   :  { %6982 = vrcp.f32 %v4167_v40  ;;  %v4168_v52 = vadd.f32 1.0, %v6981_v41  ;;  %v6640_v41 = vld [vmem:[#allocation52 + $0x10] sm:$0xff]  }
 0xad0   :  { %6984 = vrcp.f32 %v4168_v52 }
 0xad8   :  { %v6983_v57 = vpop.eup %6982 }
 0xad9   :  { %v4173_v34 = vmul.f32 %v6983_v57, %v4159_v39 }
 0xada   :  { %v6985_v17 = vpop.eup %6984  ;;  %v4439_v23 = vpop.f32.mrb[120].mxu1 }
 0xadb   :  { %v4174_v58 = vmul.f32 %v6985_v17, %v4160_v37  ;;  %v4440_v26 = vadd.f32 %v4439_v23, %v4318_v25  ;;  %v4441_v54 = vpop.f32.mrb[121].mxu1  ;;  %v6642_v25 = vld [vmem:[#allocation52 + $0x20] sm:$0xff]   ;;  %v5597_v17 = vsel %vm3914_vm7, 1.0, %v9517_v5 }
 0xadc   :  { %v4442_v51 = vadd.f32 %v4441_v54, %v4322_v2  ;;  %v4443_v30 = vpop.f32.mrb[122].mxu1 }
 0xadd   :  { %v4175_v48 = vpack.c.bf16 %v4174_v58, %v4173_v34  ;;  %v4444_v49 = vpop.f32.mrb[123].mxu1  ;;  %6220 = vmatprep.subr.mxu0 %v4440_v26  ;;  %v6644_v58 = vld [vmem:[#allocation52 + $0x30] sm:$0xff]  }
 0xade   :  { %6225 = vmatprep.subr.mxu1 %v4442_v51 }
 0xadf   :  { %6217 = vmatmul.mubr.bf16.vlgmr.msra.gmra.mrb[72].mxu0 %v4175_v48  ;;  %6226 = vmatpush3.msra.mxu1 %v4442_v51  ;;  %v5655_v48 = vld [vmem:[#allocation49] ss:$0 sm:$0xff] }
 0xae0   :  { %6222 = vmatprep.mubr.msk.f32.mxu0 %vm4458_vm6, %v9282_v42  ;;  %6228 = vmatmul.mubr.msk.f32.vlgmr.msra.gmra.mrb[124].mxu1 %vm4458_vm6, %v9301_v24 }
 0xae1   :  { %6221 = vmatpush3.msra.mxu0 %v4440_v26  ;;  %6241 = vmatprep.mubr.msk.f32.mxu1 %vm7948_vm2, %v9517_v5 }
 0xae2   :  { %6294 = vmatprep.subr.bf16.mxu0 %v7949_v4  ;;  %6297 = vmatprep.subr.bf16.mxu1 %v7949_v4 }
 0xae7   :  { %6223 = vmatmul.mubr.msk.f32.vlgmr.msra.gmra.mrb[76].mxu0 %vm4458_vm6, %v9301_v24 }
 0xae8   :  { %6234 = vmatprep.mubr.msk.f32.mxu0 %vm7948_vm2, %v9517_v5 }
 0xbb2   :  { %v4281_v45 = vpop.f32.mrb[72].mxu0 }
 0xbb3   :  { %v6218_v18 = vpop.f32.mrb[73].mxu0  ;;  %v6229_v1 = vpop.f32.mrb[124].mxu1  ;;  %v4282_v11 = vadd.f32 %v5617_v62, %v4281_v45  ;;  %v3919_v45 = vld [vmem:[#allocation12] sm:$0xff] }
 0xbb4   :  { %v4284_v9 = vpop.f32.mrb[74].mxu0  ;;  %v4608_v6 = vpop.f32.mrb[125].mxu1  ;;  %v3920_v18 = vld [vmem:[#allocation12 + $0x8] sm:$0xff] }
 0xbb5   :  { %v6219_v60 = vpop.f32.mrb[75].mxu0  ;;  %v4285_v56 = vadd.f32 %v5617_v62, %v4284_v9  ;;  %v3923_v62 = vadd.f32 %v3919_v45, %v9326_v22 }
 0xbba   :  { %v6224_v13 = vpop.f32.mrb[76].mxu0 }
 0xbbb   :  { %v4537_v63 = vadd.f32 1.0, %v6224_v13  ;;  %v4531_v35 = vpop.f32.mrb[77].mxu0  ;;  %v3924_v13 = vadd.f32 %v3920_v18, %v9328_v28  ;;  %v6646_v28 = vld [vmem:[#allocation55] sm:$0xff]  }
 0xbbc   :  { %v4532_v59 = vadd.f32 1.0, %v4531_v35 }
 0xbbd   :  { %v4541_v7 = vmul.f32 %v4537_v63, %v4285_v56 }
 0xbbe   :  { %v4540_v10 = vmul.f32 %v4532_v59, %v4282_v11 }
 0xbbf   :  { %v9342_v16 = vadd.f32 %v6229_v1, %v4541_v7 }
 0xbc0   :  { %v9344_v47 = vadd.f32 %v4608_v6, %v4540_v10  ;;  %v5656_v6 = vld [vmem:[#allocation51] ss:$0 sm:$0xff] }
 0xbc1   :  { %v4726_v38 = vmul.f32 %v9342_v16, %v9342_v16 }
 0xbc2   :  { %v4725_v36 = vmul.f32 %v9344_v47, %v9344_v47  ;;  %v6295_v0 = vpack.c.bf16 %v9342_v16, %v9344_v47 }
 0xbc4   :  { %6296 = vmatpush3.bf16.msra.mxu0 %v6295_v0  ;;  %v6298_v14 = vpack.c.bf16 %v4726_v38, %v4725_v36  ;;  %v6649_v38 = vld [vmem:[#allocation55 + $0x18] sm:$0xff]   ;;  %v6650_v36 = vld [vmem:[#allocation55 + $0x20] sm:$0xff]   ;;  %v6651_v0 = vld [vmem:[#allocation55 + $0x28] sm:$0xff]  }
 0xbc6   :  { %6299 = vmatpush3.bf16.msra.mxu1 %v6298_v14  ;;  %v6653_v14 = vld [vmem:[#allocation55 + $0x38] sm:$0xff]  }
 0xbc7   :  { %6235 = vmatmul.mubr.msk.f32.vlgmr.msra.gmra.mrb[78].mxu0 %vm877_vm4, %v4636_v15 }
 0xbc8   :  { %6246 = vmatprep.mubr.msk.f32.mxu0 %vm4458_vm6, %v9282_v42 }
 0xbc9   :  { %6242 = vmatmul.mubr.msk.f32.vlgmr.msra.gmra.mrb[126].mxu1 %vm877_vm4, %v4636_v15  ;;  %vm3913_vm4 = vcmp.ge.s32.totalorder %v9255_v29, 0  ;;  %v6645_v29 = vld [vmem:[#allocation52 + $0x38] sm:$0xff]  }
 0xbca   :  { %6251 = vmatprep.mubr.msk.f32.mxu1 %vm4458_vm6, %v9282_v42  ;;  %v5596_v2 = vsel %vm3913_vm4, 1.0, %v9517_v5  ;;  %v6652_v15 = vld [vmem:[#allocation55 + $0x30] sm:$0xff]  }
 0xbcb   :  { %v6465_v34 = vpack.i.bf16 %v5597_v17, %v5596_v2 }
 0xc9a   :  { %v4721_v3 = vpop.f32.mrb[78].mxu0 }
 0xc9b   :  { %4797 = vadd.xlane.f32.xlu0 %v4721_v3  ;;  %v6236_v19 = vpop.f32.mrb[79].mxu0  ;;  %v5657_v3 = vld [vmem:[#allocation54] ss:$0 sm:$0xff] }
 0xc9c   :  { %v4793_v46 = vpop.f32.mrb[126].mxu1 }
 0xc9d   :  { %v6243_v21 = vpop.f32.mrb[127].mxu1 }
 0xc9f   :  { %4800 = vadd.xlane.f32.xlu0 %v4793_v46 }
 0xd28   :  { %v4798_v32 = vpop.xlane.xlu0 %4797 }
 0xd29   :  { %v4799_v12 = vmul.f32 %v4798_v32, %v4619_v31 }
 0xd2b   :  { %6244 = vmatprep.subr.mxu0 %v4799_v12  ;;  %v4803_v39 = vmul.f32 %v4799_v12, %v4799_v12 }
 0xd2c   :  { %6245 = vmatpush3.msra.mxu0 %v4799_v12  ;;  %v4801_v44 = vpop.xlane.xlu0 %4800 }
 0xd2d   :  { %v4802_v20 = vmul.f32 %v4801_v44, %v4619_v31  ;;  %6247 = vmatmul.mubr.msk.f32.vlgmr.msra.gmra.mrb[80].mxu0 %vm4458_vm6, %v9301_v24  ;;  %6254 = vmatprep.subr.bf16.mxu0 %v9517_v5 }
 0xd2e   :  { %6270 = vmatprep.mubr.msk.bf16.mxu0 %vm7948_vm2, %v9517_v5  ;;  %6255 = vmatpush3.bf16.msra.mxu0 %v6638_v55 }
 0xd2f   :  { %v4804_v42 = vsub.f32 %v4802_v20, %v4803_v39  ;;  %6256 = vmatprep.subr.bf16.mxu0 %v9517_v5 }
 0xd31   :  { %v4805_v43 = vmax.f32 %v4804_v42, 0.0 }
 0xd32   :  { %6257 = vmatpush3.bf16.msra.mxu0 %v6639_v33 }
 0xd33   :  { %6249 = vmatprep.subr.mxu1 %v4805_v43  ;;  %6258 = vmatprep.subr.bf16.mxu0 %v9517_v5 }
 0xd34   :  { %6250 = vmatpush3.msra.mxu1 %v4805_v43 }
 0xd35   :  { %6252 = vmatmul.mubr.msk.f32.vlgmr.msra.gmra.mrb[128].mxu1 %vm4458_vm6, %v9301_v24  ;;  %6274 = vmatprep.subr.bf16.mxu1 %v9517_v5 }
 0xd36   :  { %6290 = vmatprep.mubr.msk.bf16.mxu1 %vm7948_vm2, %v9517_v5  ;;  %6259 = vmatpush3.bf16.msra.mxu0 %v6640_v41 }
 0xd37   :  { %6260 = vmatprep.subr.bf16.mxu0 %v9517_v5  ;;  %6275 = vmatpush3.bf16.msra.mxu1 %v6646_v28 }
 0xd38   :  { %6276 = vmatprep.subr.bf16.mxu1 %v9517_v5 }
 0xd3a   :  { %6261 = vmatpush3.bf16.msra.mxu0 %v6641_v53 }
 0xd3b   :  { %6262 = vmatprep.subr.bf16.mxu0 %v9517_v5 }
 0xd3e   :  { %6263 = vmatpush3.bf16.msra.mxu0 %v6642_v25 }
 0xd3f   :  { %6264 = vmatprep.subr.bf16.mxu0 %v9517_v5 }
 0xd42   :  { %6265 = vmatpush3.bf16.msra.mxu0 %v6643_v61 }
 0xd43   :  { %6266 = vmatprep.subr.bf16.mxu0 %v9517_v5 }
 0xd46   :  { %6267 = vmatpush3.bf16.msra.mxu0 %v6644_v58 }
 0xd47   :  { %6268 = vmatprep.subr.bf16.mxu0 %v9517_v5 }
 0xd4a   :  { %6269 = vmatpush3.bf16.msra.mxu0 %v6645_v29 }
 0xe00   :  { %v6248_v50 = vpop.f32.mrb[80].mxu0 }
 0xe01   :  { %4888 = vperm.xlu1 %6464, %v6248_v50   ;;  %v4872_v37 = vpop.f32.mrb[81].mxu0 }
 0xe02   :  { %4883 = vperm.xlu0 %6463, %v4872_v37  }
 0xe08   :  { %v6253_v40 = vpop.f32.mrb[128].mxu1 }
 0xe09   :  { %v4959_v52 = vpop.f32.mrb[129].mxu1  ;;  %v4965_v8 = vadd.f32 1e-05, %v6253_v40 }
 0xe0a   :  { %v4960_v24 = vadd.f32 1e-05, %v4959_v52 }
 0xe0c   :  { %6986 = vrsqrt.f32 %v4960_v24 }
 0xe0d   :  { %6988 = vrsqrt.f32 %v4965_v8 }
 0xe16   :  { %v6987_v57 = vpop.eup %6986 }
 0xe17   :  { %4972 = vperm.xlu0 %6463, %v6987_v57   ;;  %v6989_v23 = vpop.eup %6988 }
 0xe1b   :  { %4977 = vperm.xlu0 %6463, %v6989_v23  }
 0xe1f   :  { %6466 = vperm.xlu0 %6463, %v6465_v34  }
 0xe80   :  { %v4889_v54 = vpop.permute.xlu1 %4888 }
 0xe81   :  { %v4884_v27 = vpop.permute.xlu0 %4883  ;;  %v4892_v49 = vsub.f32 %v9342_v16, %v4889_v54  ;;  %v6647_v16 = vld [vmem:[#allocation55 + $0x8] sm:$0xff]  }
 0xe82   :  { %v4891_v26 = vsub.f32 %v9344_v47, %v4884_v27  ;;  %6277 = vmatpush3.bf16.msra.mxu1 %v6647_v16  ;;  %v6648_v47 = vld [vmem:[#allocation55 + $0x10] sm:$0xff]  }
 0xe83   :  { %6278 = vmatprep.subr.bf16.mxu1 %v9517_v5 }
 0xe86   :  { %6279 = vmatpush3.bf16.msra.mxu1 %v6648_v47 }
 0xe87   :  { %6280 = vmatprep.subr.bf16.mxu1 %v9517_v5 }
 0xe8a   :  { %6281 = vmatpush3.bf16.msra.mxu1 %v6649_v38 }
 0xe8b   :  { %6282 = vmatprep.subr.bf16.mxu1 %v9517_v5 }
 0xe8e   :  { %6283 = vmatpush3.bf16.msra.mxu1 %v6650_v36 }
 0xe8f   :  { %6284 = vmatprep.subr.bf16.mxu1 %v9517_v5 }
 0xe92   :  { %6285 = vmatpush3.bf16.msra.mxu1 %v6651_v0 }
 0xe93   :  { %6286 = vmatprep.subr.bf16.mxu1 %v9517_v5 }
 0xe96   :  { %v4973_v51 = vpop.permute.xlu0 %4972  ;;  %6287 = vmatpush3.bf16.msra.mxu1 %v6652_v15 }
 0xe97   :  { %v4980_v30 = vmul.f32 %v4973_v51, %v4891_v26  ;;  %6288 = vmatprep.subr.bf16.mxu1 %v9517_v5 }
 0xe99   :  { %v4989_v1 = vmul.f32 %v5655_v48, %v4980_v30 }
 0xe9a   :  { %v4978_v4 = vpop.permute.xlu0 %4977  ;;  %6289 = vmatpush3.bf16.msra.mxu1 %v6653_v14 }
 0xe9b   :  { %v4981_v9 = vmul.f32 %v4978_v4, %v4892_v49  ;;  %v9385_v63 = vadd.f32 %v5656_v6, %v4989_v1 }
 0xe9d   :  { %v4990_v60 = vmul.f32 %v5655_v48, %v4981_v9 }
 0xe9e   :  { %v9383_v56 = vpop.permute.xlu0 %6466 }
 0xe9f   :  { %v9387_v35 = vadd.f32 %v5656_v6, %v4990_v60  ;;  %v6469_v11 = vunpack.i.h.bf16 %v9383_v56  ;;  %v6468_v59 = vunpack.i.l.bf16 %v9383_v56 }
 0xea1   :  { %v5000_v7 = vpack.c.bf16 %v9387_v35, %v9385_v63  ;;  %v3936_v10 = vmul.f32 %v6469_v11, %v3924_v13  ;;  %v3935_v22 = vmul.f32 %v6468_v59, %v3923_v62 }
 0xea3   :  { %3937 = vst [vmem:[#allocation59] sm:$0xff] %v3935_v22  ;;  %3938 = vst [vmem:[#allocation59 + $0x8] sm:$0xff] %v3936_v10  ;;  %6271 = vmatmul.mubr.bf16.vlgmr.msra.gmra.mrb[84].mxu0 %v5000_v7 }
 0xf76   :  { %v5106_v19 = vpop.f32.mrb[84].mxu0 }
 0xf77   :  { %v5107_v46 = vadd.f32 %v5657_v3, %v5106_v19  ;;  %v6272_v21 = vpop.f32.mrb[85].mxu0 }
 0xf78   :  { %v5109_v31 = vpop.f32.mrb[86].mxu0 }
 0xf79   :  { %v5115_v32 = vmul.f32 0.044715, %v5107_v46  ;;  %v5110_v12 = vadd.f32 %v5657_v3, %v5109_v31  ;;  %v6273_v44 = vpop.f32.mrb[87].mxu0  ;;  %v5113_v24 = vmul.f32 0.5, %v5107_v46 }
 0xf7b   :  { %v5117_v39 = vmul.f32 %v5115_v32, %v5107_v46  ;;  %v5116_v20 = vmul.f32 0.044715, %v5110_v12  ;;  %v5114_v8 = vmul.f32 0.5, %v5110_v12 }
 0xf7d   :  { %v5119_v42 = vmul.f32 %v5117_v39, %v5107_v46  ;;  %v5118_v43 = vmul.f32 %v5116_v20, %v5110_v12 }
 0xf7f   :  { %v5121_v50 = vadd.f32 %v5119_v42, %v5107_v46  ;;  %v5120_v37 = vmul.f32 %v5118_v43, %v5110_v12 }
 0xf81   :  { %v5123_v55 = vmul.f32 0.7978846, %v5121_v50  ;;  %v5122_v33 = vadd.f32 %v5120_v37, %v5110_v12 }
 0xf83   :  { %6990 = vtanh.f32 %v5123_v55  ;;  %v5124_v40 = vmul.f32 0.7978846, %v5122_v33 }
 0xf85   :  { %6992 = vtanh.f32 %v5124_v40 }
 0xf8d   :  { %v6991_v5 = vpop.eup %6990 }
 0xf8e   :  { %v5127_v41 = vadd.f32 1.0, %v6991_v5 }
 0xf8f   :  { %v6993_v52 = vpop.eup %6992 }
 0xf90   :  { %v5128_v53 = vadd.f32 1.0, %v6993_v52  ;;  %v5129_v25 = vmul.f32 %v5127_v41, %v5113_v24 }
 0xf92   :  { %v5130_v57 = vmul.f32 %v5128_v53, %v5114_v8 }
 0xf94   :  { %v5131_v61 = vpack.c.bf16 %v5130_v57, %v5129_v25 }
 0xf96   :  { %6291 = vmatmul.mubr.bf16.vlgmr.msra.gmra.mrb[132].mxu1 %v5131_v61 }
 0xf97   :  { %7775 = shalt.err (!%p7772_p4)
}
 0xf98   :  { %s7776_s8 = scalar_lea.hbm %s8141_s27, 256 }
 0xf99   :  { %p7777_p5 = scmp.ne.s32.totalorder %s8141_s27, %s7776_s8  ;;  %p7780_p6 = scmp.lt.u32.totalorder %s7776_s8, %s8141_s27 }
 0xf9b   :  { %p7782_p7 = pnand %p7780_p6, %p7777_p5 }
 0xf9d   :  { %7785 = shalt.err (!%p7782_p7)
}
 0xf9e   :  { %5273 = dma.vmem_to_hbm [thread:$0]  %s5268_s24, 256, %s8141_s27, [#allocation60], %s7909_s18, %s7909_s18, %s7910_s22  }
 0xf9f   :  { %s7786_s16 = scalar_lea.vmem %s5256_s19, 2048  ;;  %p7791_p9 = scmp.lt.s32.totalorder %s5256_s19, %s5256_s19 }
 0xfa0   :  { %p7787_p8 = scmp.ne.s32.totalorder %s5256_s19, %s7786_s16  ;;  %p7792_p10 = scmp.lt.s32.totalorder %s7786_s16, %s7786_s16 }
 0xfa2   :  { %p7793_p11 = por %p7792_p10, %p7791_p9 }
 0xfa4   :  { %p7794_p12 = pnand %p7793_p11, %p7787_p8 }
 0xfa6   :  { %7797 = shalt.err (!%p7794_p12)
}
 0xfa7   :  { %s7798_s23 = scalar_lea.hbm %s8136_s5, 2048 }
 0xfa8   :  { %p7799_p13 = scmp.ne.s32.totalorder %s8136_s5, %s7798_s23  ;;  %p7802_p0 = scmp.lt.u32.totalorder %s7798_s23, %s8136_s5 }
 0xfaa   :  { %p7804_p1 = pnand %p7802_p0, %p7799_p13 }
 0xfac   :  { %7807 = shalt.err (!%p7804_p1)
}
 0xfad   :  { %5261 = dma.vmem_to_hbm [thread:$0]  %s5256_s19, 2048, %s8136_s5, [#allocation6], %s7909_s18, %s7909_s18, %s7910_s22   ;;  %v5666_v2 = vld [vmem:[#allocation57] ss:$0 sm:$0xff] }
 0xfae   :  { %s7952_s27 = smov [#allocation61]  }
 0xfaf   :  { %s5279_s20 = sshll.u32 %s7952_s27, 4  ;;  %s5280_s20 = int_to_ptr.vmem [resolvable:$true] %s5279_s20 }
 0xfb0   :  { %s7808_s5 = scalar_lea.vmem %s5280_s20, 256  ;;  %p7813_p3 = scmp.lt.s32.totalorder %s5280_s20, %s5280_s20 }
 0xfb1   :  { %p7809_p2 = scmp.ne.s32.totalorder %s5280_s20, %s7808_s5  ;;  %p7814_p4 = scmp.lt.s32.totalorder %s7808_s5, %s7808_s5 }
 0xfb3   :  { %p7815_p5 = por %p7814_p4, %p7813_p3 }
 0xfb5   :  { %p7816_p6 = pnand %p7815_p5, %p7809_p2 }
0x1069   :  { %v5237_v17 = vpop.f32.mrb[132].mxu1 }
0x106a   :  { %v5238_v23 = vadd.f32 %v5666_v2, %v5237_v17  ;;  %v6292_v34 = vpop.f32.mrb[133].mxu1 }
0x106b   :  { %v5240_v58 = vpop.f32.mrb[134].mxu1 }
0x106c   :  { %v5244_v29 = vadd.f32 %v5238_v23, %v9385_v63  ;;  %v5241_v27 = vadd.f32 %v5666_v2, %v5240_v58  ;;  %v6293_v26 = vpop.f32.mrb[135].mxu1 }
0x106e   :  { %v5246_v54 = vmul.f32 %v6468_v59, %v5244_v29  ;;  %v5245_v51 = vadd.f32 %v5241_v27, %v9387_v35 }
0x1070   :  { %5248 = vst [vmem:[#allocation61] sm:$0xff] %v5246_v54  ;;  %v5247_v30 = vmul.f32 %v6469_v11, %v5245_v51 }
0x1072   :  { %5249 = vst [vmem:[#allocation61 + $0x8] sm:$0xff] %v5247_v30 }
0x1073   :  { %7819 = shalt.err (!%p7816_p6)
}
0x1074   :  { %s7820_s26 = scalar_lea.hbm %s8146_s13, 256 }
0x1075   :  { %p7821_p7 = scmp.ne.s32.totalorder %s8146_s13, %s7820_s26  ;;  %p7824_p8 = scmp.lt.u32.totalorder %s7820_s26, %s8146_s13 }
0x1077   :  { %p7826_p9 = pnand %p7824_p8, %p7821_p7 }
0x1079   :  { %7829 = shalt.err (!%p7826_p9)
}
0x107a   :  { %5285 = dma.vmem_to_hbm [thread:$0]  %s5280_s20, 256, %s8146_s13, [#allocation60], %s7909_s18, %s7909_s18, %s7910_s22  }
0x107b   :  { %7866 = dma.done.wait [#allocation6], 2048  }
0x107c   :  { %7867 = vsyncadd [#allocation6], 4294965248 }
0x107d   :  { %7868 = dma.done.wait [#allocation60], 512  }
0x107e   :  { %7869 = vsyncadd [#allocation60], 4294966784 }
0x107f   :  { %5295 = vsyncpa [#allocation5], 1 }
0x1080   :  { %5296 = vsyncpa [#allocation8], 1 }
0x1081   :  { %5297 = vsyncpa [#allocation11], 1 }
0x1082   :  { %5298 = vsyncpa [#allocation14], 1 }
0x1083   :  { %5299 = vsyncpa [#allocation17], 1 }
0x1084   :  { %5300 = vsyncpa [#allocation20], 1 }
0x1085   :  { %5301 = vsyncpa [#allocation23], 1 }
0x1086   :  { %5302 = vsyncpa [#allocation26], 1 }
0x1087   :  { %5303 = vsyncpa [#allocation29], 1 }
0x1088   :  { %5304 = vsyncpa [#allocation32], 1 }
0x1089   :  { %5305 = vsyncpa [#allocation35], 1 }
0x108a   :  { %5306 = vsyncpa [#allocation38], 1 }
0x108b   :  { %5307 = vsyncpa [#allocation41], 1 }
0x108c   :  { %5308 = vsyncpa [#allocation44], 1 }
0x108d   :  { %5309 = vsyncpa [#allocation47], 1 }
0x108e   :  { %5310 = vsyncpa [#allocation50], 1 }
0x108f   :  { %5311 = vsyncpa [#allocation53], 1 }
0x1090   :  { %5312 = vsyncpa [#allocation56], 1 }
0x1091   :  { %5313 = vsyncpa [#allocation6], 1 }
0x1092   :  { %5314 = vsyncpa [#allocation60], 1 }

</bundles_post_ra>
